<compile_context>
chip_gen: v6e
topology: v6e:2x2x1
jax: 0.10.0
libtpu: 0.0.40
codegen_flags: <defaults>
</compile_context>

<pallas_src>
import math

import numpy as np
import jax
import jax.numpy as jnp
from jax import lax
from jax.experimental import pallas as pl
from jax.experimental.pallas import tpu as pltpu

# ----------------------- small synthetic CLIP-ViT config -----------------------
IMG_RES = 224                 # fixed by the module's preprocess()
PATCH = 32
GRID = IMG_RES // PATCH       # 7
N_PATCH = GRID * GRID         # 49
N_TOK = N_PATCH + 1           # 50 (49 patches + CLS)
WIDTH = 64                    # transformer width
HEADS = 4
HEAD_DIM = WIDTH // HEADS
LAYERS = 2
EMBED_DIM = 32                # output image-embedding dim
LN_EPS = 1e-5

CLIP_MEAN = np.array([0.48145466, 0.4578275, 0.40821073], np.float32)
CLIP_STD = np.array([0.26862954, 0.26130258, 0.27577711], np.float32)


# ----------------------- bicubic (align_corners=True) weights ------------------
def _bicubic_matrix(out_size, in_size, a=-0.75):
    """Row matrix W so that (W @ signal) == bicubic resize with
    align_corners=True, antialias=False (a = -0.75 like PyTorch/kornia)."""
    def cubic(t):
        t = abs(t)
        if t <= 1.0:
            return (a + 2.0) * t ** 3 - (a + 3.0) * t ** 2 + 1.0
        if t < 2.0:
            return a * t ** 3 - 5.0 * a * t ** 2 + 8.0 * a * t - 4.0 * a
        return 0.0

    W = np.zeros((out_size, in_size), np.float32)
    for i in range(out_size):
        src = 0.0 if out_size == 1 else i * (in_size - 1) / (out_size - 1)
        f = math.floor(src)
        frac = src - f
        for k in range(-1, 3):
            idx = min(max(f + k, 0), in_size - 1)   # border-replicate clamp
            W[i, idx] += cubic(k - frac)
    return W


# ----------------------- kernel A: fused preprocess + patch embedding ----------
# emb[b, g*WIDTH + d] = sum_{c,h,w} x[b,c,h,w] * M[c*H*W + h*W + w, g*WIDTH + d] + beff
# where M folds (bicubic resize -> (x+1)/2 -> normalize -> 32x32 patch conv).
def _patch_embed_kernel(x_ref, m_ref, b_ref, o_ref):
    x = x_ref[0].astype(jnp.bfloat16)                                    # (1, 3*H*W)
    acc = jnp.dot(x, m_ref[...], preferred_element_type=jnp.float32)    # (1, 49*WIDTH)
    o_ref[0] = acc + b_ref[...]


def patch_embed(x_flat3, m, beff):
    B, _, K = x_flat3.shape
    N = m.shape[1]
    return pl.pallas_call(
        _patch_embed_kernel,
        grid=(B,),
        in_specs=[
            pl.BlockSpec((1, 1, K), lambda b: (b, 0, 0)),
            pl.BlockSpec((K, N), lambda b: (0, 0)),        # resident across grid
            pl.BlockSpec((1, N), lambda b: (0, 0)),
        ],
        out_specs=pl.BlockSpec((1, 1, N), lambda b: (b, 0, 0)),
        out_shape=jax.ShapeDtypeStruct((B, 1, N), jnp.float32),
        compiler_params=pltpu.CompilerParams(dimension_semantics=("parallel",)),
    )(x_flat3, m, beff)


# ----------------------- kernel B: fused CLIP ViT encoder -----------------------
# One invocation per image: [CLS; patches] + pos -> ln_pre -> LAYERS residual
# attention blocks (MHA + QuickGELU MLP) -> ln_post(CLS) -> projection.
def _encoder_kernel(emb_ref, cls_ref, pos_ref, lnpre_g_ref, lnpre_b_ref,
                    ln1_g_ref, ln1_b_ref, wqkv_ref, bqkv_ref, wo_ref, bo_ref,
                    ln2_g_ref, ln2_b_ref, w1_ref, b1_ref, w2_ref, b2_ref,
                    lnpost_g_ref, lnpost_b_ref, proj_ref, o_ref, tok_ref):
    D = WIDTH
    dh = HEAD_DIM
    scl = 1.0 / math.sqrt(dh)

    def ln(v, g, b):
        mu = jnp.mean(v, axis=-1, keepdims=True)
        vc = v - mu
        var = jnp.mean(vc * vc, axis=-1, keepdims=True)
        return vc * lax.rsqrt(var + LN_EPS) * g + b

    # assemble tokens in VMEM scratch (avoids an in-kernel concatenate)
    tok_ref[0:1, :] = cls_ref[...] + pos_ref[0:1, :]
    tok_ref[1:, :] = emb_ref[0] + pos_ref[1:, :]
    x = ln(tok_ref[...], lnpre_g_ref[...], lnpre_b_ref[...])            # (50, 64) f32

    for l in range(LAYERS):                                              # static unroll
        # ---------------- multi-head self attention ----------------
        h = ln(x, ln1_g_ref[l], ln1_b_ref[l])
        w_qkv = wqkv_ref[l]                                              # (D, 3D) bf16
        w_o = wo_ref[l]                                                  # (D, D)  bf16
        qkv = jnp.dot(h.astype(jnp.bfloat16), w_qkv,
                      preferred_element_type=jnp.float32) + bqkv_ref[l]  # (50, 3D) f32
        attn = jnp.zeros((N_TOK, D), jnp.float32)
        for hh in range(HEADS):                                          # static unroll
            q = (qkv[:, hh * dh:(hh + 1) * dh] * scl).astype(jnp.bfloat16)
            k = qkv[:, D + hh * dh:D + (hh + 1) * dh].astype(jnp.bfloat16)
            v = qkv[:, 2 * D + hh * dh:2 * D + (hh + 1) * dh]
            s = lax.dot_general(q, k, (((1,), (1,)), ((), ())),
                                preferred_element_type=jnp.float32)      # (50, 50)
            s = s - jnp.max(s, axis=-1, keepdims=True)                   # softmax in f32
            e = jnp.exp(s)
            p = e * pl.reciprocal(jnp.sum(e, axis=-1, keepdims=True), approx=True)
            o_h = jnp.dot(p.astype(jnp.bfloat16), v.astype(jnp.bfloat16),
                          preferred_element_type=jnp.float32)            # (50, dh)
            # accumulate through this head's slice of the output projection
            attn = attn + jnp.dot(o_h.astype(jnp.bfloat16),
                                  w_o[hh * dh:(hh + 1) * dh, :],
                                  preferred_element_type=jnp.float32)
        x = x + attn + bo_ref[l]

        # ---------------- MLP with QuickGELU (CLIP) ----------------
        h2 = ln(x, ln2_g_ref[l], ln2_b_ref[l])
        m = jnp.dot(h2.astype(jnp.bfloat16), w1_ref[l],
                    preferred_element_type=jnp.float32) + b1_ref[l]      # (50, 4D)
        m = m * jax.nn.sigmoid(1.702 * m)
        x = x + jnp.dot(m.astype(jnp.bfloat16), w2_ref[l],
                        preferred_element_type=jnp.float32) + b2_ref[l]

    # ln_post on CLS token + projection (no bias in CLIP proj)
    c0 = ln(x[0:1, :], lnpost_g_ref[...], lnpost_b_ref[...])             # (1, 64)
    o_ref[0] = jnp.dot(c0.astype(jnp.bfloat16), proj_ref[...],
                       preferred_element_type=jnp.float32).astype(o_ref.dtype)


def encode(emb, fp):
    B = emb.shape[0]

    def fixed(a):
        shape = a.shape
        return pl.BlockSpec(shape, lambda b, _z=(0,) * len(shape): _z)

    out = pl.pallas_call(
        _encoder_kernel,
        grid=(B,),
        in_specs=[
            pl.BlockSpec((1, N_PATCH, WIDTH), lambda b: (b, 0, 0)),
            fixed(fp["cls"]), fixed(fp["pos"]),
            fixed(fp["ln_pre_g"]), fixed(fp["ln_pre_b"]),
            fixed(fp["ln1_g"]), fixed(fp["ln1_b"]),
            fixed(fp["wqkv"]), fixed(fp["bqkv"]),
            fixed(fp["wo"]), fixed(fp["bo"]),
            fixed(fp["ln2_g"]), fixed(fp["ln2_b"]),
            fixed(fp["w1"]), fixed(fp["b1"]),
            fixed(fp["w2"]), fixed(fp["b2"]),
            fixed(fp["ln_post_g"]), fixed(fp["ln_post_b"]),
            fixed(fp["proj"]),
        ],
        out_specs=pl.BlockSpec((1, 1, EMBED_DIM), lambda b: (b, 0, 0)),
        out_shape=jax.ShapeDtypeStruct((B, 1, EMBED_DIM), jnp.float32),
        scratch_shapes=[pltpu.VMEM((N_TOK, WIDTH), jnp.float32)],
        compiler_params=pltpu.CompilerParams(dimension_semantics=("parallel",)),
    )(emb, fp["cls"], fp["pos"], fp["ln_pre_g"], fp["ln_pre_b"],
      fp["ln1_g"], fp["ln1_b"], fp["wqkv"], fp["bqkv"], fp["wo"], fp["bo"],
      fp["ln2_g"], fp["ln2_b"], fp["w1"], fp["b1"], fp["w2"], fp["b2"],
      fp["ln_post_g"], fp["ln_post_b"], fp["proj"])
    return out.reshape(B, EMBED_DIM)


# ----------------------- deterministic synthetic weights ------------------------
def init_params(key):
    n_keys = 4 + 4 * LAYERS
    keys = list(jax.random.split(key, n_keys))
    nxt = iter(keys).__next__

    def nrm(shape, std=0.02):
        return std * jax.random.normal(nxt(), shape, jnp.float32)

    p = {}
    # conv1: Conv2d(3, WIDTH, kernel=stride=PATCH, bias=False)
    p["conv_w4"] = nrm((WIDTH, 3, PATCH, PATCH))        # (d, c, py, px)
    p["cls"] = nrm((WIDTH,))
    p["pos"] = nrm((N_TOK, WIDTH))
    p["proj"] = nrm((WIDTH, EMBED_DIM))
    p["ln_pre_g"] = jnp.ones((1, WIDTH), jnp.float32)
    p["ln_pre_b"] = jnp.zeros((1, WIDTH), jnp.float32)
    p["ln_post_g"] = jnp.ones((1, WIDTH), jnp.float32)
    p["ln_post_b"] = jnp.zeros((1, WIDTH), jnp.float32)
    layers = []
    for _ in range(LAYERS):
        layers.append(dict(
            ln1_g=jnp.ones((1, WIDTH), jnp.float32),
            ln1_b=jnp.zeros((1, WIDTH), jnp.float32),
            wqkv=nrm((WIDTH, 3 * WIDTH)),
            bqkv=jnp.zeros((1, 3 * WIDTH), jnp.float32),
            wo=nrm((WIDTH, WIDTH)),
            bo=jnp.zeros((1, WIDTH), jnp.float32),
            ln2_g=jnp.ones((1, WIDTH), jnp.float32),
            ln2_b=jnp.zeros((1, WIDTH), jnp.float32),
            w1=nrm((WIDTH, 4 * WIDTH)),
            b1=jnp.zeros((1, 4 * WIDTH), jnp.float32),
            w2=nrm((4 * WIDTH, WIDTH)),
            b2=jnp.zeros((1, WIDTH), jnp.float32),
        ))
    p["layers"] = layers
    return p


# ----------------------- one-time weight preparation (folding) ------------------
def _fold_patch_embed(conv_w4, H, W):
    """Fold bicubic resize (align_corners=True), (x+1)/2, CLIP normalization and
    the stride-32 patch conv into a single (3*H*W, 49*WIDTH) matrix + bias.
    Purely weight-side compute (independent of the input image); mathematically
    identical to running the four stages separately."""
    wh = jnp.asarray(_bicubic_matrix(IMG_RES, H)).reshape(GRID, PATCH, H)   # [gy,py,h]
    ww = jnp.asarray(_bicubic_matrix(IMG_RES, W)).reshape(GRID, PATCH, W)   # [gx,px,w]
    scale = jnp.asarray(0.5 / CLIP_STD)                  # (3,)  from ((r+1)/2 - mean)/std
    shift = jnp.asarray((0.5 - CLIP_MEAN) / CLIP_STD)    # (3,)

    t = jnp.einsum('dcpq,aph->dcqah', conv_w4, wh)                   # (D,3,P,GRID,H)
    m = jnp.einsum('dcqah,bqw->chwabd', t, ww)                        # (3,H,W,GRID,GRID,D)
    m = m * scale[:, None, None, None, None, None]
    M = m.reshape(3 * H * W, N_PATCH * WIDTH)                         # (3HW, 49*D)

    beff = jnp.einsum('dcpq,c->d', conv_w4, shift)                    # (D,)
    beff = jnp.tile(beff, (N_PATCH,)).reshape(1, N_PATCH * WIDTH)
    return M.astype(jnp.bfloat16), beff.astype(jnp.float32)


def prepare_params(params, H, W):
    """One-time weight preprocessing: patch-embed fold, per-layer weight stacking,
    and bf16 cast of all matmul weights (f32 accumulation happens in-kernel)."""
    M, beff = _fold_patch_embed(params["conv_w4"], H, W)
    L = params["layers"]

    def stack(name):
        return jnp.stack([lp[name] for lp in L], axis=0)

    return dict(
        patch_M=M, patch_b=beff,
        cls=params["cls"].reshape(1, WIDTH),
        pos=params["pos"],
        ln_pre_g=params["ln_pre_g"], ln_pre_b=params["ln_pre_b"],
        ln1_g=stack("ln1_g"), ln1_b=stack("ln1_b"),
        wqkv=stack("wqkv").astype(jnp.bfloat16), bqkv=stack("bqkv"),
        wo=stack("wo").astype(jnp.bfloat16), bo=stack("bo"),
        ln2_g=stack("ln2_g"), ln2_b=stack("ln2_b"),
        w1=stack("w1").astype(jnp.bfloat16), b1=stack("b1"),
        w2=stack("w2").astype(jnp.bfloat16), b2=stack("b2"),
        ln_post_g=params["ln_post_g"], ln_post_b=params["ln_post_b"],
        proj=params["proj"].astype(jnp.bfloat16),
    )


# ----------------------- full forward --------------------------------------------
def frozen_clip_image_embedder(x, fp):
    """x: (B, 3, H, W) float32 in [-1, 1]  ->  (B, EMBED_DIM) float32."""
    B, C, H, W = x.shape
    assert C == 3 and fp["patch_M"].shape[0] == C * H * W
    x_flat = x.reshape(B, 1, C * H * W)                 # contiguous, free reshape
    emb = patch_embed(x_flat, fp["patch_M"], fp["patch_b"])   # (B, 1, 49*WIDTH)
    emb = emb.reshape(B, N_PATCH, WIDTH)                # contiguous, free reshape
    return encode(emb, fp)                              # (B, EMBED_DIM)


# TODO(synk): antialias=True branch of kornia.resize (low-pass prefilter) is not
# implemented; the module defaults to antialias=False which is what this matches.

if __name__ == "__main__":
    key = jax.random.PRNGKey(0)
    pkey, xkey = jax.random.split(key)
    params = init_params(pkey)
    x = jax.random.uniform(xkey, (2, 3, 16, 16), jnp.float32, minval=-1.0, maxval=1.0)

    fparams = prepare_params(params, 16, 16)            # one-time weight prep
    fwd = jax.jit(frozen_clip_image_embedder)
    out = jax.block_until_ready(fwd(x, fparams))

    assert out.shape == (2, EMBED_DIM), out.shape
    assert bool(jnp.all(jnp.isfinite(out)))
    print("KERNEL_OK")
</pallas_src>

<mosaic_0001>
module attributes {stable_mosaic.version = 11 : i64} {
  func.func @_patch_embed_kernel(%arg0: i32, %arg1: memref<1x1x768xf32, #tpu.memory_space<vmem>>, %arg2: memref<768x3136xbf16, #tpu.memory_space<vmem>>, %arg3: memref<1x3136xf32, #tpu.memory_space<vmem>>, %arg4: memref<1x1x3136xf32, #tpu.memory_space<vmem>>) attributes {dimension_semantics = [#tpu.dimension_semantics<parallel>], iteration_bounds = array<i64: 2>, scalar_prefetch = 0 : i64, scratch_operands = 0 : i64, tpu.core_type = #tpu.core_type<tc>, window_params = [{transform_indices = @transform_0, window_bounds = array<i64: 1, 1, 768>}, {pipeline_mode = #tpu.pipeline_mode<synchronous>, transform_indices = @transform_1, window_bounds = array<i64: 768, 3136>}, {pipeline_mode = #tpu.pipeline_mode<synchronous>, transform_indices = @transform_2, window_bounds = array<i64: 1, 3136>}, {transform_indices = @transform_3, window_bounds = array<i64: 1, 1, 3136>}]} {
    %c0 = arith.constant 0 : index
    %c0_0 = arith.constant 0 : index
    %c0_1 = arith.constant 0 : index
    %0 = vector.load %arg1[%c0, %c0_0, %c0_1] : memref<1x1x768xf32, #tpu.memory_space<vmem>>, vector<1x1x768xf32>
    %1 = vector.shape_cast %0 : vector<1x1x768xf32> to vector<1x768xf32>
    %2 = arith.truncf %1 : vector<1x768xf32> to vector<1x768xbf16>
    %c0_2 = arith.constant 0 : index
    %c0_3 = arith.constant 0 : index
    %3 = vector.load %arg2[%c0_2, %c0_3] : memref<768x3136xbf16, #tpu.memory_space<vmem>>, vector<768x3136xbf16>
    %cst = arith.constant dense<0.000000e+00> : vector<1x3136xf32>
    %4 = tpu.matmul %2, %3, %cst {dimension_numbers = #tpu.dot_dimension_numbers<[1], [0], [0], [1], [0, 0, 1, 1], [], []>} : vector<1x768xbf16>, vector<768x3136xbf16>, vector<1x3136xf32> -> vector<1x3136xf32>
    %c0_4 = arith.constant 0 : index
    %c0_5 = arith.constant 0 : index
    %5 = vector.load %arg3[%c0_4, %c0_5] : memref<1x3136xf32, #tpu.memory_space<vmem>>, vector<1x3136xf32>
    %6 = arith.addf %4, %5 : vector<1x3136xf32>
    %c0_6 = arith.constant 0 : index
    %c0_7 = arith.constant 0 : index
    %c0_8 = arith.constant 0 : index
    %7 = vector.load %arg4[%c0_6, %c0_7, %c0_8] : memref<1x1x3136xf32, #tpu.memory_space<vmem>>, vector<1x1x3136xf32>
    %8 = vector.shape_cast %7 : vector<1x1x3136xf32> to vector<1x3136xf32>
    %9 = vector.shape_cast %6 : vector<1x3136xf32> to vector<1x1x3136xf32>
    tpu.vector_store %arg4[%c0_6, %c0_7, %c0_8], %9 {strides = array<i32>} : memref<1x1x3136xf32, #tpu.memory_space<vmem>>, vector<1x1x3136xf32>,
    return
  }
  func.func @transform_0(%arg0: i32) -> (i32, i32, i32) {
    %c0_i32 = arith.constant 0 : i32
    %c0_i32_0 = arith.constant 0 : i32
    %c0_i32_1 = arith.constant 0 : i32
    return %arg0, %c0_i32, %c0_i32_0 : i32, i32, i32
  }
  func.func @transform_1(%arg0: i32) -> (i32, i32) {
    %c0_i32 = arith.constant 0 : i32
    %c0_i32_0 = arith.constant 0 : i32
    %c0_i32_1 = arith.constant 0 : i32
    return %c0_i32, %c0_i32_0 : i32, i32
  }
  func.func @transform_2(%arg0: i32) -> (i32, i32) {
    %c0_i32 = arith.constant 0 : i32
    %c0_i32_0 = arith.constant 0 : i32
    %c0_i32_1 = arith.constant 0 : i32
    return %c0_i32, %c0_i32_0 : i32, i32
  }
  func.func @transform_3(%arg0: i32) -> (i32, i32, i32) {
    %c0_i32 = arith.constant 0 : i32
    %c0_i32_0 = arith.constant 0 : i32
    %c0_i32_1 = arith.constant 0 : i32
    return %arg0, %c0_i32, %c0_i32_0 : i32, i32, i32
  }
}

module attributes {stable_mosaic.version = 11 : i64} {
  func.func @_encoder_kernel(%arg0: i32, %arg1: memref<1x49x64xf32, #tpu.memory_space<vmem>>, %arg2: memref<1x64xf32, #tpu.memory_space<vmem>>, %arg3: memref<50x64xf32, #tpu.memory_space<vmem>>, %arg4: memref<1x64xf32, #tpu.memory_space<vmem>>, %arg5: memref<1x64xf32, #tpu.memory_space<vmem>>, %arg6: memref<2x1x64xf32, #tpu.memory_space<vmem>>, %arg7: memref<2x1x64xf32, #tpu.memory_space<vmem>>, %arg8: memref<2x64x192xbf16, #tpu.memory_space<vmem>>, %arg9: memref<2x1x192xf32, #tpu.memory_space<vmem>>, %arg10: memref<2x64x64xbf16, #tpu.memory_space<vmem>>, %arg11: memref<2x1x64xf32, #tpu.memory_space<vmem>>, %arg12: memref<2x1x64xf32, #tpu.memory_space<vmem>>, %arg13: memref<2x1x64xf32, #tpu.memory_space<vmem>>, %arg14: memref<2x64x256xbf16, #tpu.memory_space<vmem>>, %arg15: memref<2x1x256xf32, #tpu.memory_space<vmem>>, %arg16: memref<2x256x64xbf16, #tpu.memory_space<vmem>>, %arg17: memref<2x1x64xf32, #tpu.memory_space<vmem>>, %arg18: memref<1x64xf32, #tpu.memory_space<vmem>>, %arg19: memref<1x64xf32, #tpu.memory_space<vmem>>, %arg20: memref<64x32xbf16, #tpu.memory_space<vmem>>, %arg21: memref<1x1x32xf32, #tpu.memory_space<vmem>>, %arg22: memref<50x64xf32, #tpu.memory_space<vmem>>) attributes {dimension_semantics = [#tpu.dimension_semantics<parallel>], iteration_bounds = array<i64: 2>, scalar_prefetch = 0 : i64, scratch_operands = 1 : i64, tpu.core_type = #tpu.core_type<tc>, window_params = [{transform_indices = @transform_0, window_bounds = array<i64: 1, 49, 64>}, {pipeline_mode = #tpu.pipeline_mode<synchronous>, transform_indices = @transform_1, window_bounds = array<i64: 1, 64>}, {pipeline_mode = #tpu.pipeline_mode<synchronous>, transform_indices = @transform_2, window_bounds = array<i64: 50, 64>}, {pipeline_mode = #tpu.pipeline_mode<synchronous>, transform_indices = @transform_3, window_bounds = array<i64: 1, 64>}, {pipeline_mode = #tpu.pipeline_mode<synchronous>, transform_indices = @transform_4, window_bounds = array<i64: 1, 64>}, {pipeline_mode = #tpu.pipeline_mode<synchronous>, transform_indices = @transform_5, window_bounds = array<i64: 2, 1, 64>}, {pipeline_mode = #tpu.pipeline_mode<synchronous>, transform_indices = @transform_6, window_bounds = array<i64: 2, 1, 64>}, {pipeline_mode = #tpu.pipeline_mode<synchronous>, transform_indices = @transform_7, window_bounds = array<i64: 2, 64, 192>}, {pipeline_mode = #tpu.pipeline_mode<synchronous>, transform_indices = @transform_8, window_bounds = array<i64: 2, 1, 192>}, {pipeline_mode = #tpu.pipeline_mode<synchronous>, transform_indices = @transform_9, window_bounds = array<i64: 2, 64, 64>}, {pipeline_mode = #tpu.pipeline_mode<synchronous>, transform_indices = @transform_10, window_bounds = array<i64: 2, 1, 64>}, {pipeline_mode = #tpu.pipeline_mode<synchronous>, transform_indices = @transform_11, window_bounds = array<i64: 2, 1, 64>}, {pipeline_mode = #tpu.pipeline_mode<synchronous>, transform_indices = @transform_12, window_bounds = array<i64: 2, 1, 64>}, {pipeline_mode = #tpu.pipeline_mode<synchronous>, transform_indices = @transform_13, window_bounds = array<i64: 2, 64, 256>}, {pipeline_mode = #tpu.pipeline_mode<synchronous>, transform_indices = @transform_14, window_bounds = array<i64: 2, 1, 256>}, {pipeline_mode = #tpu.pipeline_mode<synchronous>, transform_indices = @transform_15, window_bounds = array<i64: 2, 256, 64>}, {pipeline_mode = #tpu.pipeline_mode<synchronous>, transform_indices = @transform_16, window_bounds = array<i64: 2, 1, 64>}, {pipeline_mode = #tpu.pipeline_mode<synchronous>, transform_indices = @transform_17, window_bounds = array<i64: 1, 64>}, {pipeline_mode = #tpu.pipeline_mode<synchronous>, transform_indices = @transform_18, window_bounds = array<i64: 1, 64>}, {pipeline_mode = #tpu.pipeline_mode<synchronous>, transform_indices = @transform_19, window_bounds = array<i64: 64, 32>}, {transform_indices = @transform_20, window_bounds = array<i64: 1, 1, 32>}]} {
    %c0 = arith.constant 0 : index
    %c0_0 = arith.constant 0 : index
    %0 = vector.load %arg2[%c0, %c0_0] : memref<1x64xf32, #tpu.memory_space<vmem>>, vector<1x64xf32>
    %c0_1 = arith.constant 0 : index
    %c0_2 = arith.constant 0 : index
    %1 = vector.load %arg3[%c0_1, %c0_2] : memref<50x64xf32, #tpu.memory_space<vmem>>, vector<1x64xf32>
    %2 = arith.addf %0, %1 : vector<1x64xf32>
    %c0_3 = arith.constant 0 : index
    %c0_4 = arith.constant 0 : index
    %3 = vector.load %arg22[%c0_3, %c0_4] : memref<50x64xf32, #tpu.memory_space<vmem>>, vector<1x64xf32>
    tpu.vector_store %arg22[%c0_3, %c0_4], %2 {strides = array<i32>} : memref<50x64xf32, #tpu.memory_space<vmem>>, vector<1x64xf32>,
    %c0_5 = arith.constant 0 : index
    %c0_6 = arith.constant 0 : index
    %c0_7 = arith.constant 0 : index
    %4 = vector.load %arg1[%c0_5, %c0_6, %c0_7] : memref<1x49x64xf32, #tpu.memory_space<vmem>>, vector<1x49x64xf32>
    %5 = vector.shape_cast %4 : vector<1x49x64xf32> to vector<49x64xf32>
    %c1 = arith.constant 1 : index
    %c0_8 = arith.constant 0 : index
    %6 = vector.load %arg3[%c1, %c0_8] : memref<50x64xf32, #tpu.memory_space<vmem>>, vector<49x64xf32>
    %7 = arith.addf %5, %6 : vector<49x64xf32>
    %c1_9 = arith.constant 1 : index
    %c0_10 = arith.constant 0 : index
    %8 = vector.load %arg22[%c1_9, %c0_10] : memref<50x64xf32, #tpu.memory_space<vmem>>, vector<49x64xf32>
    tpu.vector_store %arg22[%c1_9, %c0_10], %7 {strides = array<i32>} : memref<50x64xf32, #tpu.memory_space<vmem>>, vector<49x64xf32>,
    %c0_11 = arith.constant 0 : index
    %c0_12 = arith.constant 0 : index
    %9 = vector.load %arg22[%c0_11, %c0_12] : memref<50x64xf32, #tpu.memory_space<vmem>>, vector<50x64xf32>
    %c0_13 = arith.constant 0 : index
    %c0_14 = arith.constant 0 : index
    %10 = vector.load %arg4[%c0_13, %c0_14] : memref<1x64xf32, #tpu.memory_space<vmem>>, vector<1x64xf32>
    %c0_15 = arith.constant 0 : index
    %c0_16 = arith.constant 0 : index
    %11 = vector.load %arg5[%c0_15, %c0_16] : memref<1x64xf32, #tpu.memory_space<vmem>>, vector<1x64xf32>
    %cst = arith.constant dense<0.000000e+00> : vector<50xf32>
    %12 = vector.multi_reduction <add>, %9, %cst [1] : vector<50x64xf32> to vector<50xf32>
    %13 = vector.shape_cast %12 : vector<50xf32> to vector<50x1xf32>
    %cst_17 = arith.constant 6.400000e+01 : f32
    %14 = vector.broadcast %cst_17 : f32 to vector<50x1xf32>
    %15 = arith.divf %13, %14 : vector<50x1xf32>
    %16 = vector.broadcast %15 : vector<50x1xf32> to vector<50x64xf32>
    %17 = arith.subf %9, %16 : vector<50x64xf32>
    %18 = arith.mulf %17, %17 : vector<50x64xf32>
    %cst_18 = arith.constant dense<0.000000e+00> : vector<50xf32>
    %19 = vector.multi_reduction <add>, %18, %cst_18 [1] : vector<50x64xf32> to vector<50xf32>
    %20 = vector.shape_cast %19 : vector<50xf32> to vector<50x1xf32>
    %cst_19 = arith.constant 6.400000e+01 : f32
    %21 = vector.broadcast %cst_19 : f32 to vector<50x1xf32>
    %22 = arith.divf %20, %21 : vector<50x1xf32>
    %cst_20 = arith.constant 9.99999974E-6 : f32
    %23 = vector.broadcast %cst_20 : f32 to vector<50x1xf32>
    %24 = arith.addf %22, %23 : vector<50x1xf32>
    %25 = math.rsqrt %24 : vector<50x1xf32>
    %26 = vector.broadcast %25 : vector<50x1xf32> to vector<50x64xf32>
    %27 = arith.mulf %17, %26 : vector<50x64xf32>
    %28 = vector.broadcast %10 : vector<1x64xf32> to vector<50x64xf32>
    %29 = arith.mulf %27, %28 : vector<50x64xf32>
    %30 = vector.broadcast %11 : vector<1x64xf32> to vector<50x64xf32>
    %31 = arith.addf %29, %30 : vector<50x64xf32>
    %c0_21 = arith.constant 0 : index
    %c0_22 = arith.constant 0 : index
    %c0_23 = arith.constant 0 : index
    %32 = vector.load %arg6[%c0_21, %c0_22, %c0_23] : memref<2x1x64xf32, #tpu.memory_space<vmem>>, vector<1x1x64xf32>
    %33 = vector.shape_cast %32 : vector<1x1x64xf32> to vector<1x64xf32>
    %c0_24 = arith.constant 0 : index
    %c0_25 = arith.constant 0 : index
    %c0_26 = arith.constant 0 : index
    %34 = vector.load %arg7[%c0_24, %c0_25, %c0_26] : memref<2x1x64xf32, #tpu.memory_space<vmem>>, vector<1x1x64xf32>
    %35 = vector.shape_cast %34 : vector<1x1x64xf32> to vector<1x64xf32>
    %cst_27 = arith.constant dense<0.000000e+00> : vector<50xf32>
    %36 = vector.multi_reduction <add>, %31, %cst_27 [1] : vector<50x64xf32> to vector<50xf32>
    %37 = vector.shape_cast %36 : vector<50xf32> to vector<50x1xf32>
    %cst_28 = arith.constant 6.400000e+01 : f32
    %38 = vector.broadcast %cst_28 : f32 to vector<50x1xf32>
    %39 = arith.divf %37, %38 : vector<50x1xf32>
    %40 = vector.broadcast %39 : vector<50x1xf32> to vector<50x64xf32>
    %41 = arith.subf %31, %40 : vector<50x64xf32>
    %42 = arith.mulf %41, %41 : vector<50x64xf32>
    %cst_29 = arith.constant dense<0.000000e+00> : vector<50xf32>
    %43 = vector.multi_reduction <add>, %42, %cst_29 [1] : vector<50x64xf32> to vector<50xf32>
    %44 = vector.shape_cast %43 : vector<50xf32> to vector<50x1xf32>
    %cst_30 = arith.constant 6.400000e+01 : f32
    %45 = vector.broadcast %cst_30 : f32 to vector<50x1xf32>
    %46 = arith.divf %44, %45 : vector<50x1xf32>
    %cst_31 = arith.constant 9.99999974E-6 : f32
    %47 = vector.broadcast %cst_31 : f32 to vector<50x1xf32>
    %48 = arith.addf %46, %47 : vector<50x1xf32>
    %49 = math.rsqrt %48 : vector<50x1xf32>
    %50 = vector.broadcast %49 : vector<50x1xf32> to vector<50x64xf32>
    %51 = arith.mulf %41, %50 : vector<50x64xf32>
    %52 = vector.broadcast %33 : vector<1x64xf32> to vector<50x64xf32>
    %53 = arith.mulf %51, %52 : vector<50x64xf32>
    %54 = vector.broadcast %35 : vector<1x64xf32> to vector<50x64xf32>
    %55 = arith.addf %53, %54 : vector<50x64xf32>
    %c0_32 = arith.constant 0 : index
    %c0_33 = arith.constant 0 : index
    %c0_34 = arith.constant 0 : index
    %56 = vector.load %arg8[%c0_32, %c0_33, %c0_34] : memref<2x64x192xbf16, #tpu.memory_space<vmem>>, vector<1x64x192xbf16>
    %57 = vector.shape_cast %56 : vector<1x64x192xbf16> to vector<64x192xbf16>
    %c0_35 = arith.constant 0 : index
    %c0_36 = arith.constant 0 : index
    %c0_37 = arith.constant 0 : index
    %58 = vector.load %arg10[%c0_35, %c0_36, %c0_37] : memref<2x64x64xbf16, #tpu.memory_space<vmem>>, vector<1x64x64xbf16>
    %59 = vector.shape_cast %58 : vector<1x64x64xbf16> to vector<64x64xbf16>
    %60 = arith.truncf %55 : vector<50x64xf32> to vector<50x64xbf16>
    %cst_38 = arith.constant dense<0.000000e+00> : vector<50x192xf32>
    %61 = tpu.matmul %60, %57, %cst_38 {dimension_numbers = #tpu.dot_dimension_numbers<[1], [0], [0], [1], [0, 0, 1, 1], [], []>} : vector<50x64xbf16>, vector<64x192xbf16>, vector<50x192xf32> -> vector<50x192xf32>
    %c0_39 = arith.constant 0 : index
    %c0_40 = arith.constant 0 : index
    %c0_41 = arith.constant 0 : index
    %62 = vector.load %arg9[%c0_39, %c0_40, %c0_41] : memref<2x1x192xf32, #tpu.memory_space<vmem>>, vector<1x1x192xf32>
    %63 = vector.shape_cast %62 : vector<1x1x192xf32> to vector<1x192xf32>
    %64 = vector.broadcast %63 : vector<1x192xf32> to vector<50x192xf32>
    %65 = arith.addf %61, %64 : vector<50x192xf32>
    %cst_42 = arith.constant 0.000000e+00 : f32
    %66 = vector.broadcast %cst_42 : f32 to vector<50x64xf32>
    %67 = vector.extract_strided_slice %65 {offsets = [0, 0], sizes = [50, 16], strides = [1, 1]} : vector<50x192xf32> to vector<50x16xf32>
    %cst_43 = arith.constant 2.500000e-01 : f32
    %68 = vector.broadcast %cst_43 : f32 to vector<50x16xf32>
    %69 = arith.mulf %67, %68 : vector<50x16xf32>
    %70 = arith.truncf %69 : vector<50x16xf32> to vector<50x16xbf16>
    %71 = vector.extract_strided_slice %65 {offsets = [0, 64], sizes = [50, 16], strides = [1, 1]} : vector<50x192xf32> to vector<50x16xf32>
    %72 = arith.truncf %71 : vector<50x16xf32> to vector<50x16xbf16>
    %73 = vector.extract_strided_slice %65 {offsets = [0, 128], sizes = [50, 16], strides = [1, 1]} : vector<50x192xf32> to vector<50x16xf32>
    %cst_44 = arith.constant dense<0.000000e+00> : vector<50x50xf32>
    %74 = tpu.matmul %70, %72, %cst_44 {dimension_numbers = #tpu.dot_dimension_numbers<[1], [1], [0], [0], [0, 0, 1, 0], [], []>} : vector<50x16xbf16>, vector<50x16xbf16>, vector<50x50xf32> -> vector<50x50xf32>
    %cst_45 = arith.constant dense<0xFF800000> : vector<50xf32>
    %75 = vector.multi_reduction <maximumf>, %74, %cst_45 [1] : vector<50x50xf32> to vector<50xf32>
    %76 = vector.shape_cast %75 : vector<50xf32> to vector<50x1xf32>
    %77 = vector.broadcast %76 : vector<50x1xf32> to vector<50x50xf32>
    %78 = arith.subf %74, %77 : vector<50x50xf32>
    %79 = math.exp %78 : vector<50x50xf32>
    %cst_46 = arith.constant dense<0.000000e+00> : vector<50xf32>
    %80 = vector.multi_reduction <add>, %79, %cst_46 [1] : vector<50x50xf32> to vector<50xf32>
    %81 = vector.shape_cast %80 : vector<50xf32> to vector<50x1xf32>
    %82 = tpu.reciprocal %81 {approx = true} : vector<50x1xf32> -> vector<50x1xf32>
    %83 = vector.broadcast %82 : vector<50x1xf32> to vector<50x50xf32>
    %84 = arith.mulf %79, %83 : vector<50x50xf32>
    %85 = arith.truncf %84 : vector<50x50xf32> to vector<50x50xbf16>
    %86 = arith.truncf %73 : vector<50x16xf32> to vector<50x16xbf16>
    %cst_47 = arith.constant dense<0.000000e+00> : vector<50x16xf32>
    %87 = tpu.matmul %85, %86, %cst_47 {dimension_numbers = #tpu.dot_dimension_numbers<[1], [0], [0], [1], [0, 0, 1, 1], [], []>} : vector<50x50xbf16>, vector<50x16xbf16>, vector<50x16xf32> -> vector<50x16xf32>
    %88 = arith.truncf %87 : vector<50x16xf32> to vector<50x16xbf16>
    %89 = vector.extract_strided_slice %59 {offsets = [0, 0], sizes = [16, 64], strides = [1, 1]} : vector<64x64xbf16> to vector<16x64xbf16>
    %cst_48 = arith.constant dense<0.000000e+00> : vector<50x64xf32>
    %90 = tpu.matmul %88, %89, %cst_48 {dimension_numbers = #tpu.dot_dimension_numbers<[1], [0], [0], [1], [0, 0, 1, 1], [], []>} : vector<50x16xbf16>, vector<16x64xbf16>, vector<50x64xf32> -> vector<50x64xf32>
    %91 = arith.addf %66, %90 : vector<50x64xf32>
    %92 = vector.extract_strided_slice %65 {offsets = [0, 16], sizes = [50, 16], strides = [1, 1]} : vector<50x192xf32> to vector<50x16xf32>
    %cst_49 = arith.constant 2.500000e-01 : f32
    %93 = vector.broadcast %cst_49 : f32 to vector<50x16xf32>
    %94 = arith.mulf %92, %93 : vector<50x16xf32>
    %95 = arith.truncf %94 : vector<50x16xf32> to vector<50x16xbf16>
    %96 = vector.extract_strided_slice %65 {offsets = [0, 80], sizes = [50, 16], strides = [1, 1]} : vector<50x192xf32> to vector<50x16xf32>
    %97 = arith.truncf %96 : vector<50x16xf32> to vector<50x16xbf16>
    %98 = vector.extract_strided_slice %65 {offsets = [0, 144], sizes = [50, 16], strides = [1, 1]} : vector<50x192xf32> to vector<50x16xf32>
    %cst_50 = arith.constant dense<0.000000e+00> : vector<50x50xf32>
    %99 = tpu.matmul %95, %97, %cst_50 {dimension_numbers = #tpu.dot_dimension_numbers<[1], [1], [0], [0], [0, 0, 1, 0], [], []>} : vector<50x16xbf16>, vector<50x16xbf16>, vector<50x50xf32> -> vector<50x50xf32>
    %cst_51 = arith.constant dense<0xFF800000> : vector<50xf32>
    %100 = vector.multi_reduction <maximumf>, %99, %cst_51 [1] : vector<50x50xf32> to vector<50xf32>
    %101 = vector.shape_cast %100 : vector<50xf32> to vector<50x1xf32>
    %102 = vector.broadcast %101 : vector<50x1xf32> to vector<50x50xf32>
    %103 = arith.subf %99, %102 : vector<50x50xf32>
    %104 = math.exp %103 : vector<50x50xf32>
    %cst_52 = arith.constant dense<0.000000e+00> : vector<50xf32>
    %105 = vector.multi_reduction <add>, %104, %cst_52 [1] : vector<50x50xf32> to vector<50xf32>
    %106 = vector.shape_cast %105 : vector<50xf32> to vector<50x1xf32>
    %107 = tpu.reciprocal %106 {approx = true} : vector<50x1xf32> -> vector<50x1xf32>
    %108 = vector.broadcast %107 : vector<50x1xf32> to vector<50x50xf32>
    %109 = arith.mulf %104, %108 : vector<50x50xf32>
    %110 = arith.truncf %109 : vector<50x50xf32> to vector<50x50xbf16>
    %111 = arith.truncf %98 : vector<50x16xf32> to vector<50x16xbf16>
    %cst_53 = arith.constant dense<0.000000e+00> : vector<50x16xf32>
    %112 = tpu.matmul %110, %111, %cst_53 {dimension_numbers = #tpu.dot_dimension_numbers<[1], [0], [0], [1], [0, 0, 1, 1], [], []>} : vector<50x50xbf16>, vector<50x16xbf16>, vector<50x16xf32> -> vector<50x16xf32>
    %113 = arith.truncf %112 : vector<50x16xf32> to vector<50x16xbf16>
    %114 = vector.extract_strided_slice %59 {offsets = [16, 0], sizes = [16, 64], strides = [1, 1]} : vector<64x64xbf16> to vector<16x64xbf16>
    %cst_54 = arith.constant dense<0.000000e+00> : vector<50x64xf32>
    %115 = tpu.matmul %113, %114, %cst_54 {dimension_numbers = #tpu.dot_dimension_numbers<[1], [0], [0], [1], [0, 0, 1, 1], [], []>} : vector<50x16xbf16>, vector<16x64xbf16>, vector<50x64xf32> -> vector<50x64xf32>
    %116 = arith.addf %91, %115 : vector<50x64xf32>
    %117 = vector.extract_strided_slice %65 {offsets = [0, 32], sizes = [50, 16], strides = [1, 1]} : vector<50x192xf32> to vector<50x16xf32>
    %cst_55 = arith.constant 2.500000e-01 : f32
    %118 = vector.broadcast %cst_55 : f32 to vector<50x16xf32>
    %119 = arith.mulf %117, %118 : vector<50x16xf32>
    %120 = arith.truncf %119 : vector<50x16xf32> to vector<50x16xbf16>
    %121 = vector.extract_strided_slice %65 {offsets = [0, 96], sizes = [50, 16], strides = [1, 1]} : vector<50x192xf32> to vector<50x16xf32>
    %122 = arith.truncf %121 : vector<50x16xf32> to vector<50x16xbf16>
    %123 = vector.extract_strided_slice %65 {offsets = [0, 160], sizes = [50, 16], strides = [1, 1]} : vector<50x192xf32> to vector<50x16xf32>
    %cst_56 = arith.constant dense<0.000000e+00> : vector<50x50xf32>
    %124 = tpu.matmul %120, %122, %cst_56 {dimension_numbers = #tpu.dot_dimension_numbers<[1], [1], [0], [0], [0, 0, 1, 0], [], []>} : vector<50x16xbf16>, vector<50x16xbf16>, vector<50x50xf32> -> vector<50x50xf32>
    %cst_57 = arith.constant dense<0xFF800000> : vector<50xf32>
    %125 = vector.multi_reduction <maximumf>, %124, %cst_57 [1] : vector<50x50xf32> to vector<50xf32>
    %126 = vector.shape_cast %125 : vector<50xf32> to vector<50x1xf32>
    %127 = vector.broadcast %126 : vector<50x1xf32> to vector<50x50xf32>
    %128 = arith.subf %124, %127 : vector<50x50xf32>
    %129 = math.exp %128 : vector<50x50xf32>
    %cst_58 = arith.constant dense<0.000000e+00> : vector<50xf32>
    %130 = vector.multi_reduction <add>, %129, %cst_58 [1] : vector<50x50xf32> to vector<50xf32>
    %131 = vector.shape_cast %130 : vector<50xf32> to vector<50x1xf32>
    %132 = tpu.reciprocal %131 {approx = true} : vector<50x1xf32> -> vector<50x1xf32>
    %133 = vector.broadcast %132 : vector<50x1xf32> to vector<50x50xf32>
    %134 = arith.mulf %129, %133 : vector<50x50xf32>
    %135 = arith.truncf %134 : vector<50x50xf32> to vector<50x50xbf16>
    %136 = arith.truncf %123 : vector<50x16xf32> to vector<50x16xbf16>
    %cst_59 = arith.constant dense<0.000000e+00> : vector<50x16xf32>
    %137 = tpu.matmul %135, %136, %cst_59 {dimension_numbers = #tpu.dot_dimension_numbers<[1], [0], [0], [1], [0, 0, 1, 1], [], []>} : vector<50x50xbf16>, vector<50x16xbf16>, vector<50x16xf32> -> vector<50x16xf32>
    %138 = arith.truncf %137 : vector<50x16xf32> to vector<50x16xbf16>
    %139 = vector.extract_strided_slice %59 {offsets = [32, 0], sizes = [16, 64], strides = [1, 1]} : vector<64x64xbf16> to vector<16x64xbf16>
    %cst_60 = arith.constant dense<0.000000e+00> : vector<50x64xf32>
    %140 = tpu.matmul %138, %139, %cst_60 {dimension_numbers = #tpu.dot_dimension_numbers<[1], [0], [0], [1], [0, 0, 1, 1], [], []>} : vector<50x16xbf16>, vector<16x64xbf16>, vector<50x64xf32> -> vector<50x64xf32>
    %141 = arith.addf %116, %140 : vector<50x64xf32>
    %142 = vector.extract_strided_slice %65 {offsets = [0, 48], sizes = [50, 16], strides = [1, 1]} : vector<50x192xf32> to vector<50x16xf32>
    %cst_61 = arith.constant 2.500000e-01 : f32
    %143 = vector.broadcast %cst_61 : f32 to vector<50x16xf32>
    %144 = arith.mulf %142, %143 : vector<50x16xf32>
    %145 = arith.truncf %144 : vector<50x16xf32> to vector<50x16xbf16>
    %146 = vector.extract_strided_slice %65 {offsets = [0, 112], sizes = [50, 16], strides = [1, 1]} : vector<50x192xf32> to vector<50x16xf32>
    %147 = arith.truncf %146 : vector<50x16xf32> to vector<50x16xbf16>
    %148 = vector.extract_strided_slice %65 {offsets = [0, 176], sizes = [50, 16], strides = [1, 1]} : vector<50x192xf32> to vector<50x16xf32>
    %cst_62 = arith.constant dense<0.000000e+00> : vector<50x50xf32>
    %149 = tpu.matmul %145, %147, %cst_62 {dimension_numbers = #tpu.dot_dimension_numbers<[1], [1], [0], [0], [0, 0, 1, 0], [], []>} : vector<50x16xbf16>, vector<50x16xbf16>, vector<50x50xf32> -> vector<50x50xf32>
    %cst_63 = arith.constant dense<0xFF800000> : vector<50xf32>
    %150 = vector.multi_reduction <maximumf>, %149, %cst_63 [1] : vector<50x50xf32> to vector<50xf32>
    %151 = vector.shape_cast %150 : vector<50xf32> to vector<50x1xf32>
    %152 = vector.broadcast %151 : vector<50x1xf32> to vector<50x50xf32>
    %153 = arith.subf %149, %152 : vector<50x50xf32>
    %154 = math.exp %153 : vector<50x50xf32>
    %cst_64 = arith.constant dense<0.000000e+00> : vector<50xf32>
    %155 = vector.multi_reduction <add>, %154, %cst_64 [1] : vector<50x50xf32> to vector<50xf32>
    %156 = vector.shape_cast %155 : vector<50xf32> to vector<50x1xf32>
    %157 = tpu.reciprocal %156 {approx = true} : vector<50x1xf32> -> vector<50x1xf32>
    %158 = vector.broadcast %157 : vector<50x1xf32> to vector<50x50xf32>
    %159 = arith.mulf %154, %158 : vector<50x50xf32>
    %160 = arith.truncf %159 : vector<50x50xf32> to vector<50x50xbf16>
    %161 = arith.truncf %148 : vector<50x16xf32> to vector<50x16xbf16>
    %cst_65 = arith.constant dense<0.000000e+00> : vector<50x16xf32>
    %162 = tpu.matmul %160, %161, %cst_65 {dimension_numbers = #tpu.dot_dimension_numbers<[1], [0], [0], [1], [0, 0, 1, 1], [], []>} : vector<50x50xbf16>, vector<50x16xbf16>, vector<50x16xf32> -> vector<50x16xf32>
    %163 = arith.truncf %162 : vector<50x16xf32> to vector<50x16xbf16>
    %164 = vector.extract_strided_slice %59 {offsets = [48, 0], sizes = [16, 64], strides = [1, 1]} : vector<64x64xbf16> to vector<16x64xbf16>
    %cst_66 = arith.constant dense<0.000000e+00> : vector<50x64xf32>
    %165 = tpu.matmul %163, %164, %cst_66 {dimension_numbers = #tpu.dot_dimension_numbers<[1], [0], [0], [1], [0, 0, 1, 1], [], []>} : vector<50x16xbf16>, vector<16x64xbf16>, vector<50x64xf32> -> vector<50x64xf32>
    %166 = arith.addf %141, %165 : vector<50x64xf32>
    %167 = arith.addf %31, %166 : vector<50x64xf32>
    %c0_67 = arith.constant 0 : index
    %c0_68 = arith.constant 0 : index
    %c0_69 = arith.constant 0 : index
    %168 = vector.load %arg11[%c0_67, %c0_68, %c0_69] : memref<2x1x64xf32, #tpu.memory_space<vmem>>, vector<1x1x64xf32>
    %169 = vector.shape_cast %168 : vector<1x1x64xf32> to vector<1x64xf32>
    %170 = vector.broadcast %169 : vector<1x64xf32> to vector<50x64xf32>
    %171 = arith.addf %167, %170 : vector<50x64xf32>
    %c0_70 = arith.constant 0 : index
    %c0_71 = arith.constant 0 : index
    %c0_72 = arith.constant 0 : index
    %172 = vector.load %arg12[%c0_70, %c0_71, %c0_72] : memref<2x1x64xf32, #tpu.memory_space<vmem>>, vector<1x1x64xf32>
    %173 = vector.shape_cast %172 : vector<1x1x64xf32> to vector<1x64xf32>
    %c0_73 = arith.constant 0 : index
    %c0_74 = arith.constant 0 : index
    %c0_75 = arith.constant 0 : index
    %174 = vector.load %arg13[%c0_73, %c0_74, %c0_75] : memref<2x1x64xf32, #tpu.memory_space<vmem>>, vector<1x1x64xf32>
    %175 = vector.shape_cast %174 : vector<1x1x64xf32> to vector<1x64xf32>
    %cst_76 = arith.constant dense<0.000000e+00> : vector<50xf32>
    %176 = vector.multi_reduction <add>, %171, %cst_76 [1] : vector<50x64xf32> to vector<50xf32>
    %177 = vector.shape_cast %176 : vector<50xf32> to vector<50x1xf32>
    %cst_77 = arith.constant 6.400000e+01 : f32
    %178 = vector.broadcast %cst_77 : f32 to vector<50x1xf32>
    %179 = arith.divf %177, %178 : vector<50x1xf32>
    %180 = vector.broadcast %179 : vector<50x1xf32> to vector<50x64xf32>
    %181 = arith.subf %171, %180 : vector<50x64xf32>
    %182 = arith.mulf %181, %181 : vector<50x64xf32>
    %cst_78 = arith.constant dense<0.000000e+00> : vector<50xf32>
    %183 = vector.multi_reduction <add>, %182, %cst_78 [1] : vector<50x64xf32> to vector<50xf32>
    %184 = vector.shape_cast %183 : vector<50xf32> to vector<50x1xf32>
    %cst_79 = arith.constant 6.400000e+01 : f32
    %185 = vector.broadcast %cst_79 : f32 to vector<50x1xf32>
    %186 = arith.divf %184, %185 : vector<50x1xf32>
    %cst_80 = arith.constant 9.99999974E-6 : f32
    %187 = vector.broadcast %cst_80 : f32 to vector<50x1xf32>
    %188 = arith.addf %186, %187 : vector<50x1xf32>
    %189 = math.rsqrt %188 : vector<50x1xf32>
    %190 = vector.broadcast %189 : vector<50x1xf32> to vector<50x64xf32>
    %191 = arith.mulf %181, %190 : vector<50x64xf32>
    %192 = vector.broadcast %173 : vector<1x64xf32> to vector<50x64xf32>
    %193 = arith.mulf %191, %192 : vector<50x64xf32>
    %194 = vector.broadcast %175 : vector<1x64xf32> to vector<50x64xf32>
    %195 = arith.addf %193, %194 : vector<50x64xf32>
    %196 = arith.truncf %195 : vector<50x64xf32> to vector<50x64xbf16>
    %c0_81 = arith.constant 0 : index
    %c0_82 = arith.constant 0 : index
    %c0_83 = arith.constant 0 : index
    %197 = vector.load %arg14[%c0_81, %c0_82, %c0_83] : memref<2x64x256xbf16, #tpu.memory_space<vmem>>, vector<1x64x256xbf16>
    %198 = vector.shape_cast %197 : vector<1x64x256xbf16> to vector<64x256xbf16>
    %cst_84 = arith.constant dense<0.000000e+00> : vector<50x256xf32>
    %199 = tpu.matmul %196, %198, %cst_84 {dimension_numbers = #tpu.dot_dimension_numbers<[1], [0], [0], [1], [0, 0, 1, 1], [], []>} : vector<50x64xbf16>, vector<64x256xbf16>, vector<50x256xf32> -> vector<50x256xf32>
    %c0_85 = arith.constant 0 : index
    %c0_86 = arith.constant 0 : index
    %c0_87 = arith.constant 0 : index
    %200 = vector.load %arg15[%c0_85, %c0_86, %c0_87] : memref<2x1x256xf32, #tpu.memory_space<vmem>>, vector<1x1x256xf32>
    %201 = vector.shape_cast %200 : vector<1x1x256xf32> to vector<1x256xf32>
    %202 = vector.broadcast %201 : vector<1x256xf32> to vector<50x256xf32>
    %203 = arith.addf %199, %202 : vector<50x256xf32>
    %cst_88 = arith.constant 1.702000e+00 : f32
    %204 = vector.broadcast %cst_88 : f32 to vector<50x256xf32>
    %205 = arith.mulf %204, %203 : vector<50x256xf32>
    %206 = arith.negf %205 : vector<50x256xf32>
    %207 = math.exp %206 : vector<50x256xf32>
    %cst_89 = arith.constant 1.000000e+00 : f32
    %208 = vector.broadcast %cst_89 : f32 to vector<50x256xf32>
    %209 = arith.addf %208, %207 : vector<50x256xf32>
    %210 = arith.divf %208, %209 : vector<50x256xf32>
    %211 = arith.mulf %203, %210 : vector<50x256xf32>
    %212 = arith.truncf %211 : vector<50x256xf32> to vector<50x256xbf16>
    %c0_90 = arith.constant 0 : index
    %c0_91 = arith.constant 0 : index
    %c0_92 = arith.constant 0 : index
    %213 = vector.load %arg16[%c0_90, %c0_91, %c0_92] : memref<2x256x64xbf16, #tpu.memory_space<vmem>>, vector<1x256x64xbf16>
    %214 = vector.shape_cast %213 : vector<1x256x64xbf16> to vector<256x64xbf16>
    %cst_93 = arith.constant dense<0.000000e+00> : vector<50x64xf32>
    %215 = tpu.matmul %212, %214, %cst_93 {dimension_numbers = #tpu.dot_dimension_numbers<[1], [0], [0], [1], [0, 0, 1, 1], [], []>} : vector<50x256xbf16>, vector<256x64xbf16>, vector<50x64xf32> -> vector<50x64xf32>
    %216 = arith.addf %171, %215 : vector<50x64xf32>
    %c0_94 = arith.constant 0 : index
    %c0_95 = arith.constant 0 : index
    %c0_96 = arith.constant 0 : index
    %217 = vector.load %arg17[%c0_94, %c0_95, %c0_96] : memref<2x1x64xf32, #tpu.memory_space<vmem>>, vector<1x1x64xf32>
    %218 = vector.shape_cast %217 : vector<1x1x64xf32> to vector<1x64xf32>
    %219 = vector.broadcast %218 : vector<1x64xf32> to vector<50x64xf32>
    %220 = arith.addf %216, %219 : vector<50x64xf32>
    %c1_97 = arith.constant 1 : index
    %c0_98 = arith.constant 0 : index
    %c0_99 = arith.constant 0 : index
    %221 = vector.load %arg6[%c1_97, %c0_98, %c0_99] : memref<2x1x64xf32, #tpu.memory_space<vmem>>, vector<1x1x64xf32>
    %222 = vector.shape_cast %221 : vector<1x1x64xf32> to vector<1x64xf32>
    %c1_100 = arith.constant 1 : index
    %c0_101 = arith.constant 0 : index
    %c0_102 = arith.constant 0 : index
    %223 = vector.load %arg7[%c1_100, %c0_101, %c0_102] : memref<2x1x64xf32, #tpu.memory_space<vmem>>, vector<1x1x64xf32>
    %224 = vector.shape_cast %223 : vector<1x1x64xf32> to vector<1x64xf32>
    %cst_103 = arith.constant dense<0.000000e+00> : vector<50xf32>
    %225 = vector.multi_reduction <add>, %220, %cst_103 [1] : vector<50x64xf32> to vector<50xf32>
    %226 = vector.shape_cast %225 : vector<50xf32> to vector<50x1xf32>
    %cst_104 = arith.constant 6.400000e+01 : f32
    %227 = vector.broadcast %cst_104 : f32 to vector<50x1xf32>
    %228 = arith.divf %226, %227 : vector<50x1xf32>
    %229 = vector.broadcast %228 : vector<50x1xf32> to vector<50x64xf32>
    %230 = arith.subf %220, %229 : vector<50x64xf32>
    %231 = arith.mulf %230, %230 : vector<50x64xf32>
    %cst_105 = arith.constant dense<0.000000e+00> : vector<50xf32>
    %232 = vector.multi_reduction <add>, %231, %cst_105 [1] : vector<50x64xf32> to vector<50xf32>
    %233 = vector.shape_cast %232 : vector<50xf32> to vector<50x1xf32>
    %cst_106 = arith.constant 6.400000e+01 : f32
    %234 = vector.broadcast %cst_106 : f32 to vector<50x1xf32>
    %235 = arith.divf %233, %234 : vector<50x1xf32>
    %cst_107 = arith.constant 9.99999974E-6 : f32
    %236 = vector.broadcast %cst_107 : f32 to vector<50x1xf32>
    %237 = arith.addf %235, %236 : vector<50x1xf32>
    %238 = math.rsqrt %237 : vector<50x1xf32>
    %239 = vector.broadcast %238 : vector<50x1xf32> to vector<50x64xf32>
    %240 = arith.mulf %230, %239 : vector<50x64xf32>
    %241 = vector.broadcast %222 : vector<1x64xf32> to vector<50x64xf32>
    %242 = arith.mulf %240, %241 : vector<50x64xf32>
    %243 = vector.broadcast %224 : vector<1x64xf32> to vector<50x64xf32>
    %244 = arith.addf %242, %243 : vector<50x64xf32>
    %c1_108 = arith.constant 1 : index
    %c0_109 = arith.constant 0 : index
    %c0_110 = arith.constant 0 : index
    %245 = vector.load %arg8[%c1_108, %c0_109, %c0_110] : memref<2x64x192xbf16, #tpu.memory_space<vmem>>, vector<1x64x192xbf16>
    %246 = vector.shape_cast %245 : vector<1x64x192xbf16> to vector<64x192xbf16>
    %c1_111 = arith.constant 1 : index
    %c0_112 = arith.constant 0 : index
    %c0_113 = arith.constant 0 : index
    %247 = vector.load %arg10[%c1_111, %c0_112, %c0_113] : memref<2x64x64xbf16, #tpu.memory_space<vmem>>, vector<1x64x64xbf16>
    %248 = vector.shape_cast %247 : vector<1x64x64xbf16> to vector<64x64xbf16>
    %249 = arith.truncf %244 : vector<50x64xf32> to vector<50x64xbf16>
    %cst_114 = arith.constant dense<0.000000e+00> : vector<50x192xf32>
    %250 = tpu.matmul %249, %246, %cst_114 {dimension_numbers = #tpu.dot_dimension_numbers<[1], [0], [0], [1], [0, 0, 1, 1], [], []>} : vector<50x64xbf16>, vector<64x192xbf16>, vector<50x192xf32> -> vector<50x192xf32>
    %c1_115 = arith.constant 1 : index
    %c0_116 = arith.constant 0 : index
    %c0_117 = arith.constant 0 : index
    %251 = vector.load %arg9[%c1_115, %c0_116, %c0_117] : memref<2x1x192xf32, #tpu.memory_space<vmem>>, vector<1x1x192xf32>
    %252 = vector.shape_cast %251 : vector<1x1x192xf32> to vector<1x192xf32>
    %253 = vector.broadcast %252 : vector<1x192xf32> to vector<50x192xf32>
    %254 = arith.addf %250, %253 : vector<50x192xf32>
    %cst_118 = arith.constant 0.000000e+00 : f32
    %255 = vector.broadcast %cst_118 : f32 to vector<50x64xf32>
    %256 = vector.extract_strided_slice %254 {offsets = [0, 0], sizes = [50, 16], strides = [1, 1]} : vector<50x192xf32> to vector<50x16xf32>
    %cst_119 = arith.constant 2.500000e-01 : f32
    %257 = vector.broadcast %cst_119 : f32 to vector<50x16xf32>
    %258 = arith.mulf %256, %257 : vector<50x16xf32>
    %259 = arith.truncf %258 : vector<50x16xf32> to vector<50x16xbf16>
    %260 = vector.extract_strided_slice %254 {offsets = [0, 64], sizes = [50, 16], strides = [1, 1]} : vector<50x192xf32> to vector<50x16xf32>
    %261 = arith.truncf %260 : vector<50x16xf32> to vector<50x16xbf16>
    %262 = vector.extract_strided_slice %254 {offsets = [0, 128], sizes = [50, 16], strides = [1, 1]} : vector<50x192xf32> to vector<50x16xf32>
    %cst_120 = arith.constant dense<0.000000e+00> : vector<50x50xf32>
    %263 = tpu.matmul %259, %261, %cst_120 {dimension_numbers = #tpu.dot_dimension_numbers<[1], [1], [0], [0], [0, 0, 1, 0], [], []>} : vector<50x16xbf16>, vector<50x16xbf16>, vector<50x50xf32> -> vector<50x50xf32>
    %cst_121 = arith.constant dense<0xFF800000> : vector<50xf32>
    %264 = vector.multi_reduction <maximumf>, %263, %cst_121 [1] : vector<50x50xf32> to vector<50xf32>
    %265 = vector.shape_cast %264 : vector<50xf32> to vector<50x1xf32>
    %266 = vector.broadcast %265 : vector<50x1xf32> to vector<50x50xf32>
    %267 = arith.subf %263, %266 : vector<50x50xf32>
    %268 = math.exp %267 : vector<50x50xf32>
    %cst_122 = arith.constant dense<0.000000e+00> : vector<50xf32>
    %269 = vector.multi_reduction <add>, %268, %cst_122 [1] : vector<50x50xf32> to vector<50xf32>
    %270 = vector.shape_cast %269 : vector<50xf32> to vector<50x1xf32>
    %271 = tpu.reciprocal %270 {approx = true} : vector<50x1xf32> -> vector<50x1xf32>
    %272 = vector.broadcast %271 : vector<50x1xf32> to vector<50x50xf32>
    %273 = arith.mulf %268, %272 : vector<50x50xf32>
    %274 = arith.truncf %273 : vector<50x50xf32> to vector<50x50xbf16>
    %275 = arith.truncf %262 : vector<50x16xf32> to vector<50x16xbf16>
    %cst_123 = arith.constant dense<0.000000e+00> : vector<50x16xf32>
    %276 = tpu.matmul %274, %275, %cst_123 {dimension_numbers = #tpu.dot_dimension_numbers<[1], [0], [0], [1], [0, 0, 1, 1], [], []>} : vector<50x50xbf16>, vector<50x16xbf16>, vector<50x16xf32> -> vector<50x16xf32>
    %277 = arith.truncf %276 : vector<50x16xf32> to vector<50x16xbf16>
    %278 = vector.extract_strided_slice %248 {offsets = [0, 0], sizes = [16, 64], strides = [1, 1]} : vector<64x64xbf16> to vector<16x64xbf16>
    %cst_124 = arith.constant dense<0.000000e+00> : vector<50x64xf32>
    %279 = tpu.matmul %277, %278, %cst_124 {dimension_numbers = #tpu.dot_dimension_numbers<[1], [0], [0], [1], [0, 0, 1, 1], [], []>} : vector<50x16xbf16>, vector<16x64xbf16>, vector<50x64xf32> -> vector<50x64xf32>
    %280 = arith.addf %255, %279 : vector<50x64xf32>
    %281 = vector.extract_strided_slice %254 {offsets = [0, 16], sizes = [50, 16], strides = [1, 1]} : vector<50x192xf32> to vector<50x16xf32>
    %cst_125 = arith.constant 2.500000e-01 : f32
    %282 = vector.broadcast %cst_125 : f32 to vector<50x16xf32>
    %283 = arith.mulf %281, %282 : vector<50x16xf32>
    %284 = arith.truncf %283 : vector<50x16xf32> to vector<50x16xbf16>
    %285 = vector.extract_strided_slice %254 {offsets = [0, 80], sizes = [50, 16], strides = [1, 1]} : vector<50x192xf32> to vector<50x16xf32>
    %286 = arith.truncf %285 : vector<50x16xf32> to vector<50x16xbf16>
    %287 = vector.extract_strided_slice %254 {offsets = [0, 144], sizes = [50, 16], strides = [1, 1]} : vector<50x192xf32> to vector<50x16xf32>
    %cst_126 = arith.constant dense<0.000000e+00> : vector<50x50xf32>
    %288 = tpu.matmul %284, %286, %cst_126 {dimension_numbers = #tpu.dot_dimension_numbers<[1], [1], [0], [0], [0, 0, 1, 0], [], []>} : vector<50x16xbf16>, vector<50x16xbf16>, vector<50x50xf32> -> vector<50x50xf32>
    %cst_127 = arith.constant dense<0xFF800000> : vector<50xf32>
    %289 = vector.multi_reduction <maximumf>, %288, %cst_127 [1] : vector<50x50xf32> to vector<50xf32>
    %290 = vector.shape_cast %289 : vector<50xf32> to vector<50x1xf32>
    %291 = vector.broadcast %290 : vector<50x1xf32> to vector<50x50xf32>
    %292 = arith.subf %288, %291 : vector<50x50xf32>
    %293 = math.exp %292 : vector<50x50xf32>
    %cst_128 = arith.constant dense<0.000000e+00> : vector<50xf32>
    %294 = vector.multi_reduction <add>, %293, %cst_128 [1] : vector<50x50xf32> to vector<50xf32>
    %295 = vector.shape_cast %294 : vector<50xf32> to vector<50x1xf32>
    %296 = tpu.reciprocal %295 {approx = true} : vector<50x1xf32> -> vector<50x1xf32>
    %297 = vector.broadcast %296 : vector<50x1xf32> to vector<50x50xf32>
    %298 = arith.mulf %293, %297 : vector<50x50xf32>
    %299 = arith.truncf %298 : vector<50x50xf32> to vector<50x50xbf16>
    %300 = arith.truncf %287 : vector<50x16xf32> to vector<50x16xbf16>
    %cst_129 = arith.constant dense<0.000000e+00> : vector<50x16xf32>
    %301 = tpu.matmul %299, %300, %cst_129 {dimension_numbers = #tpu.dot_dimension_numbers<[1], [0], [0], [1], [0, 0, 1, 1], [], []>} : vector<50x50xbf16>, vector<50x16xbf16>, vector<50x16xf32> -> vector<50x16xf32>
    %302 = arith.truncf %301 : vector<50x16xf32> to vector<50x16xbf16>
    %303 = vector.extract_strided_slice %248 {offsets = [16, 0], sizes = [16, 64], strides = [1, 1]} : vector<64x64xbf16> to vector<16x64xbf16>
    %cst_130 = arith.constant dense<0.000000e+00> : vector<50x64xf32>
    %304 = tpu.matmul %302, %303, %cst_130 {dimension_numbers = #tpu.dot_dimension_numbers<[1], [0], [0], [1], [0, 0, 1, 1], [], []>} : vector<50x16xbf16>, vector<16x64xbf16>, vector<50x64xf32> -> vector<50x64xf32>
    %305 = arith.addf %280, %304 : vector<50x64xf32>
    %306 = vector.extract_strided_slice %254 {offsets = [0, 32], sizes = [50, 16], strides = [1, 1]} : vector<50x192xf32> to vector<50x16xf32>
    %cst_131 = arith.constant 2.500000e-01 : f32
    %307 = vector.broadcast %cst_131 : f32 to vector<50x16xf32>
    %308 = arith.mulf %306, %307 : vector<50x16xf32>
    %309 = arith.truncf %308 : vector<50x16xf32> to vector<50x16xbf16>
    %310 = vector.extract_strided_slice %254 {offsets = [0, 96], sizes = [50, 16], strides = [1, 1]} : vector<50x192xf32> to vector<50x16xf32>
    %311 = arith.truncf %310 : vector<50x16xf32> to vector<50x16xbf16>
    %312 = vector.extract_strided_slice %254 {offsets = [0, 160], sizes = [50, 16], strides = [1, 1]} : vector<50x192xf32> to vector<50x16xf32>
    %cst_132 = arith.constant dense<0.000000e+00> : vector<50x50xf32>
    %313 = tpu.matmul %309, %311, %cst_132 {dimension_numbers = #tpu.dot_dimension_numbers<[1], [1], [0], [0], [0, 0, 1, 0], [], []>} : vector<50x16xbf16>, vector<50x16xbf16>, vector<50x50xf32> -> vector<50x50xf32>
    %cst_133 = arith.constant dense<0xFF800000> : vector<50xf32>
    %314 = vector.multi_reduction <maximumf>, %313, %cst_133 [1] : vector<50x50xf32> to vector<50xf32>
    %315 = vector.shape_cast %314 : vector<50xf32> to vector<50x1xf32>
    %316 = vector.broadcast %315 : vector<50x1xf32> to vector<50x50xf32>
    %317 = arith.subf %313, %316 : vector<50x50xf32>
    %318 = math.exp %317 : vector<50x50xf32>
    %cst_134 = arith.constant dense<0.000000e+00> : vector<50xf32>
    %319 = vector.multi_reduction <add>, %318, %cst_134 [1] : vector<50x50xf32> to vector<50xf32>
    %320 = vector.shape_cast %319 : vector<50xf32> to vector<50x1xf32>
    %321 = tpu.reciprocal %320 {approx = true} : vector<50x1xf32> -> vector<50x1xf32>
    %322 = vector.broadcast %321 : vector<50x1xf32> to vector<50x50xf32>
    %323 = arith.mulf %318, %322 : vector<50x50xf32>
    %324 = arith.truncf %323 : vector<50x50xf32> to vector<50x50xbf16>
    %325 = arith.truncf %312 : vector<50x16xf32> to vector<50x16xbf16>
    %cst_135 = arith.constant dense<0.000000e+00> : vector<50x16xf32>
    %326 = tpu.matmul %324, %325, %cst_135 {dimension_numbers = #tpu.dot_dimension_numbers<[1], [0], [0], [1], [0, 0, 1, 1], [], []>} : vector<50x50xbf16>, vector<50x16xbf16>, vector<50x16xf32> -> vector<50x16xf32>
    %327 = arith.truncf %326 : vector<50x16xf32> to vector<50x16xbf16>
    %328 = vector.extract_strided_slice %248 {offsets = [32, 0], sizes = [16, 64], strides = [1, 1]} : vector<64x64xbf16> to vector<16x64xbf16>
    %cst_136 = arith.constant dense<0.000000e+00> : vector<50x64xf32>
    %329 = tpu.matmul %327, %328, %cst_136 {dimension_numbers = #tpu.dot_dimension_numbers<[1], [0], [0], [1], [0, 0, 1, 1], [], []>} : vector<50x16xbf16>, vector<16x64xbf16>, vector<50x64xf32> -> vector<50x64xf32>
    %330 = arith.addf %305, %329 : vector<50x64xf32>
    %331 = vector.extract_strided_slice %254 {offsets = [0, 48], sizes = [50, 16], strides = [1, 1]} : vector<50x192xf32> to vector<50x16xf32>
    %cst_137 = arith.constant 2.500000e-01 : f32
    %332 = vector.broadcast %cst_137 : f32 to vector<50x16xf32>
    %333 = arith.mulf %331, %332 : vector<50x16xf32>
    %334 = arith.truncf %333 : vector<50x16xf32> to vector<50x16xbf16>
    %335 = vector.extract_strided_slice %254 {offsets = [0, 112], sizes = [50, 16], strides = [1, 1]} : vector<50x192xf32> to vector<50x16xf32>
    %336 = arith.truncf %335 : vector<50x16xf32> to vector<50x16xbf16>
    %337 = vector.extract_strided_slice %254 {offsets = [0, 176], sizes = [50, 16], strides = [1, 1]} : vector<50x192xf32> to vector<50x16xf32>
    %cst_138 = arith.constant dense<0.000000e+00> : vector<50x50xf32>
    %338 = tpu.matmul %334, %336, %cst_138 {dimension_numbers = #tpu.dot_dimension_numbers<[1], [1], [0], [0], [0, 0, 1, 0], [], []>} : vector<50x16xbf16>, vector<50x16xbf16>, vector<50x50xf32> -> vector<50x50xf32>
    %cst_139 = arith.constant dense<0xFF800000> : vector<50xf32>
    %339 = vector.multi_reduction <maximumf>, %338, %cst_139 [1] : vector<50x50xf32> to vector<50xf32>
    %340 = vector.shape_cast %339 : vector<50xf32> to vector<50x1xf32>
    %341 = vector.broadcast %340 : vector<50x1xf32> to vector<50x50xf32>
    %342 = arith.subf %338, %341 : vector<50x50xf32>
    %343 = math.exp %342 : vector<50x50xf32>
    %cst_140 = arith.constant dense<0.000000e+00> : vector<50xf32>
    %344 = vector.multi_reduction <add>, %343, %cst_140 [1] : vector<50x50xf32> to vector<50xf32>
    %345 = vector.shape_cast %344 : vector<50xf32> to vector<50x1xf32>
    %346 = tpu.reciprocal %345 {approx = true} : vector<50x1xf32> -> vector<50x1xf32>
    %347 = vector.broadcast %346 : vector<50x1xf32> to vector<50x50xf32>
    %348 = arith.mulf %343, %347 : vector<50x50xf32>
    %349 = arith.truncf %348 : vector<50x50xf32> to vector<50x50xbf16>
    %350 = arith.truncf %337 : vector<50x16xf32> to vector<50x16xbf16>
    %cst_141 = arith.constant dense<0.000000e+00> : vector<50x16xf32>
    %351 = tpu.matmul %349, %350, %cst_141 {dimension_numbers = #tpu.dot_dimension_numbers<[1], [0], [0], [1], [0, 0, 1, 1], [], []>} : vector<50x50xbf16>, vector<50x16xbf16>, vector<50x16xf32> -> vector<50x16xf32>
    %352 = arith.truncf %351 : vector<50x16xf32> to vector<50x16xbf16>
    %353 = vector.extract_strided_slice %248 {offsets = [48, 0], sizes = [16, 64], strides = [1, 1]} : vector<64x64xbf16> to vector<16x64xbf16>
    %cst_142 = arith.constant dense<0.000000e+00> : vector<50x64xf32>
    %354 = tpu.matmul %352, %353, %cst_142 {dimension_numbers = #tpu.dot_dimension_numbers<[1], [0], [0], [1], [0, 0, 1, 1], [], []>} : vector<50x16xbf16>, vector<16x64xbf16>, vector<50x64xf32> -> vector<50x64xf32>
    %355 = arith.addf %330, %354 : vector<50x64xf32>
    %356 = arith.addf %220, %355 : vector<50x64xf32>
    %c1_143 = arith.constant 1 : index
    %c0_144 = arith.constant 0 : index
    %c0_145 = arith.constant 0 : index
    %357 = vector.load %arg11[%c1_143, %c0_144, %c0_145] : memref<2x1x64xf32, #tpu.memory_space<vmem>>, vector<1x1x64xf32>
    %358 = vector.shape_cast %357 : vector<1x1x64xf32> to vector<1x64xf32>
    %359 = vector.broadcast %358 : vector<1x64xf32> to vector<50x64xf32>
    %360 = arith.addf %356, %359 : vector<50x64xf32>
    %c1_146 = arith.constant 1 : index
    %c0_147 = arith.constant 0 : index
    %c0_148 = arith.constant 0 : index
    %361 = vector.load %arg12[%c1_146, %c0_147, %c0_148] : memref<2x1x64xf32, #tpu.memory_space<vmem>>, vector<1x1x64xf32>
    %362 = vector.shape_cast %361 : vector<1x1x64xf32> to vector<1x64xf32>
    %c1_149 = arith.constant 1 : index
    %c0_150 = arith.constant 0 : index
    %c0_151 = arith.constant 0 : index
    %363 = vector.load %arg13[%c1_149, %c0_150, %c0_151] : memref<2x1x64xf32, #tpu.memory_space<vmem>>, vector<1x1x64xf32>
    %364 = vector.shape_cast %363 : vector<1x1x64xf32> to vector<1x64xf32>
    %cst_152 = arith.constant dense<0.000000e+00> : vector<50xf32>
    %365 = vector.multi_reduction <add>, %360, %cst_152 [1] : vector<50x64xf32> to vector<50xf32>
    %366 = vector.shape_cast %365 : vector<50xf32> to vector<50x1xf32>
    %cst_153 = arith.constant 6.400000e+01 : f32
    %367 = vector.broadcast %cst_153 : f32 to vector<50x1xf32>
    %368 = arith.divf %366, %367 : vector<50x1xf32>
    %369 = vector.broadcast %368 : vector<50x1xf32> to vector<50x64xf32>
    %370 = arith.subf %360, %369 : vector<50x64xf32>
    %371 = arith.mulf %370, %370 : vector<50x64xf32>
    %cst_154 = arith.constant dense<0.000000e+00> : vector<50xf32>
    %372 = vector.multi_reduction <add>, %371, %cst_154 [1] : vector<50x64xf32> to vector<50xf32>
    %373 = vector.shape_cast %372 : vector<50xf32> to vector<50x1xf32>
    %cst_155 = arith.constant 6.400000e+01 : f32
    %374 = vector.broadcast %cst_155 : f32 to vector<50x1xf32>
    %375 = arith.divf %373, %374 : vector<50x1xf32>
    %cst_156 = arith.constant 9.99999974E-6 : f32
    %376 = vector.broadcast %cst_156 : f32 to vector<50x1xf32>
    %377 = arith.addf %375, %376 : vector<50x1xf32>
    %378 = math.rsqrt %377 : vector<50x1xf32>
    %379 = vector.broadcast %378 : vector<50x1xf32> to vector<50x64xf32>
    %380 = arith.mulf %370, %379 : vector<50x64xf32>
    %381 = vector.broadcast %362 : vector<1x64xf32> to vector<50x64xf32>
    %382 = arith.mulf %380, %381 : vector<50x64xf32>
    %383 = vector.broadcast %364 : vector<1x64xf32> to vector<50x64xf32>
    %384 = arith.addf %382, %383 : vector<50x64xf32>
    %385 = arith.truncf %384 : vector<50x64xf32> to vector<50x64xbf16>
    %c1_157 = arith.constant 1 : index
    %c0_158 = arith.constant 0 : index
    %c0_159 = arith.constant 0 : index
    %386 = vector.load %arg14[%c1_157, %c0_158, %c0_159] : memref<2x64x256xbf16, #tpu.memory_space<vmem>>, vector<1x64x256xbf16>
    %387 = vector.shape_cast %386 : vector<1x64x256xbf16> to vector<64x256xbf16>
    %cst_160 = arith.constant dense<0.000000e+00> : vector<50x256xf32>
    %388 = tpu.matmul %385, %387, %cst_160 {dimension_numbers = #tpu.dot_dimension_numbers<[1], [0], [0], [1], [0, 0, 1, 1], [], []>} : vector<50x64xbf16>, vector<64x256xbf16>, vector<50x256xf32> -> vector<50x256xf32>
    %c1_161 = arith.constant 1 : index
    %c0_162 = arith.constant 0 : index
    %c0_163 = arith.constant 0 : index
    %389 = vector.load %arg15[%c1_161, %c0_162, %c0_163] : memref<2x1x256xf32, #tpu.memory_space<vmem>>, vector<1x1x256xf32>
    %390 = vector.shape_cast %389 : vector<1x1x256xf32> to vector<1x256xf32>
    %391 = vector.broadcast %390 : vector<1x256xf32> to vector<50x256xf32>
    %392 = arith.addf %388, %391 : vector<50x256xf32>
    %cst_164 = arith.constant 1.702000e+00 : f32
    %393 = vector.broadcast %cst_164 : f32 to vector<50x256xf32>
    %394 = arith.mulf %393, %392 : vector<50x256xf32>
    %395 = arith.negf %394 : vector<50x256xf32>
    %396 = math.exp %395 : vector<50x256xf32>
    %cst_165 = arith.constant 1.000000e+00 : f32
    %397 = vector.broadcast %cst_165 : f32 to vector<50x256xf32>
    %398 = arith.addf %397, %396 : vector<50x256xf32>
    %399 = arith.divf %397, %398 : vector<50x256xf32>
    %400 = arith.mulf %392, %399 : vector<50x256xf32>
    %401 = arith.truncf %400 : vector<50x256xf32> to vector<50x256xbf16>
    %c1_166 = arith.constant 1 : index
    %c0_167 = arith.constant 0 : index
    %c0_168 = arith.constant 0 : index
    %402 = vector.load %arg16[%c1_166, %c0_167, %c0_168] : memref<2x256x64xbf16, #tpu.memory_space<vmem>>, vector<1x256x64xbf16>
    %403 = vector.shape_cast %402 : vector<1x256x64xbf16> to vector<256x64xbf16>
    %cst_169 = arith.constant dense<0.000000e+00> : vector<50x64xf32>
    %404 = tpu.matmul %401, %403, %cst_169 {dimension_numbers = #tpu.dot_dimension_numbers<[1], [0], [0], [1], [0, 0, 1, 1], [], []>} : vector<50x256xbf16>, vector<256x64xbf16>, vector<50x64xf32> -> vector<50x64xf32>
    %405 = arith.addf %360, %404 : vector<50x64xf32>
    %c1_170 = arith.constant 1 : index
    %c0_171 = arith.constant 0 : index
    %c0_172 = arith.constant 0 : index
    %406 = vector.load %arg17[%c1_170, %c0_171, %c0_172] : memref<2x1x64xf32, #tpu.memory_space<vmem>>, vector<1x1x64xf32>
    %407 = vector.shape_cast %406 : vector<1x1x64xf32> to vector<1x64xf32>
    %408 = vector.broadcast %407 : vector<1x64xf32> to vector<50x64xf32>
    %409 = arith.addf %405, %408 : vector<50x64xf32>
    %410 = vector.extract_strided_slice %409 {offsets = [0, 0], sizes = [1, 64], strides = [1, 1]} : vector<50x64xf32> to vector<1x64xf32>
    %c0_173 = arith.constant 0 : index
    %c0_174 = arith.constant 0 : index
    %411 = vector.load %arg18[%c0_173, %c0_174] : memref<1x64xf32, #tpu.memory_space<vmem>>, vector<1x64xf32>
    %c0_175 = arith.constant 0 : index
    %c0_176 = arith.constant 0 : index
    %412 = vector.load %arg19[%c0_175, %c0_176] : memref<1x64xf32, #tpu.memory_space<vmem>>, vector<1x64xf32>
    %cst_177 = arith.constant dense<0.000000e+00> : vector<1xf32>
    %413 = vector.multi_reduction <add>, %410, %cst_177 [1] : vector<1x64xf32> to vector<1xf32>
    %414 = vector.shape_cast %413 : vector<1xf32> to vector<1x1xf32>
    %cst_178 = arith.constant 6.400000e+01 : f32
    %415 = vector.broadcast %cst_178 : f32 to vector<1x1xf32>
    %416 = arith.divf %414, %415 : vector<1x1xf32>
    %417 = vector.broadcast %416 : vector<1x1xf32> to vector<1x64xf32>
    %418 = arith.subf %410, %417 : vector<1x64xf32>
    %419 = arith.mulf %418, %418 : vector<1x64xf32>
    %cst_179 = arith.constant dense<0.000000e+00> : vector<1xf32>
    %420 = vector.multi_reduction <add>, %419, %cst_179 [1] : vector<1x64xf32> to vector<1xf32>
    %421 = vector.shape_cast %420 : vector<1xf32> to vector<1x1xf32>
    %cst_180 = arith.constant 6.400000e+01 : f32
    %422 = vector.broadcast %cst_180 : f32 to vector<1x1xf32>
    %423 = arith.divf %421, %422 : vector<1x1xf32>
    %cst_181 = arith.constant 9.99999974E-6 : f32
    %424 = vector.broadcast %cst_181 : f32 to vector<1x1xf32>
    %425 = arith.addf %423, %424 : vector<1x1xf32>
    %426 = math.rsqrt %425 : vector<1x1xf32>
    %427 = vector.broadcast %426 : vector<1x1xf32> to vector<1x64xf32>
    %428 = arith.mulf %418, %427 : vector<1x64xf32>
    %429 = arith.mulf %428, %411 : vector<1x64xf32>
    %430 = arith.addf %429, %412 : vector<1x64xf32>
    %431 = arith.truncf %430 : vector<1x64xf32> to vector<1x64xbf16>
    %c0_182 = arith.constant 0 : index
    %c0_183 = arith.constant 0 : index
    %432 = vector.load %arg20[%c0_182, %c0_183] : memref<64x32xbf16, #tpu.memory_space<vmem>>, vector<64x32xbf16>
    %cst_184 = arith.constant dense<0.000000e+00> : vector<1x32xf32>
    %433 = tpu.matmul %431, %432, %cst_184 {dimension_numbers = #tpu.dot_dimension_numbers<[1], [0], [0], [1], [0, 0, 1, 1], [], []>} : vector<1x64xbf16>, vector<64x32xbf16>, vector<1x32xf32> -> vector<1x32xf32>
    %c0_185 = arith.constant 0 : index
    %c0_186 = arith.constant 0 : index
    %c0_187 = arith.constant 0 : index
    %434 = vector.load %arg21[%c0_185, %c0_186, %c0_187] : memref<1x1x32xf32, #tpu.memory_space<vmem>>, vector<1x1x32xf32>
    %435 = vector.shape_cast %434 : vector<1x1x32xf32> to vector<1x32xf32>
    %436 = vector.shape_cast %433 : vector<1x32xf32> to vector<1x1x32xf32>
    tpu.vector_store %arg21[%c0_185, %c0_186, %c0_187], %436 {strides = array<i32>} : memref<1x1x32xf32, #tpu.memory_space<vmem>>, vector<1x1x32xf32>,
    return
  }
  func.func @transform_0(%arg0: i32) -> (i32, i32, i32) {
    %c0_i32 = arith.constant 0 : i32
    %c0_i32_0 = arith.constant 0 : i32
    %c0_i32_1 = arith.constant 0 : i32
    return %arg0, %c0_i32, %c0_i32_0 : i32, i32, i32
  }
  func.func @transform_1(%arg0: i32) -> (i32, i32) {
    %c0_i32 = arith.constant 0 : i32
    %c0_i32_0 = arith.constant 0 : i32
    %c0_i32_1 = arith.constant 0 : i32
    return %c0_i32, %c0_i32_0 : i32, i32
  }
  func.func @transform_2(%arg0: i32) -> (i32, i32) {
    %c0_i32 = arith.constant 0 : i32
    %c0_i32_0 = arith.constant 0 : i32
    %c0_i32_1 = arith.constant 0 : i32
    return %c0_i32, %c0_i32_0 : i32, i32
  }
  func.func @transform_3(%arg0: i32) -> (i32, i32) {
    %c0_i32 = arith.constant 0 : i32
    %c0_i32_0 = arith.constant 0 : i32
    %c0_i32_1 = arith.constant 0 : i32
    return %c0_i32, %c0_i32_0 : i32, i32
  }
  func.func @transform_4(%arg0: i32) -> (i32, i32) {
    %c0_i32 = arith.constant 0 : i32
    %c0_i32_0 = arith.constant 0 : i32
    %c0_i32_1 = arith.constant 0 : i32
    return %c0_i32, %c0_i32_0 : i32, i32
  }
  func.func @transform_5(%arg0: i32) -> (i32, i32, i32) {
    %c0_i32 = arith.constant 0 : i32
    %c0_i32_0 = arith.constant 0 : i32
    %c0_i32_1 = arith.constant 0 : i32
    %c0_i32_2 = arith.constant 0 : i32
    return %c0_i32, %c0_i32_0, %c0_i32_1 : i32, i32, i32
  }
  func.func @transform_6(%arg0: i32) -> (i32, i32, i32) {
    %c0_i32 = arith.constant 0 : i32
    %c0_i32_0 = arith.constant 0 : i32
    %c0_i32_1 = arith.constant 0 : i32
    %c0_i32_2 = arith.constant 0 : i32
    return %c0_i32, %c0_i32_0, %c0_i32_1 : i32, i32, i32
  }
  func.func @transform_7(%arg0: i32) -> (i32, i32, i32) {
    %c0_i32 = arith.constant 0 : i32
    %c0_i32_0 = arith.constant 0 : i32
    %c0_i32_1 = arith.constant 0 : i32
    %c0_i32_2 = arith.constant 0 : i32
    return %c0_i32, %c0_i32_0, %c0_i32_1 : i32, i32, i32
  }
  func.func @transform_8(%arg0: i32) -> (i32, i32, i32) {
    %c0_i32 = arith.constant 0 : i32
    %c0_i32_0 = arith.constant 0 : i32
    %c0_i32_1 = arith.constant 0 : i32
    %c0_i32_2 = arith.constant 0 : i32
    return %c0_i32, %c0_i32_0, %c0_i32_1 : i32, i32, i32
  }
  func.func @transform_9(%arg0: i32) -> (i32, i32, i32) {
    %c0_i32 = arith.constant 0 : i32
    %c0_i32_0 = arith.constant 0 : i32
    %c0_i32_1 = arith.constant 0 : i32
    %c0_i32_2 = arith.constant 0 : i32
    return %c0_i32, %c0_i32_0, %c0_i32_1 : i32, i32, i32
  }
  func.func @transform_10(%arg0: i32) -> (i32, i32, i32) {
    %c0_i32 = arith.constant 0 : i32
    %c0_i32_0 = arith.constant 0 : i32
    %c0_i32_1 = arith.constant 0 : i32
    %c0_i32_2 = arith.constant 0 : i32
    return %c0_i32, %c0_i32_0, %c0_i32_1 : i32, i32, i32
  }
  func.func @transform_11(%arg0: i32) -> (i32, i32, i32) {
    %c0_i32 = arith.constant 0 : i32
    %c0_i32_0 = arith.constant 0 : i32
    %c0_i32_1 = arith.constant 0 : i32
    %c0_i32_2 = arith.constant 0 : i32
    return %c0_i32, %c0_i32_0, %c0_i32_1 : i32, i32, i32
  }
  func.func @transform_12(%arg0: i32) -> (i32, i32, i32) {
    %c0_i32 = arith.constant 0 : i32
    %c0_i32_0 = arith.constant 0 : i32
    %c0_i32_1 = arith.constant 0 : i32
    %c0_i32_2 = arith.constant 0 : i32
    return %c0_i32, %c0_i32_0, %c0_i32_1 : i32, i32, i32
  }
  func.func @transform_13(%arg0: i32) -> (i32, i32, i32) {
    %c0_i32 = arith.constant 0 : i32
    %c0_i32_0 = arith.constant 0 : i32
    %c0_i32_1 = arith.constant 0 : i32
    %c0_i32_2 = arith.constant 0 : i32
    return %c0_i32, %c0_i32_0, %c0_i32_1 : i32, i32, i32
  }
  func.func @transform_14(%arg0: i32) -> (i32, i32, i32) {
    %c0_i32 = arith.constant 0 : i32
    %c0_i32_0 = arith.constant 0 : i32
    %c0_i32_1 = arith.constant 0 : i32
    %c0_i32_2 = arith.constant 0 : i32
    return %c0_i32, %c0_i32_0, %c0_i32_1 : i32, i32, i32
  }
  func.func @transform_15(%arg0: i32) -> (i32, i32, i32) {
    %c0_i32 = arith.constant 0 : i32
    %c0_i32_0 = arith.constant 0 : i32
    %c0_i32_1 = arith.constant 0 : i32
    %c0_i32_2 = arith.constant 0 : i32
    return %c0_i32, %c0_i32_0, %c0_i32_1 : i32, i32, i32
  }
  func.func @transform_16(%arg0: i32) -> (i32, i32, i32) {
    %c0_i32 = arith.constant 0 : i32
    %c0_i32_0 = arith.constant 0 : i32
    %c0_i32_1 = arith.constant 0 : i32
    %c0_i32_2 = arith.constant 0 : i32
    return %c0_i32, %c0_i32_0, %c0_i32_1 : i32, i32, i32
  }
  func.func @transform_17(%arg0: i32) -> (i32, i32) {
    %c0_i32 = arith.constant 0 : i32
    %c0_i32_0 = arith.constant 0 : i32
    %c0_i32_1 = arith.constant 0 : i32
    return %c0_i32, %c0_i32_0 : i32, i32
  }
  func.func @transform_18(%arg0: i32) -> (i32, i32) {
    %c0_i32 = arith.constant 0 : i32
    %c0_i32_0 = arith.constant 0 : i32
    %c0_i32_1 = arith.constant 0 : i32
    return %c0_i32, %c0_i32_0 : i32, i32
  }
  func.func @transform_19(%arg0: i32) -> (i32, i32) {
    %c0_i32 = arith.constant 0 : i32
    %c0_i32_0 = arith.constant 0 : i32
    %c0_i32_1 = arith.constant 0 : i32
    return %c0_i32, %c0_i32_0 : i32, i32
  }
  func.func @transform_20(%arg0: i32) -> (i32, i32, i32) {
    %c0_i32 = arith.constant 0 : i32
    %c0_i32_0 = arith.constant 0 : i32
    %c0_i32_1 = arith.constant 0 : i32
    return %arg0, %c0_i32, %c0_i32_0 : i32, i32, i32
  }
}

</mosaic_0001>

<bundles_post_ra>
// kernel: frozen_clip_image_embedder.3
= control target key start
LH: loop header
LB: loop body
LE: loop exit
PB: predicated region body
PF: predicated region fallthrough
CT: control target
= control target key end

     0   :  { %s9165_s0 = inlined_call_operand.vmem [shape: f32[2,49,64], index: 0, kind: input, shape index: {}]   ;;  %s9166_s1 = inlined_call_operand.vmem [shape: f32[1,64], index: 1, kind: input, shape index: {}]   ;;  %s9167_s2 = inlined_call_operand.vmem [shape: f32[50,64], index: 2, kind: input, shape index: {}]   ;;  %s9168_s3 = inlined_call_operand.vmem [shape: f32[1,64], index: 3, kind: input, shape index: {}]   ;;  %s9169_s4 = inlined_call_operand.vmem [shape: f32[1,64], index: 4, kind: input, shape index: {}]   ;;  %s9170_s5 = inlined_call_operand.vmem [shape: f32[2,1,64], index: 5, kind: input, shape index: {}]   ;;  %s9171_s6 = inlined_call_operand.vmem [shape: f32[2,1,64], index: 6, kind: input, shape index: {}]   ;;  %s9172_s7 = inlined_call_operand.vmem [shape: bf16[2,64,192], index: 7, kind: input, shape index: {}]   ;;  %s9173_s8 = inlined_call_operand.vmem [shape: f32[2,1,192], index: 8, kind: input, shape index: {}]   ;;  %s9174_s9 = inlined_call_operand.vmem [shape: bf16[2,64,64], index: 9, kind: input, shape index: {}]   ;;  %s9175_s10 = inlined_call_operand.vmem [shape: f32[2,1,64], index: 10, kind: input, shape index: {}]   ;;  %s9176_s11 = inlined_call_operand.vmem [shape: f32[2,1,64], index: 11, kind: input, shape index: {}]   ;;  %s9177_s12 = inlined_call_operand.vmem [shape: f32[2,1,64], index: 12, kind: input, shape index: {}]   ;;  %s9178_s13 = inlined_call_operand.vmem [shape: bf16[2,64,256], index: 13, kind: input, shape index: {}]   ;;  %s9179_s14 = inlined_call_operand.vmem [shape: f32[2,1,256], index: 14, kind: input, shape index: {}]   ;;  %s9180_s15 = inlined_call_operand.vmem [shape: bf16[2,256,64], index: 15, kind: input, shape index: {}]   ;;  %s9181_s16 = inlined_call_operand.vmem [shape: f32[2,1,64], index: 16, kind: input, shape index: {}]   ;;  %s9182_s17 = inlined_call_operand.vmem [shape: f32[1,64], index: 17, kind: input, shape index: {}]   ;;  %s9183_s18 = inlined_call_operand.vmem [shape: f32[1,64], index: 18, kind: input, shape index: {}]   ;;  %s9184_s19 = inlined_call_operand.vmem [shape: bf16[64,32], index: 19, kind: input, shape index: {}]   ;;  %s9185_s20 = inlined_call_operand.hbm [shape: f32[2,1,32], index: 20, kind: output, shape index: {}]  }
   0x1   :  { %9204 = sst [smem:[#allocation13_spill]] %s9165_s0 }
   0x2   :  { %9205 = sst [smem:[#allocation14_spill]] %s9166_s1 }
   0x3   :  { %9206 = sst [smem:[#allocation15_spill]] %s9167_s2 }
   0x4   :  { %9207 = sst [smem:[#allocation16_spill]] %s9168_s3 }
   0x5   :  { %9208 = sst [smem:[#allocation17_spill]] %s9169_s4 }
   0x6   :  { %9209 = sst [smem:[#allocation18_spill]] %s9185_s20 }
   0x7   :  { %25 = vsyncpa [#allocation4], 0 }
   0x8   :  { %27 = vsyncpa [#allocation4 + $0x1], 0  ;;  %s7351_s1 = smov 0   ;;  %s7353_s22 = smov 0  }
   0x9   :  { %s7355_s23 = smov 0   ;;  %s7357_s24 = smov 0  }
   0xa LB: > { %9210 = sst [smem:[#allocation6_spill]] %s7221_s1  ;;  %s7372_s2 = sadd.s32 4294967295, %s7233_s24   ;;  %s7233_s24 = sphi %s7357_s24, %s9233_s24   ;;  %s7229_s23 = sphi %s7355_s23, %s9235_s23   ;;  %s7225_s22 = sphi %s7353_s22, %s9237_s22   ;;  %s7221_s1 = sphi %s7351_s1, %s9236_s1  }
   0xb   : > { %9211 = sst [smem:[#allocation7_spill]] %s7229_s23  ;;  %s5679_s25 = sadd.s32 4294967294, %s7233_s24  }
   0xc   : > { %9212 = sst [smem:[#allocation8_spill]] %s7233_s24  ;;  %s7376_s3 = sadd.s32 1, %s7233_s24  }
   0xd   : > { %9213 = sst [smem:[#allocation9_spill]] %s7376_s3  ;;  %s465_s26 = sadd.s32 1, %s7229_s23 }
   0xe   : > { %s462_s27 = ssub.s32 %s7233_s24, %s7376_s3  ;;  %p475_p0 = scmp.ne.s32.totalorder %s7229_s23, %s7225_s22 }
   0xf   : > { %p463_p1 = scmp.eq.s32.totalorder %s462_s27, 0  ;;  %p476_p2 = scmp.eq.s32.totalorder %s7372_s2, 1 }
  0x10   : > { %p481_p3 = scmp.ne.s32.totalorder %s7225_s22, %s7221_s1  ;;  %p482_p4 = scmp.eq.s32.totalorder %s5679_s25, 1 }
  0x11   : > { %s7387_s28 = scalar_select %p463_p1, %s7229_s23, %s465_s26  }
  0x12   : > { %p7389_p5 = por %p476_p2, %p475_p0  ;;  %p7393_p6 = por %p482_p4, %p481_p3 }
  0x13   : > { %9214 = sst [smem:[#allocation10_spill]] %s7387_s28  ;;  %p5682_p7 = scmp.ge.s32.totalorder %s7233_s24, 1 }
  0x14   : > { %s9215_s4 = scalar_select %p7389_p5, 1, 0 }
  0x15   : > { %s9217_s29 = scalar_select %p7393_p6, 1, 0 }
  0x16   : > { %9216 = sst [smem:[#allocation11_spill]] %s9215_s4  ;;  %p565_p8 = scmp.lt.s32.totalorder %s7233_s24, 3 }
  0x17   : > { %9218 = sst [smem:[#allocation12_spill]] %s9217_s29 }
  0x18   : > { %p566_p9 = pnand %p5682_p7, %p565_p8 }
  0x19   : > { %p622_p10 = scmp.lt.s32.totalorder (!%p566_p9), %s7372_s2, 1  ;;  %s9219_s21 = sld [smem:[#allocation14_spill]] (!%p566_p9) }
  0x1a   : > { %569 = sbr.rel (%p566_p9) target bundleno = 7725 (0x1e2d), region = 100  ;;  %s9220_s27 = sld [smem:[#allocation15_spill]] (!%p566_p9) }
  0x1b   : > { %s9221_s30 = sld [smem:[#allocation13_spill]] (!%p566_p9)  ;;  %s7238_s25 = smov (!%p566_p9), 112  }
  0x1c   : > { %s9223_s26 = sld [smem:[#allocation17_spill]] (!%p566_p9)  ;;  %s9200_s23 = smov (!%p566_p9), 96  }
  0x1d   : > { %s9198_s3 = smov (!%p566_p9), 16   ;;  %s9196_s1 = smov (!%p566_p9), 80  }
  0x1e   : > { %s620_s20 = sand.u32 (!%p566_p9), 1, %s7225_s22   ;;  %s5979_s4 = sshll.u32 (!%p566_p9), %s7372_s2, 4 }
  0x1f   : > { %v628_v0 = vld [vmem:[%s9219_s21] sm:$0x1]  ;;  %vm631_vm0 = vcmask 516096   ;;  %s623_s28 = scalar_select %p622_p10, %s7372_s2, 1  ;;  %vm654_vm1 = vcmask 523264   ;;  %vm689_vm2 = vcmask 517120  }
  0x20   : > { %v629_v1 = vld [vmem:[%s9220_s27] sm:$0x1]  ;;  %v640_v3 = vld [vmem:[%s9220_s27 + $0x1] sm:$0xff]  ;;  %v641_v4 = vld [vmem:[%s9220_s27 + $0x9] sm:$0xff]  ;;  %vm1091_vm3 = vcmask 130048   ;;  %vm1279_vm4 = vcmask 1040384  }
  0x21   : > { %v630_v2 = vadd.f32 %v629_v1, %v628_v0  ;;  %v642_v5 = vld [vmem:[%s9220_s27 + $0x11] sm:$0xff]  ;;  %s6623_s0 = smul.u32 56, %s623_s28  ;;  %v643_v6 = vld [vmem:[%s9220_s27 + $0x19] sm:$0xff]  ;;  %v644_v7 = vld [vmem:[%s9220_s27 + $0x21] sm:$0xff]  ;;  %s7237_s21 = smov 48   ;;  %vm1180_vm5 = vcmask 408576  }
  0x22   : > { %v645_v8 = vld [vmem:[%s9220_s27 + $0x29] sm:$0xff]  ;;  %v646_v9 = vld [vmem:[%s9220_s27 + $0x31] sm:$0x1]  ;;  %vm1199_vm6 = vcmask 402432   ;;  %vm7244_vm7 = vmmov 0   ;;  %s621_s29 = scalar_lea.vmem [#allocation3], %s620_s20 }
  0x23   : > { %632 = vst.msk [vmem:[#allocation2] sm:$0x1] %vm631_vm0, %v630_v2  ;;  %s626_s28 = scalar_lea.vmem %s9221_s30, %s6623_s0  ;;  %s9222_s0 = sld [smem:[#allocation16_spill]]  ;;  %vm5609_vm8 = vcmask 253952  }
  0x24   : > { %v633_v10 = vld [vmem:[%s626_s28] sm:$0xff]  ;;  %v634_v11 = vld [vmem:[%s626_s28 + $0x8] sm:$0xff]  ;;  %v635_v12 = vld [vmem:[%s626_s28 + $0x10] sm:$0xff]  ;;  %s5624_s24 = sshll.u32 %s621_s29, 4  ;;  %s7245_s2 = smov [#allocation3]   ;;  %s9126_s24 = int_to_ptr.vmem [resolvable:$true] %s5624_s24 }
  0x25   : > { %v647_v13 = vadd.f32 %v640_v3, %v633_v10  ;;  %v648_v14 = vadd.f32 %v641_v4, %v634_v11  ;;  %v649_v15 = vadd.f32 %v642_v5, %v635_v12  ;;  %v636_v16 = vld [vmem:[%s626_s28 + $0x18] sm:$0xff]  ;;  %v637_v17 = vld [vmem:[%s626_s28 + $0x20] sm:$0xff]  ;;  %v638_v18 = vld [vmem:[%s626_s28 + $0x28] sm:$0xff] }
  0x26   : > { %v650_v19 = vadd.f32 %v643_v6, %v636_v16  ;;  %v651_v20 = vadd.f32 %v644_v7, %v637_v17  ;;  %v652_v21 = vadd.f32 %v645_v8, %v638_v18  ;;  %v639_v22 = vld [vmem:[%s626_s28 + $0x30] sm:$0x1] }
  0x27   : > { %655 = vst.msk [vmem:[#allocation2 + $0x1] sm:$0xff] %vm654_vm1, %v647_v13  ;;  %656 = vst.msk [vmem:[#allocation2 + $0x9] sm:$0xff] %vm654_vm1, %v648_v14  ;;  %v653_v23 = vadd.f32 %v646_v9, %v639_v22 }
  0x28   : > { %657 = vst.msk [vmem:[#allocation2 + $0x11] sm:$0xff] %vm654_vm1, %v649_v15  ;;  %658 = vst.msk [vmem:[#allocation2 + $0x19] sm:$0xff] %vm654_vm1, %v650_v19 }
  0x29   : > { %659 = vst.msk [vmem:[#allocation2 + $0x21] sm:$0xff] %vm654_vm1, %v651_v20  ;;  %660 = vst.msk [vmem:[#allocation2 + $0x29] sm:$0xff] %vm654_vm1, %v652_v21 }
  0x2a   : > { %661 = vst.msk [vmem:[#allocation2 + $0x31] sm:$0x1] %vm631_vm0, %v653_v23 }
  0x2e   : > { %v662_v24 = vld [vmem:[#allocation2] sm:$0xff]  ;;  %v663_v26 = vld [vmem:[#allocation2 + $0x8] sm:$0xff] }
  0x2f   : > { %v664_v25 = vld [vmem:[#allocation2 + $0x10] sm:$0xff]  ;;  %v671_v27 = vsel %vm654_vm1, %v662_v24, 0.0  ;;  %v665_v29 = vld [vmem:[#allocation2 + $0x18] sm:$0xff]  ;;  %v674_v32 = vsel %vm654_vm1, %v663_v26, 0.0 }
  0x30   : > { %v677_v28 = vsel %vm654_vm1, %v664_v25, 0.0  ;;  %v666_v30 = vld [vmem:[#allocation2 + $0x20] sm:$0xff]  ;;  %v667_v31 = vld [vmem:[#allocation2 + $0x28] sm:$0xff]  ;;  %672 = vadd.xlane.f32.xlu0 %v671_v27  ;;  %v680_v33 = vsel %vm654_vm1, %v665_v29, 0.0 }
  0x31   : > { %678 = vadd.xlane.f32.xlu1 %v677_v28  ;;  %v683_v34 = vsel %vm654_vm1, %v666_v30, 0.0  ;;  %v686_v35 = vsel %vm654_vm1, %v667_v31, 0.0  ;;  %v668_v36 = vld [vmem:[#allocation2 + $0x30] sm:$0x3] }
  0x32   : > { %v690_v37 = vsel %vm689_vm2, %v668_v36, 0.0 }
  0x34   : > { %675 = vadd.xlane.f32.xlu0 %v674_v32 }
  0x35   : > { %681 = vadd.xlane.f32.xlu1 %v680_v33  ;;  %v5685_v33 = vld [vmem:[%s9223_s26] ss:$0 sm:$0xff]  ;;  %s9202_s26 = smov 32  }
  0x38   : > { %684 = vadd.xlane.f32.xlu0 %v683_v34 }
  0x39   : > { %687 = vadd.xlane.f32.xlu1 %v686_v35 }
  0x3c   : > { %691 = vadd.xlane.f32.xlu0 %v690_v37 }
  0xb9   : > { %v673_v38 = vpop.xlane.xlu0 %672 }
  0xba   : > { %v679_v39 = vpop.xlane.xlu1 %678  ;;  %v694_v40 = vmul.f32 0.015625, %v673_v38 }
  0xbb   : > { %v696_v41 = vmul.f32 0.015625, %v679_v39 }
  0xbc   : > { %v7446_v42 = vsub.f32 %v662_v24, %v694_v40 }
  0xbd   : > { %v7448_v43 = vsub.f32 %v664_v25, %v696_v41  ;;  %v676_v44 = vpop.xlane.xlu0 %675 }
  0xbe   : > { %v682_v45 = vpop.xlane.xlu1 %681  ;;  %v695_v46 = vmul.f32 0.015625, %v676_v44  ;;  %v708_v48 = vmul.f32 %v7446_v42, %v7446_v42 }
  0xbf   : > { %v697_v47 = vmul.f32 0.015625, %v682_v45  ;;  %v710_v49 = vmul.f32 %v7448_v43, %v7448_v43 }
  0xc0   : > { %v7454_v50 = vsub.f32 %v663_v26, %v695_v46  ;;  %v715_v52 = vsel %vm654_vm1, %v708_v48, 0.0 }
  0xc1   : > { %v7456_v51 = vsub.f32 %v665_v29, %v697_v47  ;;  %716 = vadd.xlane.f32.xlu1 %v715_v52  ;;  %v685_v53 = vpop.xlane.xlu0 %684  ;;  %v721_v55 = vsel %vm654_vm1, %v710_v49, 0.0 }
  0xc2   : > { %v688_v54 = vpop.xlane.xlu1 %687  ;;  %v698_v56 = vmul.f32 0.015625, %v685_v53  ;;  %v709_v58 = vmul.f32 %v7454_v50, %v7454_v50 }
  0xc3   : > { %v699_v57 = vmul.f32 0.015625, %v688_v54  ;;  %v711_v59 = vmul.f32 %v7456_v51, %v7456_v51 }
  0xc4   : > { %v7464_v60 = vsub.f32 %v666_v30, %v698_v56  ;;  %v718_v62 = vsel %vm654_vm1, %v709_v58, 0.0 }
  0xc5   : > { %v7466_v61 = vsub.f32 %v667_v31, %v699_v57  ;;  %722 = vadd.xlane.f32.xlu1 %v721_v55  ;;  %719 = vadd.xlane.f32.xlu0 %v718_v62  ;;  %v692_v63 = vpop.xlane.xlu0 %691  ;;  %v724_v1 = vsel %vm654_vm1, %v711_v59, 0.0  ;;  %v5684_v31 = vld [vmem:[%s9222_s0] ss:$0 sm:$0xff]  ;;  %s7236_s0 = smov 64  }
  0xc6   : > { %v700_v0 = vmul.f32 0.015625, %v692_v63  ;;  %v712_v2 = vmul.f32 %v7464_v60, %v7464_v60 }
  0xc7   : > { %v713_v3 = vmul.f32 %v7466_v61, %v7466_v61 }
  0xc8   : > { %v7474_v4 = vsub.f32 %v668_v36, %v700_v0  ;;  %v727_v5 = vsel %vm654_vm1, %v712_v2, 0.0 }
  0xc9   : > { %725 = vadd.xlane.f32.xlu0 %v724_v1  ;;  %728 = vadd.xlane.f32.xlu1 %v727_v5  ;;  %v730_v6 = vsel %vm654_vm1, %v713_v3, 0.0 }
  0xca   : > { %v714_v7 = vmul.f32 %v7474_v4, %v7474_v4 }
  0xcc   : > { %v733_v8 = vsel %vm689_vm2, %v714_v7, 0.0 }
  0xcd   : > { %731 = vadd.xlane.f32.xlu0 %v730_v6  ;;  %734 = vadd.xlane.f32.xlu1 %v733_v8 }
 0x14a   : > { %v717_v9 = vpop.xlane.xlu1 %716 }
 0x14b   : > { %v736_v10 = vmul.f32 0.015625, %v717_v9 }
 0x14d   : > { %v743_v11 = vadd.f32 1e-05, %v736_v10 }
 0x14e   : > { %v723_v12 = vpop.xlane.xlu1 %722  ;;  %v720_v13 = vpop.xlane.xlu0 %719 }
 0x14f   : > { %6765 = vrsqrt.f32 %v743_v11  ;;  %v738_v14 = vmul.f32 0.015625, %v723_v12  ;;  %v737_v15 = vmul.f32 0.015625, %v720_v13 }
 0x151   : > { %v745_v16 = vadd.f32 1e-05, %v738_v14  ;;  %v744_v17 = vadd.f32 1e-05, %v737_v15 }
 0x152   : > { %v729_v18 = vpop.xlane.xlu1 %728  ;;  %v726_v19 = vpop.xlane.xlu0 %725 }
 0x153   : > { %6767 = vrsqrt.f32 %v745_v16  ;;  %v740_v20 = vmul.f32 0.015625, %v729_v18  ;;  %v739_v21 = vmul.f32 0.015625, %v726_v19 }
 0x154   : > { %6769 = vrsqrt.f32 %v744_v17 }
 0x155   : > { %v747_v22 = vadd.f32 1e-05, %v740_v20  ;;  %v746_v23 = vadd.f32 1e-05, %v739_v21 }
 0x156   : > { %v735_v24 = vpop.xlane.xlu1 %734  ;;  %v732_v25 = vpop.xlane.xlu0 %731 }
 0x157   : > { %6771 = vrsqrt.f32 %v747_v22  ;;  %v742_v26 = vmul.f32 0.015625, %v735_v24  ;;  %v741_v27 = vmul.f32 0.015625, %v732_v25 }
 0x158   : > { %6773 = vrsqrt.f32 %v746_v23 }
 0x159   : > { %v749_v28 = vadd.f32 1e-05, %v742_v26  ;;  %v748_v29 = vadd.f32 1e-05, %v741_v27 }
 0x15b   : > { %6775 = vrsqrt.f32 %v749_v28 }
 0x15c   : > { %v6766_v30 = vpop.eup %6765  ;;  %6777 = vrsqrt.f32 %v748_v29 }
 0x15d   : > { %v757_v32 = vmul.f32 %v6766_v30, %v7446_v42 }
 0x15f   : > { %v770_v34 = vmul.f32 %v5684_v31, %v757_v32 }
 0x160   : > { %v6768_v35 = vpop.eup %6767 }
 0x161   : > { %v6770_v36 = vpop.eup %6769  ;;  %v7488_v37 = vadd.f32 %v5685_v33, %v770_v34  ;;  %v759_v38 = vmul.f32 %v6768_v35, %v7448_v43 }
 0x162   : > { %v758_v39 = vmul.f32 %v6770_v36, %v7454_v50 }
 0x163   : > { %v792_v40 = vsel %vm654_vm1, %v7488_v37, 0.0  ;;  %v772_v41 = vmul.f32 %v5684_v31, %v759_v38 }
 0x164   : > { %v6772_v44 = vpop.eup %6771  ;;  %793 = vadd.xlane.f32.xlu0 %v792_v40  ;;  %v771_v42 = vmul.f32 %v5684_v31, %v758_v39  ;;  %v6673_v39 = vld [vmem:[%s9172_s7 + $0x34] ss:$8 sps:$4 sm:$0xff]   ;;  %v6675_v40 = vld [vmem:[%s9172_s7 + $0x30] ss:$8 sps:$4 sm:$0xff]  }
 0x165   : > { %v6774_v45 = vpop.eup %6773  ;;  %v7494_v46 = vadd.f32 %v5685_v33, %v772_v41  ;;  %v761_v47 = vmul.f32 %v6772_v44, %v7464_v60  ;;  %1001 = vmatprep.subr.bf16.mxu0 %v6673_v39  ;;  %v6676_v41 = vld [vmem:[%s9172_s7 + $0x24] ss:$8 sps:$4 sm:$0xff]   ;;  %v6678_v44 = vld [vmem:[%s9172_s7 + $0x20] ss:$8 sps:$4 sm:$0xff]  }
 0x166   : > { %v7497_v48 = vadd.f32 %v5685_v33, %v771_v42  ;;  %v760_v49 = vmul.f32 %v6774_v45, %v7456_v51  ;;  %1002 = vmatpush1.bf16.msra.mxu0 %v6675_v40  ;;  %v6679_v42 = vld [vmem:[%s9172_s7 + $0x14] ss:$8 sps:$4 sm:$0xff]   ;;  %v6681_v45 = vld [vmem:[%s9172_s7 + $0x10] ss:$8 sps:$4 sm:$0xff]  }
 0x167   : > { %v798_v43 = vsel %vm654_vm1, %v7494_v46, 0.0  ;;  %v774_v50 = vmul.f32 %v5684_v31, %v761_v47  ;;  %1003 = vmatprep.subr.bf16.mxu0 %v6676_v41  ;;  %v7235_v47 = vmov 0  }
 0x168   : > { %v6776_v52 = vpop.eup %6775  ;;  %799 = vadd.xlane.f32.xlu0 %v798_v43  ;;  %v795_v53 = vsel %vm654_vm1, %v7497_v48, 0.0  ;;  %v773_v54 = vmul.f32 %v5684_v31, %v760_v49  ;;  %1025 = vmatprep.mubr.bf16.mxu0 %v7235_v47  ;;  %v6682_v49 = vld [vmem:[%s9172_s7 + $0x4] ss:$8 sps:$4 sm:$0xff]   ;;  %v6684_v43 = vld [vmem:[%s9172_s7] ss:$8 sps:$4 sm:$0xff]  }
 0x169   : > { %v6778_v55 = vpop.eup %6777  ;;  %796 = vadd.xlane.f32.xlu1 %v795_v53  ;;  %v7504_v56 = vadd.f32 %v5685_v33, %v774_v50  ;;  %v763_v57 = vmul.f32 %v6776_v52, %v7474_v4 }
 0x16a   : > { %v7507_v58 = vadd.f32 %v5685_v33, %v773_v54  ;;  %v762_v51 = vmul.f32 %v6778_v55, %v7466_v61  ;;  %1004 = vmatpush1.bf16.msra.mxu0 %v6678_v44 }
 0x16b   : > { %v804_v59 = vsel %vm654_vm1, %v7504_v56, 0.0  ;;  %v776_v60 = vmul.f32 %v5684_v31, %v763_v57  ;;  %1005 = vmatprep.subr.bf16.mxu0 %v6679_v42 }
 0x16c   : > { %805 = vadd.xlane.f32.xlu0 %v804_v59  ;;  %v801_v62 = vsel %vm654_vm1, %v7507_v58, 0.0  ;;  %v775_v63 = vmul.f32 %v5684_v31, %v762_v51 }
 0x16d   : > { %802 = vadd.xlane.f32.xlu1 %v801_v62  ;;  %v7514_v0 = vadd.f32 %v5685_v33, %v776_v60 }
 0x16e   : > { %v7516_v1 = vadd.f32 %v5685_v33, %v775_v63  ;;  %1006 = vmatpush1.bf16.msra.mxu0 %v6681_v45 }
 0x16f   : > { %v810_v2 = vsel %vm689_vm2, %v7514_v0, 0.0  ;;  %1007 = vmatprep.subr.bf16.mxu0 %v6682_v49 }
 0x170   : > { %811 = vadd.xlane.f32.xlu0 %v810_v2  ;;  %v807_v61 = vsel %vm654_vm1, %v7516_v1, 0.0 }
 0x171   : > { %808 = vadd.xlane.f32.xlu1 %v807_v61 }
 0x172   : > { %1008 = vmatpush1.bf16.msra.mxu0 %v6684_v43 }
 0x1ed   : > { %v794_v3 = vpop.xlane.xlu0 %793 }
 0x1ee   : > { %v813_v4 = vmul.f32 0.015625, %v794_v3 }
 0x1f0   : > { %v7523_v5 = vsub.f32 %v7488_v37, %v813_v4 }
 0x1f1   : > { %v800_v6 = vpop.xlane.xlu0 %799 }
 0x1f2   : > { %v797_v7 = vpop.xlane.xlu1 %796  ;;  %v815_v8 = vmul.f32 0.015625, %v800_v6  ;;  %v827_v9 = vmul.f32 %v7523_v5, %v7523_v5 }
 0x1f3   : > { %v814_v10 = vmul.f32 0.015625, %v797_v7 }
 0x1f4   : > { %v7528_v11 = vsub.f32 %v7494_v46, %v815_v8  ;;  %v834_v12 = vsel %vm654_vm1, %v827_v9, 0.0 }
 0x1f5   : > { %v7532_v13 = vsub.f32 %v7497_v48, %v814_v10  ;;  %835 = vadd.xlane.f32.xlu1 %v834_v12  ;;  %v806_v14 = vpop.xlane.xlu0 %805 }
 0x1f6   : > { %v803_v15 = vpop.xlane.xlu1 %802  ;;  %v817_v16 = vmul.f32 0.015625, %v806_v14  ;;  %v829_v17 = vmul.f32 %v7528_v11, %v7528_v11 }
 0x1f7   : > { %v816_v18 = vmul.f32 0.015625, %v803_v15  ;;  %v828_v19 = vmul.f32 %v7532_v13, %v7532_v13  ;;  %v5686_v15 = vld [vmem:[%s9170_s5] ss:$0 sm:$0xff] }
 0x1f8   : > { %v7539_v20 = vsub.f32 %v7504_v56, %v817_v16  ;;  %v840_v21 = vsel %vm654_vm1, %v829_v17, 0.0 }
 0x1f9   : > { %v7543_v22 = vsub.f32 %v7507_v58, %v816_v18  ;;  %v837_v23 = vsel %vm654_vm1, %v828_v19, 0.0  ;;  %841 = vadd.xlane.f32.xlu1 %v840_v21  ;;  %v812_v24 = vpop.xlane.xlu0 %811 }
 0x1fa   : > { %838 = vadd.xlane.f32.xlu0 %v837_v23  ;;  %v809_v25 = vpop.xlane.xlu1 %808  ;;  %v819_v26 = vmul.f32 0.015625, %v812_v24  ;;  %v831_v27 = vmul.f32 %v7539_v20, %v7539_v20  ;;  %v5687_v23 = vld [vmem:[%s9171_s6] ss:$0 sm:$0xff] }
 0x1fb   : > { %v818_v28 = vmul.f32 0.015625, %v809_v25  ;;  %v830_v29 = vmul.f32 %v7543_v22, %v7543_v22 }
 0x1fc   : > { %v7551_v30 = vsub.f32 %v7514_v0, %v819_v26  ;;  %v846_v31 = vsel %vm654_vm1, %v831_v27, 0.0 }
 0x1fd   : > { %v7555_v32 = vsub.f32 %v7516_v1, %v818_v28  ;;  %v843_v33 = vsel %vm654_vm1, %v830_v29, 0.0  ;;  %847 = vadd.xlane.f32.xlu1 %v846_v31 }
 0x1fe   : > { %844 = vadd.xlane.f32.xlu0 %v843_v33  ;;  %v833_v34 = vmul.f32 %v7551_v30, %v7551_v30 }
 0x1ff   : > { %v832_v35 = vmul.f32 %v7555_v32, %v7555_v32 }
 0x200   : > { %v852_v36 = vsel %vm689_vm2, %v833_v34, 0.0 }
 0x201   : > { %v849_v38 = vsel %vm654_vm1, %v832_v35, 0.0  ;;  %853 = vadd.xlane.f32.xlu1 %v852_v36 }
 0x202   : > { %850 = vadd.xlane.f32.xlu0 %v849_v38 }
 0x27e   : > { %v836_v50 = vpop.xlane.xlu1 %835 }
 0x27f   : > { %v855_v52 = vmul.f32 0.015625, %v836_v50  ;;  %v931_v50 = vlaneseq }
 0x281   : > { %v862_v53 = vadd.f32 1e-05, %v855_v52  ;;  %v932_v52 = vshrl.u32 %v931_v50, 7 }
 0x282   : > { %v842_v54 = vpop.xlane.xlu1 %841 }
 0x283   : > { %6779 = vrsqrt.f32 %v862_v53  ;;  %v857_v55 = vmul.f32 0.015625, %v842_v54  ;;  %v839_v57 = vpop.xlane.xlu0 %838  ;;  %v7609_v53 = vsub.s32 0, %v932_v52  ;;  %v929_v54 = vld [vmem:[%s9173_s8] sm:$0x3] }
 0x284   : > { %v856_v51 = vmul.f32 0.015625, %v839_v57 }
 0x285   : > { %v864_v59 = vadd.f32 1e-05, %v857_v55 }
 0x286   : > { %v863_v60 = vadd.f32 1e-05, %v856_v51  ;;  %v848_v62 = vpop.xlane.xlu1 %847 }
 0x287   : > { %v845_v63 = vpop.xlane.xlu0 %844  ;;  %v859_v61 = vmul.f32 0.015625, %v848_v62 }
 0x288   : > { %6781 = vrsqrt.f32 %v863_v60  ;;  %v858_v2 = vmul.f32 0.015625, %v845_v63 }
 0x289   : > { %6783 = vrsqrt.f32 %v864_v59  ;;  %v866_v8 = vadd.f32 1e-05, %v859_v61 }
 0x28a   : > { %v865_v3 = vadd.f32 1e-05, %v858_v2  ;;  %v854_v7 = vpop.xlane.xlu1 %853 }
 0x28b   : > { %v851_v4 = vpop.xlane.xlu0 %850  ;;  %v861_v12 = vmul.f32 0.015625, %v854_v7 }
 0x28c   : > { %6785 = vrsqrt.f32 %v865_v3  ;;  %v860_v6 = vmul.f32 0.015625, %v851_v4 }
 0x28d   : > { %v868_v16 = vadd.f32 1e-05, %v861_v12  ;;  %v7619_v12 = vsub.s32 1, %v932_v52 }
 0x28e   : > { %v867_v9 = vadd.f32 1e-05, %v860_v6 }
 0x290   : > { %v6780_v10 = vpop.eup %6779  ;;  %6787 = vrsqrt.f32 %v867_v9 }
 0x291   : > { %6789 = vrsqrt.f32 %v866_v8  ;;  %v876_v14 = vmul.f32 %v6780_v10, %v7523_v5 }
 0x292   : > { %6791 = vrsqrt.f32 %v868_v16 }
 0x293   : > { %v889_v19 = vmul.f32 %v5686_v15, %v876_v14 }
 0x295   : > { %v6782_v17 = vpop.eup %6781  ;;  %v902_v26 = vadd.f32 %v5687_v23, %v889_v19 }
 0x296   : > { %v877_v18 = vmul.f32 %v6782_v17, %v7532_v13  ;;  %v6784_v21 = vpop.eup %6783 }
 0x297   : > { %v878_v5 = vmul.f32 %v6784_v21, %v7528_v11  ;;  %v938_v21 = vrot.slane %v929_v54, %v7619_v12 }
 0x298   : > { %v890_v24 = vmul.f32 %v5686_v15, %v877_v18 }
 0x299   : > { %v6786_v25 = vpop.eup %6785  ;;  %v891_v13 = vmul.f32 %v5686_v15, %v878_v5 }
 0x29a   : > { %v903_v27 = vadd.f32 %v5687_v23, %v890_v24  ;;  %v879_v28 = vmul.f32 %v6786_v25, %v7543_v22 }
 0x29b   : > { %v904_v38 = vadd.f32 %v5687_v23, %v891_v13 }
 0x29c   : > { %v925_v29 = vpack.c.bf16 %v903_v27, %v902_v26  ;;  %v892_v31 = vmul.f32 %v5686_v15, %v879_v28 }
 0x29d   : > { %v6788_v33 = vpop.eup %6787 }
 0x29e   : > { %5696 = vmatmul.mubr.msk.bf16.vlgmr.msra.gmra.mxu0 %vm654_vm1, %v925_v29  ;;  %v6790_v34 = vpop.eup %6789  ;;  %v905_v35 = vadd.f32 %v5687_v23, %v892_v31  ;;  %v881_v36 = vmul.f32 %v6788_v33, %v7555_v32 }
 0x29f   : > { %1035 = vmatprep.mubr.bf16.mxu0 %v7235_v47  ;;  %v880_v39 = vmul.f32 %v6790_v34, %v7539_v20  ;;  %v6792_v11 = vpop.eup %6791 }
 0x2a0   : > { %v926_v40 = vpack.c.bf16 %v905_v35, %v904_v38  ;;  %v894_v41 = vmul.f32 %v5686_v15, %v881_v36  ;;  %v882_v42 = vmul.f32 %v6792_v11, %v7551_v30  ;;  %v934_v30 = vrot.slane %v929_v54, %v7609_v53 }
 0x2a1   : > { %v893_v22 = vmul.f32 %v5686_v15, %v880_v39 }
 0x2a2   : > { %v907_v44 = vadd.f32 %v5687_v23, %v894_v41  ;;  %v895_v43 = vmul.f32 %v5686_v15, %v882_v42 }
 0x2a3   : > { %v906_v45 = vadd.f32 %v5687_v23, %v893_v22 }
 0x2a4   : > { %v908_v32 = vadd.f32 %v5687_v23, %v895_v43 }
 0x2a5   : > { %v927_v49 = vpack.c.bf16 %v907_v44, %v906_v45 }
 0x2a6   : > { %5697 = vmatmul.mubr.msk.bf16.gmra.mxu0 %vm654_vm1, %v926_v40  ;;  %v928_v20 = vpack.c.bf16 %v908_v32, %v908_v32 }
 0x2a7   : > { %1045 = vmatprep.mubr.bf16.mxu0 %v7235_v47 }
 0x2ae   : > { %5698 = vmatmul.mubr.msk.bf16.gmra.mxu0 %vm654_vm1, %v927_v49 }
 0x2af   : > { %1055 = vmatprep.mubr.bf16.mxu0 %v7235_v47 }
 0x2b6   : > { %5699 = vmatmul.mubr.msk.bf16.gmra.mxu0 %vm654_vm1, %v928_v20 }
 0x35e   : > { %v1027_v55 = vpop.f32.mrf.mxu0 }
 0x35f   : > { %v1028_v51 = vadd.f32 %v1027_v55, %v934_v30 }
 0x360   : > { %v1029_v57 = vpop.f32.mrf.mxu0 }
 0x361   : > { %v1064_v63 = vmul.f32 0.25, %v1028_v51  ;;  %v1030_v11 = vadd.f32 %v1029_v57, %v938_v21 }
 0x362   : > { %v1031_v59 = vpop.f32.mrf.mxu0 }
 0x363   : > { %v1032_v60 = vadd.f32 %v1031_v59, %v934_v30 }
 0x364   : > { %v1033_v62 = vpop.f32.mrf.mxu0 }
 0x365   : > { %v1065_v2 = vmul.f32 0.25, %v1032_v60  ;;  %v7642_v38 = vpack.c.bf16 %v1032_v60, %v1028_v51  ;;  %v1034_v40 = vadd.f32 %v1033_v62, %v938_v21 }
 0x366   : > { %v1037_v61 = vpop.f32.mrf.mxu0 }
 0x367   : > { %v7615_v3 = vpack.c.bf16 %v1065_v2, %v1064_v63  ;;  %v1038_v23 = vadd.f32 %v1037_v61, %v934_v30  ;;  %v7657_v22 = vpack.c.bf16 %v1034_v40, %v1030_v11 }
 0x368   : > { %v1039_v4 = vpop.f32.mrf.mxu0 }
 0x369   : > { %6243 = vmatprep.mubr.msk.bf16.mxu1 %vm1091_vm3, %v7615_v3  ;;  %v1040_v39 = vadd.f32 %v1039_v4, %v938_v21  ;;  %v1066_v49 = vmul.f32 0.25, %v1038_v23 }
 0x36a   : > { %v1041_v6 = vpop.f32.mrf.mxu0 }
 0x36b   : > { %v1042_v17 = vadd.f32 %v1041_v6, %v934_v30 }
 0x36c   : > { %v1043_v7 = vpop.f32.mrf.mxu0 }
 0x36d   : > { %v7626_v26 = vpack.c.bf16 %v1042_v17, %v1038_v23  ;;  %v1044_v34 = vadd.f32 %v1043_v7, %v938_v21  ;;  %v1067_v42 = vmul.f32 0.25, %v1042_v17 }
 0x36e   : > { %v1047_v8 = vpop.f32.mrf.mxu0 }
 0x36f   : > { %v1048_v14 = vadd.f32 %v1047_v8, %v934_v30  ;;  %v7649_v41 = vpack.c.bf16 %v1044_v34, %v1040_v39  ;;  %v7667_v32 = vpack.c.bf16 %v1067_v42, %v1066_v49 }
 0x370   : > { %v1049_v9 = vpop.f32.mrf.mxu0 }
 0x371   : > { %v1050_v31 = vadd.f32 %v1049_v9, %v938_v21  ;;  %v1068_v45 = vmul.f32 0.25, %v1048_v14 }
 0x372   : > { %v1051_v10 = vpop.f32.mrf.mxu0 }
 0x373   : > { %v1052_v15 = vadd.f32 %v1051_v10, %v934_v30 }
 0x374   : > { %v1053_v16 = vpop.f32.mrf.mxu0 }
 0x375   : > { %v7621_v18 = vpack.c.bf16 %v1052_v15, %v1048_v14  ;;  %v1054_v27 = vadd.f32 %v1053_v16, %v938_v21  ;;  %v1069_v44 = vmul.f32 0.25, %v1052_v15 }
 0x376   : > { %v1057_v19 = vpop.f32.mrf.mxu0 }
 0x377   : > { %v1058_v24 = vadd.f32 %v1057_v19, %v934_v30  ;;  %1087 = vrot.lane.b32.xlu1 %v7621_v18, %s7236_s0  ;;  %v7636_v35 = vpack.c.bf16 %v1054_v27, %v1050_v31  ;;  %v7665_v43 = vpack.c.bf16 %v1069_v44, %v1068_v45 }
 0x378   : > { %v1059_v25 = vpop.f32.mrf.mxu0 }
 0x379   : > { %v7628_v5 = vpack.c.bf16 %v1058_v24, %v1058_v24  ;;  %v1060_v28 = vadd.f32 %v1059_v25, %v938_v21  ;;  %v1070_v20 = vmul.f32 0.25, %v1058_v24 }
 0x37a   : > { %v1061_v29 = vpop.f32.mrf.mxu0 }
 0x37b   : > { %v7630_v33 = vpack.c.bf16 %v1060_v28, %v1060_v28  ;;  %1089 = vrot.lane.b32.xlu0 %v7628_v5, %s7236_s0  ;;  %1085 = vrot.lane.b32.xlu1 %v7626_v26, %s7236_s0  ;;  %v7674_v50 = vpack.c.bf16 %v1070_v20, %v1070_v20 }
 0x37c   : > { %v1062_v13 = vpop.f32.mrf.mxu0 }
 0x37d   : > { %6587 = vmatprep.subr.msk.bf16.mxu0 %vm1279_vm4, %v7630_v33  ;;  %v1281_v36 = vsel %vm1279_vm4, %v7630_v33, 0 }
 0x37e   : > { %6252 = vmatpush3.bf16.msra.mxu0 %v1281_v36 }
 0x37f   : > { %1369 = vrot.lane.b32.xlu0 %v7628_v5, %s7237_s21  ;;  %6253 = vmatprep.subr.bf16.mxu0 %v7636_v35 }
 0x380   : > { %1083 = vrot.lane.b32.xlu1 %v7642_v38, %s7236_s0 }
 0x382   : > { %6254 = vmatpush3.bf16.msra.mxu0 %v7636_v35 }
 0x383   : > { %1365 = vrot.lane.b32.xlu0 %v7626_v26, %s7237_s21  ;;  %6255 = vmatprep.subr.bf16.mxu0 %v7649_v41 }
 0x384   : > { %1367 = vrot.lane.b32.xlu1 %v7621_v18, %s7237_s21 }
 0x386   : > { %6256 = vmatpush3.bf16.msra.mxu0 %v7649_v41 }
 0x387   : > { %1355 = vrot.lane.b32.xlu0 %v7615_v3, %s7238_s25  ;;  %6257 = vmatprep.subr.bf16.mxu0 %v7657_v22 }
 0x388   : > { %1363 = vrot.lane.b32.xlu1 %v7642_v38, %s7237_s21 }
 0x38a   : > { %6258 = vmatpush3.bf16.msra.mxu0 %v7657_v22 }
 0x38b   : > { %1359 = vrot.lane.b32.xlu0 %v7665_v43, %s7238_s25 }
 0x38c   : > { %1357 = vrot.lane.b32.xlu1 %v7667_v32, %s7238_s25 }
 0x390   : > { %1361 = vrot.lane.b32.xlu1 %v7674_v50, %s7238_s25 }
 0x3e9   : > { %v1088_v30 = vpop.permute.xlu1 %1087 }
 0x3ea   : > { %v1111_v55 = vsel %vm1091_vm3, %v1088_v30, 0 }
 0x3ed   : > { %v1090_v52 = vpop.permute.xlu0 %1089  ;;  %v1086_v57 = vpop.permute.xlu1 %1085 }
 0x3ee   : > { %6583 = vmatprep.subr.msk.bf16.mxu1 %vm1091_vm3, %v1090_v52  ;;  %v1114_v54 = vsel %vm1091_vm3, %v1090_v52, 0  ;;  %v1108_v51 = vsel %vm1091_vm3, %v1086_v57, 0 }
 0x3ef   : > { %6236 = vmatpush3.bf16.xpose.msra.mxu1 %v1114_v54 }
 0x3f0   : > { %6584 = vmatprep.subr.msk.bf16.mxu1 %vm1091_vm3, %v1088_v30 }
 0x3f1   : > { %v1370_v62 = vpop.permute.xlu0 %1369 }
 0x3f2   : > { %v1084_v59 = vpop.permute.xlu1 %1083  ;;  %v1393_v63 = vsel %vm1091_vm3, %v1370_v62, 0 }
 0x3f3   : > { %v1105_v60 = vsel %vm1091_vm3, %v1084_v59, 0 }
 0x3f5   : > { %v1366_v61 = vpop.permute.xlu0 %1365 }
 0x3f6   : > { %v1368_v2 = vpop.permute.xlu1 %1367  ;;  %v1387_v7 = vsel %vm1091_vm3, %v1366_v61, 0 }
 0x3f7   : > { %6238 = vmatpush3.bf16.xpose.msra.mxu1 %v1111_v55  ;;  %v1390_v6 = vsel %vm1091_vm3, %v1368_v2, 0 }
 0x3f8   : > { %6585 = vmatprep.subr.msk.bf16.mxu1 %vm1091_vm3, %v1086_v57 }
 0x3f9   : > { %v1356_v4 = vpop.permute.xlu0 %1355 }
 0x3fa   : > { %v1364_v8 = vpop.permute.xlu1 %1363 }
 0x3fb   : > { %v1384_v9 = vsel %vm1091_vm3, %v1364_v8, 0 }
 0x3fd   : > { %v1360_v14 = vpop.permute.xlu0 %1359 }
 0x3fe   : > { %v1358_v10 = vpop.permute.xlu1 %1357 }
 0x3ff   : > { %6240 = vmatpush3.bf16.xpose.msra.mxu1 %v1108_v51 }
 0x400   : > { %6586 = vmatprep.subr.msk.bf16.mxu1 %vm1091_vm3, %v1084_v59 }
 0x402   : > { %v1362_v15 = vpop.permute.xlu1 %1361 }
 0x407   : > { %6242 = vmatpush3.bf16.xpose.msra.mxu1 %v1105_v60 }
 0x408   : > { %6588 = vmatprep.subr.msk.bf16.mxu1 %vm1091_vm3, %v1370_v62 }
 0x40e   : > { %6244 = vmatmul.mubr.msk.bf16.vlgmr.msra.gmra.mxu1 %vm1091_vm3, %v7667_v32 }
 0x40f   : > { %6247 = vmatprep.mubr.msk.bf16.mxu1 %vm1091_vm3, %v7665_v43  ;;  %6268 = vmatpush3.bf16.xpose.msra.mxu1 %v1393_v63 }
 0x410   : > { %6589 = vmatprep.subr.msk.bf16.mxu1 %vm1091_vm3, %v1368_v2 }
 0x416   : > { %6248 = vmatmul.mubr.msk.bf16.gmra.mxu1 %vm1091_vm3, %v7674_v50 }
 0x417   : > { %6270 = vmatpush3.bf16.xpose.msra.mxu1 %v1390_v6  ;;  %6275 = vmatprep.mubr.msk.bf16.mxu1 %vm1091_vm3, %v1356_v4 }
 0x418   : > { %6590 = vmatprep.subr.msk.bf16.mxu1 %vm1091_vm3, %v1366_v61 }
 0x41f   : > { %6272 = vmatpush3.bf16.xpose.msra.mxu1 %v1387_v7 }
 0x420   : > { %6591 = vmatprep.subr.msk.bf16.mxu1 %vm1091_vm3, %v1364_v8 }
 0x427   : > { %6274 = vmatpush3.bf16.xpose.msra.mxu1 %v1384_v9 }
 0x42e   : > { %6276 = vmatmul.mubr.msk.bf16.vlgmr.msra.gmra.mxu1 %vm1091_vm3, %v1358_v10 }
 0x42f   : > { %6279 = vmatprep.mubr.msk.bf16.mxu1 %vm1091_vm3, %v1360_v14 }
 0x436   : > { %6280 = vmatmul.mubr.msk.bf16.gmra.mxu1 %vm1091_vm3, %v1362_v15 }
 0x4ce   : > { %v6245_v16 = vpop.f32.mrf.mxu1 }
 0x4cf   : > { %v1187_v17 = vsel %vm1180_vm5, %v6245_v16, -inf }
 0x4d0   : > { %v1150_v19 = vpop.f32.mrf.mxu1  ;;  %1188 = vmax.xlane.f32.xlu0 %v1187_v17 }
 0x4d1   : > { %v1181_v23 = vsel %vm1180_vm5, %v1150_v19, -inf }
 0x4d2   : > { %v6246_v21 = vpop.f32.mrf.mxu1 }
 0x4d3   : > { %v1190_v28 = vsel %vm1180_vm5, %v6246_v21, -inf }
 0x4d4   : > { %v1153_v24 = vpop.f32.mrf.mxu1  ;;  %1182 = vmax.xlane.f32.xlu0 %v1181_v23 }
 0x4d5   : > { %v1184_v25 = vsel %vm1180_vm5, %v1153_v24, -inf }
 0x4d6   : > { %1185 = vmax.xlane.f32.xlu1 %v1184_v25  ;;  %v6249_v27 = vpop.f32.mrf.mxu1 }
 0x4d7   : > { %v1200_v13 = vsel %vm1199_vm6, %v6249_v27, -inf }
 0x4d8   : > { %1191 = vmax.xlane.f32.xlu0 %v1190_v28  ;;  %v1166_v29 = vpop.f32.mrf.mxu1 }
 0x4d9   : > { %v1193_v39 = vsel %vm1180_vm5, %v1166_v29, -inf }
 0x4da   : > { %v6250_v31 = vpop.f32.mrf.mxu1 }
 0x4dc   : > { %1201 = vmax.xlane.f32.xlu0 %v1200_v13  ;;  %v1169_v34 = vpop.f32.mrf.mxu1 }
 0x4dd   : > { %v1196_v36 = vsel %vm1180_vm5, %v1169_v34, -inf }
 0x4de   : > { %1197 = vmax.xlane.f32.xlu1 %v1196_v36 }
 0x4e0   : > { %1194 = vmax.xlane.f32.xlu0 %v1193_v39 }
 0x4ee   : > { %v7711_v40 = vpop.f32.mrf.mxu1 }
 0x4ef   : > { %v1465_v11 = vsel %vm1180_vm5, %v7711_v40, -inf }
 0x4f0   : > { %v7715_v44 = vpop.f32.mrf.mxu1  ;;  %1466 = vmax.xlane.f32.xlu1 %v1465_v11 }
 0x4f1   : > { %v1459_v49 = vsel %vm1180_vm5, %v7715_v44, -inf }
 0x4f2   : > { %v7717_v42 = vpop.f32.mrf.mxu1 }
 0x4f3   : > { %v1468_v45 = vsel %vm1180_vm5, %v7717_v42, -inf }
 0x4f4   : > { %1469 = vmax.xlane.f32.xlu0 %v1468_v45  ;;  %v7723_v20 = vpop.f32.mrf.mxu1  ;;  %1460 = vmax.xlane.f32.xlu1 %v1459_v49 }
 0x4f5   : > { %v1462_v54 = vsel %vm1180_vm5, %v7723_v20, -inf }
 0x4f6   : > { %v7725_v52 = vpop.f32.mrf.mxu1 }
 0x4f7   : > { %v1477_v30 = vsel %vm1199_vm6, %v7725_v52, -inf }
 0x4f8   : > { %1463 = vmax.xlane.f32.xlu0 %v1462_v54  ;;  %v7731_v55 = vpop.f32.mrf.mxu1  ;;  %1478 = vmax.xlane.f32.xlu1 %v1477_v30 }
 0x4f9   : > { %v1471_v51 = vsel %vm1180_vm5, %v7731_v55, -inf }
 0x4fa   : > { %v6282_v57 = vpop.f32.mrf.mxu1 }
 0x4fc   : > { %v7735_v59 = vpop.f32.mrf.mxu1  ;;  %1472 = vmax.xlane.f32.xlu1 %v1471_v51 }
 0x4fd   : > { %v1474_v60 = vsel %vm1180_vm5, %v7735_v59, -inf }
 0x4fe   : > { %1475 = vmax.xlane.f32.xlu0 %v1474_v60 }
 0x50d   : > { %1550 = vrot.lane.b32.xlu1 %v7630_v33, %s7238_s25 }
 0x514   : > { %1548 = vrot.lane.b32.xlu0 %v7636_v35, %s7238_s25 }
 0x559   : > { %v1189_v62 = vpop.xlane.xlu0 %1188 }
 0x55a   : > { %v1205_v63 = vsub.f32 %v6245_v16, %v1189_v62 }
 0x55c   : > { %v1214_v2 = vmul.f32 1.442695, %v1205_v63 }
 0x55d   : > { %v1183_v61 = vpop.xlane.xlu0 %1182 }
 0x55e   : > { %6793 = vpow2.f32 %v1214_v2  ;;  %v1203_v4 = vsub.f32 %v1150_v19, %v1183_v61 }
 0x55f   : > { %v1186_v6 = vpop.xlane.xlu1 %1185 }
 0x560   : > { %v1210_v7 = vmul.f32 1.442695, %v1203_v4  ;;  %v1204_v8 = vsub.f32 %v1153_v24, %v1186_v6 }
 0x561   : > { %v1192_v9 = vpop.xlane.xlu0 %1191 }
 0x562   : > { %6795 = vpow2.f32 %v1210_v7  ;;  %v1206_v10 = vsub.f32 %v6246_v21, %v1192_v9  ;;  %v1212_v14 = vmul.f32 1.442695, %v1204_v8 }
 0x564   : > { %v1216_v15 = vmul.f32 1.442695, %v1206_v10 }
 0x565   : > { %v1202_v17 = vpop.xlane.xlu0 %1201 }
 0x566   : > { %6797 = vpow2.f32 %v1216_v15  ;;  %v1209_v23 = vsub.f32 %v6249_v27, %v1202_v17 }
 0x567   : > { %v1198_v25 = vpop.xlane.xlu1 %1197  ;;  %6799 = vpow2.f32 %v1212_v14 }
 0x568   : > { %v1222_v28 = vmul.f32 1.442695, %v1209_v23  ;;  %v1208_v31 = vsub.f32 %v1169_v34, %v1198_v25 }
 0x569   : > { %v1195_v16 = vpop.xlane.xlu0 %1194 }
 0x56a   : > { %6801 = vpow2.f32 %v1222_v28  ;;  %v1220_v13 = vmul.f32 1.442695, %v1208_v31  ;;  %v1207_v36 = vsub.f32 %v1166_v29, %v1195_v16 }
 0x56b   : > { %v7743_v19 = vpop.eup %6793 }
 0x56c   : > { %6803 = vpow2.f32 %v1220_v13  ;;  %v1218_v24 = vmul.f32 1.442695, %v1207_v36  ;;  %v1230_v21 = vsel %vm1180_vm5, %v7743_v19, 0.0 }
 0x56d   : > { %1231 = vadd.xlane.f32.xlu0 %v1230_v21 }
 0x56e   : > { %6805 = vpow2.f32 %v1218_v24 }
 0x56f   : > { %v7747_v39 = vpop.eup %6795 }
 0x570   : > { %v1224_v27 = vsel %vm1180_vm5, %v7747_v39, 0.0 }
 0x571   : > { %1225 = vadd.xlane.f32.xlu0 %v1224_v27 }
 0x573   : > { %v7751_v34 = vpop.eup %6797 }
 0x574   : > { %v1233_v29 = vsel %vm1180_vm5, %v7751_v34, 0.0  ;;  %v7755_v11 = vpop.eup %6799 }
 0x575   : > { %1234 = vadd.xlane.f32.xlu1 %v1233_v29  ;;  %v1227_v54 = vsel %vm1180_vm5, %v7755_v11, 0.0 }
 0x577   : > { %v7757_v45 = vpop.eup %6801 }
 0x578   : > { %v1242_v49 = vsel %vm1199_vm6, %v7757_v45, 0.0 }
 0x579   : > { %v7763_v30 = vpop.eup %6803  ;;  %1243 = vadd.xlane.f32.xlu0 %v1242_v49  ;;  %1228 = vadd.xlane.f32.xlu1 %v1227_v54  ;;  %v1467_v57 = vpop.xlane.xlu1 %1466 }
 0x57a   : > { %v1482_v51 = vsub.f32 %v7711_v40, %v1467_v57  ;;  %v1239_v2 = vsel %vm1180_vm5, %v7763_v30, 0.0 }
 0x57b   : > { %v7766_v60 = vpop.eup %6805 }
 0x57c   : > { %v1491_v62 = vmul.f32 1.442695, %v1482_v51  ;;  %v1236_v63 = vsel %vm1180_vm5, %v7766_v60, 0.0 }
 0x57d   : > { %v1470_v61 = vpop.xlane.xlu0 %1469  ;;  %1237 = vadd.xlane.f32.xlu0 %v1236_v63  ;;  %1240 = vadd.xlane.f32.xlu1 %v1239_v2  ;;  %v1461_v4 = vpop.xlane.xlu1 %1460 }
 0x57e   : > { %6807 = vpow2.f32 %v1491_v62  ;;  %v1483_v6 = vsub.f32 %v7717_v42, %v1470_v61  ;;  %v1480_v7 = vsub.f32 %v7715_v44, %v1461_v4 }
 0x580   : > { %v1493_v8 = vmul.f32 1.442695, %v1483_v6  ;;  %v1487_v40 = vmul.f32 1.442695, %v1480_v7 }
 0x581   : > { %v1464_v9 = vpop.xlane.xlu0 %1463  ;;  %v1479_v10 = vpop.xlane.xlu1 %1478 }
 0x582   : > { %6809 = vpow2.f32 %v1493_v8  ;;  %v1481_v14 = vsub.f32 %v7723_v20, %v1464_v9  ;;  %v1486_v15 = vsub.f32 %v7725_v52, %v1479_v10 }
 0x583   : > { %6811 = vpow2.f32 %v1487_v40 }
 0x584   : > { %v1489_v17 = vmul.f32 1.442695, %v1481_v14  ;;  %v1499_v23 = vmul.f32 1.442695, %v1486_v15 }
 0x585   : > { %v1473_v25 = vpop.xlane.xlu1 %1472 }
 0x586   : > { %6813 = vpow2.f32 %v1489_v17  ;;  %v1484_v28 = vsub.f32 %v7731_v55, %v1473_v25 }
 0x587   : > { %v1476_v31 = vpop.xlane.xlu0 %1475  ;;  %6815 = vpow2.f32 %v1499_v23 }
 0x588   : > { %v1495_v42 = vmul.f32 1.442695, %v1484_v28  ;;  %v1485_v44 = vsub.f32 %v7735_v59, %v1476_v31 }
 0x589   : > { %v7778_v16 = vpop.permute.xlu1 %1550 }
 0x58a   : > { %6817 = vpow2.f32 %v1495_v42  ;;  %v1497_v13 = vmul.f32 1.442695, %v1485_v44  ;;  %6592 = vmatprep.subr.msk.bf16.mxu0 %vm1279_vm4, %v7778_v16 }
 0x58b   : > { %v7782_v20 = vpop.eup %6807 }
 0x58c   : > { %6819 = vpow2.f32 %v1497_v13  ;;  %v1507_v52 = vsel %vm1180_vm5, %v7782_v20, 0.0 }
 0x58d   : > { %1508 = vadd.xlane.f32.xlu1 %v1507_v52  ;;  %v6685_v52 = vld [vmem:[%s9174_s9 + $0x8] sm:$0xff]  }
 0x58f   : > { %v7786_v55 = vpop.eup %6809 }
 0x590   : > { %v7788_v36 = vpop.eup %6811  ;;  %v1510_v59 = vsel %vm1180_vm5, %v7786_v55, 0.0 }
 0x591   : > { %1511 = vadd.xlane.f32.xlu0 %v1510_v59  ;;  %v1501_v24 = vsel %vm1180_vm5, %v7788_v36, 0.0 }
 0x592   : > { %1502 = vadd.xlane.f32.xlu1 %v1501_v24 }
 0x593   : > { %v7794_v21 = vpop.eup %6813 }
 0x594   : > { %v1504_v27 = vsel %vm1180_vm5, %v7794_v21, 0.0  ;;  %v7798_v29 = vpop.eup %6815 }
 0x595   : > { %1505 = vadd.xlane.f32.xlu0 %v1504_v27  ;;  %v1519_v54 = vsel %vm1199_vm6, %v7798_v29, 0.0 }
 0x597   : > { %v7800_v49 = vpop.eup %6817 }
 0x598   : > { %v1513_v57 = vsel %vm1180_vm5, %v7800_v49, 0.0 }
 0x599   : > { %v7806_v51 = vpop.eup %6819  ;;  %1520 = vadd.xlane.f32.xlu0 %v1519_v54  ;;  %1514 = vadd.xlane.f32.xlu1 %v1513_v57 }
 0x59a   : > { %v1516_v62 = vsel %vm1180_vm5, %v7806_v51, 0.0 }
 0x59d   : > { %1517 = vadd.xlane.f32.xlu0 %v1516_v62 }
 0x5aa   : > { %1546 = vrot.lane.b32.xlu1 %v7649_v41, %s7238_s25 }
 0x5ae   : > { %1816 = vrot.lane.b32.xlu1 %v7628_v5, %s9202_s26 }
 0x5b2   : > { %1814 = vrot.lane.b32.xlu1 %v7621_v18, %s9202_s26 }
 0x5b3   : > { %1544 = vrot.lane.b32.xlu0 %v7657_v22, %s7238_s25 }
 0x5b6   : > { %1812 = vrot.lane.b32.xlu1 %v7626_v26, %s9202_s26 }
 0x5b7   : > { %1802 = vrot.lane.b32.xlu0 %v7615_v3, %s9200_s23 }
 0x5ba   : > { %1810 = vrot.lane.b32.xlu1 %v7642_v38, %s9202_s26  ;;  %s9229_s26 = sld [smem:[#allocation18_spill]] }
 0x5bb   : > { %1806 = vrot.lane.b32.xlu0 %v7665_v43, %s9200_s23 }
 0x5be   : > { %1804 = vrot.lane.b32.xlu1 %v7667_v32, %s9200_s23 }
 0x5bf   : > { %2184 = vrot.lane.b32.xlu0 %v7628_v5, %s9198_s3 }
 0x5c2   : > { %1808 = vrot.lane.b32.xlu1 %v7674_v50, %s9200_s23 }
 0x5c3   : > { %2180 = vrot.lane.b32.xlu0 %v7626_v26, %s9198_s3  ;;  %v1549_v26 = vpop.permute.xlu0 %1548 }
 0x5c6   : > { %2182 = vrot.lane.b32.xlu1 %v7621_v18, %s9198_s3 }
 0x5c7   : > { %2170 = vrot.lane.b32.xlu0 %v7615_v3, %s9196_s1 }
 0x5ca   : > { %2178 = vrot.lane.b32.xlu1 %v7642_v38, %s9198_s3  ;;  %s9226_s3 = smov 16  }
 0x5cb   : > { %2174 = vrot.lane.b32.xlu0 %v7665_v43, %s9196_s1 }
 0x5ce   : > { %2172 = vrot.lane.b32.xlu1 %v7667_v32, %s9196_s1 }
 0x5d2   : > { %2176 = vrot.lane.b32.xlu1 %v7674_v50, %s9196_s1 }
 0x5f6   : > { %v1232_v5 = vpop.xlane.xlu0 %1231 }
 0x5fa   : > { %v1226_v63 = vpop.xlane.xlu0 %1225 }
 0x5fe   : > { %v1235_v18 = vpop.xlane.xlu1 %1234 }
 0x5ff   : > { %6821 = vrcp.f32 %v1235_v18 }
 0x600   : > { %6823 = vrcp.f32 %v1226_v63 }
 0x601   : > { %6825 = vrcp.f32 %v1232_v5 }
 0x602   : > { %v1244_v2 = vpop.xlane.xlu0 %1243  ;;  %v1229_v3 = vpop.xlane.xlu1 %1228 }
 0x603   : > { %6827 = vrcp.f32 %v1229_v3 }
 0x606   : > { %v1238_v38 = vpop.xlane.xlu0 %1237  ;;  %v1241_v61 = vpop.xlane.xlu1 %1240 }
 0x607   : > { %6829 = vrcp.f32 %v1238_v38 }
 0x608   : > { %6831 = vrcp.f32 %v1241_v61 }
 0x609   : > { %6833 = vrcp.f32 %v1244_v2 }
 0x60c   : > { %v6822_v43 = vpop.eup %6821 }
 0x60d   : > { %v6824_v32 = vpop.eup %6823  ;;  %v1255_v50 = vmul.f32 %v6822_v43, %v7751_v34 }
 0x60e   : > { %v6826_v4 = vpop.eup %6825  ;;  %v1252_v7 = vmul.f32 %v6824_v32, %v7747_v39  ;;  %v1568_v39 = vsel %vm1279_vm4, %v7778_v16, 0  ;;  %v6686_v32 = vld [vmem:[%s9174_s9] sm:$0xff]  }
 0x60f   : > { %v1254_v40 = vmul.f32 %v6826_v4, %v7743_v19  ;;  %6309 = vmatprep.subr.bf16.mxu1 %v6686_v32 }
 0x610   : > { %v6828_v6 = vpop.eup %6827  ;;  %6310 = vmatpush3.bf16.msra.mxu1 %v6686_v32 }
 0x611   : > { %v1253_v8 = vmul.f32 %v6828_v6, %v7755_v11  ;;  %v1260_v15 = vpack.c.bf16 %v1255_v50, %v1254_v40 }
 0x613   : > { %v1259_v10 = vpack.c.bf16 %v1253_v8, %v1252_v7 }
 0x614   : > { %v6830_v9 = vpop.eup %6829 }
 0x615   : > { %v6832_v14 = vpop.eup %6831  ;;  %v1256_v17 = vmul.f32 %v6830_v9, %v7766_v60  ;;  %6259 = vmatprep.mubr.msk.bf16.mxu0 %vm1180_vm5, %v1259_v10 }
 0x616   : > { %v6834_v23 = vpop.eup %6833  ;;  %v1509_v25 = vpop.xlane.xlu1 %1508  ;;  %v1257_v28 = vmul.f32 %v6832_v14, %v7763_v30  ;;  %6260 = vmatmul.mubr.msk.bf16.vlgmr.msra.gmra.mxu0 %vm1180_vm5, %v1260_v15 }
 0x617   : > { %6284 = vmatpush3.bf16.msra.mxu0 %v1568_v39  ;;  %v1258_v19 = vmul.f32 %v6834_v23, %v7757_v45 }
 0x618   : > { %v1261_v34 = vpack.c.bf16 %v1257_v28, %v1256_v17  ;;  %6285 = vmatprep.subr.bf16.mxu0 %v1549_v26 }
 0x619   : > { %v1262_v31 = vpack.c.bf16 %v1258_v19, %v1258_v19 }
 0x61a   : > { %6263 = vmatprep.mubr.msk.bf16.mxu0 %vm1180_vm5, %v1261_v34  ;;  %v1512_v11 = vpop.xlane.xlu0 %1511 }
 0x61b   : > { %v1503_v60 = vpop.xlane.xlu1 %1502  ;;  %6835 = vrcp.f32 %v1512_v11  ;;  %6286 = vmatpush3.bf16.msra.mxu0 %v1549_v26 }
 0x61c   : > { %6837 = vrcp.f32 %v1503_v60 }
 0x61d   : > { %6839 = vrcp.f32 %v1509_v25 }
 0x61e   : > { %v1506_v30 = vpop.xlane.xlu0 %1505  ;;  %6264 = vmatmul.mubr.msk.bf16.gmra.mxu0 %vm1180_vm5, %v1262_v31 }
 0x61f   : > { %6841 = vrcp.f32 %v1506_v30 }
 0x622   : > { %v1521_v42 = vpop.xlane.xlu0 %1520  ;;  %v1515_v44 = vpop.xlane.xlu1 %1514 }
 0x623   : > { %6843 = vrcp.f32 %v1521_v42 }
 0x624   : > { %6845 = vrcp.f32 %v1515_v44 }
 0x626   : > { %v1518_v16 = vpop.xlane.xlu0 %1517  ;;  %v1547_v13 = vpop.permute.xlu1 %1546 }
 0x627   : > { %6847 = vrcp.f32 %v1518_v16  ;;  %6287 = vmatprep.subr.bf16.mxu0 %v1547_v13 }
 0x628   : > { %6288 = vmatpush3.bf16.msra.mxu0 %v1547_v13  ;;  %v6836_v45 = vpop.eup %6835 }
 0x629   : > { %v6838_v59 = vpop.eup %6837  ;;  %v1532_v57 = vmul.f32 %v6836_v45, %v7786_v55 }
 0x62a   : > { %v1545_v24 = vpop.permute.xlu0 %1544  ;;  %v6840_v27 = vpop.eup %6839  ;;  %v1529_v62 = vmul.f32 %v6838_v59, %v7788_v36 }
 0x62b   : > { %6289 = vmatprep.subr.bf16.mxu0 %v1545_v24  ;;  %v1531_v5 = vmul.f32 %v6840_v27, %v7782_v20  ;;  %v1817_v38 = vpop.permute.xlu1 %1816 }
 0x62c   : > { %v6842_v54 = vpop.eup %6841  ;;  %6290 = vmatpush3.bf16.msra.mxu0 %v1545_v24  ;;  %v1840_v11 = vsel %vm1091_vm3, %v1817_v38, 0 }
 0x62d   : > { %v1530_v26 = vmul.f32 %v6842_v54, %v7794_v21  ;;  %6299 = vmatprep.subr.bf16.mxu0 %v6685_v52  ;;  %v1537_v18 = vpack.c.bf16 %v1532_v57, %v1531_v5 }
 0x62e   : > { %v1803_v16 = vpop.permute.xlu0 %1802 }
 0x62f   : > { %v1536_v63 = vpack.c.bf16 %v1530_v26, %v1529_v62  ;;  %v1815_v60 = vpop.permute.xlu1 %1814 }
 0x630   : > { %v6844_v2 = vpop.eup %6843  ;;  %v1837_v13 = vsel %vm1091_vm3, %v1815_v60, 0 }
 0x631   : > { %6291 = vmatprep.mubr.msk.bf16.mxu0 %vm1180_vm5, %v1536_v63  ;;  %v6846_v3 = vpop.eup %6845  ;;  %v1535_v55 = vmul.f32 %v6844_v2, %v7798_v29 }
 0x632   : > { %6292 = vmatmul.mubr.msk.bf16.vlgmr.msra.gmra.mxu0 %vm1180_vm5, %v1537_v18  ;;  %v1533_v36 = vmul.f32 %v6846_v3, %v7800_v49  ;;  %v1807_v24 = vpop.permute.xlu0 %1806 }
 0x633   : > { %6300 = vmatpush3.bf16.msra.mxu0 %v6685_v52  ;;  %v1539_v43 = vpack.c.bf16 %v1535_v55, %v1535_v55  ;;  %v1813_v45 = vpop.permute.xlu1 %1812 }
 0x634   : > { %v6848_v61 = vpop.eup %6847  ;;  %6593 = vmatprep.subr.msk.bf16.mxu0 %vm1091_vm3, %v1817_v38  ;;  %v1834_v59 = vsel %vm1091_vm3, %v1813_v45, 0 }
 0x635   : > { %v1534_v21 = vmul.f32 %v6848_v61, %v7806_v51 }
 0x636   : > { %v2185_v57 = vpop.permute.xlu0 %2184 }
 0x637   : > { %v1538_v20 = vpack.c.bf16 %v1534_v21, %v1533_v36  ;;  %v1811_v52 = vpop.permute.xlu1 %1810  ;;  %v2208_v26 = vsel %vm1091_vm3, %v2185_v57, 0 }
 0x638   : > { %v1831_v54 = vsel %vm1091_vm3, %v1811_v52, 0 }
 0x639   : > { %6295 = vmatprep.mubr.msk.bf16.mxu0 %vm1180_vm5, %v1538_v20 }
 0x63a   : > { %6296 = vmatmul.mubr.msk.bf16.gmra.mxu0 %vm1180_vm5, %v1539_v43  ;;  %v2181_v63 = vpop.permute.xlu0 %2180 }
 0x63b   : > { %v1805_v27 = vpop.permute.xlu1 %1804  ;;  %v2202_v3 = vsel %vm1091_vm3, %v2181_v63, 0 }
 0x63e   : > { %v2171_v18 = vpop.permute.xlu0 %2170 }
 0x63f   : > { %v1809_v62 = vpop.permute.xlu1 %1808 }
 0x642   : > { %v2175_v36 = vpop.permute.xlu0 %2174 }
 0x643   : > { %v2183_v5 = vpop.permute.xlu1 %2182 }
 0x644   : > { %v2205_v2 = vsel %vm1091_vm3, %v2183_v5, 0 }
 0x647   : > { %v2179_v38 = vpop.permute.xlu1 %2178 }
 0x648   : > { %v2199_v61 = vsel %vm1091_vm3, %v2179_v38, 0 }
 0x64b   : > { %v2173_v55 = vpop.permute.xlu1 %2172 }
 0x64f   : > { %v2177_v21 = vpop.permute.xlu1 %2176 }
 0x6d6   : > { %v6261_v4 = vpop.f32.mrf.mxu0 }
 0x6d8   : > { %v1317_v6 = vpop.f32.mrf.mxu0 }
 0x6da   : > { %v6262_v50 = vpop.f32.mrf.mxu0 }
 0x6db   : > { %v1348_v49 = vpack.c.bf16 %v6262_v50, %v6261_v4 }
 0x6dc   : > { %v1320_v29 = vpop.f32.mrf.mxu0 }
 0x6dd   : > { %v1347_v7 = vpack.c.bf16 %v1320_v29, %v1317_v6 }
 0x6de   : > { %v6265_v8 = vpop.f32.mrf.mxu0 }
 0x6df   : > { %6311 = vmatprep.mubr.msk.bf16.mxu1 %vm1091_vm3, %v1347_v7  ;;  %v1350_v14 = vpack.c.bf16 %v6265_v8, %v6265_v8 }
 0x6e0   : > { %v1333_v51 = vpop.f32.mrf.mxu0  ;;  %6312 = vmatmul.mubr.msk.bf16.vlgmr.msra.gmra.mxu1 %vm1091_vm3, %v1348_v49 }
 0x6e2   : > { %v6266_v40 = vpop.f32.mrf.mxu0 }
 0x6e4   : > { %v1336_v9 = vpop.f32.mrf.mxu0 }
 0x6e5   : > { %v1349_v10 = vpack.c.bf16 %v1336_v9, %v1333_v51 }
 0x6e7   : > { %6315 = vmatprep.mubr.msk.bf16.mxu1 %vm1091_vm3, %v1349_v10 }
 0x6e8   : > { %6316 = vmatmul.mubr.msk.bf16.gmra.mxu1 %vm1091_vm3, %v1350_v14 }
 0x6f2   : > { %v6293_v15 = vpop.f32.mrf.mxu0 }
 0x6f4   : > { %v1604_v17 = vpop.f32.mrf.mxu0 }
 0x6f6   : > { %v6294_v23 = vpop.f32.mrf.mxu0 }
 0x6f7   : > { %v1635_v39 = vpack.c.bf16 %v6294_v23, %v6293_v15 }
 0x6f8   : > { %v1607_v25 = vpop.f32.mrf.mxu0 }
 0x6f9   : > { %v1634_v28 = vpack.c.bf16 %v1607_v25, %v1604_v17 }
 0x6fa   : > { %v6297_v34 = vpop.f32.mrf.mxu0 }
 0x6fb   : > { %6301 = vmatprep.mubr.msk.bf16.mxu0 %vm1091_vm3, %v1634_v28  ;;  %v1637_v44 = vpack.c.bf16 %v6297_v34, %v6297_v34 }
 0x6fc   : > { %v1620_v19 = vpop.f32.mrf.mxu0  ;;  %6302 = vmatmul.mubr.msk.bf16.vlgmr.msra.gmra.mxu0 %vm1091_vm3, %v1635_v39 }
 0x6fd   : > { %6320 = vmatpush3.bf16.xpose.msra.mxu0 %v1840_v11 }
 0x6fe   : > { %6594 = vmatprep.subr.msk.bf16.mxu0 %vm1091_vm3, %v1815_v60  ;;  %v6298_v31 = vpop.f32.mrf.mxu0 }
 0x700   : > { %v1623_v30 = vpop.f32.mrf.mxu0 }
 0x701   : > { %v1636_v42 = vpack.c.bf16 %v1623_v30, %v1620_v19 }
 0x703   : > { %6305 = vmatprep.mubr.msk.bf16.mxu0 %vm1091_vm3, %v1636_v42 }
 0x704   : > { %6306 = vmatmul.mubr.msk.bf16.gmra.mxu0 %vm1091_vm3, %v1637_v44 }
 0x705   : > { %6322 = vmatpush3.bf16.xpose.msra.mxu0 %v1837_v13  ;;  %6327 = vmatprep.mubr.msk.bf16.mxu0 %vm1091_vm3, %v1803_v16 }
 0x706   : > { %6595 = vmatprep.subr.msk.bf16.mxu0 %vm1091_vm3, %v1813_v45 }
 0x70d   : > { %6324 = vmatpush3.bf16.xpose.msra.mxu0 %v1834_v59 }
 0x70e   : > { %6596 = vmatprep.subr.msk.bf16.mxu0 %vm1091_vm3, %v1811_v52 }
 0x715   : > { %6326 = vmatpush3.bf16.xpose.msra.mxu0 %v1831_v54 }
 0x716   : > { %6598 = vmatprep.subr.msk.bf16.mxu0 %vm1091_vm3, %v2185_v57 }
 0x71c   : > { %6328 = vmatmul.mubr.msk.bf16.vlgmr.msra.gmra.mxu0 %vm1091_vm3, %v1805_v27 }
 0x71d   : > { %6331 = vmatprep.mubr.msk.bf16.mxu0 %vm1091_vm3, %v1807_v24  ;;  %6362 = vmatpush3.bf16.xpose.msra.mxu0 %v2208_v26 }
 0x71e   : > { %6599 = vmatprep.subr.msk.bf16.mxu0 %vm1091_vm3, %v2183_v5 }
 0x724   : > { %6332 = vmatmul.mubr.msk.bf16.gmra.mxu0 %vm1091_vm3, %v1809_v62 }
 0x725   : > { %6364 = vmatpush3.bf16.xpose.msra.mxu0 %v2205_v2  ;;  %6369 = vmatprep.mubr.msk.bf16.mxu0 %vm1091_vm3, %v2171_v18 }
 0x726   : > { %6600 = vmatprep.subr.msk.bf16.mxu0 %vm1091_vm3, %v2181_v63 }
 0x72d   : > { %6366 = vmatpush3.bf16.xpose.msra.mxu0 %v2202_v3 }
 0x72e   : > { %6601 = vmatprep.subr.msk.bf16.mxu0 %vm1091_vm3, %v2179_v38 }
 0x735   : > { %6368 = vmatpush3.bf16.xpose.msra.mxu0 %v2199_v61 }
 0x73c   : > { %6370 = vmatmul.mubr.msk.bf16.vlgmr.msra.gmra.mxu0 %vm1091_vm3, %v2173_v55 }
 0x73d   : > { %6373 = vmatprep.mubr.msk.bf16.mxu0 %vm1091_vm3, %v2175_v36 }
 0x744   : > { %6374 = vmatmul.mubr.msk.bf16.gmra.mxu0 %vm1091_vm3, %v2177_v21 }
 0x745   : > { %2786 = vmatprep.mubr.bf16.mxu0 %v7235_v47 }
 0x7a0   : > { %v6313_v20 = vpop.f32.mrf.mxu1 }
 0x7a2   : > { %v1772_v43 = vpop.f32.mrf.mxu1 }
 0x7a4   : > { %v6314_v32 = vpop.f32.mrf.mxu1 }
 0x7a6   : > { %v7909_v4 = vpop.f32.mrf.mxu1 }
 0x7a8   : > { %v6317_v6 = vpop.f32.mrf.mxu1 }
 0x7aa   : > { %v1788_v50 = vpop.f32.mrf.mxu1 }
 0x7ac   : > { %v6318_v29 = vpop.f32.mrf.mxu1 }
 0x7bc   : > { %v6303_v7 = vpop.f32.mrf.mxu0 }
 0x7bd   : > { %v7911_v49 = vadd.f32 %v6313_v20, %v6303_v7 }
 0x7be   : > { %v1690_v8 = vpop.f32.mrf.mxu0 }
 0x7bf   : > { %v7913_v51 = vadd.f32 %v1772_v43, %v1690_v8 }
 0x7c0   : > { %v6304_v40 = vpop.f32.mrf.mxu0 }
 0x7c1   : > { %v7915_v9 = vadd.f32 %v6314_v32, %v6304_v40 }
 0x7c2   : > { %v7917_v10 = vpop.f32.mrf.mxu0 }
 0x7c4   : > { %v6307_v14 = vpop.f32.mrf.mxu0 }
 0x7c5   : > { %v7919_v15 = vadd.f32 %v6317_v6, %v6307_v14 }
 0x7c6   : > { %v1706_v17 = vpop.f32.mrf.mxu0 }
 0x7c7   : > { %v7921_v23 = vadd.f32 %v1788_v50, %v1706_v17 }
 0x7c8   : > { %v6308_v25 = vpop.f32.mrf.mxu0 }
 0x7ca   : > { %v7923_v28 = vpop.f32.mrf.mxu0 }
 0x7dc   : > { %v6329_v39 = vpop.f32.mrf.mxu0 }
 0x7dd   : > { %v1912_v31 = vsel %vm1180_vm5, %v6329_v39, -inf }
 0x7de   : > { %v1876_v34 = vpop.f32.mrf.mxu0 }
 0x7df   : > { %v1906_v19 = vsel %vm1180_vm5, %v1876_v34, -inf }
 0x7e0   : > { %1907 = vmax.xlane.f32.xlu0 %v1906_v19  ;;  %v6330_v11 = vpop.f32.mrf.mxu0 }
 0x7e1   : > { %v1915_v16 = vsel %vm1180_vm5, %v6330_v11, -inf }
 0x7e2   : > { %v1879_v60 = vpop.f32.mrf.mxu0 }
 0x7e3   : > { %v1909_v30 = vsel %vm1180_vm5, %v1879_v60, -inf }
 0x7e4   : > { %1913 = vmax.xlane.f32.xlu0 %v1912_v31  ;;  %1910 = vmax.xlane.f32.xlu1 %v1909_v30  ;;  %v6333_v42 = vpop.f32.mrf.mxu0 }
 0x7e5   : > { %v1924_v24 = vsel %vm1199_vm6, %v6333_v42, -inf }
 0x7e6   : > { %v1892_v44 = vpop.f32.mrf.mxu0 }
 0x7e7   : > { %v1918_v52 = vsel %vm1180_vm5, %v1892_v44, -inf }
 0x7e8   : > { %1916 = vmax.xlane.f32.xlu0 %v1915_v16  ;;  %v6334_v13 = vpop.f32.mrf.mxu0 }
 0x7ea   : > { %v1895_v45 = vpop.f32.mrf.mxu0 }
 0x7eb   : > { %v1921_v59 = vsel %vm1180_vm5, %v1895_v45, -inf }
 0x7ec   : > { %1919 = vmax.xlane.f32.xlu0 %v1918_v52  ;;  %1922 = vmax.xlane.f32.xlu1 %v1921_v59 }
 0x7f0   : > { %1925 = vmax.xlane.f32.xlu0 %v1924_v24 }
 0x7fc   : > { %v7932_v27 = vpop.f32.mrf.mxu0 }
 0x7fe   : > { %v7934_v54 = vpop.f32.mrf.mxu0 }
 0x800   : > { %v7936_v57 = vpop.f32.mrf.mxu0 }
 0x802   : > { %v7938_v62 = vpop.f32.mrf.mxu0 }
 0x804   : > { %v7940_v26 = vpop.f32.mrf.mxu0 }
 0x806   : > { %v7942_v5 = vpop.f32.mrf.mxu0 }
 0x808   : > { %v6376_v63 = vpop.f32.mrf.mxu0 }
 0x809   : > { %v2274_v63 = vsel %vm1180_vm5, %v7934_v54, -inf }
 0x869   : > { %v1908_v18 = vpop.xlane.xlu0 %1907 }
 0x86a   : > { %v1927_v2 = vsub.f32 %v1876_v34, %v1908_v18  ;;  %v2280_v18 = vsel %vm1180_vm5, %v7932_v27, -inf }
 0x86c   : > { %v1934_v55 = vmul.f32 1.442695, %v1927_v2  ;;  %v2283_v2 = vsel %vm1180_vm5, %v7936_v57, -inf }
 0x86d   : > { %v1914_v3 = vpop.xlane.xlu0 %1913  ;;  %v1911_v38 = vpop.xlane.xlu1 %1910 }
 0x86e   : > { %v1929_v61 = vsub.f32 %v6329_v39, %v1914_v3  ;;  %v1928_v21 = vsub.f32 %v1879_v60, %v1911_v38  ;;  %v2277_v3 = vsel %vm1180_vm5, %v7938_v62, -inf  ;;  %v2286_v38 = vsel %vm1180_vm5, %v7942_v5, -inf }
 0x870   : > { %v1938_v36 = vmul.f32 1.442695, %v1929_v61  ;;  %v1936_v32 = vmul.f32 1.442695, %v1928_v21  ;;  %v7984_v61 = vpop.f32.mrf.mxu0 }
 0x871   : > { %v1917_v20 = vpop.xlane.xlu0 %1916 }
 0x872   : > { %6849 = vpow2.f32 %v1938_v36  ;;  %v1930_v43 = vsub.f32 %v6330_v11, %v1917_v20  ;;  %v2292_v36 = vsel %vm1199_vm6, %v7940_v26, -inf }
 0x873   : > { %6851 = vpow2.f32 %v1934_v55  ;;  %v2289_v55 = vsel %vm1180_vm5, %v7984_v61, -inf }
 0x874   : > { %v1940_v6 = vmul.f32 1.442695, %v1930_v43 }
 0x875   : > { %v1920_v50 = vpop.xlane.xlu0 %1919  ;;  %v1923_v29 = vpop.xlane.xlu1 %1922 }
 0x876   : > { %6853 = vpow2.f32 %v1940_v6  ;;  %v1932_v7 = vsub.f32 %v1895_v45, %v1923_v29  ;;  %v1931_v8 = vsub.f32 %v1892_v44, %v1920_v50 }
 0x877   : > { %6855 = vpow2.f32 %v1936_v32 }
 0x878   : > { %v1944_v40 = vmul.f32 1.442695, %v1932_v7  ;;  %v1942_v25 = vmul.f32 1.442695, %v1931_v8 }
 0x879   : > { %v1926_v14 = vpop.xlane.xlu0 %1925 }
 0x87a   : > { %v1933_v17 = vsub.f32 %v6333_v42, %v1926_v14  ;;  %6857 = vpow2.f32 %v1944_v40 }
 0x87c   : > { %v1946_v39 = vmul.f32 1.442695, %v1933_v17 }
 0x87e   : > { %6859 = vpow2.f32 %v1946_v39 }
 0x87f   : > { %v7944_v34 = vpop.eup %6849  ;;  %6861 = vpow2.f32 %v1942_v25 }
 0x880   : > { %v1954_v19 = vsel %vm1180_vm5, %v7944_v34, 0.0  ;;  %v6852_v11 = vpop.eup %6851 }
 0x881   : > { %1955 = vadd.xlane.f32.xlu1 %v1954_v19  ;;  %v1948_v30 = vsel %vm1180_vm5, %v6852_v11, 0.0 }
 0x883   : > { %v7948_v60 = vpop.eup %6853 }
 0x884   : > { %v1957_v31 = vsel %vm1180_vm5, %v7948_v60, 0.0  ;;  %v6856_v42 = vpop.eup %6855 }
 0x885   : > { %1958 = vadd.xlane.f32.xlu0 %v1957_v31  ;;  %1949 = vadd.xlane.f32.xlu1 %v1948_v30  ;;  %v1951_v44 = vsel %vm1180_vm5, %v6856_v42, 0.0 }
 0x887   : > { %v7954_v16 = vpop.eup %6857 }
 0x888   : > { %v1963_v52 = vsel %vm1180_vm5, %v7954_v16, 0.0 }
 0x889   : > { %1952 = vadd.xlane.f32.xlu0 %v1951_v44 }
 0x88b   : > { %v7956_v13 = vpop.eup %6859 }
 0x88c   : > { %v1966_v45 = vsel %vm1199_vm6, %v7956_v13, 0.0  ;;  %v7962_v59 = vpop.eup %6861 }
 0x88d   : > { %1967 = vadd.xlane.f32.xlu1 %v1966_v45  ;;  %1964 = vadd.xlane.f32.xlu0 %v1963_v52  ;;  %v1960_v24 = vsel %vm1180_vm5, %v7962_v59, 0.0  ;;  %v6687_v45 = vld [vmem:[%s9174_s9 + $0x10] sm:$0xff]  }
 0x891   : > { %1961 = vadd.xlane.f32.xlu1 %v1960_v24 }
 0x8a2   : > { %1991 = vrot.lane.b32.xlu1 %v7636_v35, %s9200_s23 }
 0x8a3   : > { %1993 = vrot.lane.b32.xlu0 %v7630_v33, %s9200_s23 }
 0x8a6   : > { %1989 = vrot.lane.b32.xlu1 %v7649_v41, %s9200_s23 }
 0x8aa   : > { %1987 = vrot.lane.b32.xlu1 %v7657_v22, %s9200_s23  ;;  %s9124_s23 = scalar_lea.hbm %s9229_s26, %s5979_s4 }
 0x8c2   : > { %2275 = vmax.xlane.f32.xlu0 %v2274_v63 }
 0x8c6   : > { %2281 = vmax.xlane.f32.xlu0 %v2280_v18 }
 0x8ca   : > { %2284 = vmax.xlane.f32.xlu0 %v2283_v2 }
 0x8ce   : > { %2278 = vmax.xlane.f32.xlu1 %v2277_v3  ;;  %2287 = vmax.xlane.f32.xlu0 %v2286_v38 }
 0x8d2   : > { %2290 = vmax.xlane.f32.xlu1 %v2289_v55  ;;  %2293 = vmax.xlane.f32.xlu0 %v2292_v36 }
 0x8e3   : > { %2361 = vrot.lane.b32.xlu1 %v7630_v33, %s9196_s1 }
 0x90a   : > { %v1956_v21 = vpop.xlane.xlu1 %1955 }
 0x90e   : > { %v1959_v20 = vpop.xlane.xlu0 %1958  ;;  %v1950_v43 = vpop.xlane.xlu1 %1949 }
 0x90f   : > { %6863 = vrcp.f32 %v1950_v43 }
 0x912   : > { %v1953_v32 = vpop.xlane.xlu0 %1952 }
 0x913   : > { %6865 = vrcp.f32 %v1953_v32 }
 0x914   : > { %6867 = vrcp.f32 %v1959_v20 }
 0x915   : > { %6869 = vrcp.f32 %v1956_v21 }
 0x916   : > { %v1965_v6 = vpop.xlane.xlu0 %1964  ;;  %v1968_v50 = vpop.xlane.xlu1 %1967 }
 0x917   : > { %6871 = vrcp.f32 %v1965_v6 }
 0x91a   : > { %v1994_v29 = vpop.permute.xlu0 %1993  ;;  %v1962_v7 = vpop.xlane.xlu1 %1961 }
 0x91b   : > { %6873 = vrcp.f32 %v1962_v7  ;;  %6597 = vmatprep.subr.msk.bf16.mxu1 %vm1279_vm4, %v1994_v29  ;;  %v2011_v8 = vsel %vm1279_vm4, %v1994_v29, 0 }
 0x91c   : > { %6336 = vmatpush3.bf16.msra.mxu1 %v2011_v8  ;;  %6875 = vrcp.f32 %v1968_v50  ;;  %v6864_v33 = vpop.eup %6863 }
 0x91d   : > { %v1976_v17 = vmul.f32 %v6864_v33, %v6852_v11 }
 0x91e   : > { %v1992_v40 = vpop.permute.xlu1 %1991 }
 0x91f   : > { %6337 = vmatprep.subr.bf16.mxu1 %v1992_v40 }
 0x920   : > { %v6866_v14 = vpop.eup %6865  ;;  %6338 = vmatpush3.bf16.msra.mxu1 %v1992_v40 }
 0x921   : > { %v1977_v25 = vmul.f32 %v6866_v14, %v6856_v42  ;;  %v6868_v39 = vpop.eup %6867 }
 0x922   : > { %v1990_v19 = vpop.permute.xlu1 %1989  ;;  %v6870_v30 = vpop.eup %6869  ;;  %v1979_v44 = vmul.f32 %v6868_v39, %v7948_v60 }
 0x923   : > { %6339 = vmatprep.subr.bf16.mxu1 %v1990_v19  ;;  %v1983_v31 = vpack.c.bf16 %v1977_v25, %v1976_v17  ;;  %v1978_v63 = vmul.f32 %v6870_v30, %v7944_v34 }
 0x924   : > { %6340 = vmatpush3.bf16.msra.mxu1 %v1990_v19  ;;  %v6872_v52 = vpop.eup %6871 }
 0x925   : > { %6343 = vmatprep.mubr.msk.bf16.mxu1 %vm1180_vm5, %v1983_v31  ;;  %v1984_v42 = vpack.c.bf16 %v1979_v44, %v1978_v63  ;;  %v1981_v2 = vmul.f32 %v6872_v52, %v7954_v16 }
 0x926   : > { %v1988_v24 = vpop.permute.xlu1 %1987 }
 0x927   : > { %6341 = vmatprep.subr.bf16.mxu1 %v1988_v24 }
 0x928   : > { %v6874_v11 = vpop.eup %6873  ;;  %6342 = vmatpush3.bf16.msra.mxu1 %v1988_v24 }
 0x929   : > { %v1980_v18 = vmul.f32 %v6874_v11, %v7962_v59  ;;  %6351 = vmatprep.subr.bf16.mxu1 %v6687_v45  ;;  %v6876_v60 = vpop.eup %6875 }
 0x92a   : > { %v1982_v38 = vmul.f32 %v6876_v60, %v7956_v13 }
 0x92b   : > { %6344 = vmatmul.mubr.msk.bf16.vlgmr.msra.gmra.mxu1 %vm1180_vm5, %v1984_v42  ;;  %v1985_v3 = vpack.c.bf16 %v1981_v2, %v1980_v18  ;;  %v8042_v42 = vpop.f32.mrf.mxu1 }
 0x92c   : > { %6352 = vmatpush3.bf16.msra.mxu1 %v6687_v45  ;;  %v1986_v55 = vpack.c.bf16 %v1982_v38, %v1982_v38 }
 0x92d   : > { %6347 = vmatprep.mubr.msk.bf16.mxu1 %vm1180_vm5, %v1985_v3 }
 0x933   : > { %6348 = vmatmul.mubr.msk.bf16.gmra.mxu1 %vm1180_vm5, %v1986_v55 }
 0x94b   : > { %v2276_v34 = vpop.xlane.xlu0 %2275 }
 0x94c   : > { %v2295_v36 = vsub.f32 %v7934_v54, %v2276_v34 }
 0x94e   : > { %v2302_v16 = vmul.f32 1.442695, %v2295_v36 }
 0x94f   : > { %v2282_v21 = vpop.xlane.xlu0 %2281 }
 0x950   : > { %v2297_v59 = vsub.f32 %v7932_v27, %v2282_v21 }
 0x952   : > { %v2306_v20 = vmul.f32 1.442695, %v2297_v59 }
 0x953   : > { %v2285_v43 = vpop.xlane.xlu0 %2284 }
 0x954   : > { %6877 = vpow2.f32 %v2306_v20  ;;  %v2298_v32 = vsub.f32 %v7936_v57, %v2285_v43 }
 0x955   : > { %6879 = vpow2.f32 %v2302_v16 }
 0x956   : > { %v2308_v6 = vmul.f32 1.442695, %v2298_v32 }
 0x957   : > { %v2288_v50 = vpop.xlane.xlu0 %2287  ;;  %v2279_v29 = vpop.xlane.xlu1 %2278 }
 0x958   : > { %6881 = vpow2.f32 %v2308_v6  ;;  %v2296_v13 = vsub.f32 %v7938_v62, %v2279_v29  ;;  %v2299_v8 = vsub.f32 %v7942_v5, %v2288_v50 }
 0x95a   : > { %v2304_v7 = vmul.f32 1.442695, %v2296_v13  ;;  %v2310_v14 = vmul.f32 1.442695, %v2299_v8 }
 0x95b   : > { %v2294_v54 = vpop.xlane.xlu0 %2293  ;;  %v2291_v33 = vpop.xlane.xlu1 %2290 }
 0x95c   : > { %v2301_v27 = vsub.f32 %v7940_v26, %v2294_v54  ;;  %6883 = vpow2.f32 %v2304_v7  ;;  %v2300_v17 = vsub.f32 %v7984_v61, %v2291_v33 }
 0x95e   : > { %v2314_v40 = vmul.f32 1.442695, %v2301_v27  ;;  %v2312_v5 = vmul.f32 1.442695, %v2300_v17 }
 0x95f   : > { %v2362_v57 = vpop.permute.xlu1 %2361 }
 0x960   : > { %6885 = vpow2.f32 %v2314_v40  ;;  %6602 = vmatprep.subr.msk.bf16.mxu1 %vm1279_vm4, %v2362_v57 }
 0x961   : > { %v8014_v25 = vpop.eup %6877  ;;  %6887 = vpow2.f32 %v2310_v14 }
 0x962   : > { %v2322_v62 = vsel %vm1180_vm5, %v8014_v25, 0.0  ;;  %v6880_v39 = vpop.eup %6879  ;;  %6889 = vpow2.f32 %v2312_v5 }
 0x963   : > { %2323 = vadd.xlane.f32.xlu1 %v2322_v62  ;;  %v2316_v26 = vsel %vm1180_vm5, %v6880_v39, 0.0 }
 0x965   : > { %v8018_v19 = vpop.eup %6881 }
 0x966   : > { %v2325_v61 = vsel %vm1180_vm5, %v8018_v19, 0.0 }
 0x967   : > { %2317 = vadd.xlane.f32.xlu1 %v2316_v26  ;;  %2326 = vadd.xlane.f32.xlu0 %v2325_v61 }
 0x969   : > { %v6884_v31 = vpop.eup %6883 }
 0x96a   : > { %v2319_v30 = vsel %vm1180_vm5, %v6884_v31, 0.0 }
 0x96b   : > { %2320 = vadd.xlane.f32.xlu0 %v2319_v30 }
 0x96d   : > { %v8024_v44 = vpop.eup %6885 }
 0x96e   : > { %v2334_v45 = vsel %vm1199_vm6, %v8024_v44, 0.0  ;;  %v8028_v52 = vpop.eup %6887 }
 0x96f   : > { %2335 = vadd.xlane.f32.xlu0 %v2334_v45  ;;  %v2328_v24 = vsel %vm1180_vm5, %v8028_v52, 0.0  ;;  %v8032_v63 = vpop.eup %6889 }
 0x970   : > { %v2331_v11 = vsel %vm1180_vm5, %v8032_v63, 0.0 }
 0x973   : > { %2329 = vadd.xlane.f32.xlu0 %v2328_v24 }
 0x977   : > { %2332 = vadd.xlane.f32.xlu0 %v2331_v11 }
 0x978   : > { %2357 = vrot.lane.b32.xlu1 %v7649_v41, %s9196_s1 }
 0x97c   : > { %2355 = vrot.lane.b32.xlu1 %v7657_v22, %s9196_s1 }
 0x98d   : > { %2359 = vrot.lane.b32.xlu0 %v7636_v35, %s9196_s1  ;;  %v2379_v35 = vsel %vm1279_vm4, %v2362_v57, 0 }
 0x9eb   : > { %v6345_v18 = vpop.f32.mrf.mxu1 }
 0x9ec   : > { %v2324_v2 = vpop.xlane.xlu1 %2323 }
 0x9ed   : > { %v2047_v60 = vpop.f32.mrf.mxu1 }
 0x9ef   : > { %v6346_v3 = vpop.f32.mrf.mxu1 }
 0x9f0   : > { %v2327_v38 = vpop.xlane.xlu0 %2326  ;;  %v2318_v55 = vpop.xlane.xlu1 %2317  ;;  %v2078_v21 = vpack.c.bf16 %v6346_v3, %v6345_v18 }
 0x9f1   : > { %v2050_v34 = vpop.f32.mrf.mxu1  ;;  %6891 = vrcp.f32 %v2318_v55 }
 0x9f2   : > { %v2077_v36 = vpack.c.bf16 %v2050_v34, %v2047_v60 }
 0x9f3   : > { %v6349_v59 = vpop.f32.mrf.mxu1 }
 0x9f4   : > { %6353 = vmatprep.mubr.msk.bf16.mxu1 %vm1091_vm3, %v2077_v36  ;;  %v2321_v41 = vpop.xlane.xlu0 %2320  ;;  %v2080_v6 = vpack.c.bf16 %v6349_v59, %v6349_v59  ;;  %v2358_v33 = vpop.permute.xlu1 %2357  ;;  %v1792_v59 = vadd.f32 %v8042_v42, %v7923_v28 }
 0x9f5   : > { %v2063_v22 = vpop.f32.mrf.mxu1  ;;  %6354 = vmatmul.mubr.msk.bf16.vlgmr.msra.gmra.mxu1 %vm1091_vm3, %v2078_v21  ;;  %6893 = vrcp.f32 %v2321_v41 }
 0x9f6   : > { %6378 = vmatpush3.bf16.msra.mxu1 %v2379_v35  ;;  %6895 = vrcp.f32 %v2327_v38 }
 0x9f7   : > { %v6350_v16 = vpop.f32.mrf.mxu1  ;;  %6897 = vrcp.f32 %v2324_v2 }
 0x9f8   : > { %v2336_v20 = vpop.xlane.xlu0 %2335  ;;  %v2356_v57 = vpop.permute.xlu1 %2355 }
 0x9f9   : > { %v2066_v43 = vpop.f32.mrf.mxu1 }
 0x9fa   : > { %v2079_v32 = vpack.c.bf16 %v2066_v43, %v2063_v22 }
 0x9fc   : > { %6357 = vmatprep.mubr.msk.bf16.mxu1 %vm1091_vm3, %v2079_v32  ;;  %v2330_v50 = vpop.xlane.xlu0 %2329 }
 0x9fd   : > { %6358 = vmatmul.mubr.msk.bf16.gmra.mxu1 %vm1091_vm3, %v2080_v6  ;;  %6899 = vrcp.f32 %v2330_v50 }
 0x9fe   : > { %v6892_v29 = vpop.eup %6891 }
 0x9ff   : > { %v2344_v8 = vmul.f32 %v6892_v29, %v6880_v39 }
 0xa00   : > { %v2333_v13 = vpop.xlane.xlu0 %2332 }
 0xa01   : > { %6901 = vrcp.f32 %v2333_v13  ;;  %v1776_v13 = vadd.f32 %v7909_v4, %v7917_v10 }
 0xa02   : > { %v6894_v7 = vpop.eup %6893  ;;  %6903 = vrcp.f32 %v2336_v20 }
 0xa03   : > { %v2345_v54 = vmul.f32 %v6894_v7, %v6884_v31  ;;  %v6896_v14 = vpop.eup %6895 }
 0xa04   : > { %v2360_v27 = vpop.permute.xlu0 %2359  ;;  %v6898_v17 = vpop.eup %6897  ;;  %v2347_v62 = vmul.f32 %v6896_v14, %v8018_v19 }
 0xa05   : > { %6379 = vmatprep.subr.bf16.mxu1 %v2360_v27  ;;  %v2351_v40 = vpack.c.bf16 %v2345_v54, %v2344_v8  ;;  %v2346_v26 = vmul.f32 %v6898_v17, %v8014_v25  ;;  %v6688_v25 = vld [vmem:[%s9174_s9 + $0x18] sm:$0xff]  }
 0xa06   : > { %6380 = vmatpush3.bf16.msra.mxu1 %v2360_v27  ;;  %v5752_v27 = vld [vmem:[%s9175_s10] ss:$0 sm:$0xff] }
 0xa07   : > { %6381 = vmatprep.subr.bf16.mxu1 %v2358_v33  ;;  %6385 = vmatprep.mubr.msk.bf16.mxu1 %vm1180_vm5, %v2351_v40  ;;  %v2352_v61 = vpack.c.bf16 %v2347_v62, %v2346_v26 }
 0xa0a   : > { %6382 = vmatpush3.bf16.msra.mxu1 %v2358_v33  ;;  %v6900_v5 = vpop.eup %6899 }
 0xa0b   : > { %6383 = vmatprep.subr.bf16.mxu1 %v2356_v57  ;;  %v2348_v31 = vmul.f32 %v6900_v5, %v8028_v52 }
 0xa0e   : > { %v6902_v39 = vpop.eup %6901  ;;  %6384 = vmatpush3.bf16.msra.mxu1 %v2356_v57 }
 0xa0f   : > { %v2349_v30 = vmul.f32 %v6902_v39, %v8032_v63  ;;  %v6904_v45 = vpop.eup %6903  ;;  %6393 = vmatprep.subr.bf16.mxu1 %v6688_v25 }
 0xa10   : > { %v2350_v11 = vmul.f32 %v6904_v45, %v8024_v44 }
 0xa11   : > { %6386 = vmatmul.mubr.msk.bf16.vlgmr.msra.gmra.mxu1 %vm1180_vm5, %v2352_v61  ;;  %v2353_v24 = vpack.c.bf16 %v2349_v30, %v2348_v31 }
 0xa12   : > { %v2354_v19 = vpack.c.bf16 %v2350_v11, %v2350_v11  ;;  %6394 = vmatpush3.bf16.msra.mxu1 %v6688_v25 }
 0xa13   : > { %6389 = vmatprep.mubr.msk.bf16.mxu1 %vm1180_vm5, %v2353_v24 }
 0xa19   : > { %6390 = vmatmul.mubr.msk.bf16.gmra.mxu1 %vm1180_vm5, %v2354_v19 }
 0xab5   : > { %v6355_v52 = vpop.f32.mrf.mxu1 }
 0xab6   : > { %v2165_v63 = vadd.f32 %v6355_v52, %v7911_v49 }
 0xab7   : > { %v2133_v18 = vpop.f32.mrf.mxu1 }
 0xab8   : > { %v2163_v2 = vadd.f32 %v2133_v18, %v7913_v51 }
 0xab9   : > { %v6356_v60 = vpop.f32.mrf.mxu1 }
 0xaba   : > { %v2166_v3 = vadd.f32 %v6356_v60, %v7915_v9 }
 0xabb   : > { %v2136_v38 = vpop.f32.mrf.mxu1 }
 0xabc   : > { %v2164_v33 = vadd.f32 %v2136_v38, %v1776_v13 }
 0xabd   : > { %v6359_v44 = vpop.f32.mrf.mxu1 }
 0xabe   : > { %v2169_v55 = vadd.f32 %v6359_v44, %v7919_v15 }
 0xabf   : > { %v2149_v34 = vpop.f32.mrf.mxu1 }
 0xac0   : > { %v2167_v36 = vadd.f32 %v2149_v34, %v7921_v23 }
 0xac1   : > { %v6360_v21 = vpop.f32.mrf.mxu1 }
 0xac3   : > { %v2152_v41 = vpop.f32.mrf.mxu1 }
 0xac4   : > { %v2168_v22 = vadd.f32 %v2152_v41, %v1792_v59 }
 0xad1   : > { %v6387_v49 = vpop.f32.mrf.mxu1 }
 0xad3   : > { %v2415_v35 = vpop.f32.mrf.mxu1 }
 0xad5   : > { %v6388_v16 = vpop.f32.mrf.mxu1 }
 0xad6   : > { %v2446_v43 = vpack.c.bf16 %v6388_v16, %v6387_v49 }
 0xad7   : > { %v2418_v51 = vpop.f32.mrf.mxu1 }
 0xad8   : > { %v2445_v20 = vpack.c.bf16 %v2418_v51, %v2415_v35 }
 0xad9   : > { %v6391_v9 = vpop.f32.mrf.mxu1 }
 0xada   : > { %6395 = vmatprep.mubr.msk.bf16.mxu1 %vm1091_vm3, %v2445_v20  ;;  %v2448_v50 = vpack.c.bf16 %v6391_v9, %v6391_v9 }
 0xadb   : > { %v2431_v32 = vpop.f32.mrf.mxu1  ;;  %6396 = vmatmul.mubr.msk.bf16.vlgmr.msra.gmra.mxu1 %vm1091_vm3, %v2446_v43 }
 0xadd   : > { %v6392_v15 = vpop.f32.mrf.mxu1 }
 0xadf   : > { %v2434_v23 = vpop.f32.mrf.mxu1 }
 0xae0   : > { %v2447_v6 = vpack.c.bf16 %v2434_v23, %v2431_v32 }
 0xae2   : > { %6399 = vmatprep.mubr.msk.bf16.mxu1 %vm1091_vm3, %v2447_v6 }
 0xae3   : > { %6400 = vmatmul.mubr.msk.bf16.gmra.mxu1 %vm1091_vm3, %v2448_v50 }
 0xb9b   : > { %v6397_v28 = vpop.f32.mrf.mxu1 }
 0xb9c   : > { %v2533_v42 = vadd.f32 %v6397_v28, %v2165_v63 }
 0xb9d   : > { %v2501_v29 = vpop.f32.mrf.mxu1 }
 0xb9e   : > { %v2531_v7 = vadd.f32 %v2501_v29, %v2163_v2  ;;  %v2540_v8 = vadd.f32 %v2533_v42, %v7494_v46 }
 0xb9f   : > { %v6398_v54 = vpop.f32.mrf.mxu1 }
 0xba0   : > { %v2538_v40 = vadd.f32 %v2531_v7, %v7488_v37  ;;  %v2534_v14 = vadd.f32 %v6398_v54, %v2166_v3  ;;  %v8081_v5 = vadd.f32 %v5752_v27, %v2540_v8 }
 0xba1   : > { %v2504_v17 = vpop.f32.mrf.mxu1 }
 0xba2   : > { %v8079_v57 = vadd.f32 %v5752_v27, %v2538_v40  ;;  %v2532_v62 = vadd.f32 %v2504_v17, %v2164_v33  ;;  %v2541_v4 = vadd.f32 %v2534_v14, %v7507_v58  ;;  %v2567_v45 = vsel %vm654_vm1, %v8081_v5, 0.0 }
 0xba3   : > { %v6401_v26 = vpop.f32.mrf.mxu1 }
 0xba4   : > { %v2539_v46 = vadd.f32 %v2532_v62, %v7497_v48  ;;  %v2537_v10 = vadd.f32 %v6401_v26, %v2169_v55  ;;  %v2561_v39 = vsel %vm654_vm1, %v8079_v57, 0.0  ;;  %v8091_v24 = vadd.f32 %v5752_v27, %v2541_v4  ;;  %v6691_v26 = vld [vmem:[%s9178_s13 + $0x34] ss:$8 sps:$4 sm:$0xff]   ;;  %v6689_v4 = vld [vmem:[%s9178_s13 + $0x30] ss:$8 sps:$4 sm:$0xff]  }
 0xba5   : > { %2562 = vadd.xlane.f32.xlu1 %v2561_v39  ;;  %v2517_v61 = vpop.f32.mrf.mxu1  ;;  %2762 = vmatprep.subr.bf16.mxu0 %v6691_v26  ;;  %v6697_v39 = vld [vmem:[%s9178_s13 + $0x14] ss:$8 sps:$4 sm:$0xff]  }
 0xba6   : > { %v8087_v31 = vadd.f32 %v5752_v27, %v2539_v46  ;;  %v2535_v37 = vadd.f32 %v2517_v61, %v2167_v36  ;;  %v2544_v11 = vadd.f32 %v2537_v10, %v7514_v0  ;;  %v2570_v2 = vsel %vm654_vm1, %v8091_v24, 0.0  ;;  %2763 = vmatpush1.bf16.msra.mxu0 %v6689_v4  ;;  %v6694_v46 = vld [vmem:[%s9178_s13 + $0x24] ss:$8 sps:$4 sm:$0xff]   ;;  %v6692_v10 = vld [vmem:[%s9178_s13 + $0x20] ss:$8 sps:$4 sm:$0xff]  }
 0xba7   : > { %v6402_v30 = vpop.f32.mrf.mxu1  ;;  %2764 = vmatprep.subr.bf16.mxu0 %v6694_v46  ;;  %v6695_v61 = vld [vmem:[%s9178_s13 + $0x10] ss:$8 sps:$4 sm:$0xff]  }
 0xba8   : > { %v2542_v58 = vadd.f32 %v2535_v37, %v7504_v56  ;;  %v2564_v48 = vsel %vm654_vm1, %v8087_v31, 0.0  ;;  %v8099_v63 = vadd.f32 %v5752_v27, %v2544_v11  ;;  %v6698_v37 = vld [vmem:[%s9178_s13] ss:$8 sps:$4 sm:$0xff]   ;;  %v6700_v30 = vld [vmem:[%s9178_s13 + $0x4] ss:$8 sps:$4 sm:$0xff]  }
 0xba9   : > { %2568 = vadd.xlane.f32.xlu1 %v2567_v45  ;;  %2565 = vadd.xlane.f32.xlu0 %v2564_v48  ;;  %v2520_v19 = vpop.f32.mrf.mxu1 }
 0xbaa   : > { %v8097_v25 = vadd.f32 %v5752_v27, %v2542_v58  ;;  %v2536_v52 = vadd.f32 %v2520_v19, %v2168_v22  ;;  %v2579_v60 = vsel %vm689_vm2, %v8099_v63, 0.0  ;;  %2765 = vmatpush1.bf16.msra.mxu0 %v6692_v10 }
 0xbab   : > { %2766 = vmatprep.subr.bf16.mxu0 %v6697_v39 }
 0xbac   : > { %v2543_v18 = vadd.f32 %v2536_v52, %v7516_v1  ;;  %v2573_v0 = vsel %vm654_vm1, %v8097_v25, 0.0 }
 0xbad   : > { %2571 = vadd.xlane.f32.xlu1 %v2570_v2  ;;  %2574 = vadd.xlane.f32.xlu0 %v2573_v0 }
 0xbae   : > { %v8106_v56 = vadd.f32 %v5752_v27, %v2543_v18  ;;  %2767 = vmatpush1.bf16.msra.mxu0 %v6695_v61 }
 0xbaf   : > { %2768 = vmatprep.subr.bf16.mxu0 %v6700_v30 }
 0xbb0   : > { %v2576_v3 = vsel %vm654_vm1, %v8106_v56, 0.0 }
 0xbb1   : > { %2580 = vadd.xlane.f32.xlu0 %v2579_v60  ;;  %2577 = vadd.xlane.f32.xlu1 %v2576_v3 }
 0xbb2   : > { %2769 = vmatpush1.bf16.msra.mxu0 %v6698_v37 }
 0xc2e   : > { %v2563_v38 = vpop.xlane.xlu1 %2562 }
 0xc2f   : > { %v2582_v1 = vmul.f32 0.015625, %v2563_v38 }
 0xc31   : > { %v8113_v44 = vsub.f32 %v8079_v57, %v2582_v1 }
 0xc32   : > { %v2569_v55 = vpop.xlane.xlu1 %2568  ;;  %v2566_v34 = vpop.xlane.xlu0 %2565 }
 0xc33   : > { %v2584_v36 = vmul.f32 0.015625, %v2569_v55  ;;  %v2583_v21 = vmul.f32 0.015625, %v2566_v34  ;;  %v2596_v59 = vmul.f32 %v8113_v44, %v8113_v44 }
 0xc35   : > { %v8118_v41 = vsub.f32 %v8081_v5, %v2584_v36  ;;  %v8121_v22 = vsub.f32 %v8087_v31, %v2583_v21  ;;  %v2603_v49 = vsel %vm654_vm1, %v2596_v59, 0.0 }
 0xc36   : > { %v2572_v35 = vpop.xlane.xlu1 %2571  ;;  %v2575_v16 = vpop.xlane.xlu0 %2574  ;;  %2604 = vadd.xlane.f32.xlu1 %v2603_v49 }
 0xc37   : > { %v2585_v51 = vmul.f32 0.015625, %v2572_v35  ;;  %v2586_v20 = vmul.f32 0.015625, %v2575_v16  ;;  %v2597_v43 = vmul.f32 %v8121_v22, %v8121_v22  ;;  %v2598_v9 = vmul.f32 %v8118_v41, %v8118_v41 }
 0xc39   : > { %v8129_v32 = vsub.f32 %v8091_v24, %v2585_v51  ;;  %v8132_v15 = vsub.f32 %v8097_v25, %v2586_v20  ;;  %v2606_v23 = vsel %vm654_vm1, %v2597_v43, 0.0  ;;  %v2609_v6 = vsel %vm654_vm1, %v2598_v9, 0.0  ;;  %v5753_v20 = vld [vmem:[%s9176_s11] ss:$0 sm:$0xff] }
 0xc3a   : > { %2607 = vadd.xlane.f32.xlu0 %v2606_v23  ;;  %v2581_v50 = vpop.xlane.xlu0 %2580  ;;  %2610 = vadd.xlane.f32.xlu1 %v2609_v6  ;;  %v2578_v28 = vpop.xlane.xlu1 %2577 }
 0xc3b   : > { %v2588_v42 = vmul.f32 0.015625, %v2581_v50  ;;  %v2587_v29 = vmul.f32 0.015625, %v2578_v28  ;;  %v2599_v13 = vmul.f32 %v8129_v32, %v8129_v32  ;;  %v2600_v7 = vmul.f32 %v8132_v15, %v8132_v15  ;;  %v5754_v28 = vld [vmem:[%s9177_s12] ss:$0 sm:$0xff] }
 0xc3d   : > { %v8141_v8 = vsub.f32 %v8099_v63, %v2588_v42  ;;  %v8144_v54 = vsub.f32 %v8106_v56, %v2587_v29  ;;  %v2612_v33 = vsel %vm654_vm1, %v2599_v13, 0.0  ;;  %v2615_v27 = vsel %vm654_vm1, %v2600_v7, 0.0 }
 0xc3e   : > { %2613 = vadd.xlane.f32.xlu0 %v2612_v33  ;;  %2616 = vadd.xlane.f32.xlu1 %v2615_v27 }
 0xc3f   : > { %v2602_v40 = vmul.f32 %v8141_v8, %v8141_v8  ;;  %v2601_v14 = vmul.f32 %v8144_v54, %v8144_v54 }
 0xc41   : > { %v2621_v17 = vsel %vm689_vm2, %v2602_v40, 0.0  ;;  %v2618_v62 = vsel %vm654_vm1, %v2601_v14, 0.0 }
 0xc42   : > { %2622 = vadd.xlane.f32.xlu1 %v2621_v17  ;;  %2619 = vadd.xlane.f32.xlu0 %v2618_v62 }
 0xcbf   : > { %v2605_v45 = vpop.xlane.xlu1 %2604 }
 0xcc0   : > { %v2624_v11 = vmul.f32 0.015625, %v2605_v45 }
 0xcc2   : > { %v2631_v58 = vadd.f32 1e-05, %v2624_v11 }
 0xcc3   : > { %v2608_v48 = vpop.xlane.xlu0 %2607  ;;  %v2611_v19 = vpop.xlane.xlu1 %2610 }
 0xcc4   : > { %6905 = vrsqrt.f32 %v2631_v58  ;;  %v2625_v52 = vmul.f32 0.015625, %v2608_v48  ;;  %v2626_v18 = vmul.f32 0.015625, %v2611_v19  ;;  %v6701_v58 = vld [vmem:[%s9180_s15 + $0x78] sm:$0xff]   ;;  %v6703_v48 = vld [vmem:[%s9180_s15 + $0x70] sm:$0xff]  }
 0xcc5   : > { %6066 = vmatprep.subr.bf16.mxu1 %v6701_v58  ;;  %v6704_v19 = vld [vmem:[%s9180_s15 + $0x30] sm:$0xff]  }
 0xcc6   : > { %v2632_v2 = vadd.f32 1e-05, %v2625_v52  ;;  %v2633_v0 = vadd.f32 1e-05, %v2626_v18  ;;  %v6705_v52 = vld [vmem:[%s9180_s15 + $0x68] sm:$0xff]  }
 0xcc7   : > { %v2614_v60 = vpop.xlane.xlu0 %2613  ;;  %v2617_v3 = vpop.xlane.xlu1 %2616  ;;  %v6706_v18 = vld [vmem:[%s9180_s15 + $0x28] sm:$0xff]  }
 0xcc8   : > { %6907 = vrsqrt.f32 %v2632_v2  ;;  %v2627_v38 = vmul.f32 0.015625, %v2614_v60  ;;  %v2628_v55 = vmul.f32 0.015625, %v2617_v3  ;;  %v6707_v2 = vld [vmem:[%s9180_s15 + $0x60] sm:$0xff]   ;;  %v6709_v60 = vld [vmem:[%s9180_s15 + $0x58] sm:$0xff]  }
 0xcc9   : > { %6909 = vrsqrt.f32 %v2633_v0  ;;  %v6708_v0 = vld [vmem:[%s9180_s15 + $0x20] sm:$0xff]   ;;  %v6710_v3 = vld [vmem:[%s9180_s15 + $0x18] sm:$0xff]  }
 0xcca   : > { %v2634_v1 = vadd.f32 1e-05, %v2627_v38  ;;  %v2635_v59 = vadd.f32 1e-05, %v2628_v55  ;;  %v6711_v38 = vld [vmem:[%s9180_s15 + $0x50] sm:$0xff]   ;;  %v6713_v55 = vld [vmem:[%s9180_s15 + $0x48] sm:$0xff]  }
 0xccb   : > { %v2620_v34 = vpop.xlane.xlu0 %2619  ;;  %v2623_v21 = vpop.xlane.xlu1 %2622 }
 0xccc   : > { %6911 = vrsqrt.f32 %v2634_v1  ;;  %v2629_v36 = vmul.f32 0.015625, %v2620_v34  ;;  %v2630_v35 = vmul.f32 0.015625, %v2623_v21  ;;  %v6712_v1 = vld [vmem:[%s9180_s15 + $0x10] sm:$0xff]   ;;  %v6714_v34 = vld [vmem:[%s9180_s15 + $0x8] sm:$0xff]   ;;  %v6716_v21 = vld [vmem:[%s9180_s15] sm:$0xff]  }
 0xcce   : > { %v2636_v49 = vadd.f32 1e-05, %v2629_v36  ;;  %v2637_v43 = vadd.f32 1e-05, %v2630_v35  ;;  %v6715_v36 = vld [vmem:[%s9180_s15 + $0x40] sm:$0xff]  }
 0xcd0   : > { %6913 = vrsqrt.f32 %v2636_v49 }
 0xcd1   : > { %v6906_v16 = vpop.eup %6905  ;;  %6915 = vrsqrt.f32 %v2635_v59  ;;  %v2690_v59 = vld [vmem:[%s9179_s14] sm:$0x3] }
 0xcd2   : > { %v2645_v51 = vmul.f32 %v6906_v16, %v8113_v44  ;;  %6917 = vrsqrt.f32 %v2637_v43  ;;  %v8251_v49 = vrot.slane %v2690_v59, %v7609_v53  ;;  %v8254_v35 = vrot.slane %v2690_v59, %v7619_v12 }
 0xcd4   : > { %v2658_v23 = vmul.f32 %v5753_v20, %v2645_v51 }
 0xcd5   : > { %v6908_v9 = vpop.eup %6907 }
 0xcd6   : > { %v2646_v6 = vmul.f32 %v6908_v9, %v8121_v22  ;;  %v6910_v50 = vpop.eup %6909  ;;  %v2671_v13 = vadd.f32 %v5754_v28, %v2658_v23 }
 0xcd7   : > { %v2647_v7 = vmul.f32 %v6910_v50, %v8118_v41 }
 0xcd8   : > { %v2659_v42 = vmul.f32 %v5753_v20, %v2646_v6 }
 0xcd9   : > { %v6912_v29 = vpop.eup %6911  ;;  %v2660_v22 = vmul.f32 %v5753_v20, %v2647_v7 }
 0xcda   : > { %v2672_v44 = vadd.f32 %v5754_v28, %v2659_v42  ;;  %v2648_v33 = vmul.f32 %v6912_v29, %v8129_v32 }
 0xcdb   : > { %v2673_v4 = vadd.f32 %v5754_v28, %v2660_v22 }
 0xcdc   : > { %v2678_v27 = vpack.c.bf16 %v2672_v44, %v2671_v13  ;;  %v2661_v40 = vmul.f32 %v5753_v20, %v2648_v33 }
 0xcdd   : > { %v6914_v14 = vpop.eup %6913 }
 0xcde   : > { %5763 = vmatmul.mubr.msk.bf16.vlgmr.msra.gmra.mxu0 %vm654_vm1, %v2678_v27  ;;  %v6916_v17 = vpop.eup %6915  ;;  %v2674_v62 = vadd.f32 %v5754_v28, %v2661_v40  ;;  %v2650_v26 = vmul.f32 %v6914_v14, %v8144_v54 }
 0xcdf   : > { %2796 = vmatprep.mubr.bf16.mxu0 %v7235_v47  ;;  %v2649_v46 = vmul.f32 %v6916_v17, %v8132_v15  ;;  %v6918_v41 = vpop.eup %6917 }
 0xce0   : > { %v2679_v10 = vpack.c.bf16 %v2674_v62, %v2673_v4  ;;  %v2663_v39 = vmul.f32 %v5753_v20, %v2650_v26  ;;  %v2651_v37 = vmul.f32 %v6918_v41, %v8141_v8  ;;  %v6702_v8 = vld [vmem:[%s9180_s15 + $0x38] sm:$0xff]  }
 0xce1   : > { %v2662_v32 = vmul.f32 %v5753_v20, %v2649_v46  ;;  %6067 = vmatpush3.bf16.msra.mxu1 %v6702_v8 }
 0xce2   : > { %v2676_v61 = vadd.f32 %v5754_v28, %v2663_v39  ;;  %v2664_v11 = vmul.f32 %v5753_v20, %v2651_v37  ;;  %6068 = vmatprep.subr.bf16.mxu1 %v6703_v48 }
 0xce3   : > { %v2675_v30 = vadd.f32 %v5754_v28, %v2662_v32 }
 0xce4   : > { %v2677_v54 = vadd.f32 %v5754_v28, %v2664_v11 }
 0xce5   : > { %v2680_v45 = vpack.c.bf16 %v2676_v61, %v2675_v30  ;;  %6069 = vmatpush3.bf16.msra.mxu1 %v6704_v19 }
 0xce6   : > { %5764 = vmatmul.mubr.msk.bf16.gmra.mxu0 %vm654_vm1, %v2679_v10  ;;  %v2681_v15 = vpack.c.bf16 %v2677_v54, %v2677_v54  ;;  %6070 = vmatprep.subr.bf16.mxu1 %v6705_v52 }
 0xce7   : > { %2806 = vmatprep.mubr.bf16.mxu0 %v7235_v47 }
 0xce9   : > { %6071 = vmatpush3.bf16.msra.mxu1 %v6706_v18 }
 0xcea   : > { %6072 = vmatprep.subr.bf16.mxu1 %v6707_v2 }
 0xced   : > { %6073 = vmatpush3.bf16.msra.mxu1 %v6708_v0 }
 0xcee   : > { %5765 = vmatmul.mubr.msk.bf16.gmra.mxu0 %vm654_vm1, %v2680_v45  ;;  %6074 = vmatprep.subr.bf16.mxu1 %v6709_v60 }
 0xcef   : > { %2816 = vmatprep.mubr.bf16.mxu0 %v7235_v47 }
 0xcf1   : > { %6075 = vmatpush3.bf16.msra.mxu1 %v6710_v3 }
 0xcf2   : > { %6076 = vmatprep.subr.bf16.mxu1 %v6711_v38 }
 0xcf5   : > { %6077 = vmatpush3.bf16.msra.mxu1 %v6712_v1 }
 0xcf6   : > { %5766 = vmatmul.mubr.msk.bf16.gmra.mxu0 %vm654_vm1, %v2681_v15  ;;  %6078 = vmatprep.subr.bf16.mxu1 %v6713_v55 }
 0xcf7   : > { %3398 = vmatprep.mubr.bf16.mxu0 %v7235_v47 }
 0xcf9   : > { %6079 = vmatpush3.bf16.msra.mxu1 %v6714_v34 }
 0xcfa   : > { %6080 = vmatprep.subr.bf16.mxu1 %v6715_v36 }
 0xcfd   : > { %6081 = vmatpush3.bf16.msra.mxu1 %v6716_v21 }
 0xd9e   : > { %v2788_v16 = vpop.f32.mrf.mxu0 }
 0xd9f   : > { %v8257_v51 = vadd.f32 %v2788_v16, %v8251_v49 }
 0xda0   : > { %v2790_v20 = vpop.f32.mrf.mxu0 }
 0xda1   : > { %v5767_v43 = vmul.f32 -1.702, %v8257_v51  ;;  %v8261_v9 = vadd.f32 %v2790_v20, %v8254_v35 }
 0xda2   : > { %v2792_v23 = vpop.f32.mrf.mxu0 }
 0xda3   : > { %v2853_v6 = vmul.f32 1.442695, %v5767_v43  ;;  %v5768_v50 = vmul.f32 -1.702, %v8261_v9  ;;  %v8265_v28 = vadd.f32 %v2792_v23, %v8251_v49 }
 0xda4   : > { %v2794_v42 = vpop.f32.mrf.mxu0 }
 0xda5   : > { %6919 = vpow2.f32 %v2853_v6  ;;  %v2855_v29 = vmul.f32 1.442695, %v5768_v50  ;;  %v5769_v13 = vmul.f32 -1.702, %v8265_v28  ;;  %v8269_v44 = vadd.f32 %v2794_v42, %v8254_v35 }
 0xda6   : > { %v2798_v7 = vpop.f32.mrf.mxu0 }
 0xda7   : > { %6921 = vpow2.f32 %v2855_v29  ;;  %v2857_v33 = vmul.f32 1.442695, %v5769_v13  ;;  %v5770_v27 = vmul.f32 -1.702, %v8269_v44  ;;  %v8273_v40 = vadd.f32 %v2798_v7, %v8251_v49 }
 0xda8   : > { %v2800_v14 = vpop.f32.mrf.mxu0 }
 0xda9   : > { %6923 = vpow2.f32 %v2857_v33  ;;  %v2859_v22 = vmul.f32 1.442695, %v5770_v27  ;;  %v5771_v17 = vmul.f32 -1.702, %v8273_v40  ;;  %v8277_v62 = vadd.f32 %v2800_v14, %v8254_v35 }
 0xdaa   : > { %v2802_v26 = vpop.f32.mrf.mxu0 }
 0xdab   : > { %6925 = vpow2.f32 %v2859_v22  ;;  %v2861_v4 = vmul.f32 1.442695, %v5771_v17  ;;  %v5772_v46 = vmul.f32 -1.702, %v8277_v62  ;;  %v8281_v10 = vadd.f32 %v2802_v26, %v8251_v49 }
 0xdac   : > { %v2804_v39 = vpop.f32.mrf.mxu0 }
 0xdad   : > { %v2863_v41 = vmul.f32 1.442695, %v5772_v46  ;;  %v5773_v32 = vmul.f32 -1.702, %v8281_v10  ;;  %v8285_v61 = vadd.f32 %v2804_v39, %v8254_v35  ;;  %6927 = vpow2.f32 %v2861_v4 }
 0xdae   : > { %v2808_v37 = vpop.f32.mrf.mxu0 }
 0xdaf   : > { %6929 = vpow2.f32 %v2863_v41  ;;  %v2865_v30 = vmul.f32 1.442695, %v5773_v32  ;;  %v5774_v45 = vmul.f32 -1.702, %v8285_v61  ;;  %v8289_v11 = vadd.f32 %v2808_v37, %v8251_v49 }
 0xdb0   : > { %v2810_v54 = vpop.f32.mrf.mxu0 }
 0xdb1   : > { %6931 = vpow2.f32 %v2865_v30  ;;  %v2867_v15 = vmul.f32 1.442695, %v5774_v45  ;;  %v5775_v58 = vmul.f32 -1.702, %v8289_v11  ;;  %v8293_v8 = vadd.f32 %v2810_v54, %v8254_v35 }
 0xdb2   : > { %v6920_v48 = vpop.eup %6919  ;;  %v2812_v19 = vpop.f32.mrf.mxu0 }
 0xdb3   : > { %v2881_v52 = vadd.f32 1.0, %v6920_v48  ;;  %6933 = vpow2.f32 %v2867_v15  ;;  %v2869_v18 = vmul.f32 1.442695, %v5775_v58  ;;  %v5776_v2 = vmul.f32 -1.702, %v8293_v8 }
 0xdb4   : > { %v6922_v0 = vpop.eup %6921  ;;  %v8297_v60 = vadd.f32 %v2812_v19, %v8251_v49  ;;  %v2814_v3 = vpop.f32.mrf.mxu0 }
 0xdb5   : > { %6935 = vrcp.f32 %v2881_v52  ;;  %v2882_v38 = vadd.f32 1.0, %v6922_v0  ;;  %v2871_v1 = vmul.f32 1.442695, %v5776_v2  ;;  %v8300_v55 = vadd.f32 %v2814_v3, %v8254_v35 }
 0xdb6   : > { %v6924_v34 = vpop.eup %6923  ;;  %6937 = vpow2.f32 %v2869_v18  ;;  %v5777_v36 = vmul.f32 -1.702, %v8297_v60  ;;  %v2818_v21 = vpop.f32.mrf.mxu0 }
 0xdb7   : > { %6939 = vrcp.f32 %v2882_v38  ;;  %v2883_v59 = vadd.f32 1.0, %v6924_v34  ;;  %v5778_v16 = vmul.f32 -1.702, %v8300_v55  ;;  %v8305_v20 = vadd.f32 %v2818_v21, %v8251_v49 }
 0xdb8   : > { %v6926_v43 = vpop.eup %6925  ;;  %6941 = vpow2.f32 %v2871_v1  ;;  %v2873_v23 = vmul.f32 1.442695, %v5777_v36  ;;  %v2820_v6 = vpop.f32.mrf.mxu0 }
 0xdb9   : > { %6943 = vrcp.f32 %v2883_v59  ;;  %v2884_v50 = vadd.f32 1.0, %v6926_v43  ;;  %v2875_v42 = vmul.f32 1.442695, %v5778_v16  ;;  %v5779_v29 = vmul.f32 -1.702, %v8305_v20 }
 0xdba   : > { %6945 = vpow2.f32 %v2873_v23  ;;  %v8309_v13 = vadd.f32 %v2820_v6, %v8254_v35  ;;  %v2822_v7 = vpop.f32.mrf.mxu0  ;;  %v6928_v33 = vpop.eup %6927 }
 0xdbb   : > { %6947 = vrcp.f32 %v2884_v50  ;;  %v2877_v27 = vmul.f32 1.442695, %v5779_v29  ;;  %v2885_v4 = vadd.f32 1.0, %v6928_v33 }
 0xdbc   : > { %v6930_v14 = vpop.eup %6929  ;;  %6949 = vpow2.f32 %v2875_v42  ;;  %v5780_v49 = vmul.f32 -1.702, %v8309_v13  ;;  %v2823_v22 = vpop.f32.mrf.mxu0 }
 0xdbd   : > { %v2886_v17 = vadd.f32 1.0, %v6930_v14  ;;  %6951 = vpow2.f32 %v2877_v27 }
 0xdbe   : > { %v6932_v26 = vpop.eup %6931  ;;  %v2879_v46 = vmul.f32 1.442695, %v5780_v49 }
 0xdbf   : > { %6953 = vrcp.f32 %v2886_v17  ;;  %v2887_v39 = vadd.f32 1.0, %v6932_v26 }
 0xdc0   : > { %v6934_v41 = vpop.eup %6933  ;;  %6955 = vpow2.f32 %v2879_v46 }
 0xdc1   : > { %6957 = vrcp.f32 %v2887_v39  ;;  %v2888_v35 = vadd.f32 1.0, %v6934_v41 }
 0xdc2   : > { %v6936_v32 = vpop.eup %6935  ;;  %6959 = vrcp.f32 %v2885_v4 }
 0xdc3   : > { %v6938_v37 = vpop.eup %6937  ;;  %6961 = vrcp.f32 %v2888_v35  ;;  %v2923_v38 = vmul.f32 %v6936_v32, %v8257_v51 }
 0xdc4   : > { %v6940_v30 = vpop.eup %6939  ;;  %v2889_v48 = vadd.f32 1.0, %v6938_v37 }
 0xdc5   : > { %v6942_v45 = vpop.eup %6941  ;;  %v2924_v0 = vmul.f32 %v6940_v30, %v8261_v9 }
 0xdc6   : > { %v6944_v54 = vpop.eup %6943  ;;  %v2890_v15 = vadd.f32 1.0, %v6942_v45 }
 0xdc7   : > { %v6946_v58 = vpop.eup %6945  ;;  %v2925_v52 = vmul.f32 %v6944_v54, %v8265_v28 }
 0xdc8   : > { %v6948_v19 = vpop.eup %6947  ;;  %v2891_v18 = vadd.f32 1.0, %v6946_v58  ;;  %6963 = vrcp.f32 %v2890_v15 }
 0xdc9   : > { %v6950_v2 = vpop.eup %6949  ;;  %v2926_v3 = vmul.f32 %v6948_v19, %v8269_v44  ;;  %v2937_v59 = vpack.c.bf16 %v2925_v52, %v2923_v38 }
 0xdca   : > { %6965 = vrcp.f32 %v2891_v18  ;;  %v2892_v1 = vadd.f32 1.0, %v6950_v2  ;;  %v6952_v34 = vpop.eup %6951 }
 0xdcb   : > { %6967 = vrcp.f32 %v2889_v48  ;;  %v2938_v36 = vpack.c.bf16 %v2926_v3, %v2924_v0  ;;  %v2893_v43 = vadd.f32 1.0, %v6952_v34 }
 0xdcc   : > { %v6954_v21 = vpop.eup %6953  ;;  %6969 = vrcp.f32 %v2892_v1 }
 0xdcd   : > { %v6956_v16 = vpop.eup %6955  ;;  %3105 = vmatprep.mubr.bf16.mxu1 %v2938_v36  ;;  %v2928_v51 = vmul.f32 %v6954_v21, %v8277_v62 }
 0xdce   : > { %v6958_v28 = vpop.eup %6957  ;;  %v2894_v23 = vadd.f32 1.0, %v6956_v16  ;;  %3106 = vmatmul.mubr.bf16.vlgmr.msra.gmra.mxu1 %v2937_v59 }
 0xdcf   : > { %v6960_v9 = vpop.eup %6959  ;;  %v2929_v44 = vmul.f32 %v6958_v28, %v8281_v10 }
 0xdd0   : > { %v6962_v6 = vpop.eup %6961  ;;  %6971 = vrcp.f32 %v2894_v23  ;;  %v2927_v42 = vmul.f32 %v6960_v9, %v8273_v40 }
 0xdd1   : > { %v2930_v50 = vmul.f32 %v6962_v6, %v8285_v61  ;;  %6973 = vrcp.f32 %v2893_v43 }
 0xdd2   : > { %v2939_v7 = vpack.c.bf16 %v2929_v44, %v2927_v42 }
 0xdd3   : > { %v2940_v29 = vpack.c.bf16 %v2930_v50, %v2928_v51 }
 0xdd5   : > { %3113 = vmatprep.mubr.bf16.mxu1 %v2940_v29  ;;  %v6964_v33 = vpop.eup %6963 }
 0xdd6   : > { %3114 = vmatmul.mubr.bf16.gmra.mxu1 %v2939_v7  ;;  %v2932_v10 = vmul.f32 %v6964_v33, %v8293_v8 }
 0xdd7   : > { %v6966_v27 = vpop.eup %6965 }
 0xdd8   : > { %v6968_v14 = vpop.eup %6967  ;;  %v2933_v22 = vmul.f32 %v6966_v27, %v8297_v60  ;;  %v6717_v27 = vld [vmem:[%s9172_s7 + $0x70] ss:$8 sps:$4 sm:$0xff]  }
 0xdd9   : > { %v6970_v49 = vpop.eup %6969  ;;  %v2931_v62 = vmul.f32 %v6968_v14, %v8289_v11  ;;  %v5797_v11 = vld [vmem:[%s9181_s16] ss:$0 sm:$0xff]  ;;  %v6719_v14 = vld [vmem:[%s9172_s7 + $0x74] ss:$8 sps:$4 sm:$0xff]  }
 0xdda   : > { %v2934_v17 = vmul.f32 %v6970_v49, %v8300_v55  ;;  %3374 = vmatprep.subr.bf16.mxu0 %v6719_v14 }
 0xddb   : > { %v2941_v4 = vpack.c.bf16 %v2933_v22, %v2931_v62  ;;  %3375 = vmatpush1.bf16.msra.mxu0 %v6717_v27 }
 0xddc   : > { %v2942_v61 = vpack.c.bf16 %v2934_v17, %v2932_v10 }
 0xddd   : > { %v6972_v26 = vpop.eup %6971 }
 0xdde   : > { %v6974_v40 = vpop.eup %6973  ;;  %v2936_v46 = vmul.f32 %v6972_v26, %v8309_v13  ;;  %3121 = vmatprep.mubr.bf16.mxu1 %v2942_v61 }
 0xddf   : > { %3122 = vmatmul.mubr.bf16.gmra.mxu1 %v2941_v4  ;;  %v2935_v41 = vmul.f32 %v6974_v40, %v8305_v20 }
 0xde0   : > { %v2944_v39 = vpack.c.bf16 %v2936_v46, %v2936_v46 }
 0xde1   : > { %v2943_v35 = vpack.c.bf16 %v2935_v41, %v2935_v41 }
 0xde2   : > { %3129 = vmatprep.mubr.bf16.mxu1 %v2944_v39 }
 0xde7   : > { %3130 = vmatmul.mubr.bf16.gmra.mxu1 %v2943_v35 }
 0xe8e   : > { %v6082_v60 = vpop.f32.mrf.mxu1 }
 0xe90   : > { %v6083_v8 = vpop.f32.mrf.mxu1 }
 0xe91   : > { %v6084_v32 = vadd.f32 %v6083_v8, %v6082_v60 }
 0xe92   : > { %v6085_v55 = vpop.f32.mrf.mxu1 }
 0xe93   : > { %v3137_v37 = vadd.f32 %v6084_v32, %v8079_v57 }
 0xe94   : > { %v6086_v30 = vpop.f32.mrf.mxu1 }
 0xe95   : > { %v8330_v13 = vadd.f32 %v5797_v11, %v3137_v37  ;;  %v6087_v45 = vadd.f32 %v6086_v30, %v6085_v55 }
 0xe96   : > { %v6088_v54 = vpop.f32.mrf.mxu1 }
 0xe97   : > { %v3138_v20 = vadd.f32 %v6087_v45, %v8087_v31  ;;  %v3162_v15 = vsel %vm654_vm1, %v8330_v13, 0.0 }
 0xe98   : > { %3163 = vadd.xlane.f32.xlu0 %v3162_v15  ;;  %v6089_v58 = vpop.f32.mrf.mxu1 }
 0xe99   : > { %v8335_v48 = vadd.f32 %v5797_v11, %v3138_v20  ;;  %v6090_v19 = vadd.f32 %v6089_v58, %v6088_v54 }
 0xe9a   : > { %v6091_v52 = vpop.f32.mrf.mxu1 }
 0xe9b   : > { %v3139_v18 = vadd.f32 %v6090_v19, %v8081_v5  ;;  %v3165_v57 = vsel %vm654_vm1, %v8335_v48, 0.0 }
 0xe9c   : > { %3166 = vadd.xlane.f32.xlu1 %v3165_v57  ;;  %v6092_v2 = vpop.f32.mrf.mxu1 }
 0xe9d   : > { %v8340_v0 = vadd.f32 %v5797_v11, %v3139_v18  ;;  %v6093_v3 = vadd.f32 %v6092_v2, %v6091_v52 }
 0xe9f   : > { %v3140_v31 = vadd.f32 %v6093_v3, %v8091_v24  ;;  %v6094_v38 = vpop.f32.mrf.mxu1  ;;  %v3168_v1 = vsel %vm654_vm1, %v8340_v0, 0.0 }
 0xea0   : > { %3169 = vadd.xlane.f32.xlu0 %v3168_v1 }
 0xea1   : > { %v8345_v34 = vadd.f32 %v5797_v11, %v3140_v31  ;;  %v6095_v36 = vpop.f32.mrf.mxu1 }
 0xea2   : > { %v6096_v21 = vadd.f32 %v6095_v36, %v6094_v38  ;;  %v6722_v36 = vld [vmem:[%s9172_s7 + $0x64] ss:$8 sps:$4 sm:$0xff]  }
 0xea3   : > { %v6097_v5 = vpop.f32.mrf.mxu1  ;;  %v3171_v59 = vsel %vm654_vm1, %v8345_v34, 0.0  ;;  %3376 = vmatprep.subr.bf16.mxu0 %v6722_v36 }
 0xea4   : > { %v3141_v16 = vadd.f32 %v6096_v21, %v8097_v25  ;;  %3172 = vadd.xlane.f32.xlu1 %v3171_v59  ;;  %v6720_v21 = vld [vmem:[%s9172_s7 + $0x60] ss:$8 sps:$4 sm:$0xff]   ;;  %v6723_v59 = vld [vmem:[%s9172_s7 + $0x50] ss:$8 sps:$4 sm:$0xff]  }
 0xea5   : > { %v6098_v43 = vpop.f32.mrf.mxu1  ;;  %3377 = vmatpush1.bf16.msra.mxu0 %v6720_v21 }
 0xea6   : > { %v8350_v28 = vadd.f32 %v5797_v11, %v3141_v16  ;;  %v6099_v24 = vadd.f32 %v6098_v43, %v6097_v5  ;;  %v6725_v5 = vld [vmem:[%s9172_s7 + $0x54] ss:$8 sps:$4 sm:$0xff]   ;;  %v6726_v16 = vld [vmem:[%s9172_s7 + $0x40] ss:$8 sps:$4 sm:$0xff]   ;;  %v6728_v43 = vld [vmem:[%s9172_s7 + $0x44] ss:$8 sps:$4 sm:$0xff]  }
 0xea7   : > { %v6100_v23 = vpop.f32.mrf.mxu1  ;;  %3378 = vmatprep.subr.bf16.mxu0 %v6725_v5 }
 0xea8   : > { %v3142_v9 = vadd.f32 %v6099_v24, %v8106_v56  ;;  %v3174_v6 = vsel %vm654_vm1, %v8350_v28, 0.0 }
 0xea9   : > { %3175 = vadd.xlane.f32.xlu0 %v3174_v6  ;;  %v6101_v44 = vpop.f32.mrf.mxu1  ;;  %3379 = vmatpush1.bf16.msra.mxu0 %v6723_v59 }
 0xeaa   : > { %v8355_v51 = vadd.f32 %v5797_v11, %v3142_v9  ;;  %v6102_v50 = vadd.f32 %v6101_v44, %v6100_v23  ;;  %3380 = vmatprep.subr.bf16.mxu0 %v6728_v43 }
 0xeab   : > { %v6103_v42 = vpop.f32.mrf.mxu1 }
 0xeac   : > { %v3143_v29 = vadd.f32 %v6102_v50, %v8099_v63  ;;  %v3177_v25 = vsel %vm654_vm1, %v8355_v51, 0.0 }
 0xead   : > { %3178 = vadd.xlane.f32.xlu1 %v3177_v25  ;;  %v6104_v7 = vpop.f32.mrf.mxu1  ;;  %3381 = vmatpush1.bf16.msra.mxu0 %v6726_v16 }
 0xeae   : > { %v8360_v33 = vadd.f32 %v5797_v11, %v3143_v29 }
 0xeb0   : > { %v3180_v56 = vsel %vm689_vm2, %v8360_v33, 0.0 }
 0xeb1   : > { %3181 = vadd.xlane.f32.xlu0 %v3180_v56 }
 0xf21   : > { %v3164_v63 = vpop.xlane.xlu0 %3163 }
 0xf22   : > { %v3183_v49 = vmul.f32 0.015625, %v3164_v63 }
 0xf24   : > { %v8371_v22 = vsub.f32 %v8330_v13, %v3183_v49 }
 0xf25   : > { %v3167_v10 = vpop.xlane.xlu1 %3166 }
 0xf26   : > { %v3184_v17 = vmul.f32 0.015625, %v3167_v10  ;;  %v3197_v62 = vmul.f32 %v8371_v22, %v8371_v22 }
 0xf28   : > { %v8376_v61 = vsub.f32 %v8335_v48, %v3184_v17  ;;  %v3204_v26 = vsel %vm654_vm1, %v3197_v62, 0.0  ;;  %v5800_v17 = vld [vmem:[%s9170_s5 + $0x1] ss:$0 sm:$0xff] }
 0xf29   : > { %v3170_v4 = vpop.xlane.xlu0 %3169  ;;  %3205 = vadd.xlane.f32.xlu1 %v3204_v26 }
 0xf2a   : > { %v3185_v40 = vmul.f32 0.015625, %v3170_v4  ;;  %v3198_v46 = vmul.f32 %v8376_v61, %v8376_v61 }
 0xf2c   : > { %v8382_v39 = vsub.f32 %v8340_v0, %v3185_v40  ;;  %v3207_v41 = vsel %vm654_vm1, %v3198_v46, 0.0 }
 0xf2d   : > { %3208 = vadd.xlane.f32.xlu0 %v3207_v41  ;;  %v3173_v35 = vpop.xlane.xlu1 %3172 }
 0xf2e   : > { %v3186_v60 = vmul.f32 0.015625, %v3173_v35  ;;  %v3199_v8 = vmul.f32 %v8382_v39, %v8382_v39 }
 0xf30   : > { %v8388_v32 = vsub.f32 %v8345_v34, %v3186_v60  ;;  %v3210_v11 = vsel %vm654_vm1, %v3199_v8, 0.0  ;;  %v5801_v60 = vld [vmem:[%s9171_s6 + $0x1] ss:$0 sm:$0xff] }
 0xf31   : > { %3211 = vadd.xlane.f32.xlu1 %v3210_v11 }
 0xf32   : > { %v3176_v55 = vpop.xlane.xlu0 %3175  ;;  %v3200_v37 = vmul.f32 %v8388_v32, %v8388_v32 }
 0xf33   : > { %v3187_v30 = vmul.f32 0.015625, %v3176_v55 }
 0xf34   : > { %v3213_v45 = vsel %vm654_vm1, %v3200_v37, 0.0 }
 0xf35   : > { %v8395_v54 = vsub.f32 %v8350_v28, %v3187_v30  ;;  %3214 = vadd.xlane.f32.xlu0 %v3213_v45 }
 0xf36   : > { %v3179_v20 = vpop.xlane.xlu1 %3178 }
 0xf37   : > { %v3188_v15 = vmul.f32 0.015625, %v3179_v20  ;;  %v3201_v58 = vmul.f32 %v8395_v54, %v8395_v54 }
 0xf39   : > { %v8400_v19 = vsub.f32 %v8355_v51, %v3188_v15  ;;  %v3216_v52 = vsel %vm654_vm1, %v3201_v58, 0.0 }
 0xf3a   : > { %3217 = vadd.xlane.f32.xlu1 %v3216_v52  ;;  %v3182_v18 = vpop.xlane.xlu0 %3181 }
 0xf3b   : > { %v3189_v57 = vmul.f32 0.015625, %v3182_v18  ;;  %v3202_v2 = vmul.f32 %v8400_v19, %v8400_v19 }
 0xf3d   : > { %v8406_v3 = vsub.f32 %v8360_v33, %v3189_v57  ;;  %v3219_v31 = vsel %vm654_vm1, %v3202_v2, 0.0 }
 0xf3e   : > { %3220 = vadd.xlane.f32.xlu0 %v3219_v31 }
 0xf3f   : > { %v3203_v38 = vmul.f32 %v8406_v3, %v8406_v3 }
 0xf41   : > { %v3222_v1 = vsel %vm689_vm2, %v3203_v38, 0.0 }
 0xf42   : > { %3223 = vadd.xlane.f32.xlu1 %v3222_v1 }
 0xfb2   : > { %v3206_v24 = vpop.xlane.xlu1 %3205 }
 0xfb3   : > { %v3225_v23 = vmul.f32 0.015625, %v3206_v24 }
 0xfb5   : > { %v3232_v9 = vadd.f32 1e-05, %v3225_v23 }
 0xfb6   : > { %v3209_v6 = vpop.xlane.xlu0 %3208 }
 0xfb7   : > { %6975 = vrsqrt.f32 %v3232_v9  ;;  %v3226_v44 = vmul.f32 0.015625, %v3209_v6 }
 0xfb9   : > { %v3233_v50 = vadd.f32 1e-05, %v3226_v44 }
 0xfba   : > { %v3212_v42 = vpop.xlane.xlu1 %3211 }
 0xfbb   : > { %6977 = vrsqrt.f32 %v3233_v50  ;;  %v3227_v29 = vmul.f32 0.015625, %v3212_v42 }
 0xfbd   : > { %v3234_v25 = vadd.f32 1e-05, %v3227_v29 }
 0xfbe   : > { %v3215_v7 = vpop.xlane.xlu0 %3214 }
 0xfbf   : > { %6979 = vrsqrt.f32 %v3234_v25  ;;  %v3228_v56 = vmul.f32 0.015625, %v3215_v7 }
 0xfc1   : > { %v3235_v27 = vadd.f32 1e-05, %v3228_v56 }
 0xfc3   : > { %6981 = vrsqrt.f32 %v3235_v27  ;;  %v3218_v14 = vpop.xlane.xlu1 %3217 }
 0xfc4   : > { %v6976_v63 = vpop.eup %6975  ;;  %v3229_v49 = vmul.f32 0.015625, %v3218_v14 }
 0xfc5   : > { %v3246_v10 = vmul.f32 %v6976_v63, %v8371_v22 }
 0xfc6   : > { %v3236_v62 = vadd.f32 1e-05, %v3229_v49 }
 0xfc7   : > { %v3221_v26 = vpop.xlane.xlu0 %3220  ;;  %v3259_v46 = vmul.f32 %v5800_v17, %v3246_v10 }
 0xfc8   : > { %v6978_v4 = vpop.eup %6977  ;;  %6983 = vrsqrt.f32 %v3236_v62  ;;  %v3230_v40 = vmul.f32 0.015625, %v3221_v26 }
 0xfc9   : > { %v3247_v41 = vmul.f32 %v6978_v4, %v8376_v61  ;;  %v3272_v37 = vadd.f32 %v5801_v60, %v3259_v46 }
 0xfca   : > { %v3237_v35 = vadd.f32 1e-05, %v3230_v40 }
 0xfcb   : > { %v3260_v8 = vmul.f32 %v5800_v17, %v3247_v41  ;;  %v3224_v11 = vpop.xlane.xlu1 %3223 }
 0xfcc   : > { %v6980_v22 = vpop.eup %6979  ;;  %6985 = vrsqrt.f32 %v3237_v35  ;;  %v3231_v55 = vmul.f32 0.015625, %v3224_v11 }
 0xfcd   : > { %v3273_v30 = vadd.f32 %v5801_v60, %v3260_v8  ;;  %v3248_v45 = vmul.f32 %v6980_v22, %v8382_v39 }
 0xfce   : > { %v3238_v20 = vadd.f32 1e-05, %v3231_v55 }
 0xfcf   : > { %v3297_v15 = vpack.c.bf16 %v3273_v30, %v3272_v37  ;;  %v3261_v52 = vmul.f32 %v5800_v17, %v3248_v45 }
 0xfd0   : > { %v6982_v58 = vpop.eup %6981  ;;  %6987 = vrsqrt.f32 %v3238_v20 }
 0xfd1   : > { %5827 = vmatmul.mubr.msk.bf16.vlgmr.msra.gmra.mxu0 %vm654_vm1, %v3297_v15  ;;  %v3249_v61 = vmul.f32 %v6982_v58, %v8388_v32  ;;  %v3274_v2 = vadd.f32 %v5801_v60, %v3261_v52 }
 0xfd2   : > { %3408 = vmatprep.mubr.bf16.mxu0 %v7235_v47 }
 0xfd3   : > { %v3262_v18 = vmul.f32 %v5800_v17, %v3249_v61 }
 0xfd5   : > { %v6984_v57 = vpop.eup %6983  ;;  %v3275_v31 = vadd.f32 %v5801_v60, %v3262_v18 }
 0xfd6   : > { %v3250_v38 = vmul.f32 %v6984_v57, %v8395_v54 }
 0xfd7   : > { %v3298_v1 = vpack.c.bf16 %v3275_v31, %v3274_v2 }
 0xfd8   : > { %v3263_v21 = vmul.f32 %v5800_v17, %v3250_v38 }
 0xfd9   : > { %v6986_v36 = vpop.eup %6985  ;;  %5828 = vmatmul.mubr.msk.bf16.gmra.mxu0 %vm654_vm1, %v3298_v1 }
 0xfda   : > { %3418 = vmatprep.mubr.bf16.mxu0 %v7235_v47  ;;  %v3251_v39 = vmul.f32 %v6986_v36, %v8400_v19  ;;  %v3276_v59 = vadd.f32 %v5801_v60, %v3263_v21  ;;  %v5818_v19 = vld [vmem:[%s9173_s8 + $0x2] sm:$0x3] }
 0xfdb   : > { %v3307_v6 = vrot.slane %v5818_v19, %v7609_v53  ;;  %v3311_v8 = vrot.slane %v5818_v19, %v7619_v12 }
 0xfdc   : > { %v3264_v5 = vmul.f32 %v5800_v17, %v3251_v39 }
 0xfdd   : > { %v6988_v32 = vpop.eup %6987 }
 0xfde   : > { %v3277_v16 = vadd.f32 %v5801_v60, %v3264_v5  ;;  %v3252_v43 = vmul.f32 %v6988_v32, %v8406_v3 }
 0xfe0   : > { %v3299_v24 = vpack.c.bf16 %v3277_v16, %v3276_v59  ;;  %v3265_v23 = vmul.f32 %v5800_v17, %v3252_v43 }
 0xfe2   : > { %5829 = vmatmul.mubr.msk.bf16.gmra.mxu0 %vm654_vm1, %v3299_v24  ;;  %v3278_v54 = vadd.f32 %v5801_v60, %v3265_v23 }
 0xfe3   : > { %3428 = vmatprep.mubr.bf16.mxu0 %v7235_v47 }
 0xfe4   : > { %v3300_v9 = vpack.c.bf16 %v3278_v54, %v3278_v54 }
 0xfea   : > { %5830 = vmatmul.mubr.msk.bf16.gmra.mxu0 %vm654_vm1, %v3300_v9 }
0x1091   : > { %v3400_v44 = vpop.f32.mrf.mxu0 }
0x1092   : > { %v3401_v42 = vadd.f32 %v3400_v44, %v3307_v6 }
0x1093   : > { %v3402_v50 = vpop.f32.mrf.mxu0 }
0x1094   : > { %v3437_v7 = vmul.f32 0.25, %v3401_v42  ;;  %v3403_v39 = vadd.f32 %v3402_v50, %v3311_v8 }
0x1095   : > { %v3404_v3 = vpop.f32.mrf.mxu0 }
0x1096   : > { %v3405_v29 = vadd.f32 %v3404_v3, %v3307_v6 }
0x1097   : > { %v3406_v25 = vpop.f32.mrf.mxu0 }
0x1098   : > { %v3438_v56 = vmul.f32 0.25, %v3405_v29  ;;  %v8473_v18 = vpack.c.bf16 %v3405_v29, %v3401_v42  ;;  %v3407_v1 = vadd.f32 %v3406_v25, %v3311_v8 }
0x1099   : > { %v3410_v27 = vpop.f32.mrf.mxu0 }
0x109a   : > { %v8454_v14 = vpack.c.bf16 %v3438_v56, %v3437_v7  ;;  %v3411_v11 = vadd.f32 %v3410_v27, %v3307_v6  ;;  %v8494_v21 = vpack.c.bf16 %v3407_v1, %v3403_v39 }
0x109b   : > { %v3412_v63 = vpop.f32.mrf.mxu0 }
0x109c   : > { %6411 = vmatprep.mubr.msk.bf16.mxu1 %vm1091_vm3, %v8454_v14  ;;  %v3413_v38 = vadd.f32 %v3412_v63, %v3311_v8  ;;  %v3439_v59 = vmul.f32 0.25, %v3411_v11 }
0x109d   : > { %v3414_v49 = vpop.f32.mrf.mxu0 }
0x109e   : > { %v3415_v41 = vadd.f32 %v3414_v49, %v3307_v6 }
0x109f   : > { %v3416_v10 = vpop.f32.mrf.mxu0 }
0x10a0   : > { %v8463_v37 = vpack.c.bf16 %v3415_v41, %v3411_v11  ;;  %v3417_v57 = vadd.f32 %v3416_v10, %v3311_v8  ;;  %v3440_v5 = vmul.f32 0.25, %v3415_v41 }
0x10a2   : > { %v3420_v17 = vpop.f32.mrf.mxu0  ;;  %v8486_v36 = vpack.c.bf16 %v3417_v57, %v3413_v38  ;;  %v8502_v43 = vpack.c.bf16 %v3440_v5, %v3439_v59 }
0x10a3   : > { %v3421_v4 = vadd.f32 %v3420_v17, %v3307_v6 }
0x10a4   : > { %v3422_v62 = vpop.f32.mrf.mxu0 }
0x10a5   : > { %v3423_v58 = vadd.f32 %v3422_v62, %v3311_v8  ;;  %v3441_v16 = vmul.f32 0.25, %v3421_v4 }
0x10a6   : > { %v3424_v26 = vpop.f32.mrf.mxu0 }
0x10a7   : > { %v3425_v40 = vadd.f32 %v3424_v26, %v3307_v6 }
0x10a8   : > { %v3426_v46 = vpop.f32.mrf.mxu0 }
0x10a9   : > { %v8458_v35 = vpack.c.bf16 %v3425_v40, %v3421_v4  ;;  %v3427_v30 = vadd.f32 %v3426_v46, %v3311_v8  ;;  %v3442_v32 = vmul.f32 0.25, %v3425_v40 }
0x10aa   : > { %v3430_v60 = vpop.f32.mrf.mxu0 }
0x10ab   : > { %v3431_v22 = vadd.f32 %v3430_v60, %v3307_v6  ;;  %3460 = vrot.lane.b32.xlu1 %v8458_v35, %s7236_s0  ;;  %v8475_v2 = vpack.c.bf16 %v3427_v30, %v3423_v58  ;;  %v8504_v23 = vpack.c.bf16 %v3442_v32, %v3441_v16 }
0x10ac   : > { %v3432_v55 = vpop.f32.mrf.mxu0 }
0x10ad   : > { %v8465_v45 = vpack.c.bf16 %v3431_v22, %v3431_v22  ;;  %v3433_v20 = vadd.f32 %v3432_v55, %v3311_v8  ;;  %v3443_v24 = vmul.f32 0.25, %v3431_v22 }
0x10ae   : > { %v3434_v15 = vpop.f32.mrf.mxu0 }
0x10af   : > { %v8467_v61 = vpack.c.bf16 %v3433_v20, %v3433_v20  ;;  %3458 = vrot.lane.b32.xlu1 %v8463_v37, %s7236_s0  ;;  %3462 = vrot.lane.b32.xlu0 %v8465_v45, %s7236_s0  ;;  %v8511_v54 = vpack.c.bf16 %v3443_v24, %v3443_v24 }
0x10b0   : > { %v3435_v52 = vpop.f32.mrf.mxu0 }
0x10b1   : > { %6607 = vmatprep.subr.msk.bf16.mxu0 %vm1279_vm4, %v8467_v61  ;;  %v3650_v31 = vsel %vm1279_vm4, %v8467_v61, 0 }
0x10b2   : > { %6420 = vmatpush3.bf16.msra.mxu0 %v3650_v31 }
0x10b3   : > { %3456 = vrot.lane.b32.xlu1 %v8473_v18, %s7236_s0  ;;  %6421 = vmatprep.subr.bf16.mxu0 %v8475_v2  ;;  %s9224_s0 = smov 32  }
0x10b4   : > { %3738 = vrot.lane.b32.xlu0 %v8465_v45, %s7237_s21 }
0x10b6   : > { %6422 = vmatpush3.bf16.msra.mxu0 %v8475_v2 }
0x10b7   : > { %3736 = vrot.lane.b32.xlu1 %v8458_v35, %s7237_s21  ;;  %6423 = vmatprep.subr.bf16.mxu0 %v8486_v36 }
0x10b8   : > { %3734 = vrot.lane.b32.xlu0 %v8463_v37, %s7237_s21 }
0x10ba   : > { %6424 = vmatpush3.bf16.msra.mxu0 %v8486_v36 }
0x10bb   : > { %3732 = vrot.lane.b32.xlu1 %v8473_v18, %s7237_s21  ;;  %6425 = vmatprep.subr.bf16.mxu0 %v8494_v21  ;;  %s9225_s21 = smov 96  }
0x10bc   : > { %3724 = vrot.lane.b32.xlu0 %v8454_v14, %s7238_s25 }
0x10be   : > { %6426 = vmatpush3.bf16.msra.mxu0 %v8494_v21 }
0x10bf   : > { %3726 = vrot.lane.b32.xlu1 %v8502_v43, %s7238_s25 }
0x10c0   : > { %3728 = vrot.lane.b32.xlu0 %v8504_v23, %s7238_s25 }
0x10c3   : > { %3730 = vrot.lane.b32.xlu1 %v8511_v54, %s7238_s25 }
0x111d   : > { %v3461_v6 = vpop.permute.xlu1 %3460 }
0x111e   : > { %v3483_v44 = vsel %vm1091_vm3, %v3461_v6, 0 }
0x1121   : > { %v3463_v9 = vpop.permute.xlu0 %3462  ;;  %v3459_v50 = vpop.permute.xlu1 %3458 }
0x1122   : > { %6603 = vmatprep.subr.msk.bf16.mxu1 %vm1091_vm3, %v3463_v9  ;;  %v3486_v19 = vsel %vm1091_vm3, %v3463_v9, 0  ;;  %v3480_v42 = vsel %vm1091_vm3, %v3459_v50, 0 }
0x1123   : > { %6404 = vmatpush3.bf16.xpose.msra.mxu1 %v3486_v19 }
0x1124   : > { %6604 = vmatprep.subr.msk.bf16.mxu1 %vm1091_vm3, %v3461_v6 }
0x1125   : > { %v3457_v3 = vpop.permute.xlu1 %3456 }
0x1126   : > { %v3477_v29 = vsel %vm1091_vm3, %v3457_v3, 0  ;;  %v3739_v25 = vpop.permute.xlu0 %3738 }
0x1127   : > { %v3762_v7 = vsel %vm1091_vm3, %v3739_v25, 0 }
0x1129   : > { %v3737_v56 = vpop.permute.xlu1 %3736 }
0x112a   : > { %v3735_v27 = vpop.permute.xlu0 %3734  ;;  %v3759_v49 = vsel %vm1091_vm3, %v3737_v56, 0 }
0x112b   : > { %6406 = vmatpush3.bf16.xpose.msra.mxu1 %v3483_v44  ;;  %v3756_v10 = vsel %vm1091_vm3, %v3735_v27, 0 }
0x112c   : > { %6605 = vmatprep.subr.msk.bf16.mxu1 %vm1091_vm3, %v3459_v50 }
0x112d   : > { %v3733_v17 = vpop.permute.xlu1 %3732 }
0x112e   : > { %v3725_v63 = vpop.permute.xlu0 %3724  ;;  %v3753_v62 = vsel %vm1091_vm3, %v3733_v17, 0 }
0x1131   : > { %v3727_v26 = vpop.permute.xlu1 %3726 }
0x1132   : > { %v3729_v4 = vpop.permute.xlu0 %3728 }
0x1133   : > { %6408 = vmatpush3.bf16.xpose.msra.mxu1 %v3480_v42 }
0x1134   : > { %6606 = vmatprep.subr.msk.bf16.mxu1 %vm1091_vm3, %v3457_v3 }
0x1135   : > { %v3731_v40 = vpop.permute.xlu1 %3730 }
0x113b   : > { %6410 = vmatpush3.bf16.xpose.msra.mxu1 %v3477_v29 }
0x113c   : > { %6608 = vmatprep.subr.msk.bf16.mxu1 %vm1091_vm3, %v3739_v25 }
0x1142   : > { %6412 = vmatmul.mubr.msk.bf16.vlgmr.msra.gmra.mxu1 %vm1091_vm3, %v8502_v43 }
0x1143   : > { %6415 = vmatprep.mubr.msk.bf16.mxu1 %vm1091_vm3, %v8504_v23  ;;  %6436 = vmatpush3.bf16.xpose.msra.mxu1 %v3762_v7 }
0x1144   : > { %6609 = vmatprep.subr.msk.bf16.mxu1 %vm1091_vm3, %v3737_v56 }
0x114a   : > { %6416 = vmatmul.mubr.msk.bf16.gmra.mxu1 %vm1091_vm3, %v8511_v54 }
0x114b   : > { %6438 = vmatpush3.bf16.xpose.msra.mxu1 %v3759_v49  ;;  %6443 = vmatprep.mubr.msk.bf16.mxu1 %vm1091_vm3, %v3725_v63 }
0x114c   : > { %6610 = vmatprep.subr.msk.bf16.mxu1 %vm1091_vm3, %v3735_v27 }
0x1153   : > { %6440 = vmatpush3.bf16.xpose.msra.mxu1 %v3756_v10 }
0x1154   : > { %6611 = vmatprep.subr.msk.bf16.mxu1 %vm1091_vm3, %v3733_v17 }
0x115b   : > { %6442 = vmatpush3.bf16.xpose.msra.mxu1 %v3753_v62 }
0x1162   : > { %6444 = vmatmul.mubr.msk.bf16.vlgmr.msra.gmra.mxu1 %vm1091_vm3, %v3727_v26 }
0x1163   : > { %6447 = vmatprep.mubr.msk.bf16.mxu1 %vm1091_vm3, %v3729_v4 }
0x116a   : > { %6448 = vmatmul.mubr.msk.bf16.gmra.mxu1 %vm1091_vm3, %v3731_v40 }
0x1202   : > { %v6413_v46 = vpop.f32.mrf.mxu1 }
0x1203   : > { %v3558_v41 = vsel %vm1180_vm5, %v6413_v46, -inf }
0x1204   : > { %3559 = vmax.xlane.f32.xlu0 %v3558_v41  ;;  %v3522_v60 = vpop.f32.mrf.mxu1 }
0x1205   : > { %v3552_v11 = vsel %vm1180_vm5, %v3522_v60, -inf }
0x1206   : > { %v6414_v8 = vpop.f32.mrf.mxu1 }
0x1207   : > { %v3561_v20 = vsel %vm1180_vm5, %v6414_v8, -inf }
0x1208   : > { %3553 = vmax.xlane.f32.xlu0 %v3552_v11  ;;  %v3525_v22 = vpop.f32.mrf.mxu1 }
0x1209   : > { %v3555_v55 = vsel %vm1180_vm5, %v3525_v22, -inf }
0x120a   : > { %3556 = vmax.xlane.f32.xlu1 %v3555_v55  ;;  %v6417_v30 = vpop.f32.mrf.mxu1 }
0x120b   : > { %v3570_v52 = vsel %vm1199_vm6, %v6417_v30, -inf }
0x120c   : > { %3562 = vmax.xlane.f32.xlu0 %v3561_v20  ;;  %v3538_v15 = vpop.f32.mrf.mxu1 }
0x120d   : > { %v3564_v38 = vsel %vm1180_vm5, %v3538_v15, -inf }
0x120e   : > { %v6418_v58 = vpop.f32.mrf.mxu1 }
0x1210   : > { %3571 = vmax.xlane.f32.xlu0 %v3570_v52  ;;  %v3541_v57 = vpop.f32.mrf.mxu1 }
0x1211   : > { %v3567_v31 = vsel %vm1180_vm5, %v3541_v57, -inf }
0x1212   : > { %3568 = vmax.xlane.f32.xlu1 %v3567_v31 }
0x1214   : > { %3565 = vmax.xlane.f32.xlu0 %v3564_v38 }
0x1222   : > { %v8548_v1 = vpop.f32.mrf.mxu1 }
0x1223   : > { %v3834_v39 = vsel %vm1180_vm5, %v8548_v1, -inf }
0x1224   : > { %3835 = vmax.xlane.f32.xlu1 %v3834_v39  ;;  %v8552_v5 = vpop.f32.mrf.mxu1 }
0x1225   : > { %v3828_v59 = vsel %vm1180_vm5, %v8552_v5, -inf }
0x1226   : > { %v8554_v32 = vpop.f32.mrf.mxu1 }
0x1227   : > { %v3837_v16 = vsel %vm1180_vm5, %v8554_v32, -inf }
0x1228   : > { %3829 = vmax.xlane.f32.xlu1 %v3828_v59  ;;  %3838 = vmax.xlane.f32.xlu0 %v3837_v16  ;;  %v8560_v24 = vpop.f32.mrf.mxu1 }
0x1229   : > { %v3831_v19 = vsel %vm1180_vm5, %v8560_v24, -inf }
0x122a   : > { %v8562_v9 = vpop.f32.mrf.mxu1 }
0x122b   : > { %v3846_v6 = vsel %vm1199_vm6, %v8562_v9, -inf }
0x122c   : > { %3832 = vmax.xlane.f32.xlu0 %v3831_v19  ;;  %3847 = vmax.xlane.f32.xlu1 %v3846_v6  ;;  %v8568_v44 = vpop.f32.mrf.mxu1 }
0x122d   : > { %v3840_v42 = vsel %vm1180_vm5, %v8568_v44, -inf }
0x122e   : > { %v6450_v50 = vpop.f32.mrf.mxu1 }
0x1230   : > { %3841 = vmax.xlane.f32.xlu1 %v3840_v42  ;;  %v8572_v3 = vpop.f32.mrf.mxu1 }
0x1231   : > { %v3843_v29 = vsel %vm1180_vm5, %v8572_v3, -inf }
0x1232   : > { %3844 = vmax.xlane.f32.xlu0 %v3843_v29 }
0x1241   : > { %3919 = vrot.lane.b32.xlu1 %v8467_v61, %s7238_s25 }
0x1248   : > { %3917 = vrot.lane.b32.xlu0 %v8475_v2, %s7238_s25 }
0x128d   : > { %v3560_v25 = vpop.xlane.xlu0 %3559 }
0x128e   : > { %v3575_v7 = vsub.f32 %v6413_v46, %v3560_v25 }
0x1290   : > { %v3584_v56 = vmul.f32 1.442695, %v3575_v7 }
0x1291   : > { %v3554_v27 = vpop.xlane.xlu0 %3553 }
0x1292   : > { %6989 = vpow2.f32 %v3584_v56  ;;  %v3573_v63 = vsub.f32 %v3522_v60, %v3554_v27 }
0x1293   : > { %v3557_v49 = vpop.xlane.xlu1 %3556 }
0x1294   : > { %v3580_v10 = vmul.f32 1.442695, %v3573_v63  ;;  %v3574_v17 = vsub.f32 %v3525_v22, %v3557_v49 }
0x1295   : > { %v3563_v62 = vpop.xlane.xlu0 %3562 }
0x1296   : > { %6991 = vpow2.f32 %v3580_v10  ;;  %v3576_v26 = vsub.f32 %v6414_v8, %v3563_v62  ;;  %v3582_v4 = vmul.f32 1.442695, %v3574_v17 }
0x1298   : > { %v3586_v40 = vmul.f32 1.442695, %v3576_v26 }
0x1299   : > { %v3572_v41 = vpop.xlane.xlu0 %3571 }
0x129a   : > { %6993 = vpow2.f32 %v3586_v40  ;;  %v3579_v11 = vsub.f32 %v6417_v30, %v3572_v41 }
0x129b   : > { %v3569_v55 = vpop.xlane.xlu1 %3568  ;;  %6995 = vpow2.f32 %v3582_v4 }
0x129c   : > { %v3592_v20 = vmul.f32 1.442695, %v3579_v11  ;;  %v3578_v58 = vsub.f32 %v3541_v57, %v3569_v55 }
0x129d   : > { %v3566_v46 = vpop.xlane.xlu0 %3565 }
0x129e   : > { %6997 = vpow2.f32 %v3592_v20  ;;  %v3590_v52 = vmul.f32 1.442695, %v3578_v58  ;;  %v3577_v31 = vsub.f32 %v3538_v15, %v3566_v46 }
0x129f   : > { %v8580_v60 = vpop.eup %6989 }
0x12a0   : > { %6999 = vpow2.f32 %v3590_v52  ;;  %v3588_v22 = vmul.f32 1.442695, %v3577_v31  ;;  %v3600_v8 = vsel %vm1180_vm5, %v8580_v60, 0.0 }
0x12a1   : > { %3601 = vadd.xlane.f32.xlu0 %v3600_v8 }
0x12a2   : > { %7001 = vpow2.f32 %v3588_v22 }
0x12a3   : > { %v8584_v38 = vpop.eup %6991 }
0x12a4   : > { %v3594_v30 = vsel %vm1180_vm5, %v8584_v38, 0.0 }
0x12a5   : > { %3595 = vadd.xlane.f32.xlu0 %v3594_v30 }
0x12a7   : > { %v8588_v57 = vpop.eup %6993 }
0x12a8   : > { %v3603_v15 = vsel %vm1180_vm5, %v8588_v57, 0.0  ;;  %v8592_v39 = vpop.eup %6995 }
0x12a9   : > { %3604 = vadd.xlane.f32.xlu1 %v3603_v15  ;;  %v3597_v19 = vsel %vm1180_vm5, %v8592_v39, 0.0 }
0x12ab   : > { %v8594_v59 = vpop.eup %6997 }
0x12ac   : > { %v3612_v16 = vsel %vm1199_vm6, %v8594_v59, 0.0 }
0x12ad   : > { %v8600_v6 = vpop.eup %6999  ;;  %3613 = vadd.xlane.f32.xlu0 %v3612_v16  ;;  %3598 = vadd.xlane.f32.xlu1 %v3597_v19  ;;  %v3836_v50 = vpop.xlane.xlu1 %3835 }
0x12ae   : > { %v3851_v42 = vsub.f32 %v8548_v1, %v3836_v50  ;;  %v3609_v56 = vsel %vm1180_vm5, %v8600_v6, 0.0 }
0x12af   : > { %v8603_v29 = vpop.eup %7001 }
0x12b0   : > { %v3860_v25 = vmul.f32 1.442695, %v3851_v42  ;;  %v3606_v7 = vsel %vm1180_vm5, %v8603_v29, 0.0 }
0x12b1   : > { %v3839_v27 = vpop.xlane.xlu0 %3838  ;;  %3607 = vadd.xlane.f32.xlu0 %v3606_v7  ;;  %3610 = vadd.xlane.f32.xlu1 %v3609_v56  ;;  %v3830_v63 = vpop.xlane.xlu1 %3829 }
0x12b2   : > { %7003 = vpow2.f32 %v3860_v25  ;;  %v3852_v49 = vsub.f32 %v8554_v32, %v3839_v27  ;;  %v3849_v10 = vsub.f32 %v8552_v5, %v3830_v63 }
0x12b4   : > { %v3862_v17 = vmul.f32 1.442695, %v3852_v49  ;;  %v3856_v1 = vmul.f32 1.442695, %v3849_v10 }
0x12b5   : > { %v3833_v62 = vpop.xlane.xlu0 %3832  ;;  %v3848_v26 = vpop.xlane.xlu1 %3847 }
0x12b6   : > { %7005 = vpow2.f32 %v3862_v17  ;;  %v3850_v4 = vsub.f32 %v8560_v24, %v3833_v62  ;;  %v3855_v40 = vsub.f32 %v8562_v9, %v3848_v26 }
0x12b7   : > { %7007 = vpow2.f32 %v3856_v1 }
0x12b8   : > { %v3858_v41 = vmul.f32 1.442695, %v3850_v4  ;;  %v3868_v11 = vmul.f32 1.442695, %v3855_v40 }
0x12b9   : > { %v3842_v55 = vpop.xlane.xlu1 %3841 }
0x12ba   : > { %7009 = vpow2.f32 %v3858_v41  ;;  %v3853_v20 = vsub.f32 %v8568_v44, %v3842_v55 }
0x12bb   : > { %v3845_v58 = vpop.xlane.xlu0 %3844  ;;  %7011 = vpow2.f32 %v3868_v11 }
0x12bc   : > { %v3864_v32 = vmul.f32 1.442695, %v3853_v20  ;;  %v3854_v5 = vsub.f32 %v8572_v3, %v3845_v58 }
0x12bd   : > { %v8615_v46 = vpop.permute.xlu1 %3919 }
0x12be   : > { %7013 = vpow2.f32 %v3864_v32  ;;  %v3866_v52 = vmul.f32 1.442695, %v3854_v5  ;;  %6612 = vmatprep.subr.msk.bf16.mxu0 %vm1279_vm4, %v8615_v46 }
0x12bf   : > { %v8619_v24 = vpop.eup %7003  ;;  %v3918_v7 = vpop.permute.xlu0 %3917 }
0x12c0   : > { %7015 = vpow2.f32 %v3866_v52  ;;  %v3876_v9 = vsel %vm1180_vm5, %v8619_v24, 0.0 }
0x12c1   : > { %3877 = vadd.xlane.f32.xlu1 %v3876_v9 }
0x12c3   : > { %v8623_v44 = vpop.eup %7005 }
0x12c4   : > { %v8625_v31 = vpop.eup %7007  ;;  %v3879_v3 = vsel %vm1180_vm5, %v8623_v44, 0.0 }
0x12c5   : > { %3880 = vadd.xlane.f32.xlu0 %v3879_v3  ;;  %v3870_v22 = vsel %vm1180_vm5, %v8625_v31, 0.0 }
0x12c6   : > { %3871 = vadd.xlane.f32.xlu1 %v3870_v22  ;;  %v6729_v22 = vld [vmem:[%s9174_s9 + $0x28] sm:$0xff]  }
0x12c7   : > { %v8631_v8 = vpop.eup %7009 }
0x12c8   : > { %v3873_v30 = vsel %vm1180_vm5, %v8631_v8, 0.0  ;;  %v8635_v15 = vpop.eup %7011 }
0x12c9   : > { %3874 = vadd.xlane.f32.xlu0 %v3873_v30  ;;  %v3888_v19 = vsel %vm1199_vm6, %v8635_v15, 0.0 }
0x12cb   : > { %v8637_v16 = vpop.eup %7013 }
0x12cc   : > { %v3882_v50 = vsel %vm1180_vm5, %v8637_v16, 0.0 }
0x12cd   : > { %v8643_v42 = vpop.eup %7015  ;;  %3889 = vadd.xlane.f32.xlu0 %v3888_v19  ;;  %3883 = vadd.xlane.f32.xlu1 %v3882_v50 }
0x12ce   : > { %v3885_v25 = vsel %vm1180_vm5, %v8643_v42, 0.0 }
0x12d1   : > { %3886 = vadd.xlane.f32.xlu0 %v3885_v25 }
0x12de   : > { %3915 = vrot.lane.b32.xlu1 %v8486_v36, %s7238_s25 }
0x12e2   : > { %4185 = vrot.lane.b32.xlu1 %v8465_v45, %s9224_s0 }
0x12e6   : > { %4183 = vrot.lane.b32.xlu1 %v8458_v35, %s9224_s0 }
0x12e7   : > { %3913 = vrot.lane.b32.xlu0 %v8494_v21, %s7238_s25  ;;  %s9227_s25 = smov 80  }
0x12ea   : > { %4181 = vrot.lane.b32.xlu1 %v8463_v37, %s9224_s0 }
0x12eb   : > { %4171 = vrot.lane.b32.xlu0 %v8454_v14, %s9225_s21 }
0x12ee   : > { %4179 = vrot.lane.b32.xlu1 %v8473_v18, %s9224_s0  ;;  %s5612_s0 = scalar_lea.sflag [#allocation4], %s620_s20 }
0x12ef   : > { %4175 = vrot.lane.b32.xlu0 %v8504_v23, %s9225_s21 }
0x12f2   : > { %4173 = vrot.lane.b32.xlu1 %v8502_v43, %s9225_s21 }
0x12f3   : > { %4553 = vrot.lane.b32.xlu0 %v8465_v45, %s9226_s3 }
0x12f6   : > { %4177 = vrot.lane.b32.xlu1 %v8511_v54, %s9225_s21 }
0x12f7   : > { %4549 = vrot.lane.b32.xlu0 %v8463_v37, %s9226_s3 }
0x12fa   : > { %4551 = vrot.lane.b32.xlu1 %v8458_v35, %s9226_s3 }
0x12fb   : > { %4539 = vrot.lane.b32.xlu0 %v8454_v14, %s9227_s25 }
0x12fe   : > { %4547 = vrot.lane.b32.xlu1 %v8473_v18, %s9226_s3  ;;  %s7177_s3 = sshll.u32 %s7245_s2, 4  ;;  %s7178_s3 = int_to_ptr.vmem [resolvable:$false] %s7177_s3 }
0x12ff   : > { %p7180_p0 = scmp.lt.s32.totalorder %s9126_s24, %s7178_s3 }
0x1302   : > { %4541 = vrot.lane.b32.xlu1 %v8502_v43, %s9227_s25 }
0x132a   : > { %v3602_v45 = vpop.xlane.xlu0 %3601 }
0x132e   : > { %v3596_v56 = vpop.xlane.xlu0 %3595 }
0x1332   : > { %v3605_v27 = vpop.xlane.xlu1 %3604 }
0x1333   : > { %7017 = vrcp.f32 %v3605_v27 }
0x1334   : > { %7019 = vrcp.f32 %v3596_v56 }
0x1335   : > { %7021 = vrcp.f32 %v3602_v45 }
0x1336   : > { %v3614_v63 = vpop.xlane.xlu0 %3613  ;;  %v3599_v37 = vpop.xlane.xlu1 %3598 }
0x1337   : > { %7023 = vrcp.f32 %v3599_v37 }
0x133a   : > { %v3608_v35 = vpop.xlane.xlu0 %3607  ;;  %v3611_v49 = vpop.xlane.xlu1 %3610 }
0x133b   : > { %7025 = vrcp.f32 %v3608_v35 }
0x133c   : > { %7027 = vrcp.f32 %v3611_v49 }
0x133d   : > { %7029 = vrcp.f32 %v3614_v63 }
0x1340   : > { %v7018_v14 = vpop.eup %7017 }
0x1341   : > { %v7020_v18 = vpop.eup %7019  ;;  %v3625_v43 = vmul.f32 %v7018_v14, %v8588_v57  ;;  %v3937_v57 = vsel %vm1279_vm4, %v8615_v46, 0 }
0x1342   : > { %v7022_v10 = vpop.eup %7021  ;;  %v3622_v1 = vmul.f32 %v7020_v18, %v8584_v38 }
0x1343   : > { %v3624_v26 = vmul.f32 %v7022_v10, %v8580_v60 }
0x1344   : > { %v7024_v17 = vpop.eup %7023 }
0x1345   : > { %v3623_v62 = vmul.f32 %v7024_v17, %v8592_v39  ;;  %v3630_v11 = vpack.c.bf16 %v3625_v43, %v3624_v26  ;;  %v6730_v17 = vld [vmem:[%s9174_s9 + $0x20] sm:$0xff]  }
0x1346   : > { %6477 = vmatprep.subr.bf16.mxu1 %v6730_v17 }
0x1347   : > { %v3629_v40 = vpack.c.bf16 %v3623_v62, %v3622_v1  ;;  %6478 = vmatpush3.bf16.msra.mxu1 %v6730_v17 }
0x1348   : > { %v7026_v4 = vpop.eup %7025 }
0x1349   : > { %v7028_v41 = vpop.eup %7027  ;;  %v3626_v55 = vmul.f32 %v7026_v4, %v8603_v29  ;;  %6427 = vmatprep.mubr.msk.bf16.mxu0 %vm1180_vm5, %v3629_v40 }
0x134a   : > { %v7030_v20 = vpop.eup %7029  ;;  %v3878_v58 = vpop.xlane.xlu1 %3877  ;;  %v3627_v32 = vmul.f32 %v7028_v41, %v8600_v6  ;;  %6428 = vmatmul.mubr.msk.bf16.vlgmr.msra.gmra.mxu0 %vm1180_vm5, %v3630_v11 }
0x134b   : > { %6452 = vmatpush3.bf16.msra.mxu0 %v3937_v57  ;;  %v3628_v60 = vmul.f32 %v7030_v20, %v8594_v59 }
0x134c   : > { %v3631_v38 = vpack.c.bf16 %v3627_v32, %v3626_v55  ;;  %6453 = vmatprep.subr.bf16.mxu0 %v3918_v7 }
0x134d   : > { %v3632_v5 = vpack.c.bf16 %v3628_v60, %v3628_v60 }
0x134e   : > { %6431 = vmatprep.mubr.msk.bf16.mxu0 %vm1180_vm5, %v3631_v38  ;;  %v3881_v39 = vpop.xlane.xlu0 %3880 }
0x134f   : > { %v3872_v29 = vpop.xlane.xlu1 %3871  ;;  %7031 = vrcp.f32 %v3881_v39  ;;  %6454 = vmatpush3.bf16.msra.mxu0 %v3918_v7 }
0x1350   : > { %7033 = vrcp.f32 %v3872_v29 }
0x1351   : > { %7035 = vrcp.f32 %v3878_v58 }
0x1352   : > { %v3875_v6 = vpop.xlane.xlu0 %3874  ;;  %6432 = vmatmul.mubr.msk.bf16.gmra.mxu0 %vm1180_vm5, %v3632_v5 }
0x1353   : > { %7037 = vrcp.f32 %v3875_v6 }
0x1356   : > { %v3890_v46 = vpop.xlane.xlu0 %3889  ;;  %v3884_v52 = vpop.xlane.xlu1 %3883 }
0x1357   : > { %7039 = vrcp.f32 %v3890_v46 }
0x1358   : > { %7041 = vrcp.f32 %v3884_v52 }
0x135a   : > { %v3887_v9 = vpop.xlane.xlu0 %3886  ;;  %v3916_v3 = vpop.permute.xlu1 %3915 }
0x135b   : > { %7043 = vrcp.f32 %v3887_v9  ;;  %6455 = vmatprep.subr.bf16.mxu0 %v3916_v3 }
0x135c   : > { %6456 = vmatpush3.bf16.msra.mxu0 %v3916_v3  ;;  %v7032_v59 = vpop.eup %7031 }
0x135d   : > { %v7034_v30 = vpop.eup %7033  ;;  %v3901_v7 = vmul.f32 %v7032_v59, %v8623_v44 }
0x135e   : > { %v3914_v19 = vpop.permute.xlu0 %3913  ;;  %v7036_v50 = vpop.eup %7035  ;;  %v3898_v45 = vmul.f32 %v7034_v30, %v8625_v31 }
0x135f   : > { %6457 = vmatprep.subr.bf16.mxu0 %v3914_v19  ;;  %v3900_v27 = vmul.f32 %v7036_v50, %v8619_v24  ;;  %v4186_v14 = vpop.permute.xlu1 %4185 }
0x1360   : > { %v7038_v25 = vpop.eup %7037  ;;  %6458 = vmatpush3.bf16.msra.mxu0 %v3914_v19  ;;  %v4209_v29 = vsel %vm1091_vm3, %v4186_v14, 0 }
0x1361   : > { %v3899_v56 = vmul.f32 %v7038_v25, %v8631_v8  ;;  %6467 = vmatprep.subr.bf16.mxu0 %v6729_v22  ;;  %v3906_v37 = vpack.c.bf16 %v3901_v7, %v3900_v27 }
0x1362   : > { %v4172_v59 = vpop.permute.xlu0 %4171 }
0x1363   : > { %v3905_v63 = vpack.c.bf16 %v3899_v56, %v3898_v45  ;;  %v4184_v6 = vpop.permute.xlu1 %4183 }
0x1364   : > { %v7040_v35 = vpop.eup %7039 }
0x1365   : > { %6459 = vmatprep.mubr.msk.bf16.mxu0 %vm1180_vm5, %v3905_v63  ;;  %v7042_v49 = vpop.eup %7041  ;;  %v3904_v44 = vmul.f32 %v7040_v35, %v8635_v15 }
0x1366   : > { %6460 = vmatmul.mubr.msk.bf16.vlgmr.msra.gmra.mxu0 %vm1180_vm5, %v3906_v37  ;;  %v3902_v31 = vmul.f32 %v7042_v49, %v8637_v16  ;;  %v4176_v25 = vpop.permute.xlu0 %4175 }
0x1367   : > { %6468 = vmatpush3.bf16.msra.mxu0 %v6729_v22  ;;  %v3908_v10 = vpack.c.bf16 %v3904_v44, %v3904_v44  ;;  %v4206_v22 = vsel %vm1091_vm3, %v4184_v6, 0  ;;  %v4182_v30 = vpop.permute.xlu1 %4181 }
0x1368   : > { %v7044_v18 = vpop.eup %7043  ;;  %6613 = vmatprep.subr.msk.bf16.mxu0 %vm1091_vm3, %v4186_v14  ;;  %v4203_v50 = vsel %vm1091_vm3, %v4182_v30, 0 }
0x1369   : > { %v3903_v8 = vmul.f32 %v7044_v18, %v8643_v42 }
0x136a   : > { %v4554_v56 = vpop.permute.xlu0 %4553 }
0x136b   : > { %v3907_v24 = vpack.c.bf16 %v3903_v8, %v3902_v31  ;;  %v4180_v19 = vpop.permute.xlu1 %4179  ;;  %v4577_v63 = vsel %vm1091_vm3, %v4554_v56, 0 }
0x136c   : > { %v4200_v45 = vsel %vm1091_vm3, %v4180_v19, 0 }
0x136d   : > { %6463 = vmatprep.mubr.msk.bf16.mxu0 %vm1180_vm5, %v3907_v24 }
0x136e   : > { %6464 = vmatmul.mubr.msk.bf16.gmra.mxu0 %vm1180_vm5, %v3908_v10  ;;  %v4550_v35 = vpop.permute.xlu0 %4549 }
0x136f   : > { %v4174_v7 = vpop.permute.xlu1 %4173  ;;  %v4571_v18 = vsel %vm1091_vm3, %v4550_v35, 0 }
0x1372   : > { %v4540_v49 = vpop.permute.xlu0 %4539 }
0x1373   : > { %v4178_v27 = vpop.permute.xlu1 %4177 }
0x1377   : > { %v4552_v37 = vpop.permute.xlu1 %4551 }
0x1378   : > { %v4574_v14 = vsel %vm1091_vm3, %v4552_v37, 0 }
0x137b   : > { %v4548_v44 = vpop.permute.xlu1 %4547 }
0x137c   : > { %v4568_v31 = vsel %vm1091_vm3, %v4548_v44, 0 }
0x137f   : > { %v4542_v8 = vpop.permute.xlu1 %4541 }
0x140a   : > { %v6429_v43 = vpop.f32.mrf.mxu0 }
0x140c   : > { %v3686_v1 = vpop.f32.mrf.mxu0 }
0x140e   : > { %v6430_v62 = vpop.f32.mrf.mxu0 }
0x140f   : > { %v3717_v16 = vpack.c.bf16 %v6430_v62, %v6429_v43 }
0x1410   : > { %v3689_v15 = vpop.f32.mrf.mxu0 }
0x1411   : > { %v3716_v26 = vpack.c.bf16 %v3689_v15, %v3686_v1 }
0x1412   : > { %v6433_v4 = vpop.f32.mrf.mxu0 }
0x1413   : > { %6479 = vmatprep.mubr.msk.bf16.mxu1 %vm1091_vm3, %v3716_v26  ;;  %v3719_v55 = vpack.c.bf16 %v6433_v4, %v6433_v4 }
0x1414   : > { %v3702_v42 = vpop.f32.mrf.mxu0  ;;  %6480 = vmatmul.mubr.msk.bf16.vlgmr.msra.gmra.mxu1 %vm1091_vm3, %v3717_v16 }
0x1416   : > { %v6434_v40 = vpop.f32.mrf.mxu0 }
0x1418   : > { %v3705_v41 = vpop.f32.mrf.mxu0 }
0x1419   : > { %v3718_v11 = vpack.c.bf16 %v3705_v41, %v3702_v42 }
0x141b   : > { %6483 = vmatprep.mubr.msk.bf16.mxu1 %vm1091_vm3, %v3718_v11 }
0x141c   : > { %6484 = vmatmul.mubr.msk.bf16.gmra.mxu1 %vm1091_vm3, %v3719_v55 }
0x1426   : > { %v6461_v20 = vpop.f32.mrf.mxu0 }
0x1428   : > { %v3973_v58 = vpop.f32.mrf.mxu0 }
0x142a   : > { %v6462_v32 = vpop.f32.mrf.mxu0 }
0x142b   : > { %v4004_v60 = vpack.c.bf16 %v6462_v32, %v6461_v20 }
0x142c   : > { %v3976_v57 = vpop.f32.mrf.mxu0 }
0x142d   : > { %v4003_v38 = vpack.c.bf16 %v3976_v57, %v3973_v58 }
0x142e   : > { %v6465_v39 = vpop.f32.mrf.mxu0 }
0x142f   : > { %6469 = vmatprep.mubr.msk.bf16.mxu0 %vm1091_vm3, %v4003_v38  ;;  %v4006_v3 = vpack.c.bf16 %v6465_v39, %v6465_v39 }
0x1430   : > { %v3989_v5 = vpop.f32.mrf.mxu0  ;;  %6470 = vmatmul.mubr.msk.bf16.vlgmr.msra.gmra.mxu0 %vm1091_vm3, %v4004_v60 }
0x1431   : > { %6488 = vmatpush3.bf16.xpose.msra.mxu0 %v4209_v29 }
0x1432   : > { %6614 = vmatprep.subr.msk.bf16.mxu0 %vm1091_vm3, %v4184_v6  ;;  %v6466_v46 = vpop.f32.mrf.mxu0 }
0x1434   : > { %v3992_v52 = vpop.f32.mrf.mxu0 }
0x1435   : > { %v4005_v9 = vpack.c.bf16 %v3992_v52, %v3989_v5 }
0x1437   : > { %6473 = vmatprep.mubr.msk.bf16.mxu0 %vm1091_vm3, %v4005_v9 }
0x1438   : > { %6474 = vmatmul.mubr.msk.bf16.gmra.mxu0 %vm1091_vm3, %v4006_v3 }
0x1439   : > { %6490 = vmatpush3.bf16.xpose.msra.mxu0 %v4206_v22  ;;  %6495 = vmatprep.mubr.msk.bf16.mxu0 %vm1091_vm3, %v4172_v59 }
0x143a   : > { %6615 = vmatprep.subr.msk.bf16.mxu0 %vm1091_vm3, %v4182_v30 }
0x1441   : > { %6492 = vmatpush3.bf16.xpose.msra.mxu0 %v4203_v50 }
0x1442   : > { %6616 = vmatprep.subr.msk.bf16.mxu0 %vm1091_vm3, %v4180_v19 }
0x1449   : > { %6494 = vmatpush3.bf16.xpose.msra.mxu0 %v4200_v45 }
0x144a   : > { %6618 = vmatprep.subr.msk.bf16.mxu0 %vm1091_vm3, %v4554_v56 }
0x1450   : > { %6496 = vmatmul.mubr.msk.bf16.vlgmr.msra.gmra.mxu0 %vm1091_vm3, %v4174_v7 }
0x1451   : > { %6499 = vmatprep.mubr.msk.bf16.mxu0 %vm1091_vm3, %v4176_v25  ;;  %6530 = vmatpush3.bf16.xpose.msra.mxu0 %v4577_v63 }
0x1452   : > { %6619 = vmatprep.subr.msk.bf16.mxu0 %vm1091_vm3, %v4552_v37 }
0x1458   : > { %6500 = vmatmul.mubr.msk.bf16.gmra.mxu0 %vm1091_vm3, %v4178_v27 }
0x1459   : > { %6532 = vmatpush3.bf16.xpose.msra.mxu0 %v4574_v14  ;;  %6537 = vmatprep.mubr.msk.bf16.mxu0 %vm1091_vm3, %v4540_v49 }
0x145a   : > { %6620 = vmatprep.subr.msk.bf16.mxu0 %vm1091_vm3, %v4550_v35 }
0x1461   : > { %6534 = vmatpush3.bf16.xpose.msra.mxu0 %v4571_v18 }
0x1462   : > { %6621 = vmatprep.subr.msk.bf16.mxu0 %vm1091_vm3, %v4548_v44 }
0x1469   : > { %6536 = vmatpush3.bf16.xpose.msra.mxu0 %v4568_v31 }
0x1470   : > { %6538 = vmatmul.mubr.msk.bf16.vlgmr.msra.gmra.mxu0 %vm1091_vm3, %v4542_v8 }
0x14d4   : > { %v6481_v24 = vpop.f32.mrf.mxu1 }
0x14d6   : > { %v4141_v10 = vpop.f32.mrf.mxu1 }
0x14d8   : > { %v6482_v17 = vpop.f32.mrf.mxu1 }
0x14da   : > { %v4144_v43 = vpop.f32.mrf.mxu1 }
0x14dc   : > { %v6485_v1 = vpop.f32.mrf.mxu1 }
0x14de   : > { %v4157_v62 = vpop.f32.mrf.mxu1 }
0x14e0   : > { %v6486_v15 = vpop.f32.mrf.mxu1 }
0x14f0   : > { %v6471_v26 = vpop.f32.mrf.mxu0 }
0x14f1   : > { %v8739_v16 = vadd.f32 %v6481_v24, %v6471_v26 }
0x14f2   : > { %v4059_v4 = vpop.f32.mrf.mxu0 }
0x14f3   : > { %v8741_v42 = vadd.f32 %v4141_v10, %v4059_v4 }
0x14f4   : > { %v6472_v40 = vpop.f32.mrf.mxu0 }
0x14f5   : > { %v8743_v41 = vadd.f32 %v6482_v17, %v6472_v40 }
0x14f6   : > { %v4062_v11 = vpop.f32.mrf.mxu0 }
0x14f7   : > { %v8745_v55 = vadd.f32 %v4144_v43, %v4062_v11 }
0x14f8   : > { %v6475_v20 = vpop.f32.mrf.mxu0 }
0x14f9   : > { %v8747_v58 = vadd.f32 %v6485_v1, %v6475_v20 }
0x14fa   : > { %v4075_v32 = vpop.f32.mrf.mxu0 }
0x14fb   : > { %v8749_v57 = vadd.f32 %v4157_v62, %v4075_v32 }
0x14fc   : > { %v6476_v38 = vpop.f32.mrf.mxu0 }
0x14fe   : > { %v8751_v60 = vpop.f32.mrf.mxu0 }
0x1510   : > { %v6497_v39 = vpop.f32.mrf.mxu0 }
0x1511   : > { %v4281_v52 = vsel %vm1180_vm5, %v6497_v39, -inf }
0x1512   : > { %v4245_v29 = vpop.f32.mrf.mxu0 }
0x1513   : > { %v4275_v5 = vsel %vm1180_vm5, %v4245_v29, -inf }
0x1514   : > { %4276 = vmax.xlane.f32.xlu0 %v4275_v5  ;;  %v6498_v6 = vpop.f32.mrf.mxu0 }
0x1515   : > { %v4284_v22 = vsel %vm1180_vm5, %v6498_v6, -inf }
0x1516   : > { %v4248_v46 = vpop.f32.mrf.mxu0 }
0x1517   : > { %v4278_v9 = vsel %vm1180_vm5, %v4248_v46, -inf }
0x1518   : > { %4282 = vmax.xlane.f32.xlu0 %v4281_v52  ;;  %4279 = vmax.xlane.f32.xlu1 %v4278_v9  ;;  %v6501_v3 = vpop.f32.mrf.mxu0 }
0x1519   : > { %v4293_v7 = vsel %vm1199_vm6, %v6501_v3, -inf }
0x151a   : > { %v4261_v59 = vpop.f32.mrf.mxu0 }
0x151b   : > { %v4287_v50 = vsel %vm1180_vm5, %v4261_v59, -inf }
0x151c   : > { %4285 = vmax.xlane.f32.xlu0 %v4284_v22  ;;  %v6502_v30 = vpop.f32.mrf.mxu0 }
0x151e   : > { %v4264_v19 = vpop.f32.mrf.mxu0 }
0x151f   : > { %v4290_v25 = vsel %vm1180_vm5, %v4264_v19, -inf }
0x1520   : > { %4288 = vmax.xlane.f32.xlu0 %v4287_v50  ;;  %4291 = vmax.xlane.f32.xlu1 %v4290_v25 }
0x1524   : > { %4294 = vmax.xlane.f32.xlu0 %v4293_v7 }
0x1530   : > { %v8797_v22 = vpop.f32.mrf.mxu0 }
0x1531   : > { %v4649_v50 = vsel %vm1180_vm5, %v8797_v22, -inf }
0x1532   : > { %v8799_v30 = vpop.f32.mrf.mxu0 }
0x1534   : > { %v8805_v25 = vpop.f32.mrf.mxu0 }
0x1536   : > { %v8809_v7 = vpop.f32.mrf.mxu0 }
0x159d   : > { %v4277_v45 = vpop.xlane.xlu0 %4276 }
0x159e   : > { %v4296_v56 = vsub.f32 %v4245_v29, %v4277_v45 }
0x15a0   : > { %v4303_v35 = vmul.f32 1.442695, %v4296_v56 }
0x15a1   : > { %v4283_v27 = vpop.xlane.xlu0 %4282  ;;  %v4280_v63 = vpop.xlane.xlu1 %4279 }
0x15a2   : > { %v4298_v37 = vsub.f32 %v6497_v39, %v4283_v27  ;;  %v4297_v14 = vsub.f32 %v4248_v46, %v4280_v63 }
0x15a4   : > { %v4307_v49 = vmul.f32 1.442695, %v4298_v37  ;;  %v4305_v31 = vmul.f32 1.442695, %v4297_v14 }
0x15a5   : > { %v4286_v18 = vpop.xlane.xlu0 %4285 }
0x15a6   : > { %7045 = vpow2.f32 %v4307_v49  ;;  %v4299_v44 = vsub.f32 %v6498_v6, %v4286_v18 }
0x15a7   : > { %7047 = vpow2.f32 %v4303_v35 }
0x15a8   : > { %v4309_v8 = vmul.f32 1.442695, %v4299_v44 }
0x15a9   : > { %v4289_v24 = vpop.xlane.xlu0 %4288  ;;  %v4292_v10 = vpop.xlane.xlu1 %4291 }
0x15aa   : > { %7049 = vpow2.f32 %v4309_v8  ;;  %v4301_v17 = vsub.f32 %v4264_v19, %v4292_v10  ;;  %v4300_v43 = vsub.f32 %v4261_v59, %v4289_v24  ;;  %v4643_v19 = vsel %vm1180_vm5, %v8799_v30, -inf }
0x15ab   : > { %7051 = vpow2.f32 %v4305_v31 }
0x15ac   : > { %v4313_v1 = vmul.f32 1.442695, %v4301_v17  ;;  %v4311_v26 = vmul.f32 1.442695, %v4300_v43 }
0x15ad   : > { %v4295_v62 = vpop.xlane.xlu0 %4294 }
0x15ae   : > { %v4302_v15 = vsub.f32 %v6501_v3, %v4295_v62  ;;  %7053 = vpow2.f32 %v4313_v1 }
0x15b0   : > { %v4315_v4 = vmul.f32 1.442695, %v4302_v15 }
0x15b2   : > { %7055 = vpow2.f32 %v4315_v4 }
0x15b3   : > { %v8760_v40 = vpop.eup %7045  ;;  %7057 = vpow2.f32 %v4311_v26 }
0x15b4   : > { %v4323_v11 = vsel %vm1180_vm5, %v8760_v40, 0.0  ;;  %v8764_v20 = vpop.eup %7047 }
0x15b5   : > { %4324 = vadd.xlane.f32.xlu1 %v4323_v11  ;;  %v4317_v39 = vsel %vm1180_vm5, %v8764_v20, 0.0 }
0x15b7   : > { %v8766_v32 = vpop.eup %7049 }
0x15b8   : > { %v4326_v38 = vsel %vm1180_vm5, %v8766_v32, 0.0  ;;  %v7052_v29 = vpop.eup %7051 }
0x15b9   : > { %4327 = vadd.xlane.f32.xlu0 %v4326_v38  ;;  %4318 = vadd.xlane.f32.xlu1 %v4317_v39  ;;  %v4320_v5 = vsel %vm1180_vm5, %v7052_v29, 0.0 }
0x15bb   : > { %v8773_v6 = vpop.eup %7053 }
0x15bc   : > { %v4332_v9 = vsel %vm1180_vm5, %v8773_v6, 0.0 }
0x15bd   : > { %4321 = vadd.xlane.f32.xlu0 %v4320_v5 }
0x15bf   : > { %v8775_v46 = vpop.eup %7055 }
0x15c0   : > { %v4335_v52 = vsel %vm1199_vm6, %v8775_v46, 0.0  ;;  %v8781_v3 = vpop.eup %7057 }
0x15c1   : > { %4336 = vadd.xlane.f32.xlu1 %v4335_v52  ;;  %4333 = vadd.xlane.f32.xlu0 %v4332_v9  ;;  %v4329_v59 = vsel %vm1180_vm5, %v8781_v3, 0.0 }
0x15c5   : > { %4330 = vadd.xlane.f32.xlu1 %v4329_v59 }
0x15d6   : > { %4360 = vrot.lane.b32.xlu1 %v8475_v2, %s9225_s21 }
0x15d7   : > { %4362 = vrot.lane.b32.xlu0 %v8467_v61, %s9225_s21 }
0x15da   : > { %4358 = vrot.lane.b32.xlu1 %v8486_v36, %s9225_s21 }
0x15db   : > { %4543 = vrot.lane.b32.xlu0 %v8504_v23, %s9227_s25  ;;  %v4652_v23 = vsel %vm1180_vm5, %v8805_v25, -inf }
0x15de   : > { %4356 = vrot.lane.b32.xlu1 %v8494_v21, %s9225_s21  ;;  %s7173_s21 = scalar_lea.vmem %s9126_s24, 16 }
0x15df   : > { %p7174_p11 = scmp.ne.s32.totalorder %s9126_s24, %s7173_s21 }
0x15e1   : > { %p7175_p12 = pnand %p7174_p11, %p7389_p5 }
0x15e2   : > { %4545 = vrot.lane.b32.xlu1 %v8511_v54, %s9227_s25  ;;  %v4646_v54 = vsel %vm1180_vm5, %v8809_v7, -inf }
0x15e3   : > { %p7176_p13 = pneg %p7175_p12 }
0x15fa   : > { %4644 = vmax.xlane.f32.xlu0 %v4643_v19 }
0x15fe   : > { %4650 = vmax.xlane.f32.xlu0 %v4649_v50 }
0x1602   : > { %4653 = vmax.xlane.f32.xlu0 %v4652_v23 }
0x1606   : > { %4647 = vmax.xlane.f32.xlu1 %v4646_v54 }
0x1617   : > { %4728 = vrot.lane.b32.xlu1 %v8475_v2, %s9227_s25 }
0x161b   : > { %4726 = vrot.lane.b32.xlu1 %v8486_v36, %s9227_s25 }
0x163e   : > { %v4325_v45 = vpop.xlane.xlu1 %4324 }
0x1642   : > { %v4328_v56 = vpop.xlane.xlu0 %4327  ;;  %v4319_v27 = vpop.xlane.xlu1 %4318 }
0x1643   : > { %7059 = vrcp.f32 %v4319_v27 }
0x1646   : > { %v4322_v63 = vpop.xlane.xlu0 %4321 }
0x1647   : > { %7061 = vrcp.f32 %v4322_v63 }
0x1648   : > { %7063 = vrcp.f32 %v4328_v56 }
0x1649   : > { %7065 = vrcp.f32 %v4325_v45 }
0x164a   : > { %v4334_v37 = vpop.xlane.xlu0 %4333  ;;  %v4337_v35 = vpop.xlane.xlu1 %4336 }
0x164b   : > { %7067 = vrcp.f32 %v4334_v37 }
0x164e   : > { %v4363_v49 = vpop.permute.xlu0 %4362  ;;  %v4331_v14 = vpop.xlane.xlu1 %4330 }
0x164f   : > { %v4380_v18 = vsel %vm1279_vm4, %v4363_v49, 0  ;;  %7069 = vrcp.f32 %v4331_v14  ;;  %6617 = vmatprep.subr.msk.bf16.mxu1 %vm1279_vm4, %v4363_v49  ;;  %v6731_v14 = vld [vmem:[%s9174_s9 + $0x30] sm:$0xff]  }
0x1650   : > { %6504 = vmatpush3.bf16.msra.mxu1 %v4380_v18  ;;  %7071 = vrcp.f32 %v4337_v35  ;;  %v7060_v2 = vpop.eup %7059  ;;  %v8856_v18 = vpop.f32.mrf.mxu1 }
0x1651   : > { %v4345_v8 = vmul.f32 %v7060_v2, %v8764_v20 }
0x1652   : > { %v4544_v36 = vpop.permute.xlu0 %4543  ;;  %v4361_v44 = vpop.permute.xlu1 %4360 }
0x1653   : > { %6505 = vmatprep.subr.bf16.mxu1 %v4361_v44  ;;  %6541 = vmatprep.mubr.msk.bf16.mxu0 %vm1091_vm3, %v4544_v36 }
0x1654   : > { %v7062_v31 = vpop.eup %7061  ;;  %6506 = vmatpush3.bf16.msra.mxu1 %v4361_v44 }
0x1655   : > { %v4346_v24 = vmul.f32 %v7062_v31, %v7052_v29  ;;  %v7064_v10 = vpop.eup %7063 }
0x1656   : > { %v4359_v17 = vpop.permute.xlu1 %4358  ;;  %v7066_v1 = vpop.eup %7065  ;;  %v4348_v62 = vmul.f32 %v7064_v10, %v8766_v32 }
0x1657   : > { %6507 = vmatprep.subr.bf16.mxu1 %v4359_v17  ;;  %v4352_v43 = vpack.c.bf16 %v4346_v24, %v4345_v8  ;;  %v4347_v4 = vmul.f32 %v7066_v1, %v8760_v40 }
0x1658   : > { %6508 = vmatpush3.bf16.msra.mxu1 %v4359_v17  ;;  %v7068_v15 = vpop.eup %7067 }
0x1659   : > { %6511 = vmatprep.mubr.msk.bf16.mxu1 %vm1180_vm5, %v4352_v43  ;;  %v4353_v38 = vpack.c.bf16 %v4348_v62, %v4347_v4  ;;  %v4350_v39 = vmul.f32 %v7068_v15, %v8773_v6 }
0x165a   : > { %v4357_v26 = vpop.permute.xlu1 %4356 }
0x165b   : > { %6509 = vmatprep.subr.bf16.mxu1 %v4357_v26 }
0x165c   : > { %v7070_v11 = vpop.eup %7069  ;;  %6510 = vmatpush3.bf16.msra.mxu1 %v4357_v26 }
0x165d   : > { %v4349_v20 = vmul.f32 %v7070_v11, %v8781_v3  ;;  %v7072_v29 = vpop.eup %7071  ;;  %6519 = vmatprep.subr.bf16.mxu1 %v6731_v14 }
0x165e   : > { %v4546_v5 = vpop.permute.xlu1 %4545  ;;  %v4351_v40 = vmul.f32 %v7072_v29, %v8775_v46 }
0x165f   : > { %6512 = vmatmul.mubr.msk.bf16.vlgmr.msra.gmra.mxu1 %vm1180_vm5, %v4353_v38  ;;  %6542 = vmatmul.mubr.msk.bf16.gmra.mxu0 %vm1091_vm3, %v4546_v5  ;;  %v4354_v32 = vpack.c.bf16 %v4350_v39, %v4349_v20 }
0x1660   : > { %5160 = vmatprep.mubr.bf16.mxu0 %v7235_v47  ;;  %v4355_v52 = vpack.c.bf16 %v4351_v40, %v4351_v40  ;;  %6520 = vmatpush3.bf16.msra.mxu1 %v6731_v14 }
0x1661   : > { %6515 = vmatprep.mubr.msk.bf16.mxu1 %vm1180_vm5, %v4354_v32 }
0x1667   : > { %6516 = vmatmul.mubr.msk.bf16.gmra.mxu1 %vm1180_vm5, %v4355_v52 }
0x1683   : > { %v4645_v9 = vpop.xlane.xlu0 %4644 }
0x1684   : > { %v4664_v3 = vsub.f32 %v8799_v30, %v4645_v9 }
0x1686   : > { %v4671_v19 = vmul.f32 1.442695, %v4664_v3 }
0x1687   : > { %v4651_v6 = vpop.xlane.xlu0 %4650 }
0x1688   : > { %v4666_v59 = vsub.f32 %v8797_v22, %v4651_v6 }
0x168a   : > { %v4675_v50 = vmul.f32 1.442695, %v4666_v59 }
0x168b   : > { %v4654_v23 = vpop.xlane.xlu0 %4653 }
0x168c   : > { %7073 = vpow2.f32 %v4675_v50  ;;  %v4667_v54 = vsub.f32 %v8805_v25, %v4654_v23 }
0x168d   : > { %7075 = vpow2.f32 %v4671_v19 }
0x168e   : > { %v4677_v45 = vmul.f32 1.442695, %v4667_v54 }
0x168f   : > { %v4648_v56 = vpop.xlane.xlu1 %4647 }
0x1690   : > { %7077 = vpow2.f32 %v4677_v45  ;;  %v4665_v46 = vsub.f32 %v8809_v7, %v4648_v56 }
0x1692   : > { %v4673_v27 = vmul.f32 1.442695, %v4665_v46 }
0x1693   : > { %v4729_v2 = vpop.permute.xlu1 %4728 }
0x1694   : > { %7079 = vpow2.f32 %v4673_v27 }
0x1697   : > { %v4727_v43 = vpop.permute.xlu1 %4726 }
0x1699   : > { %v8836_v63 = vpop.eup %7073 }
0x169a   : > { %v4691_v30 = vsel %vm1180_vm5, %v8836_v63, 0.0  ;;  %v8840_v22 = vpop.eup %7075 }
0x169b   : > { %4692 = vadd.xlane.f32.xlu0 %v4691_v30  ;;  %v4685_v25 = vsel %vm1180_vm5, %v8840_v22, 0.0 }
0x169d   : > { %v8842_v37 = vpop.eup %7077 }
0x169e   : > { %v4694_v35 = vsel %vm1180_vm5, %v8842_v37, 0.0 }
0x169f   : > { %4686 = vadd.xlane.f32.xlu0 %v4685_v25  ;;  %4695 = vadd.xlane.f32.xlu1 %v4694_v35 }
0x16a1   : > { %v7080_v7 = vpop.eup %7079 }
0x16a2   : > { %v4688_v49 = vsel %vm1180_vm5, %v7080_v7, 0.0 }
0x16a3   : > { %4689 = vadd.xlane.f32.xlu1 %v4688_v49 }
0x16b4   : > { %4724 = vrot.lane.b32.xlu1 %v8494_v21, %s9227_s25 }
0x16b5   : > { %4730 = vrot.lane.b32.xlu0 %v8467_v61, %s9227_s25  ;;  %s7179_s25 = scalar_lea.vmem %s7178_s3, 32 }
0x16b6   : > { %p7181_p1 = scmp.lt.s32.totalorder %s7179_s25, %s7173_s21 }
0x16b8   : > { %p7182_p2 = por %p7181_p1, %p7180_p0 }
0x16ba   : > { %p7183_p3 = pnand %p7182_p2, %p7176_p13 }
0x171f   : > { %v6513_v36 = vpop.f32.mrf.mxu1  ;;  %v8858_v44 = vpop.f32.mrf.mxu0 }
0x1720   : > { %v4661_v61 = vsel %vm1199_vm6, %v8858_v44, -inf }
0x1721   : > { %v4416_v31 = vpop.f32.mrf.mxu1  ;;  %v4629_v8 = vpop.f32.mrf.mxu0 }
0x1722   : > { %v4655_v24 = vsel %vm1180_vm5, %v4629_v8, -inf }
0x1723   : > { %v6514_v10 = vpop.f32.mrf.mxu1  ;;  %4656 = vmax.xlane.f32.xlu0 %v4655_v24  ;;  %v6544_v17 = vpop.f32.mrf.mxu0 }
0x1724   : > { %v4693_v1 = vpop.xlane.xlu0 %4692  ;;  %v4447_v4 = vpack.c.bf16 %v6514_v10, %v6513_v36 }
0x1725   : > { %v4419_v62 = vpop.f32.mrf.mxu1  ;;  %v4632_v21 = vpop.f32.mrf.mxu0 }
0x1726   : > { %v4446_v15 = vpack.c.bf16 %v4419_v62, %v4416_v31  ;;  %v4658_v26 = vsel %vm1180_vm5, %v4632_v21, -inf }
0x1727   : > { %v6517_v11 = vpop.f32.mrf.mxu1  ;;  %4662 = vmax.xlane.f32.xlu0 %v4661_v61  ;;  %4659 = vmax.xlane.f32.xlu1 %v4658_v26 }
0x1728   : > { %v4687_v38 = vpop.xlane.xlu0 %4686  ;;  %6521 = vmatprep.mubr.msk.bf16.mxu1 %vm1091_vm3, %v4446_v15  ;;  %v4696_v20 = vpop.xlane.xlu1 %4695  ;;  %v4449_v3 = vpack.c.bf16 %v6517_v11, %v6517_v11 }
0x1729   : > { %v4432_v39 = vpop.f32.mrf.mxu1  ;;  %6522 = vmatmul.mubr.msk.bf16.vlgmr.msra.gmra.mxu1 %vm1091_vm3, %v4447_v4  ;;  %7081 = vrcp.f32 %v4696_v20 }
0x172a   : > { %7083 = vrcp.f32 %v4687_v38 }
0x172b   : > { %v6518_v29 = vpop.f32.mrf.mxu1  ;;  %7085 = vrcp.f32 %v4693_v1 }
0x172c   : > { %v4731_v5 = vpop.permute.xlu0 %4730  ;;  %v4690_v32 = vpop.xlane.xlu1 %4689 }
0x172d   : > { %v4748_v40 = vsel %vm1279_vm4, %v4731_v5, 0  ;;  %7087 = vrcp.f32 %v4690_v32  ;;  %v4435_v52 = vpop.f32.mrf.mxu1  ;;  %6622 = vmatprep.subr.msk.bf16.mxu1 %vm1279_vm4, %v4731_v5 }
0x172e   : > { %v4448_v9 = vpack.c.bf16 %v4435_v52, %v4432_v39  ;;  %6546 = vmatpush3.bf16.msra.mxu1 %v4748_v40 }
0x172f   : > { %6547 = vmatprep.subr.bf16.mxu1 %v4729_v2 }
0x1730   : > { %6525 = vmatprep.mubr.msk.bf16.mxu1 %vm1091_vm3, %v4448_v9  ;;  %v4725_v6 = vpop.permute.xlu1 %4724 }
0x1731   : > { %6526 = vmatmul.mubr.msk.bf16.gmra.mxu1 %vm1091_vm3, %v4449_v3 }
0x1732   : > { %6548 = vmatpush3.bf16.msra.mxu1 %v4729_v2 }
0x1733   : > { %6549 = vmatprep.subr.bf16.mxu1 %v4727_v43 }
0x1736   : > { %6550 = vmatpush3.bf16.msra.mxu1 %v4727_v43  ;;  %v7082_v59 = vpop.eup %7081 }
0x1737   : > { %6551 = vmatprep.subr.bf16.mxu1 %v4725_v6  ;;  %v7084_v19 = vpop.eup %7083  ;;  %v4716_v54 = vmul.f32 %v7082_v59, %v8842_v37 }
0x1738   : > { %v7086_v50 = vpop.eup %7085  ;;  %v4713_v45 = vmul.f32 %v7084_v19, %v8840_v22 }
0x1739   : > { %v4715_v46 = vmul.f32 %v7086_v50, %v8836_v63 }
0x173a   : > { %v7088_v23 = vpop.eup %7087  ;;  %6552 = vmatpush3.bf16.msra.mxu1 %v4725_v6 }
0x173b   : > { %v4714_v56 = vmul.f32 %v7088_v23, %v7080_v7  ;;  %v4721_v30 = vpack.c.bf16 %v4716_v54, %v4715_v46 }
0x173d   : > { %v4720_v27 = vpack.c.bf16 %v4714_v56, %v4713_v45 }
0x173f   : > { %6553 = vmatprep.mubr.msk.bf16.mxu1 %vm1180_vm5, %v4720_v27 }
0x1740   : > { %6554 = vmatmul.mubr.msk.bf16.vlgmr.msra.gmra.mxu1 %vm1180_vm5, %v4721_v30 }
0x17ac   : > { %v4657_v25 = vpop.xlane.xlu0 %4656 }
0x17ad   : > { %v4668_v35 = vsub.f32 %v4629_v8, %v4657_v25 }
0x17af   : > { %v4679_v49 = vmul.f32 1.442695, %v4668_v35 }
0x17b0   : > { %v4663_v14 = vpop.xlane.xlu0 %4662  ;;  %v4660_v2 = vpop.xlane.xlu1 %4659 }
0x17b1   : > { %7089 = vpow2.f32 %v4679_v49  ;;  %v4670_v37 = vsub.f32 %v8858_v44, %v4663_v14  ;;  %v4669_v36 = vsub.f32 %v4632_v21, %v4660_v2  ;;  %v6732_v44 = vld [vmem:[%s9174_s9 + $0x38] sm:$0xff]  }
0x17b2   : > { %6561 = vmatprep.subr.bf16.mxu1 %v6732_v44 }
0x17b3   : > { %v4683_v31 = vmul.f32 1.442695, %v4670_v37  ;;  %v4681_v22 = vmul.f32 1.442695, %v4669_v36  ;;  %6562 = vmatpush3.bf16.msra.mxu1 %v6732_v44 }
0x17b5   : > { %7091 = vpow2.f32 %v4683_v31 }
0x17b6   : > { %7093 = vpow2.f32 %v4681_v22  ;;  %v5884_v22 = vld [vmem:[%s9175_s10 + $0x1] ss:$0 sm:$0xff] }
0x17be   : > { %v7090_v63 = vpop.eup %7089 }
0x17bf   : > { %v4697_v7 = vsel %vm1180_vm5, %v7090_v63, 0.0 }
0x17c0   : > { %4698 = vadd.xlane.f32.xlu0 %v4697_v7 }
0x17c2   : > { %v7092_v24 = vpop.eup %7091 }
0x17c3   : > { %v7094_v10 = vpop.eup %7093  ;;  %v4703_v17 = vsel %vm1199_vm6, %v7092_v24, 0.0 }
0x17c4   : > { %4704 = vadd.xlane.f32.xlu1 %v4703_v17  ;;  %v4700_v8 = vsel %vm1180_vm5, %v7094_v10, 0.0 }
0x17c5   : > { %4701 = vadd.xlane.f32.xlu0 %v4700_v8 }
0x17e9   : > { %v6523_v43 = vpop.f32.mrf.mxu1 }
0x17ea   : > { %v4534_v1 = vadd.f32 %v6523_v43, %v8739_v16  ;;  %v4161_v16 = vadd.f32 %v8856_v18, %v8751_v60 }
0x17eb   : > { %v4502_v62 = vpop.f32.mrf.mxu1 }
0x17ec   : > { %v4532_v21 = vadd.f32 %v4502_v62, %v8741_v42 }
0x17ed   : > { %v6524_v15 = vpop.f32.mrf.mxu1 }
0x17ee   : > { %v4535_v61 = vadd.f32 %v6524_v15, %v8743_v41 }
0x17ef   : > { %v4505_v26 = vpop.f32.mrf.mxu1 }
0x17f0   : > { %v4533_v4 = vadd.f32 %v4505_v26, %v8745_v55 }
0x17f1   : > { %v6527_v11 = vpop.f32.mrf.mxu1 }
0x17f2   : > { %v8887_v38 = vadd.f32 %v6527_v11, %v8747_v58 }
0x17f3   : > { %v4518_v20 = vpop.f32.mrf.mxu1 }
0x17f4   : > { %v8890_v39 = vadd.f32 %v4518_v20, %v8749_v57 }
0x17f5   : > { %v6528_v29 = vpop.f32.mrf.mxu1 }
0x17f7   : > { %v4521_v5 = vpop.f32.mrf.mxu1 }
0x17f8   : > { %v8894_v42 = vadd.f32 %v4521_v5, %v4161_v16 }
0x1800   : > { %v6555_v55 = vpop.f32.mrf.mxu1 }
0x1802   : > { %v4784_v58 = vpop.f32.mrf.mxu1 }
0x1804   : > { %v6556_v9 = vpop.f32.mrf.mxu1 }
0x1805   : > { %v4815_v54 = vpack.c.bf16 %v6556_v9, %v6555_v55  ;;  %v6741_v55 = vld [vmem:[%s9178_s13 + $0x54] ss:$8 sps:$4 sm:$0xff]   ;;  %v6742_v9 = vld [vmem:[%s9178_s13 + $0x40] ss:$8 sps:$4 sm:$0xff]  }
0x1806   : > { %v4787_v50 = vpop.f32.mrf.mxu1 }
0x1807   : > { %v4814_v23 = vpack.c.bf16 %v4787_v50, %v4784_v58  ;;  %v6739_v58 = vld [vmem:[%s9178_s13 + $0x50] ss:$8 sps:$4 sm:$0xff]  }
0x1849   : > { %v4699_v32 = vpop.xlane.xlu0 %4698 }
0x184a   : > { %7095 = vrcp.f32 %v4699_v32  ;;  %v6733_v32 = vld [vmem:[%s9178_s13 + $0x70] ss:$8 sps:$4 sm:$0xff]  }
0x184d   : > { %v4705_v41 = vpop.xlane.xlu1 %4704 }
0x184e   : > { %v4702_v40 = vpop.xlane.xlu0 %4701  ;;  %7097 = vrcp.f32 %v4705_v41  ;;  %v6738_v41 = vld [vmem:[%s9178_s13 + $0x64] ss:$8 sps:$4 sm:$0xff]  }
0x184f   : > { %7099 = vrcp.f32 %v4702_v40  ;;  %v6736_v40 = vld [vmem:[%s9178_s13 + $0x60] ss:$8 sps:$4 sm:$0xff]  }
0x1857   : > { %v7096_v52 = vpop.eup %7095 }
0x1858   : > { %v4717_v59 = vmul.f32 %v7096_v52, %v7090_v63  ;;  %v6744_v52 = vld [vmem:[%s9178_s13 + $0x44] ss:$8 sps:$4 sm:$0xff]  }
0x185b   : > { %v7098_v3 = vpop.eup %7097 }
0x185c   : > { %v7100_v57 = vpop.eup %7099  ;;  %v4719_v6 = vmul.f32 %v7098_v3, %v7092_v24 }
0x185d   : > { %v4718_v19 = vmul.f32 %v7100_v57, %v7094_v10 }
0x185e   : > { %v4723_v60 = vpack.c.bf16 %v4719_v6, %v4719_v6 }
0x185f   : > { %v4722_v18 = vpack.c.bf16 %v4718_v19, %v4717_v59 }
0x1861   : > { %6557 = vmatprep.mubr.msk.bf16.mxu1 %vm1180_vm5, %v4722_v18 }
0x1862   : > { %6558 = vmatmul.mubr.msk.bf16.gmra.mxu1 %vm1180_vm5, %v4723_v60 }
0x1863   : > { %6563 = vmatprep.mubr.msk.bf16.mxu1 %vm1091_vm3, %v4814_v23 }
0x186a   : > { %6564 = vmatmul.mubr.msk.bf16.vlgmr.msra.gmra.mxu1 %vm1091_vm3, %v4815_v54 }
0x1922   : > { %v6559_v45 = vpop.f32.mrf.mxu1 }
0x1923   : > { %v4817_v25 = vpack.c.bf16 %v6559_v45, %v6559_v45 }
0x1924   : > { %v4800_v56 = vpop.f32.mrf.mxu1 }
0x1926   : > { %v6560_v46 = vpop.f32.mrf.mxu1 }
0x1928   : > { %v4803_v27 = vpop.f32.mrf.mxu1 }
0x1929   : > { %v4816_v30 = vpack.c.bf16 %v4803_v27, %v4800_v56 }
0x192a   : > { %v6565_v35 = vpop.f32.mrf.mxu1 }
0x192b   : > { %v4902_v49 = vadd.f32 %v6565_v35, %v4534_v1  ;;  %6567 = vmatprep.mubr.msk.bf16.mxu1 %vm1091_vm3, %v4816_v30 }
0x192c   : > { %v4870_v14 = vpop.f32.mrf.mxu1  ;;  %6568 = vmatmul.mubr.msk.bf16.gmra.mxu1 %vm1091_vm3, %v4817_v25 }
0x192d   : > { %v4900_v2 = vadd.f32 %v4870_v14, %v4532_v21  ;;  %v4909_v1 = vadd.f32 %v4902_v49, %v8340_v0 }
0x192e   : > { %v6566_v37 = vpop.f32.mrf.mxu1 }
0x192f   : > { %v4907_v36 = vadd.f32 %v4900_v2, %v8330_v13  ;;  %v4903_v31 = vadd.f32 %v6566_v37, %v4535_v61  ;;  %v4924_v11 = vadd.f32 %v5884_v22, %v4909_v1  ;;  %v8981_v1 = vld [vmem:[%s9177_s12 + $0x1] ss:$0 sm:$0xff] }
0x1930   : > { %v4873_v63 = vpop.f32.mrf.mxu1 }
0x1931   : > { %v8906_v7 = vadd.f32 %v5884_v22, %v4907_v36  ;;  %v4901_v24 = vadd.f32 %v4873_v63, %v4533_v4  ;;  %v4910_v61 = vadd.f32 %v4903_v31, %v8345_v34  ;;  %v4939_v0 = vsel %vm654_vm1, %v4924_v11, 0.0  ;;  %v6735_v34 = vld [vmem:[%s9178_s13 + $0x74] ss:$8 sps:$4 sm:$0xff]  }
0x1932   : > { %5136 = vmatprep.subr.bf16.mxu0 %v6735_v34 }
0x1933   : > { %v4908_v10 = vadd.f32 %v4901_v24, %v8335_v48  ;;  %v4933_v17 = vsel %vm654_vm1, %v8906_v7, 0.0  ;;  %v4925_v16 = vadd.f32 %v5884_v22, %v4910_v61  ;;  %5137 = vmatpush1.bf16.msra.mxu0 %v6733_v32 }
0x1934   : > { %4934 = vadd.xlane.f32.xlu0 %v4933_v17  ;;  %5138 = vmatprep.subr.bf16.mxu0 %v6738_v41 }
0x1935   : > { %v4923_v8 = vadd.f32 %v5884_v22, %v4908_v10  ;;  %v4942_v5 = vsel %vm654_vm1, %v4925_v16, 0.0 }
0x1937   : > { %v4936_v44 = vsel %vm654_vm1, %v4923_v8, 0.0  ;;  %5139 = vmatpush1.bf16.msra.mxu0 %v6736_v40 }
0x1938   : > { %4937 = vadd.xlane.f32.xlu1 %v4936_v44  ;;  %5140 = vmatprep.subr.bf16.mxu0 %v6741_v55 }
0x193b   : > { %5141 = vmatpush1.bf16.msra.mxu0 %v6739_v58 }
0x193c   : > { %5142 = vmatprep.subr.bf16.mxu0 %v6744_v52  ;;  %v6745_v52 = vld [vmem:[%s9180_s15 + $0xf8] sm:$0xff]  }
0x193d   : > { %6190 = vmatprep.subr.bf16.mxu1 %v6745_v52 }
0x193f   : > { %5143 = vmatpush1.bf16.msra.mxu0 %v6742_v9  ;;  %v6746_v9 = vld [vmem:[%s9180_s15 + $0xb8] sm:$0xff]  }
0x1940   : > { %6191 = vmatpush3.bf16.msra.mxu1 %v6746_v9 }
0x19bd   : > { %v4935_v13 = vpop.xlane.xlu0 %4934 }
0x19be   : > { %v4954_v43 = vmul.f32 0.015625, %v4935_v13 }
0x19c0   : > { %v8914_v62 = vsub.f32 %v8906_v7, %v4954_v43 }
0x19c1   : > { %v4938_v21 = vpop.xlane.xlu1 %4937 }
0x19c2   : > { %v4955_v15 = vmul.f32 0.015625, %v4938_v21  ;;  %v4968_v48 = vmul.f32 %v8914_v62, %v8914_v62 }
0x19c4   : > { %v8919_v26 = vsub.f32 %v4923_v8, %v4955_v15  ;;  %v4975_v4 = vsel %vm654_vm1, %v4968_v48, 0.0  ;;  %v8974_v8 = vld [vmem:[%s9176_s11 + $0x1] ss:$0 sm:$0xff] }
0x19c5   : > { %4976 = vadd.xlane.f32.xlu0 %v4975_v4 }
0x19c6   : > { %v4969_v20 = vmul.f32 %v8919_v26, %v8919_v26 }
0x19c8   : > { %v4978_v29 = vsel %vm654_vm1, %v4969_v20, 0.0 }
0x19c9   : > { %4940 = vadd.xlane.f32.xlu0 %v4939_v0  ;;  %4979 = vadd.xlane.f32.xlu1 %v4978_v29 }
0x19cd   : > { %4943 = vadd.xlane.f32.xlu1 %v4942_v5 }
0x19ec   : > { %v6569_v3 = vpop.f32.mrf.mxu1 }
0x19ed   : > { %v4906_v57 = vadd.f32 %v6569_v3, %v8887_v38  ;;  %v6747_v3 = vld [vmem:[%s9180_s15 + $0xf0] sm:$0xff]  }
0x19ee   : > { %v4886_v6 = vpop.f32.mrf.mxu1  ;;  %6192 = vmatprep.subr.bf16.mxu1 %v6747_v3 }
0x19ef   : > { %v4904_v59 = vadd.f32 %v4886_v6, %v8890_v39  ;;  %v4913_v50 = vadd.f32 %v4906_v57, %v8360_v33  ;;  %v6748_v57 = vld [vmem:[%s9180_s15 + $0xb0] sm:$0xff]   ;;  %v6749_v6 = vld [vmem:[%s9180_s15 + $0xe8] sm:$0xff]  }
0x19f0   : > { %v6570_v19 = vpop.f32.mrf.mxu1  ;;  %6193 = vmatpush3.bf16.msra.mxu1 %v6748_v57 }
0x19f1   : > { %v4911_v60 = vadd.f32 %v4904_v59, %v8350_v28  ;;  %v4928_v46 = vadd.f32 %v5884_v22, %v4913_v50  ;;  %v6750_v59 = vld [vmem:[%s9180_s15 + $0xa8] sm:$0xff]   ;;  %6194 = vmatprep.subr.bf16.mxu1 %v6749_v6  ;;  %v6751_v19 = vld [vmem:[%s9180_s15 + $0xe0] sm:$0xff]  }
0x19f2   : > { %v4889_v18 = vpop.f32.mrf.mxu1  ;;  %v6752_v50 = vld [vmem:[%s9180_s15 + $0xa0] sm:$0xff]  }
0x19f3   : > { %v4905_v23 = vadd.f32 %v4889_v18, %v8894_v42  ;;  %v4926_v54 = vadd.f32 %v5884_v22, %v4911_v60  ;;  %v4951_v38 = vsel %vm689_vm2, %v4928_v46, 0.0  ;;  %v6753_v60 = vld [vmem:[%s9180_s15 + $0xd8] sm:$0xff]  }
0x19f4   : > { %6195 = vmatpush3.bf16.msra.mxu1 %v6750_v59  ;;  %v6754_v18 = vld [vmem:[%s9180_s15 + $0x98] sm:$0xff]  }
0x19f5   : > { %v4912_v45 = vadd.f32 %v4905_v23, %v8355_v51  ;;  %v4945_v56 = vsel %vm654_vm1, %v4926_v54, 0.0  ;;  %6196 = vmatprep.subr.bf16.mxu1 %v6751_v19  ;;  %v6755_v23 = vld [vmem:[%s9180_s15 + $0xd0] sm:$0xff]  }
0x19f6   : > { %4946 = vadd.xlane.f32.xlu0 %v4945_v56  ;;  %v6758_v56 = vld [vmem:[%s9180_s15 + $0x88] sm:$0xff]  }
0x19f7   : > { %v4927_v27 = vadd.f32 %v5884_v22, %v4912_v45  ;;  %v6757_v45 = vld [vmem:[%s9180_s15 + $0xc8] sm:$0xff]  }
0x19f8   : > { %6197 = vmatpush3.bf16.msra.mxu1 %v6752_v50 }
0x19f9   : > { %v4948_v39 = vsel %vm654_vm1, %v4927_v27, 0.0  ;;  %6198 = vmatprep.subr.bf16.mxu1 %v6753_v60 }
0x19fa   : > { %4952 = vadd.xlane.f32.xlu0 %v4951_v38  ;;  %4949 = vadd.xlane.f32.xlu1 %v4948_v39 }
0x19fc   : > { %6199 = vmatpush3.bf16.msra.mxu1 %v6754_v18 }
0x19fd   : > { %6200 = vmatprep.subr.bf16.mxu1 %v6755_v23 }
0x1a4e   : > { %v4977_v33 = vpop.xlane.xlu0 %4976 }
0x1a4f   : > { %v4996_v30 = vmul.f32 0.015625, %v4977_v33 }
0x1a51   : > { %v5003_v28 = vadd.f32 1e-05, %v4996_v30 }
0x1a52   : > { %v4941_v25 = vpop.xlane.xlu0 %4940  ;;  %v4980_v35 = vpop.xlane.xlu1 %4979 }
0x1a53   : > { %7101 = vrsqrt.f32 %v5003_v28  ;;  %v4956_v42 = vmul.f32 0.015625, %v4941_v25  ;;  %v4997_v49 = vmul.f32 0.015625, %v4980_v35 }
0x1a55   : > { %v8960_v51 = vsub.f32 %v4924_v11, %v4956_v42  ;;  %v5004_v14 = vadd.f32 1e-05, %v4997_v49 }
0x1a56   : > { %v4944_v2 = vpop.xlane.xlu1 %4943 }
0x1a57   : > { %7103 = vrsqrt.f32 %v5004_v14  ;;  %v4957_v37 = vmul.f32 0.015625, %v4944_v2  ;;  %v4970_v36 = vmul.f32 %v8960_v51, %v8960_v51 }
0x1a59   : > { %v8964_v31 = vsub.f32 %v4925_v16, %v4957_v37  ;;  %v4981_v22 = vsel %vm654_vm1, %v4970_v36, 0.0 }
0x1a5a   : > { %4982 = vadd.xlane.f32.xlu1 %v4981_v22 }
0x1a5b   : > { %v4971_v63 = vmul.f32 %v8964_v31, %v8964_v31 }
0x1a5d   : > { %v4984_v24 = vsel %vm654_vm1, %v4971_v63, 0.0 }
0x1a5e   : > { %4985 = vadd.xlane.f32.xlu0 %v4984_v24 }
0x1a60   : > { %v7102_v10 = vpop.eup %7101 }
0x1a61   : > { %v5017_v17 = vmul.f32 %v7102_v10, %v8914_v62 }
0x1a63   : > { %v5030_v13 = vmul.f32 %v8974_v8, %v5017_v17 }
0x1a64   : > { %v7104_v44 = vpop.eup %7103 }
0x1a65   : > { %v5018_v43 = vmul.f32 %v7104_v44, %v8919_v26  ;;  %v5043_v15 = vadd.f32 %v8981_v1, %v5030_v13 }
0x1a67   : > { %v5031_v21 = vmul.f32 %v8974_v8, %v5018_v43 }
0x1a69   : > { %v5044_v62 = vadd.f32 %v8981_v1, %v5031_v21 }
0x1a6b   : > { %v5050_v48 = vpack.c.bf16 %v5044_v62, %v5043_v15 }
0x1a6d   : > { %5906 = vmatmul.mubr.msk.bf16.vlgmr.msra.gmra.mxu0 %vm654_vm1, %v5050_v48 }
0x1a6e   : > { %5170 = vmatprep.mubr.bf16.mxu0 %v7235_v47 }
0x1a7f   : > { %v4947_v61 = vpop.xlane.xlu0 %4946 }
0x1a80   : > { %v4958_v4 = vmul.f32 0.015625, %v4947_v61 }
0x1a82   : > { %v8988_v11 = vsub.f32 %v4926_v54, %v4958_v4  ;;  %v6756_v54 = vld [vmem:[%s9180_s15 + $0x90] sm:$0xff]  }
0x1a83   : > { %v4953_v26 = vpop.xlane.xlu0 %4952  ;;  %v4950_v20 = vpop.xlane.xlu1 %4949  ;;  %6201 = vmatpush3.bf16.msra.mxu1 %v6756_v54 }
0x1a84   : > { %v4960_v0 = vmul.f32 0.015625, %v4953_v26  ;;  %v4959_v29 = vmul.f32 0.015625, %v4950_v20  ;;  %v4972_v16 = vmul.f32 %v8988_v11, %v8988_v11  ;;  %6202 = vmatprep.subr.bf16.mxu1 %v6757_v45  ;;  %v5897_v26 = vld [vmem:[%s9179_s14 + $0x2] sm:$0x3] }
0x1a86   : > { %v8992_v5 = vsub.f32 %v4928_v46, %v4960_v0  ;;  %v8994_v34 = vsub.f32 %v4927_v27, %v4959_v29  ;;  %v4987_v32 = vsel %vm654_vm1, %v4972_v16, 0.0  ;;  %v6759_v46 = vld [vmem:[%s9180_s15 + $0xc0] sm:$0xff]   ;;  %v9068_v16 = vrot.slane %v5897_v26, %v7609_v53 }
0x1a87   : > { %4988 = vadd.xlane.f32.xlu1 %v4987_v32  ;;  %6203 = vmatpush3.bf16.msra.mxu1 %v6758_v56  ;;  %v6760_v27 = vld [vmem:[%s9180_s15 + $0x80] sm:$0xff]  }
0x1a88   : > { %v4974_v41 = vmul.f32 %v8992_v5, %v8992_v5  ;;  %v4973_v40 = vmul.f32 %v8994_v34, %v8994_v34  ;;  %6204 = vmatprep.subr.bf16.mxu1 %v6759_v46 }
0x1a8a   : > { %v4993_v55 = vsel %vm689_vm2, %v4974_v41, 0.0  ;;  %v4990_v58 = vsel %vm654_vm1, %v4973_v40, 0.0  ;;  %v9073_v41 = vrot.slane %v5897_v26, %v7619_v12 }
0x1a8b   : > { %4994 = vadd.xlane.f32.xlu1 %v4993_v55  ;;  %4991 = vadd.xlane.f32.xlu0 %v4990_v58 }
0x1a8c   : > { %6205 = vmatpush3.bf16.msra.mxu1 %v6760_v27 }
0x1ae3   : > { %v4983_v38 = vpop.xlane.xlu1 %4982 }
0x1ae4   : > { %v4998_v39 = vmul.f32 0.015625, %v4983_v38 }
0x1ae6   : > { %v5005_v33 = vadd.f32 1e-05, %v4998_v39 }
0x1ae7   : > { %v4986_v30 = vpop.xlane.xlu0 %4985 }
0x1ae8   : > { %7105 = vrsqrt.f32 %v5005_v33  ;;  %v4999_v28 = vmul.f32 0.015625, %v4986_v30 }
0x1aea   : > { %v5006_v25 = vadd.f32 1e-05, %v4999_v28 }
0x1aec   : > { %7107 = vrsqrt.f32 %v5006_v25 }
0x1af5   : > { %v7106_v35 = vpop.eup %7105 }
0x1af6   : > { %v5019_v42 = vmul.f32 %v7106_v35, %v8960_v51 }
0x1af8   : > { %v5032_v2 = vmul.f32 %v8974_v8, %v5019_v42 }
0x1af9   : > { %v7108_v49 = vpop.eup %7107 }
0x1afa   : > { %v5020_v14 = vmul.f32 %v7108_v49, %v8964_v31  ;;  %v5045_v36 = vadd.f32 %v8981_v1, %v5032_v2 }
0x1afc   : > { %v5033_v37 = vmul.f32 %v8974_v8, %v5020_v14 }
0x1afe   : > { %v5046_v22 = vadd.f32 %v8981_v1, %v5033_v37 }
0x1b00   : > { %v5051_v63 = vpack.c.bf16 %v5046_v22, %v5045_v36 }
0x1b02   : > { %5907 = vmatmul.mubr.msk.bf16.gmra.mxu0 %vm654_vm1, %v5051_v63 }
0x1b03   : > { %5180 = vmatprep.mubr.bf16.mxu0 %v7235_v47 }
0x1b10   : > { %v4989_v24 = vpop.xlane.xlu1 %4988 }
0x1b11   : > { %v5000_v10 = vmul.f32 0.015625, %v4989_v24 }
0x1b13   : > { %v5007_v17 = vadd.f32 1e-05, %v5000_v10 }
0x1b14   : > { %v4992_v51 = vpop.xlane.xlu0 %4991  ;;  %v4995_v44 = vpop.xlane.xlu1 %4994 }
0x1b15   : > { %7109 = vrsqrt.f32 %v5007_v17  ;;  %v5001_v31 = vmul.f32 0.015625, %v4992_v51  ;;  %v5002_v13 = vmul.f32 0.015625, %v4995_v44 }
0x1b17   : > { %v5008_v43 = vadd.f32 1e-05, %v5001_v31  ;;  %v5009_v21 = vadd.f32 1e-05, %v5002_v13 }
0x1b19   : > { %7111 = vrsqrt.f32 %v5008_v43 }
0x1b1a   : > { %7113 = vrsqrt.f32 %v5009_v21 }
0x1b22   : > { %v7110_v15 = vpop.eup %7109 }
0x1b23   : > { %v5021_v62 = vmul.f32 %v7110_v15, %v8988_v11 }
0x1b25   : > { %v5034_v20 = vmul.f32 %v8974_v8, %v5021_v62 }
0x1b26   : > { %v7112_v48 = vpop.eup %7111 }
0x1b27   : > { %v7114_v61 = vpop.eup %7113  ;;  %v5022_v4 = vmul.f32 %v7112_v48, %v8994_v34  ;;  %v5047_v32 = vadd.f32 %v8981_v1, %v5034_v20 }
0x1b28   : > { %v5023_v0 = vmul.f32 %v7114_v61, %v8992_v5 }
0x1b29   : > { %v5035_v29 = vmul.f32 %v8974_v8, %v5022_v4 }
0x1b2a   : > { %v5036_v55 = vmul.f32 %v8974_v8, %v5023_v0 }
0x1b2b   : > { %v5048_v11 = vadd.f32 %v8981_v1, %v5035_v29 }
0x1b2c   : > { %v5049_v3 = vadd.f32 %v8981_v1, %v5036_v55 }
0x1b2d   : > { %v5162_v34 = vpop.f32.mrf.mxu0  ;;  %v5052_v40 = vpack.c.bf16 %v5048_v11, %v5047_v32 }
0x1b2e   : > { %v5163_v58 = vadd.f32 %v5162_v34, %v9068_v16  ;;  %v5053_v60 = vpack.c.bf16 %v5049_v3, %v5049_v3 }
0x1b2f   : > { %v5164_v52 = vpop.f32.mrf.mxu0  ;;  %5908 = vmatmul.mubr.msk.bf16.gmra.mxu0 %vm654_vm1, %v5052_v40 }
0x1b30   : > { %v5910_v5 = vmul.f32 -1.702, %v5163_v58  ;;  %v5165_v53 = vadd.f32 %v5164_v52, %v9073_v41  ;;  %5190 = vmatprep.mubr.bf16.mxu0 %v7235_v47 }
0x1b31   : > { %v5166_v9 = vpop.f32.mrf.mxu0 }
0x1b32   : > { %v5227_v57 = vmul.f32 1.442695, %v5910_v5  ;;  %v5911_v12 = vmul.f32 -1.702, %v5165_v53  ;;  %v5167_v6 = vadd.f32 %v5166_v9, %v9068_v16 }
0x1b33   : > { %v5168_v59 = vpop.f32.mrf.mxu0 }
0x1b34   : > { %v5229_v19 = vmul.f32 1.442695, %v5911_v12  ;;  %v5912_v8 = vmul.f32 -1.702, %v5167_v6  ;;  %v5169_v50 = vadd.f32 %v5168_v59, %v9073_v41  ;;  %7115 = vpow2.f32 %v5227_v57 }
0x1b36   : > { %7117 = vpow2.f32 %v5229_v19  ;;  %v5231_v18 = vmul.f32 1.442695, %v5912_v8  ;;  %v5913_v23 = vmul.f32 -1.702, %v5169_v50 }
0x1b37   : > { %5909 = vmatmul.mubr.msk.bf16.gmra.mxu0 %vm654_vm1, %v5053_v60 }
0x1b38   : > { %7119 = vpow2.f32 %v5231_v18  ;;  %v5233_v47 = vmul.f32 1.442695, %v5913_v23 }
0x1b3a   : > { %7121 = vpow2.f32 %v5233_v47 }
0x1b41   : > { %v7116_v1 = vpop.eup %7115 }
0x1b42   : > { %v5255_v46 = vadd.f32 1.0, %v7116_v1 }
0x1b43   : > { %v7118_v54 = vpop.eup %7117 }
0x1b44   : > { %v5256_v45 = vadd.f32 1.0, %v7118_v54 }
0x1b45   : > { %v7120_v56 = vpop.eup %7119 }
0x1b46   : > { %v5257_v27 = vadd.f32 1.0, %v7120_v56  ;;  %7123 = vrcp.f32 %v5256_v45 }
0x1b47   : > { %v7122_v38 = vpop.eup %7121 }
0x1b48   : > { %7125 = vrcp.f32 %v5257_v27  ;;  %v5258_v39 = vadd.f32 1.0, %v7122_v38 }
0x1b49   : > { %7127 = vrcp.f32 %v5255_v46 }
0x1b4a   : > { %7129 = vrcp.f32 %v5258_v39 }
0x1b53   : > { %v7124_v33 = vpop.eup %7123 }
0x1b54   : > { %v5298_v42 = vmul.f32 %v7124_v33, %v5165_v53 }
0x1b55   : > { %v7126_v30 = vpop.eup %7125 }
0x1b56   : > { %v7128_v28 = vpop.eup %7127  ;;  %v5299_v35 = vmul.f32 %v7126_v30, %v5167_v6 }
0x1b57   : > { %v7130_v25 = vpop.eup %7129  ;;  %v5297_v14 = vmul.f32 %v7128_v28, %v5163_v58 }
0x1b58   : > { %v5300_v49 = vmul.f32 %v7130_v25, %v5169_v50 }
0x1b59   : > { %v5311_v37 = vpack.c.bf16 %v5299_v35, %v5297_v14 }
0x1b5a   : > { %v5312_v2 = vpack.c.bf16 %v5300_v49, %v5298_v42 }
0x1b5c   : > { %5480 = vmatprep.mubr.bf16.mxu1 %v5312_v2 }
0x1b5d   : > { %5481 = vmatmul.mubr.bf16.vlgmr.msra.gmra.mxu1 %v5311_v37 }
0x1bc2   : > { %v5172_v36 = vpop.f32.mrf.mxu0 }
0x1bc3   : > { %v5173_v22 = vadd.f32 %v5172_v36, %v9068_v16 }
0x1bc4   : > { %v5174_v63 = vpop.f32.mrf.mxu0 }
0x1bc5   : > { %v5914_v24 = vmul.f32 -1.702, %v5173_v22  ;;  %v5175_v10 = vadd.f32 %v5174_v63, %v9073_v41 }
0x1bc6   : > { %v5176_v17 = vpop.f32.mrf.mxu0 }
0x1bc7   : > { %v5235_v51 = vmul.f32 1.442695, %v5914_v24  ;;  %v5915_v44 = vmul.f32 -1.702, %v5175_v10  ;;  %v5177_v31 = vadd.f32 %v5176_v17, %v9068_v16 }
0x1bc8   : > { %v5178_v13 = vpop.f32.mrf.mxu0 }
0x1bc9   : > { %v5237_v43 = vmul.f32 1.442695, %v5915_v44  ;;  %v5916_v21 = vmul.f32 -1.702, %v5177_v31  ;;  %v5179_v15 = vadd.f32 %v5178_v13, %v9073_v41  ;;  %7131 = vpow2.f32 %v5235_v51 }
0x1bcb   : > { %7133 = vpow2.f32 %v5237_v43  ;;  %v5239_v62 = vmul.f32 1.442695, %v5916_v21  ;;  %v5917_v48 = vmul.f32 -1.702, %v5179_v15 }
0x1bcd   : > { %7135 = vpow2.f32 %v5239_v62  ;;  %v5241_v61 = vmul.f32 1.442695, %v5917_v48 }
0x1bcf   : > { %7137 = vpow2.f32 %v5241_v61 }
0x1bd6   : > { %v7132_v4 = vpop.eup %7131 }
0x1bd7   : > { %v5259_v29 = vadd.f32 1.0, %v7132_v4 }
0x1bd8   : > { %v7134_v26 = vpop.eup %7133 }
0x1bd9   : > { %v5260_v20 = vadd.f32 1.0, %v7134_v26 }
0x1bda   : > { %v7136_v0 = vpop.eup %7135 }
0x1bdb   : > { %v5261_v32 = vadd.f32 1.0, %v7136_v0  ;;  %7139 = vrcp.f32 %v5260_v20 }
0x1bdc   : > { %v7138_v11 = vpop.eup %7137 }
0x1bdd   : > { %7141 = vrcp.f32 %v5261_v32  ;;  %v5262_v34 = vadd.f32 1.0, %v7138_v11 }
0x1bde   : > { %7143 = vrcp.f32 %v5259_v29 }
0x1bdf   : > { %7145 = vrcp.f32 %v5262_v34 }
0x1be8   : > { %v7140_v40 = vpop.eup %7139 }
0x1be9   : > { %v5302_v53 = vmul.f32 %v7140_v40, %v5175_v10 }
0x1bea   : > { %v7142_v55 = vpop.eup %7141 }
0x1beb   : > { %v7144_v58 = vpop.eup %7143  ;;  %v5303_v5 = vmul.f32 %v7142_v55, %v5177_v31 }
0x1bec   : > { %v7146_v52 = vpop.eup %7145  ;;  %v5301_v3 = vmul.f32 %v7144_v58, %v5173_v22 }
0x1bed   : > { %v5304_v9 = vmul.f32 %v7146_v52, %v5179_v15 }
0x1bee   : > { %v5313_v6 = vpack.c.bf16 %v5303_v5, %v5301_v3  ;;  %v5973_v5 = vld [vmem:[%s9181_s16 + $0x1] ss:$0 sm:$0xff] }
0x1bef   : > { %v5182_v57 = vpop.f32.mrf.mxu0  ;;  %v5314_v12 = vpack.c.bf16 %v5304_v9, %v5302_v53 }
0x1bf0   : > { %v5183_v59 = vadd.f32 %v5182_v57, %v9068_v16 }
0x1bf1   : > { %v5184_v19 = vpop.f32.mrf.mxu0  ;;  %5487 = vmatprep.mubr.bf16.mxu1 %v5314_v12 }
0x1bf2   : > { %v5918_v8 = vmul.f32 -1.702, %v5183_v59  ;;  %v5185_v50 = vadd.f32 %v5184_v19, %v9073_v41  ;;  %5488 = vmatmul.mubr.bf16.gmra.mxu1 %v5313_v6  ;;  %v6761_v6 = vld [vmem:[%s9184_s19 + $0x18] sm:$0xff]  }
0x1bf3   : > { %v5186_v60 = vpop.f32.mrf.mxu0 }
0x1bf4   : > { %v5243_v18 = vmul.f32 1.442695, %v5918_v8  ;;  %v5919_v23 = vmul.f32 -1.702, %v5185_v50  ;;  %v5187_v47 = vadd.f32 %v5186_v60, %v9068_v16 }
0x1bf5   : > { %v5188_v1 = vpop.f32.mrf.mxu0 }
0x1bf6   : > { %v5245_v54 = vmul.f32 1.442695, %v5919_v23  ;;  %v5920_v45 = vmul.f32 -1.702, %v5187_v47  ;;  %v5189_v56 = vadd.f32 %v5188_v1, %v9073_v41  ;;  %7147 = vpow2.f32 %v5243_v18 }
0x1bf7   : > { %v5192_v46 = vpop.f32.mrf.mxu0 }
0x1bf8   : > { %7149 = vpow2.f32 %v5245_v54  ;;  %v5247_v27 = vmul.f32 1.442695, %v5920_v45  ;;  %v5921_v38 = vmul.f32 -1.702, %v5189_v56  ;;  %v5193_v39 = vadd.f32 %v5192_v46, %v9068_v16  ;;  %v6762_v54 = vld [vmem:[%s9184_s19 + $0x10] sm:$0xff]   ;;  %v6763_v45 = vld [vmem:[%s9184_s19 + $0x8] sm:$0xff]  }
0x1bf9   : > { %v5194_v33 = vpop.f32.mrf.mxu0 }
0x1bfa   : > { %7151 = vpow2.f32 %v5247_v27  ;;  %v5249_v30 = vmul.f32 1.442695, %v5921_v38  ;;  %v5922_v28 = vmul.f32 -1.702, %v5193_v39  ;;  %v5195_v25 = vadd.f32 %v5194_v33, %v9073_v41 }
0x1bfb   : > { %v5196_v35 = vpop.f32.mrf.mxu0 }
0x1bfc   : > { %7153 = vpow2.f32 %v5249_v30  ;;  %v5251_v42 = vmul.f32 1.442695, %v5922_v28  ;;  %v5923_v49 = vmul.f32 -1.702, %v5195_v25 }
0x1bfd   : > { %v5197_v14 = vpop.f32.mrf.mxu0 }
0x1bfe   : > { %7155 = vpow2.f32 %v5251_v42  ;;  %v5253_v2 = vmul.f32 1.442695, %v5923_v49 }
0x1c00   : > { %7157 = vpow2.f32 %v5253_v2  ;;  %v5516_v2 = vld [vmem:[%s9182_s17] sm:$0x1] }
0x1c03   : > { %v7148_v37 = vpop.eup %7147 }
0x1c04   : > { %v5263_v24 = vadd.f32 1.0, %v7148_v37 }
0x1c05   : > { %v7150_v36 = vpop.eup %7149 }
0x1c06   : > { %v5264_v22 = vadd.f32 1.0, %v7150_v36  ;;  %v5517_v36 = vld [vmem:[%s9183_s18] sm:$0x1] }
0x1c07   : > { %v7152_v63 = vpop.eup %7151 }
0x1c08   : > { %v5265_v16 = vadd.f32 1.0, %v7152_v63  ;;  %7159 = vrcp.f32 %v5264_v22 }
0x1c09   : > { %v7154_v10 = vpop.eup %7153 }
0x1c0a   : > { %7161 = vrcp.f32 %v5265_v16  ;;  %v5266_v17 = vadd.f32 1.0, %v7154_v10 }
0x1c0b   : > { %v7156_v51 = vpop.eup %7155  ;;  %7163 = vrcp.f32 %v5263_v24 }
0x1c0c   : > { %7165 = vrcp.f32 %v5266_v17  ;;  %v5267_v44 = vadd.f32 1.0, %v7156_v51 }
0x1c0d   : > { %v7158_v41 = vpop.eup %7157 }
0x1c0e   : > { %v5268_v31 = vadd.f32 1.0, %v7158_v41 }
0x1c10   : > { %7167 = vrcp.f32 %v5268_v31 }
0x1c11   : > { %7169 = vrcp.f32 %v5267_v44 }
0x1c15   : > { %v7160_v13 = vpop.eup %7159 }
0x1c16   : > { %v5306_v48 = vmul.f32 %v7160_v13, %v5185_v50 }
0x1c17   : > { %v7162_v43 = vpop.eup %7161 }
0x1c18   : > { %v7164_v21 = vpop.eup %7163  ;;  %v5307_v62 = vmul.f32 %v7162_v43, %v5187_v47 }
0x1c19   : > { %v7166_v15 = vpop.eup %7165  ;;  %v5305_v4 = vmul.f32 %v7164_v21, %v5183_v59  ;;  %v7243_v59 = vmov 0.0  }
0x1c1a   : > { %v5308_v61 = vmul.f32 %v7166_v15, %v5189_v56  ;;  %6571 = vmatprep.subr.bf16.mxu0 %v7243_v59  ;;  %v6764_v56 = vld [vmem:[%s9184_s19] sm:$0xff]   ;;  %6579 = vmatprep.mubr.msk.bf16.mxu0 %vm7244_vm7, %v7243_v59 }
0x1c1b   : > { %v5315_v0 = vpack.c.bf16 %v5307_v62, %v5305_v4  ;;  %6572 = vmatpush3.bf16.msra.mxu0 %v6761_v6 }
0x1c1c   : > { %v5316_v26 = vpack.c.bf16 %v5308_v61, %v5306_v48  ;;  %6573 = vmatprep.subr.bf16.mxu0 %v7243_v59 }
0x1c1d   : > { %v7168_v20 = vpop.eup %7167  ;;  %v6206_v29 = vpop.f32.mrf.mxu1 }
0x1c1e   : > { %v7170_v32 = vpop.eup %7169  ;;  %v5310_v11 = vmul.f32 %v7168_v20, %v5195_v25  ;;  %5493 = vmatprep.mubr.bf16.mxu1 %v5316_v26 }
0x1c1f   : > { %v6207_v34 = vpop.f32.mrf.mxu1  ;;  %5494 = vmatmul.mubr.bf16.gmra.mxu1 %v5315_v0  ;;  %v5309_v58 = vmul.f32 %v7170_v32, %v5193_v39  ;;  %6574 = vmatpush3.bf16.msra.mxu0 %v6762_v54 }
0x1c20   : > { %v5318_v40 = vpack.c.bf16 %v5310_v11, %v5310_v11  ;;  %v6208_v55 = vadd.f32 %v6207_v34, %v6206_v29  ;;  %6575 = vmatprep.subr.bf16.mxu0 %v7243_v59 }
0x1c21   : > { %v6209_v52 = vpop.f32.mrf.mxu1  ;;  %v5317_v57 = vpack.c.bf16 %v5309_v58, %v5309_v58 }
0x1c22   : > { %v5506_v53 = vadd.f32 %v6208_v55, %v8906_v7  ;;  %5499 = vmatprep.mubr.bf16.mxu1 %v5318_v40 }
0x1c23   : > { %v6210_v9 = vpop.f32.mrf.mxu1  ;;  %6576 = vmatpush3.bf16.msra.mxu0 %v6763_v45 }
0x1c24   : > { %v5515_v3 = vadd.f32 %v5973_v5, %v5506_v53  ;;  %6577 = vmatprep.subr.bf16.mxu0 %v7243_v59 }
0x1c26   : > { %v5518_v12 = vsel %vm631_vm0, %v5515_v3, 0.0 }
0x1c27   : > { %5519 = vadd.xlane.f32.xlu0 %v5518_v12  ;;  %5500 = vmatmul.mubr.bf16.gmra.mxu1 %v5317_v57 }
0x1c28   : > { %6578 = vmatpush3.bf16.msra.mxu0 %v6764_v56 }
0x1cb0   : > { %v5520_v19 = vpop.xlane.xlu0 %5519 }
0x1cb1   : > { %v5521_v8 = vmul.f32 0.015625, %v5520_v19 }
0x1cb2   : > { %v6212_v50 = vpop.f32.mrf.mxu1 }
0x1cb3   : > { %v5522_v7 = vsub.f32 %v5515_v3, %v5521_v8 }
0x1cb4   : > { %v6213_v60 = vpop.f32.mrf.mxu1 }
0x1cb5   : > { %v5523_v18 = vmul.f32 %v5522_v7, %v5522_v7 }
0x1cb6   : > { %v6215_v23 = vpop.f32.mrf.mxu1 }
0x1cb7   : > { %v5524_v47 = vsel %vm631_vm0, %v5523_v18, 0.0 }
0x1cb8   : > { %5525 = vadd.xlane.f32.xlu1 %v5524_v47  ;;  %v6216_v1 = vpop.f32.mrf.mxu1 }
0x1cdf   : > { %v6218_v46 = vpop.f32.mrf.mxu1 }
0x1ce1   : > { %v6219_v27 = vpop.f32.mrf.mxu1 }
0x1ce3   : > { %v6221_v38 = vpop.f32.mrf.mxu1 }
0x1ce5   : > { %v6222_v39 = vpop.f32.mrf.mxu1 }
0x1ce7   : > { %v6224_v33 = vpop.f32.mrf.mxu1 }
0x1ce9   : > { %v6225_v30 = vpop.f32.mrf.mxu1 }
0x1ceb   : > { %v6227_v28 = vpop.f32.mrf.mxu1 }
0x1ced   : > { %v6228_v25 = vpop.f32.mrf.mxu1 }
0x1d41   : > { %v5526_v35 = vpop.xlane.xlu1 %5525 }
0x1d42   : > { %v5527_v42 = vmul.f32 0.015625, %v5526_v35 }
0x1d44   : > { %v5528_v49 = vadd.f32 1e-05, %v5527_v42 }
0x1d46   : > { %7171 = vrsqrt.f32 %v5528_v49 }
0x1d53   : > { %v7172_v14 = vpop.eup %7171 }
0x1d54   : > { %v5530_v37 = vmul.f32 %v7172_v14, %v5522_v7 }
0x1d56   : > { %v5531_v22 = vmul.f32 %v5530_v37, %v5516_v2 }
0x1d58   : > { %v5532_v63 = vadd.f32 %v5531_v22, %v5517_v36 }
0x1d5a   : > { %v5533_v24 = vpack.c.bf16 %v5532_v63, %v5532_v63 }
0x1d5c   : > { %6580 = vmatmul.mubr.msk.bf16.vlgmr.msra.gmra.mxu0 %vm654_vm1, %v5533_v24 }
0x1e1c   : > { %v5603_v16 = vpop.f32.mrf.mxu0 }
0x1e1d   : > { %5610 = vst.msk [vmem:[%s621_s29] sm:$0x1] %vm5609_vm8, %v5603_v16 }
0x1e1e   : > { %v6581_v10 = vpop.f32.mrf.mxu0 }
0x1e1f   : > { %7186 = shalt.err (!%p7183_p3)
}
0x1e20   : > { %s7187_s4 = scalar_lea.hbm %s9124_s23, 16  ;;  %s7191_s30 = scalar_lea.hbm %s9229_s26, 32 }
0x1e21   : > { %p7188_p4 = scmp.ne.s32.totalorder %s9124_s23, %s7187_s4  ;;  %p7192_p9 = scmp.lt.s32.totalorder %s9124_s23, %s9229_s26 }
0x1e22   : > { %p7193_p10 = scmp.lt.s32.totalorder %s7191_s30, %s7187_s4 }
0x1e23   : > { %p7189_p7 = pnand %p7188_p4, %p7389_p5 }
0x1e24   : > { %p7194_p11 = por %p7193_p10, %p7192_p9 }
0x1e25   : > { %p7190_p8 = pneg %p7189_p7 }
0x1e27   : > { %p7195_p12 = pnand %p7194_p11, %p7190_p8 }
0x1e29   : > { %7198 = shalt.err (!%p7195_p12)
}
0x1e2a   : > { %6624 = dma.vmem_to_hbm [thread:$0]  (%p7389_p5), %s9126_s24, 16, %s9124_s23, %s5612_s0   ;;  %v5606_v17 = vpop.f32.mrf.mxu0 }
0x1e2c   : > { %v6582_v51 = vpop.f32.mrf.mxu0 }
0x1e2d PF: > { %s9230_s21 = sld [smem:[#allocation8_spill]] }
0x1e2e   : > { %s9231_s3 = sld [smem:[#allocation6_spill]] }
0x1e33   : > { %p6630_p13 = scmp.ge.s32.totalorder %s9230_s21, 2 }
0x1e34   : > { %s5636_s20 = sand.u32 1, %s9231_s3  }
0x1e35   : > { %p6627_p0 = pnand %p6630_p13, %p7393_p6  ;;  %s5637_s4 = scalar_lea.sflag [#allocation4], %s5636_s20 }
0x1e37   : > { %p6628_p1 = pneg %p6627_p0 }
0x1e39   : > { %7216 = dma.done.wait (%p6628_p1), %s5637_s4, 16  }
0x1e3a   : > { %7218 = vsyncadd (%p6628_p1), %s5637_s4, 4294967280  ;;  %s9233_s24 = sld [smem:[#allocation9_spill]]  ;;  %s9236_s1 = smov %s7225_s22 }
0x1e3b   : > { %s9234_s29 = sld [smem:[#allocation7_spill]] }
0x1e3c   : > { %s9235_s23 = sld [smem:[#allocation10_spill]] }
0x1e40   : > { %p30_p5 = scmp.ge.s32.totalorder %s9233_s24, 4  }
0x1e41   : > { %s9237_s22 = smov %s9234_s29 }
0x1e42   :  { %32 = sbr.rel (!%p30_p5) target bundleno = 10 (0xa), region = 147 }
0x1e47   :  { %5641 = vsyncpa [#allocation4], 1 }
0x1e48   :  { %5643 = vsyncpa [#allocation4 + $0x1], 1 }

// kernel: frozen_clip_image_embedder.2
= control target key start
LH: loop header
LB: loop body
LE: loop exit
PB: predicated region body
PF: predicated region fallthrough
CT: control target
= control target key end

     0   :  { %s12574_s12 = smov 0   ;;  %s16565_s0 = inlined_call_operand.vmem [shape: f32[2,1,768], index: 0, kind: input, shape index: {}]   ;;  %s16566_s1 = inlined_call_operand.vmem [shape: bf16[768,3136], index: 1, kind: input, shape index: {}]   ;;  %s16567_s2 = inlined_call_operand.vmem [shape: f32[1,3136], index: 2, kind: input, shape index: {}]   ;;  %s16568_s3 = inlined_call_operand.vmem [shape: f32[2,1,3136], index: 3, kind: output, shape index: {}]  }
   0x1 LB: > { %s9481_s13 = sadd.s32 4294967295, %s12551_s12   ;;  %p9485_p0 = scmp.ge.s32.totalorder %s12551_s12, 1  ;;  %s12551_s12 = sphi %s12574_s12, %s13_s12  }
   0x2   : > { %p136_p1 = scmp.lt.s32.totalorder %s12551_s12, 3 }
   0x4   : > { %p137_p2 = pnand %p9485_p0, %p136_p1 }
   0x5   : > { %p158_p3 = scmp.lt.s32.totalorder (!%p137_p2), %s9481_s13, 1 }
   0x6   : > { %140 = sbr.rel (%p137_p2) target bundleno = 1432 (0x598), region = 32 }
   0xb   : > { %v10766_v0 = vld [vmem:[%s16566_s1 + $0x57c] ss:$100 sps:$4 sm:$0xff]   ;;  %v10772_v4 = vld [vmem:[%s16566_s1 + $0x4b4] ss:$100 sps:$4 sm:$0xff]   ;;  %v10778_v8 = vld [vmem:[%s16566_s1 + $0x3ec] ss:$100 sps:$4 sm:$0xff]   ;;  %v169_v35 = vlaneseq }
   0xc   : > { %v10768_v1 = vld [vmem:[%s16566_s1 + $0x578] ss:$100 sps:$4 sm:$0xff]   ;;  %7634 = vmatprep.subr.bf16.mxu0 %v10766_v0  ;;  %v10774_v5 = vld [vmem:[%s16566_s1 + $0x4b0] ss:$100 sps:$4 sm:$0xff]   ;;  %v10780_v9 = vld [vmem:[%s16566_s1 + $0x3e8] ss:$100 sps:$4 sm:$0xff]  }
   0xd   : > { %v10769_v2 = vld [vmem:[%s16566_s1 + $0x11fc] ss:$100 sps:$4 sm:$0xff]   ;;  %7635 = vmatpush1.bf16.msra.mxu0 %v10768_v1  ;;  %v10775_v6 = vld [vmem:[%s16566_s1 + $0x1134] ss:$100 sps:$4 sm:$0xff]   ;;  %v10781_v10 = vld [vmem:[%s16566_s1 + $0x106c] ss:$100 sps:$4 sm:$0xff]  }
   0xe   : > { %v10771_v3 = vld [vmem:[%s16566_s1 + $0x11f8] ss:$100 sps:$4 sm:$0xff]   ;;  %7675 = vmatprep.subr.bf16.mxu1 %v10769_v2  ;;  %7636 = vmatprep.subr.bf16.mxu0 %v10772_v4  ;;  %v10777_v7 = vld [vmem:[%s16566_s1 + $0x1130] ss:$100 sps:$4 sm:$0xff]   ;;  %v10784_v11 = vld [vmem:[%s16566_s1 + $0x324] ss:$100 sps:$4 sm:$0xff]  }
   0xf   : > { %7676 = vmatpush1.bf16.msra.mxu1 %v10771_v3  ;;  %v10783_v12 = vld [vmem:[%s16566_s1 + $0x1068] ss:$100 sps:$4 sm:$0xff]   ;;  %v10786_v14 = vld [vmem:[%s16566_s1 + $0x320] ss:$100 sps:$4 sm:$0xff]   ;;  %v10792_v18 = vld [vmem:[%s16566_s1 + $0x258] ss:$100 sps:$4 sm:$0xff]  }
  0x10   : > { %7677 = vmatprep.subr.bf16.mxu1 %v10775_v6  ;;  %v10787_v13 = vld [vmem:[%s16566_s1 + $0xfa4] ss:$100 sps:$4 sm:$0xff]   ;;  %v10790_v15 = vld [vmem:[%s16566_s1 + $0x25c] ss:$100 sps:$4 sm:$0xff]   ;;  %v10796_v19 = vld [vmem:[%s16566_s1 + $0x194] ss:$100 sps:$4 sm:$0xff]  }
  0x11   : > { %7637 = vmatpush1.bf16.msra.mxu0 %v10774_v5  ;;  %v10789_v16 = vld [vmem:[%s16566_s1 + $0xfa0] ss:$100 sps:$4 sm:$0xff]   ;;  %v10795_v20 = vld [vmem:[%s16566_s1 + $0xed8] ss:$100 sps:$4 sm:$0xff]   ;;  %v10798_v22 = vld [vmem:[%s16566_s1 + $0x190] ss:$100 sps:$4 sm:$0xff]  }
  0x12   : > { %7638 = vmatprep.subr.bf16.mxu0 %v10778_v8  ;;  %v10793_v17 = vld [vmem:[%s16566_s1 + $0xedc] ss:$100 sps:$4 sm:$0xff]   ;;  %v10799_v21 = vld [vmem:[%s16566_s1 + $0xe14] ss:$100 sps:$4 sm:$0xff]   ;;  %v10802_v23 = vld [vmem:[%s16566_s1 + $0xcc] ss:$100 sps:$4 sm:$0xff]  }
  0x13   : > { %7678 = vmatpush1.bf16.msra.mxu1 %v10777_v7  ;;  %v10801_v24 = vld [vmem:[%s16566_s1 + $0xe10] ss:$100 sps:$4 sm:$0xff]   ;;  %v10804_v26 = vld [vmem:[%s16566_s1 + $0xc8] ss:$100 sps:$4 sm:$0xff]   ;;  %v10810_v30 = vld [vmem:[%s16566_s1] ss:$100 sps:$4 sm:$0xff]  }
  0x14   : > { %7679 = vmatprep.subr.bf16.mxu1 %v10781_v10  ;;  %v10805_v25 = vld [vmem:[%s16566_s1 + $0xd4c] ss:$100 sps:$4 sm:$0xff]   ;;  %v10808_v27 = vld [vmem:[%s16566_s1 + $0x4] ss:$100 sps:$4 sm:$0xff]   ;;  %v10814_v31 = vld [vmem:[%s16566_s1 + $0xbbc] ss:$100 sps:$4 sm:$0xff]  }
  0x15   : > { %7639 = vmatpush1.bf16.msra.mxu0 %v10780_v9  ;;  %v10807_v28 = vld [vmem:[%s16566_s1 + $0xd48] ss:$100 sps:$4 sm:$0xff]   ;;  %v10813_v32 = vld [vmem:[%s16566_s1 + $0xc80] ss:$100 sps:$4 sm:$0xff]   ;;  %v10816_v34 = vld [vmem:[%s16566_s1 + $0xbb8] ss:$100 sps:$4 sm:$0xff]  }
  0x16   : > { %7640 = vmatprep.subr.bf16.mxu0 %v10784_v11  ;;  %v10811_v29 = vld [vmem:[%s16566_s1 + $0xc84] ss:$100 sps:$4 sm:$0xff]   ;;  %v10817_v33 = vld [vmem:[%s16566_s1 + $0x183c] ss:$100 sps:$4 sm:$0xff]   ;;  %s16570_s13 = smov (!%p158_p3, %s9481_s13), 1  ;;  %v12707_v40 = vshrl.u32 %v169_v35, 7 }
  0x17   : > { %7680 = vmatpush1.bf16.msra.mxu1 %v10783_v12  ;;  %v10820_v36 = vld [vmem:[%s16566_s1 + $0xaf4] ss:$100 sps:$4 sm:$0xff]   ;;  %s10755_s17 = smul.u32 6, %s16570_s13  ;;  %v10826_v41 = vld [vmem:[%s16566_s1 + $0xa2c] ss:$100 sps:$4 sm:$0xff]   ;;  %vm9425_vm0 = vcmp.lt.s32.totalorder %v169_v35, 64 }
  0x18   : > { %7681 = vmatprep.subr.bf16.mxu1 %v10787_v13  ;;  %v10819_v37 = vld [vmem:[%s16566_s1 + $0x1838] ss:$100 sps:$4 sm:$0xff]   ;;  %v10822_v39 = vld [vmem:[%s16566_s1 + $0xaf0] ss:$100 sps:$4 sm:$0xff]   ;;  %v10828_v44 = vld [vmem:[%s16566_s1 + $0xa28] ss:$100 sps:$4 sm:$0xff]  }
  0x19   : > { %7641 = vmatpush1.bf16.msra.mxu0 %v10786_v14  ;;  %v10823_v38 = vld [vmem:[%s16566_s1 + $0x1774] ss:$100 sps:$4 sm:$0xff]   ;;  %v10829_v43 = vld [vmem:[%s16566_s1 + $0x16ac] ss:$100 sps:$4 sm:$0xff]   ;;  %s161_s28 = scalar_lea.vmem %s16565_s0, %s10755_s17  ;;  %v12725_v45 = vsub.s32 1, %v12707_v40  ;;  %v12728_v46 = vsub.s32 3, %v12707_v40 }
  0x1a   : > { %7642 = vmatprep.subr.bf16.mxu0 %v10790_v15  ;;  %v10825_v42 = vld [vmem:[%s16566_s1 + $0x1770] ss:$100 sps:$4 sm:$0xff]   ;;  %v10832_v47 = vld [vmem:[%s16566_s1 + $0x964] ss:$100 sps:$4 sm:$0xff]   ;;  %v10838_v54 = vld [vmem:[%s16566_s1 + $0x89c] ss:$100 sps:$4 sm:$0xff]  }
  0x1b   : > { %7682 = vmatpush1.bf16.msra.mxu1 %v10789_v16  ;;  %v10831_v48 = vld [vmem:[%s16566_s1 + $0x16a8] ss:$100 sps:$4 sm:$0xff]   ;;  %v12739_v50 = vld [vmem:[%s161_s28] sm:$0x3f]  ;;  %v10840_v59 = vld [vmem:[%s16566_s1 + $0x898] ss:$100 sps:$4 sm:$0xff]  }
  0x1c   : > { %7683 = vmatprep.subr.bf16.mxu1 %v10793_v17  ;;  %v10835_v49 = vld [vmem:[%s16566_s1 + $0x15e4] ss:$100 sps:$4 sm:$0xff]   ;;  %v176_v52 = vrot.slane %v12739_v50, %v12725_v45  ;;  %v184_v53 = vrot.slane %v12739_v50, %v12728_v46  ;;  %v10841_v58 = vld [vmem:[%s16566_s1 + $0x151c] ss:$100 sps:$4 sm:$0xff]   ;;  %v10844_v60 = vld [vmem:[%s16566_s1 + $0x7d4] ss:$100 sps:$4 sm:$0xff]  }
  0x1d   : > { %7643 = vmatpush1.bf16.msra.mxu0 %v10792_v18  ;;  %v10834_v51 = vld [vmem:[%s16566_s1 + $0x960] ss:$100 sps:$4 sm:$0xff]   ;;  %v10843_v61 = vld [vmem:[%s16566_s1 + $0x1518] ss:$100 sps:$4 sm:$0xff]   ;;  %v10846_v63 = vld [vmem:[%s16566_s1 + $0x7d0] ss:$100 sps:$4 sm:$0xff]  }
  0x1e   : > { %7644 = vmatprep.subr.bf16.mxu0 %v10796_v19  ;;  %v10837_v55 = vld [vmem:[%s16566_s1 + $0x15e0] ss:$100 sps:$4 sm:$0xff]   ;;  %v12754_v56 = vpack.c.bf16 %v176_v52, %v176_v52  ;;  %v12756_v57 = vpack.c.bf16 %v184_v53, %v184_v53  ;;  %v10847_v62 = vld [vmem:[%s16566_s1 + $0x1454] ss:$100 sps:$4 sm:$0xff]   ;;  %v10850_v0 = vld [vmem:[%s16566_s1 + $0x70c] ss:$100 sps:$4 sm:$0xff]  }
  0x1f   : > { %7684 = vmatpush1.bf16.msra.mxu1 %v10795_v20  ;;  %v10849_v1 = vld [vmem:[%s16566_s1 + $0x1450] ss:$100 sps:$4 sm:$0xff]   ;;  %v12788_v3 = vsub.s32 0, %v12707_v40  ;;  %v10852_v4 = vld [vmem:[%s16566_s1 + $0x708] ss:$100 sps:$4 sm:$0xff]   ;;  %v12794_v5 = vsub.s32 5, %v12707_v40 }
  0x20   : > { %7685 = vmatprep.subr.bf16.mxu1 %v10799_v21  ;;  %7666 = vmatprep.mubr.bf16.mxu0 %v12754_v56  ;;  %v10853_v2 = vld [vmem:[%s16566_s1 + $0x138c] ss:$100 sps:$4 sm:$0xff]   ;;  %v10856_v6 = vld [vmem:[%s16566_s1 + $0x644] ss:$100 sps:$4 sm:$0xff]   ;;  %v12800_v7 = vsub.s32 2, %v12707_v40  ;;  %s10756_s6 = smul.u32 25, %s16570_s13 }
  0x21   : > { %7645 = vmatpush1.bf16.msra.mxu0 %v10798_v22  ;;  %7707 = vmatprep.mubr.bf16.mxu1 %v12756_v57  ;;  %v10855_v8 = vld [vmem:[%s16566_s1 + $0x1388] ss:$100 sps:$4 sm:$0xff]   ;;  %v172_v10 = vrot.slane %v12739_v50, %v12788_v3  ;;  %v10858_v11 = vld [vmem:[%s16566_s1 + $0x640] ss:$100 sps:$4 sm:$0xff]   ;;  %v192_v12 = vrot.slane %v12739_v50, %v12794_v5  ;;  %v10862_v18 = vld [vmem:[%s16566_s1 + $0x1e78] ss:$100 sps:$4 sm:$0xff]  }
  0x22   : > { %7646 = vmatprep.subr.bf16.mxu0 %v10802_v23  ;;  %v10859_v9 = vld [vmem:[%s16566_s1 + $0x12c4] ss:$100 sps:$4 sm:$0xff]   ;;  %v10864_v13 = vld [vmem:[%s16566_s1 + $0x1e7c] ss:$100 sps:$4 sm:$0xff]   ;;  %v180_v14 = vrot.slane %v12739_v50, %v12800_v7  ;;  %v10870_v21 = vld [vmem:[%s16566_s1 + $0x1db4] ss:$100 sps:$4 sm:$0xff]   ;;  %s14558_s18 = scalar_lea.vmem %s16568_s3, %s10756_s6 }
  0x23   : > { %7686 = vmatpush1.bf16.msra.mxu1 %v10801_v24  ;;  %v10861_v15 = vld [vmem:[%s16566_s1 + $0x12c0] ss:$100 sps:$4 sm:$0xff]   ;;  %v12823_v16 = vpack.c.bf16 %v172_v10, %v172_v10  ;;  %v12831_v19 = vpack.c.bf16 %v192_v12, %v192_v12  ;;  %v10868_v24 = vld [vmem:[%s16566_s1 + $0x1db0] ss:$100 sps:$4 sm:$0xff]   ;;  %v10931_v12 = vld [vmem:[%s16566_s1 + $0x968] ss:$100 sps:$4 sm:$0xff]  }
  0x24   : > { %7687 = vmatprep.subr.bf16.mxu1 %v10805_v25  ;;  %v10867_v17 = vld [vmem:[%s16566_s1 + $0x584] ss:$100 sps:$4 sm:$0xff]   ;;  %v12833_v20 = vpack.c.bf16 %v180_v14, %v180_v14  ;;  %v10873_v23 = vld [vmem:[%s16566_s1 + $0x4bc] ss:$100 sps:$4 sm:$0xff]   ;;  %v10876_v25 = vld [vmem:[%s16566_s1 + $0x1cec] ss:$100 sps:$4 sm:$0xff]  }
  0x25   : > { %7647 = vmatpush1.bf16.msra.mxu0 %v10804_v26  ;;  %v10865_v22 = vld [vmem:[%s16566_s1 + $0x580] ss:$100 sps:$4 sm:$0xff]   ;;  %v10871_v26 = vld [vmem:[%s16566_s1 + $0x4b8] ss:$100 sps:$4 sm:$0xff]   ;;  %v10909_v52 = vld [vmem:[%s16566_s1 + $0xc] ss:$100 sps:$4 sm:$0xff]  }
  0x26   : > { %7648 = vmatprep.subr.bf16.mxu0 %v10808_v27  ;;  %v10879_v27 = vld [vmem:[%s16566_s1 + $0x3f4] ss:$100 sps:$4 sm:$0xff]   ;;  %v10904_v53 = vld [vmem:[%s16566_s1 + $0x1900] ss:$100 sps:$4 sm:$0xff]  }
  0x27   : > { %7688 = vmatpush1.bf16.msra.mxu1 %v10807_v28  ;;  %v10874_v28 = vld [vmem:[%s16566_s1 + $0x1ce8] ss:$100 sps:$4 sm:$0xff]   ;;  %v10928_v10 = vld [vmem:[%s16566_s1 + $0x2260] ss:$100 sps:$4 sm:$0xff]   ;;  %v10934_v14 = vld [vmem:[%s16566_s1 + $0x2198] ss:$100 sps:$4 sm:$0xff]  }
  0x28   : > { %7689 = vmatprep.subr.bf16.mxu1 %v10811_v29  ;;  %v10882_v29 = vld [vmem:[%s16566_s1 + $0x1c24] ss:$100 sps:$4 sm:$0xff]  }
  0x29   : > { %7649 = vmatpush1.bf16.msra.mxu0 %v10810_v30  ;;  %v10877_v30 = vld [vmem:[%s16566_s1 + $0x3f0] ss:$100 sps:$4 sm:$0xff]  }
  0x2a   : > { %7650 = vmatprep.subr.bf16.mxu0 %v10814_v31  ;;  %v10885_v31 = vld [vmem:[%s16566_s1 + $0x32c] ss:$100 sps:$4 sm:$0xff]  }
  0x2b   : > { %7690 = vmatpush1.bf16.msra.mxu1 %v10813_v32  ;;  %v10880_v32 = vld [vmem:[%s16566_s1 + $0x1c20] ss:$100 sps:$4 sm:$0xff]  }
  0x2c   : > { %7691 = vmatprep.subr.bf16.mxu1 %v10817_v33  ;;  %v10888_v33 = vld [vmem:[%s16566_s1 + $0x1b5c] ss:$100 sps:$4 sm:$0xff]  }
  0x2d   : > { %7651 = vmatpush2.bf16.msra.mxu0 %v10816_v34  ;;  %v10883_v34 = vld [vmem:[%s16566_s1 + $0x328] ss:$100 sps:$4 sm:$0xff]  }
  0x2e   : > { %7652 = vmatprep.subr.bf16.mxu0 %v10820_v36  ;;  %v10891_v36 = vld [vmem:[%s16566_s1 + $0x264] ss:$100 sps:$4 sm:$0xff]  }
  0x2f   : > { %7692 = vmatpush2.bf16.msra.mxu1 %v10819_v37  ;;  %v10886_v37 = vld [vmem:[%s16566_s1 + $0x1b58] ss:$100 sps:$4 sm:$0xff]  }
  0x30   : > { %7693 = vmatprep.subr.bf16.mxu1 %v10823_v38  ;;  %v10894_v38 = vld [vmem:[%s16566_s1 + $0x1a94] ss:$100 sps:$4 sm:$0xff]  }
  0x31   : > { %7653 = vmatpush2.bf16.msra.mxu0 %v10822_v39  ;;  %v10889_v39 = vld [vmem:[%s16566_s1 + $0x260] ss:$100 sps:$4 sm:$0xff]  }
  0x32   : > { %7654 = vmatprep.subr.bf16.mxu0 %v10826_v41  ;;  %v10897_v41 = vld [vmem:[%s16566_s1 + $0x19c] ss:$100 sps:$4 sm:$0xff]  }
  0x33   : > { %7694 = vmatpush2.bf16.msra.mxu1 %v10825_v42  ;;  %v10892_v42 = vld [vmem:[%s16566_s1 + $0x1a90] ss:$100 sps:$4 sm:$0xff]  }
  0x34   : > { %7695 = vmatprep.subr.bf16.mxu1 %v10829_v43  ;;  %v10900_v43 = vld [vmem:[%s16566_s1 + $0x19cc] ss:$100 sps:$4 sm:$0xff]  }
  0x35   : > { %7655 = vmatpush2.bf16.msra.mxu0 %v10828_v44  ;;  %v10895_v44 = vld [vmem:[%s16566_s1 + $0x198] ss:$100 sps:$4 sm:$0xff]  }
  0x36   : > { %7656 = vmatprep.subr.bf16.mxu0 %v10832_v47  ;;  %v10903_v47 = vld [vmem:[%s16566_s1 + $0xd4] ss:$100 sps:$4 sm:$0xff]  }
  0x37   : > { %7696 = vmatpush2.bf16.msra.mxu1 %v10831_v48  ;;  %v10898_v48 = vld [vmem:[%s16566_s1 + $0x19c8] ss:$100 sps:$4 sm:$0xff]  }
  0x38   : > { %7697 = vmatprep.subr.bf16.mxu1 %v10835_v49  ;;  %v10906_v49 = vld [vmem:[%s16566_s1 + $0x1904] ss:$100 sps:$4 sm:$0xff]  }
  0x39   : > { %7657 = vmatpush2.bf16.msra.mxu0 %v10834_v51  ;;  %v10901_v51 = vld [vmem:[%s16566_s1 + $0xd0] ss:$100 sps:$4 sm:$0xff]  }
  0x3a   : > { %7658 = vmatprep.subr.bf16.mxu0 %v10838_v54  ;;  %v10912_v54 = vld [vmem:[%s16566_s1 + $0x24bc] ss:$100 sps:$4 sm:$0xff]  }
  0x3b   : > { %7698 = vmatpush2.bf16.msra.mxu1 %v10837_v55  ;;  %v10907_v55 = vld [vmem:[%s16566_s1 + $0x8] ss:$100 sps:$4 sm:$0xff]  }
  0x3c   : > { %7699 = vmatprep.subr.bf16.mxu1 %v10841_v58  ;;  %v10915_v58 = vld [vmem:[%s16566_s1 + $0xbc4] ss:$100 sps:$4 sm:$0xff]  }
  0x3d   : > { %7659 = vmatpush2.bf16.msra.mxu0 %v10840_v59  ;;  %v10910_v59 = vld [vmem:[%s16566_s1 + $0x24b8] ss:$100 sps:$4 sm:$0xff]  }
  0x3e   : > { %7660 = vmatprep.subr.bf16.mxu0 %v10844_v60  ;;  %v10918_v60 = vld [vmem:[%s16566_s1 + $0x23f4] ss:$100 sps:$4 sm:$0xff]  }
  0x3f   : > { %7700 = vmatpush2.bf16.msra.mxu1 %v10843_v61  ;;  %v10913_v61 = vld [vmem:[%s16566_s1 + $0xbc0] ss:$100 sps:$4 sm:$0xff]  }
  0x40   : > { %7701 = vmatprep.subr.bf16.mxu1 %v10847_v62  ;;  %v10921_v62 = vld [vmem:[%s16566_s1 + $0xafc] ss:$100 sps:$4 sm:$0xff]  }
  0x41   : > { %7661 = vmatpush2.bf16.msra.mxu0 %v10846_v63  ;;  %v10916_v63 = vld [vmem:[%s16566_s1 + $0x23f0] ss:$100 sps:$4 sm:$0xff]  }
  0x42   : > { %7662 = vmatprep.subr.bf16.mxu0 %v10850_v0  ;;  %v10924_v0 = vld [vmem:[%s16566_s1 + $0x232c] ss:$100 sps:$4 sm:$0xff]  }
  0x43   : > { %7702 = vmatpush2.bf16.msra.mxu1 %v10849_v1  ;;  %v10919_v1 = vld [vmem:[%s16566_s1 + $0xaf8] ss:$100 sps:$4 sm:$0xff]  }
  0x44   : > { %7703 = vmatprep.subr.bf16.mxu1 %v10853_v2  ;;  %v10927_v2 = vld [vmem:[%s16566_s1 + $0xa34] ss:$100 sps:$4 sm:$0xff]  }
  0x45   : > { %7663 = vmatpush2.bf16.msra.mxu0 %v10852_v4  ;;  %v10922_v4 = vld [vmem:[%s16566_s1 + $0x2328] ss:$100 sps:$4 sm:$0xff]  }
  0x46   : > { %7664 = vmatprep.subr.bf16.mxu0 %v10856_v6  ;;  %v10930_v6 = vld [vmem:[%s16566_s1 + $0x2264] ss:$100 sps:$4 sm:$0xff]  }
  0x47   : > { %7704 = vmatpush2.bf16.msra.mxu1 %v10855_v8  ;;  %v10925_v8 = vld [vmem:[%s16566_s1 + $0xa30] ss:$100 sps:$4 sm:$0xff]  }
  0x48   : > { %7705 = vmatprep.subr.bf16.mxu1 %v10859_v9  ;;  %v10933_v9 = vld [vmem:[%s16566_s1 + $0x96c] ss:$100 sps:$4 sm:$0xff]  }
  0x49   : > { %7665 = vmatpush2.bf16.msra.mxu0 %v10858_v11  ;;  %v10936_v11 = vld [vmem:[%s16566_s1 + $0x219c] ss:$100 sps:$4 sm:$0xff]  }
  0x4a   : > { %7716 = vmatprep.subr.bf16.mxu0 %v10864_v13  ;;  %v10939_v13 = vld [vmem:[%s16566_s1 + $0x8a4] ss:$100 sps:$4 sm:$0xff]  }
  0x4b   : > { %7706 = vmatpush2.bf16.msra.mxu1 %v10861_v15  ;;  %v10942_v15 = vld [vmem:[%s16566_s1 + $0x20d4] ss:$100 sps:$4 sm:$0xff]  }
  0x4c   : > { %7667 = vmatmul.mubr.bf16.vlgmr.msra.gmra.mxu0 %v12823_v16  ;;  %7757 = vmatprep.subr.bf16.mxu1 %v10867_v17  ;;  %v10937_v17 = vld [vmem:[%s16566_s1 + $0x8a0] ss:$100 sps:$4 sm:$0xff]  }
  0x4d   : > { %7717 = vmatpush1.bf16.msra.mxu0 %v10862_v18  ;;  %7748 = vmatprep.mubr.bf16.mxu0 %v12831_v19  ;;  %v10945_v18 = vld [vmem:[%s16566_s1 + $0x7dc] ss:$100 sps:$4 sm:$0xff]  }
  0x4e   : > { %7708 = vmatmul.mubr.bf16.vlgmr.msra.gmra.mxu1 %v12833_v20  ;;  %7718 = vmatprep.subr.bf16.mxu0 %v10870_v21  ;;  %v10940_v21 = vld [vmem:[%s16566_s1 + $0x20d0] ss:$100 sps:$4 sm:$0xff]  }
  0x4f   : > { %7758 = vmatpush1.bf16.msra.mxu1 %v10865_v22  ;;  %7789 = vmatprep.mubr.bf16.mxu1 %v12754_v56  ;;  %v10948_v22 = vld [vmem:[%s16566_s1 + $0x200c] ss:$100 sps:$4 sm:$0xff]  }
  0x50   : > { %7759 = vmatprep.subr.bf16.mxu1 %v10873_v23  ;;  %v10943_v23 = vld [vmem:[%s16566_s1 + $0x7d8] ss:$100 sps:$4 sm:$0xff]  }
  0x51   : > { %7719 = vmatpush1.bf16.msra.mxu0 %v10868_v24  ;;  %v10951_v24 = vld [vmem:[%s16566_s1 + $0x714] ss:$100 sps:$4 sm:$0xff]  }
  0x52   : > { %7720 = vmatprep.subr.bf16.mxu0 %v10876_v25  ;;  %v13005_v25 = vsub.s32 4, %v12707_v40 }
  0x53   : > { %7760 = vmatpush1.bf16.msra.mxu1 %v10871_v26  ;;  %v10946_v26 = vld [vmem:[%s16566_s1 + $0x2008] ss:$100 sps:$4 sm:$0xff]  }
  0x54   : > { %7761 = vmatprep.subr.bf16.mxu1 %v10879_v27  ;;  %v10954_v27 = vld [vmem:[%s16566_s1 + $0x1f44] ss:$100 sps:$4 sm:$0xff]  }
  0x55   : > { %7721 = vmatpush1.bf16.msra.mxu0 %v10874_v28  ;;  %v10949_v28 = vld [vmem:[%s16566_s1 + $0x710] ss:$100 sps:$4 sm:$0xff]  }
  0x56   : > { %7722 = vmatprep.subr.bf16.mxu0 %v10882_v29  ;;  %v10957_v29 = vld [vmem:[%s16566_s1 + $0x64c] ss:$100 sps:$4 sm:$0xff]  }
  0x57   : > { %7762 = vmatpush1.bf16.msra.mxu1 %v10877_v30  ;;  %v188_v30 = vrot.slane %v12739_v50, %v13005_v25  ;;  %v10963_v50 = vld [vmem:[%s16566_s1 + $0x1e84] ss:$100 sps:$4 sm:$0xff]  }
  0x58   : > { %7763 = vmatprep.subr.bf16.mxu1 %v10885_v31  ;;  %v10952_v31 = vld [vmem:[%s16566_s1 + $0x1f40] ss:$100 sps:$4 sm:$0xff]  }
  0x59   : > { %7723 = vmatpush1.bf16.msra.mxu0 %v10880_v32  ;;  %v10960_v32 = vld [vmem:[%s16566_s1 + $0x1204] ss:$100 sps:$4 sm:$0xff]  }
  0x5a   : > { %7724 = vmatprep.subr.bf16.mxu0 %v10888_v33  ;;  %v10955_v33 = vld [vmem:[%s16566_s1 + $0x648] ss:$100 sps:$4 sm:$0xff]  }
  0x5b   : > { %7764 = vmatpush1.bf16.msra.mxu1 %v10883_v34  ;;  %v13030_v34 = vpack.c.bf16 %v188_v30, %v188_v30  ;;  %v11032_v30 = vld [vmem:[%s16566_s1 + $0x1524] ss:$100 sps:$4 sm:$0xff]  }
  0x5c   : > { %7765 = vmatprep.subr.bf16.mxu1 %v10891_v36  ;;  %v10958_v36 = vld [vmem:[%s16566_s1 + $0x1200] ss:$100 sps:$4 sm:$0xff]  }
  0x5d   : > { %7725 = vmatpush1.bf16.msra.mxu0 %v10886_v37  ;;  %v10966_v37 = vld [vmem:[%s16566_s1 + $0x113c] ss:$100 sps:$4 sm:$0xff]  }
  0x5e   : > { %7726 = vmatprep.subr.bf16.mxu0 %v10894_v38  ;;  %v10961_v38 = vld [vmem:[%s16566_s1 + $0x1e80] ss:$100 sps:$4 sm:$0xff]  }
  0x5f   : > { %7766 = vmatpush1.bf16.msra.mxu1 %v10889_v39  ;;  %v10969_v39 = vld [vmem:[%s16566_s1 + $0x1dbc] ss:$100 sps:$4 sm:$0xff]  }
  0x60   : > { %7767 = vmatprep.subr.bf16.mxu1 %v10897_v41  ;;  %v10964_v41 = vld [vmem:[%s16566_s1 + $0x1138] ss:$100 sps:$4 sm:$0xff]  }
  0x61   : > { %7727 = vmatpush1.bf16.msra.mxu0 %v10892_v42  ;;  %v10972_v42 = vld [vmem:[%s16566_s1 + $0x1074] ss:$100 sps:$4 sm:$0xff]  }
  0x62   : > { %7728 = vmatprep.subr.bf16.mxu0 %v10900_v43  ;;  %v10967_v43 = vld [vmem:[%s16566_s1 + $0x1db8] ss:$100 sps:$4 sm:$0xff]  }
  0x63   : > { %7768 = vmatpush1.bf16.msra.mxu1 %v10895_v44  ;;  %v10975_v44 = vld [vmem:[%s16566_s1 + $0x1cf4] ss:$100 sps:$4 sm:$0xff]  }
  0x64   : > { %7769 = vmatprep.subr.bf16.mxu1 %v10903_v47  ;;  %v10970_v47 = vld [vmem:[%s16566_s1 + $0x1070] ss:$100 sps:$4 sm:$0xff]  }
  0x65   : > { %7729 = vmatpush1.bf16.msra.mxu0 %v10898_v48  ;;  %v10978_v48 = vld [vmem:[%s16566_s1 + $0xfac] ss:$100 sps:$4 sm:$0xff]  }
  0x66   : > { %7730 = vmatprep.subr.bf16.mxu0 %v10906_v49  ;;  %v10973_v49 = vld [vmem:[%s16566_s1 + $0x1cf0] ss:$100 sps:$4 sm:$0xff]  }
  0x67   : > { %7770 = vmatpush1.bf16.msra.mxu1 %v10901_v51  ;;  %v10981_v51 = vld [vmem:[%s16566_s1 + $0x1c2c] ss:$100 sps:$4 sm:$0xff]  }
  0x68   : > { %7771 = vmatprep.subr.bf16.mxu1 %v10909_v52  ;;  %v10976_v52 = vld [vmem:[%s16566_s1 + $0xfa8] ss:$100 sps:$4 sm:$0xff]  }
  0x69   : > { %7731 = vmatpush1.bf16.msra.mxu0 %v10904_v53  ;;  %v10984_v53 = vld [vmem:[%s16566_s1 + $0xee4] ss:$100 sps:$4 sm:$0xff]  }
  0x6a   : > { %7732 = vmatprep.subr.bf16.mxu0 %v10912_v54  ;;  %v10979_v54 = vld [vmem:[%s16566_s1 + $0x1c28] ss:$100 sps:$4 sm:$0xff]  }
  0x6b   : > { %7772 = vmatpush1.bf16.msra.mxu1 %v10907_v55  ;;  %v10987_v55 = vld [vmem:[%s16566_s1 + $0x1b64] ss:$100 sps:$4 sm:$0xff]  }
  0x6c   : > { %7773 = vmatprep.subr.bf16.mxu1 %v10915_v58  ;;  %v10982_v58 = vld [vmem:[%s16566_s1 + $0xee0] ss:$100 sps:$4 sm:$0xff]  }
  0x6d   : > { %7733 = vmatpush2.bf16.msra.mxu0 %v10910_v59  ;;  %v10990_v59 = vld [vmem:[%s16566_s1 + $0xe1c] ss:$100 sps:$4 sm:$0xff]  }
  0x6e   : > { %7734 = vmatprep.subr.bf16.mxu0 %v10918_v60  ;;  %v10985_v60 = vld [vmem:[%s16566_s1 + $0x1b60] ss:$100 sps:$4 sm:$0xff]  }
  0x6f   : > { %7774 = vmatpush2.bf16.msra.mxu1 %v10913_v61  ;;  %v10993_v61 = vld [vmem:[%s16566_s1 + $0x1a9c] ss:$100 sps:$4 sm:$0xff]  }
  0x70   : > { %7775 = vmatprep.subr.bf16.mxu1 %v10921_v62  ;;  %v10988_v62 = vld [vmem:[%s16566_s1 + $0xe18] ss:$100 sps:$4 sm:$0xff]  }
  0x71   : > { %7735 = vmatpush2.bf16.msra.mxu0 %v10916_v63  ;;  %v10996_v63 = vld [vmem:[%s16566_s1 + $0xd54] ss:$100 sps:$4 sm:$0xff]  }
  0x72   : > { %7736 = vmatprep.subr.bf16.mxu0 %v10924_v0  ;;  %v10991_v0 = vld [vmem:[%s16566_s1 + $0x1a98] ss:$100 sps:$4 sm:$0xff]  }
  0x73   : > { %7776 = vmatpush2.bf16.msra.mxu1 %v10919_v1  ;;  %v10999_v1 = vld [vmem:[%s16566_s1 + $0x19d4] ss:$100 sps:$4 sm:$0xff]  }
  0x74   : > { %7777 = vmatprep.subr.bf16.mxu1 %v10927_v2  ;;  %v10994_v2 = vld [vmem:[%s16566_s1 + $0xd50] ss:$100 sps:$4 sm:$0xff]  }
  0x75   : > { %7737 = vmatpush2.bf16.msra.mxu0 %v10922_v4  ;;  %v11002_v4 = vld [vmem:[%s16566_s1 + $0xc8c] ss:$100 sps:$4 sm:$0xff]  }
  0x76   : > { %7738 = vmatprep.subr.bf16.mxu0 %v10930_v6  ;;  %v10997_v6 = vld [vmem:[%s16566_s1 + $0x19d0] ss:$100 sps:$4 sm:$0xff]  }
  0x77   : > { %7778 = vmatpush2.bf16.msra.mxu1 %v10925_v8  ;;  %v11005_v8 = vld [vmem:[%s16566_s1 + $0x190c] ss:$100 sps:$4 sm:$0xff]  }
  0x78   : > { %7779 = vmatprep.subr.bf16.mxu1 %v10933_v9  ;;  %v11000_v9 = vld [vmem:[%s16566_s1 + $0xc88] ss:$100 sps:$4 sm:$0xff]  }
  0x79   : > { %7739 = vmatpush2.bf16.msra.mxu0 %v10928_v10  ;;  %v11008_v10 = vld [vmem:[%s16566_s1 + $0x1844] ss:$100 sps:$4 sm:$0xff]  }
  0x7a   : > { %7740 = vmatprep.subr.bf16.mxu0 %v10936_v11  ;;  %v11003_v11 = vld [vmem:[%s16566_s1 + $0x1908] ss:$100 sps:$4 sm:$0xff]  }
  0x7b   : > { %7780 = vmatpush2.bf16.msra.mxu1 %v10931_v12  ;;  %v11011_v12 = vld [vmem:[%s16566_s1 + $0x24c4] ss:$100 sps:$4 sm:$0xff]  }
  0x7c   : > { %7781 = vmatprep.subr.bf16.mxu1 %v10939_v13  ;;  %v11006_v13 = vld [vmem:[%s16566_s1 + $0x1840] ss:$100 sps:$4 sm:$0xff]  }
  0x7d   : > { %7741 = vmatpush2.bf16.msra.mxu0 %v10934_v14  ;;  %v11014_v14 = vld [vmem:[%s16566_s1 + $0x177c] ss:$100 sps:$4 sm:$0xff]  }
  0x7e   : > { %7742 = vmatprep.subr.bf16.mxu0 %v10942_v15  ;;  %v11009_v15 = vld [vmem:[%s16566_s1 + $0x24c0] ss:$100 sps:$4 sm:$0xff]  }
  0x7f   : > { %7782 = vmatpush2.bf16.msra.mxu1 %v10937_v17  ;;  %v11017_v17 = vld [vmem:[%s16566_s1 + $0x23fc] ss:$100 sps:$4 sm:$0xff]  }
  0x80   : > { %7783 = vmatprep.subr.bf16.mxu1 %v10945_v18  ;;  %v11012_v18 = vld [vmem:[%s16566_s1 + $0x1778] ss:$100 sps:$4 sm:$0xff]  }
  0x81   : > { %7743 = vmatpush2.bf16.msra.mxu0 %v10940_v21  ;;  %v11020_v21 = vld [vmem:[%s16566_s1 + $0x16b4] ss:$100 sps:$4 sm:$0xff]  }
  0x82   : > { %7744 = vmatprep.subr.bf16.mxu0 %v10948_v22  ;;  %v11015_v22 = vld [vmem:[%s16566_s1 + $0x23f8] ss:$100 sps:$4 sm:$0xff]  }
  0x83   : > { %7784 = vmatpush2.bf16.msra.mxu1 %v10943_v23  ;;  %v11023_v23 = vld [vmem:[%s16566_s1 + $0x2334] ss:$100 sps:$4 sm:$0xff]  }
  0x84   : > { %7785 = vmatprep.subr.bf16.mxu1 %v10951_v24  ;;  %v11018_v24 = vld [vmem:[%s16566_s1 + $0x16b0] ss:$100 sps:$4 sm:$0xff]  }
  0x85   : > { %7745 = vmatpush2.bf16.msra.mxu0 %v10946_v26  ;;  %v11026_v26 = vld [vmem:[%s16566_s1 + $0x15ec] ss:$100 sps:$4 sm:$0xff]  }
  0x86   : > { %7746 = vmatprep.subr.bf16.mxu0 %v10954_v27  ;;  %v11021_v27 = vld [vmem:[%s16566_s1 + $0x2330] ss:$100 sps:$4 sm:$0xff]  }
  0x87   : > { %7786 = vmatpush2.bf16.msra.mxu1 %v10949_v28  ;;  %v11029_v28 = vld [vmem:[%s16566_s1 + $0x226c] ss:$100 sps:$4 sm:$0xff]  }
  0x88   : > { %7787 = vmatprep.subr.bf16.mxu1 %v10957_v29  ;;  %v11024_v29 = vld [vmem:[%s16566_s1 + $0x15e8] ss:$100 sps:$4 sm:$0xff]  }
  0x89   : > { %7747 = vmatpush2.bf16.msra.mxu0 %v10952_v31  ;;  %v11027_v31 = vld [vmem:[%s16566_s1 + $0x2268] ss:$100 sps:$4 sm:$0xff]  }
  0x8a   : > { %7798 = vmatprep.subr.bf16.mxu0 %v10960_v32  ;;  %v11035_v32 = vld [vmem:[%s16566_s1 + $0x21a4] ss:$100 sps:$4 sm:$0xff]  }
  0x8b   : > { %7788 = vmatpush2.bf16.msra.mxu1 %v10955_v33  ;;  %v11030_v33 = vld [vmem:[%s16566_s1 + $0x1520] ss:$100 sps:$4 sm:$0xff]  }
  0x8c   : > { %7749 = vmatmul.mubr.bf16.vlgmr.msra.gmra.mxu0 %v13030_v34  ;;  %7839 = vmatprep.subr.bf16.mxu1 %v10963_v50  ;;  %v11038_v50 = vld [vmem:[%s16566_s1 + $0x145c] ss:$100 sps:$4 sm:$0xff]  }
  0x8d   : > { %7799 = vmatpush1.bf16.msra.mxu0 %v10958_v36  ;;  %7830 = vmatprep.mubr.bf16.mxu0 %v12756_v57  ;;  %v11033_v36 = vld [vmem:[%s16566_s1 + $0x21a0] ss:$100 sps:$4 sm:$0xff]  }
  0x8e   : > { %7790 = vmatmul.mubr.bf16.vlgmr.msra.gmra.mxu1 %v12823_v16  ;;  %7800 = vmatprep.subr.bf16.mxu0 %v10966_v37  ;;  %v11041_v37 = vld [vmem:[%s16566_s1 + $0x20dc] ss:$100 sps:$4 sm:$0xff]  }
  0x8f   : > { %7840 = vmatpush1.bf16.msra.mxu1 %v10961_v38  ;;  %7871 = vmatprep.mubr.bf16.mxu1 %v12831_v19  ;;  %v11036_v38 = vld [vmem:[%s16566_s1 + $0x1458] ss:$100 sps:$4 sm:$0xff]  }
  0x90   : > { %7841 = vmatprep.subr.bf16.mxu1 %v10969_v39  ;;  %v11044_v39 = vld [vmem:[%s16566_s1 + $0x1394] ss:$100 sps:$4 sm:$0xff]  }
  0x91   : > { %7801 = vmatpush1.bf16.msra.mxu0 %v10964_v41  ;;  %v11039_v41 = vld [vmem:[%s16566_s1 + $0x20d8] ss:$100 sps:$4 sm:$0xff]  }
  0x92   : > { %7802 = vmatprep.subr.bf16.mxu0 %v10972_v42  ;;  %v11047_v42 = vld [vmem:[%s16566_s1 + $0x2014] ss:$100 sps:$4 sm:$0xff]  }
  0x93   : > { %7842 = vmatpush1.bf16.msra.mxu1 %v10967_v43  ;;  %v11042_v43 = vld [vmem:[%s16566_s1 + $0x1390] ss:$100 sps:$4 sm:$0xff]  }
  0x94   : > { %7843 = vmatprep.subr.bf16.mxu1 %v10975_v44  ;;  %v11050_v44 = vld [vmem:[%s16566_s1 + $0x12cc] ss:$100 sps:$4 sm:$0xff]  }
  0x95   : > { %7803 = vmatpush1.bf16.msra.mxu0 %v10970_v47  ;;  %v11045_v47 = vld [vmem:[%s16566_s1 + $0x2010] ss:$100 sps:$4 sm:$0xff]  }
  0x96   : > { %7804 = vmatprep.subr.bf16.mxu0 %v10978_v48  ;;  %v11053_v48 = vld [vmem:[%s16566_s1 + $0x1f4c] ss:$100 sps:$4 sm:$0xff]  }
  0x97   : > { %7844 = vmatpush1.bf16.msra.mxu1 %v10973_v49  ;;  %v11048_v49 = vld [vmem:[%s16566_s1 + $0x12c8] ss:$100 sps:$4 sm:$0xff]  }
  0x98   : > { %7845 = vmatprep.subr.bf16.mxu1 %v10981_v51  ;;  %v11056_v51 = vld [vmem:[%s16566_s1 + $0x58c] ss:$100 sps:$4 sm:$0xff]  }
  0x99   : > { %7805 = vmatpush1.bf16.msra.mxu0 %v10976_v52  ;;  %v11051_v52 = vld [vmem:[%s16566_s1 + $0x1f48] ss:$100 sps:$4 sm:$0xff]  }
  0x9a   : > { %7806 = vmatprep.subr.bf16.mxu0 %v10984_v53  ;;  %v11059_v53 = vld [vmem:[%s16566_s1 + $0x120c] ss:$100 sps:$4 sm:$0xff]  }
  0x9b   : > { %7846 = vmatpush1.bf16.msra.mxu1 %v10979_v54  ;;  %v11054_v54 = vld [vmem:[%s16566_s1 + $0x588] ss:$100 sps:$4 sm:$0xff]  }
  0x9c   : > { %7847 = vmatprep.subr.bf16.mxu1 %v10987_v55  ;;  %v11062_v55 = vld [vmem:[%s16566_s1 + $0x4c4] ss:$100 sps:$4 sm:$0xff]  }
  0x9d   : > { %7807 = vmatpush1.bf16.msra.mxu0 %v10982_v58  ;;  %v11057_v58 = vld [vmem:[%s16566_s1 + $0x1208] ss:$100 sps:$4 sm:$0xff]  }
  0x9e   : > { %7808 = vmatprep.subr.bf16.mxu0 %v10990_v59  ;;  %v11065_v59 = vld [vmem:[%s16566_s1 + $0x1144] ss:$100 sps:$4 sm:$0xff]  }
  0x9f   : > { %7848 = vmatpush1.bf16.msra.mxu1 %v10985_v60  ;;  %v11060_v60 = vld [vmem:[%s16566_s1 + $0x4c0] ss:$100 sps:$4 sm:$0xff]  }
  0xa0   : > { %7849 = vmatprep.subr.bf16.mxu1 %v10993_v61  ;;  %v11068_v61 = vld [vmem:[%s16566_s1 + $0x3fc] ss:$100 sps:$4 sm:$0xff]  }
  0xa1   : > { %7809 = vmatpush1.bf16.msra.mxu0 %v10988_v62  ;;  %v11063_v62 = vld [vmem:[%s16566_s1 + $0x1140] ss:$100 sps:$4 sm:$0xff]  }
  0xa2   : > { %7810 = vmatprep.subr.bf16.mxu0 %v10996_v63  ;;  %v11071_v63 = vld [vmem:[%s16566_s1 + $0x107c] ss:$100 sps:$4 sm:$0xff]  }
  0xa3   : > { %7850 = vmatpush1.bf16.msra.mxu1 %v10991_v0  ;;  %v11066_v0 = vld [vmem:[%s16566_s1 + $0x3f8] ss:$100 sps:$4 sm:$0xff]  }
  0xa4   : > { %7851 = vmatprep.subr.bf16.mxu1 %v10999_v1  ;;  %v11074_v1 = vld [vmem:[%s16566_s1 + $0x334] ss:$100 sps:$4 sm:$0xff]  }
  0xa5   : > { %7811 = vmatpush1.bf16.msra.mxu0 %v10994_v2  ;;  %v11069_v2 = vld [vmem:[%s16566_s1 + $0x1078] ss:$100 sps:$4 sm:$0xff]  }
  0xa6   : > { %7812 = vmatprep.subr.bf16.mxu0 %v11002_v4  ;;  %v11077_v4 = vld [vmem:[%s16566_s1 + $0xfb4] ss:$100 sps:$4 sm:$0xff]  }
  0xa7   : > { %7852 = vmatpush1.bf16.msra.mxu1 %v10997_v6  ;;  %v11072_v6 = vld [vmem:[%s16566_s1 + $0x330] ss:$100 sps:$4 sm:$0xff]  }
  0xa8   : > { %7853 = vmatprep.subr.bf16.mxu1 %v11005_v8  ;;  %v11080_v8 = vld [vmem:[%s16566_s1 + $0x26c] ss:$100 sps:$4 sm:$0xff]  }
  0xa9   : > { %7813 = vmatpush1.bf16.msra.mxu0 %v11000_v9  ;;  %v11075_v9 = vld [vmem:[%s16566_s1 + $0xfb0] ss:$100 sps:$4 sm:$0xff]  }
  0xaa   : > { %7814 = vmatprep.subr.bf16.mxu0 %v11008_v10  ;;  %v11083_v10 = vld [vmem:[%s16566_s1 + $0xeec] ss:$100 sps:$4 sm:$0xff]  }
  0xab   : > { %7854 = vmatpush1.bf16.msra.mxu1 %v11003_v11  ;;  %v11078_v11 = vld [vmem:[%s16566_s1 + $0x268] ss:$100 sps:$4 sm:$0xff]  }
  0xac   : > { %7855 = vmatprep.subr.bf16.mxu1 %v11011_v12  ;;  %v11086_v12 = vld [vmem:[%s16566_s1 + $0x1a4] ss:$100 sps:$4 sm:$0xff]  }
  0xad   : > { %7815 = vmatpush2.bf16.msra.mxu0 %v11006_v13  ;;  %v11081_v13 = vld [vmem:[%s16566_s1 + $0xee8] ss:$100 sps:$4 sm:$0xff]  }
  0xae   : > { %7816 = vmatprep.subr.bf16.mxu0 %v11014_v14  ;;  %v11089_v14 = vld [vmem:[%s16566_s1 + $0xe24] ss:$100 sps:$4 sm:$0xff]  }
  0xaf   : > { %7856 = vmatpush2.bf16.msra.mxu1 %v11009_v15  ;;  %v11084_v15 = vld [vmem:[%s16566_s1 + $0x1a0] ss:$100 sps:$4 sm:$0xff]  }
  0xb0   : > { %7857 = vmatprep.subr.bf16.mxu1 %v11017_v17  ;;  %v11092_v17 = vld [vmem:[%s16566_s1 + $0xdc] ss:$100 sps:$4 sm:$0xff]  }
  0xb1   : > { %7817 = vmatpush2.bf16.msra.mxu0 %v11012_v18  ;;  %v11087_v18 = vld [vmem:[%s16566_s1 + $0xe20] ss:$100 sps:$4 sm:$0xff]  }
  0xb2   : > { %7818 = vmatprep.subr.bf16.mxu0 %v11020_v21  ;;  %v11095_v21 = vld [vmem:[%s16566_s1 + $0xd5c] ss:$100 sps:$4 sm:$0xff]  }
  0xb3   : > { %7858 = vmatpush2.bf16.msra.mxu1 %v11015_v22  ;;  %v11090_v22 = vld [vmem:[%s16566_s1 + $0xd8] ss:$100 sps:$4 sm:$0xff]  }
  0xb4   : > { %7859 = vmatprep.subr.bf16.mxu1 %v11023_v23  ;;  %v11098_v23 = vld [vmem:[%s16566_s1 + $0x14] ss:$100 sps:$4 sm:$0xff]  }
  0xb5   : > { %7819 = vmatpush2.bf16.msra.mxu0 %v11018_v24  ;;  %v11093_v24 = vld [vmem:[%s16566_s1 + $0xd58] ss:$100 sps:$4 sm:$0xff]  }
  0xb6   : > { %7820 = vmatprep.subr.bf16.mxu0 %v11026_v26  ;;  %v11101_v26 = vld [vmem:[%s16566_s1 + $0xc94] ss:$100 sps:$4 sm:$0xff]  }
  0xb7   : > { %7860 = vmatpush2.bf16.msra.mxu1 %v11021_v27  ;;  %v11096_v27 = vld [vmem:[%s16566_s1 + $0x10] ss:$100 sps:$4 sm:$0xff]  }
  0xb8   : > { %7861 = vmatprep.subr.bf16.mxu1 %v11029_v28  ;;  %v11104_v28 = vld [vmem:[%s16566_s1 + $0xbcc] ss:$100 sps:$4 sm:$0xff]  }
  0xb9   : > { %7821 = vmatpush2.bf16.msra.mxu0 %v11024_v29  ;;  %v11099_v29 = vld [vmem:[%s16566_s1 + $0xc90] ss:$100 sps:$4 sm:$0xff]  }
  0xba   : > { %7822 = vmatprep.subr.bf16.mxu0 %v11032_v30  ;;  %v11107_v30 = vld [vmem:[%s16566_s1 + $0x184c] ss:$100 sps:$4 sm:$0xff]  }
  0xbb   : > { %7862 = vmatpush2.bf16.msra.mxu1 %v11027_v31  ;;  %v11102_v31 = vld [vmem:[%s16566_s1 + $0xbc8] ss:$100 sps:$4 sm:$0xff]  }
  0xbc   : > { %7863 = vmatprep.subr.bf16.mxu1 %v11035_v32  ;;  %v11110_v32 = vld [vmem:[%s16566_s1 + $0xb04] ss:$100 sps:$4 sm:$0xff]  }
  0xbd   : > { %7823 = vmatpush2.bf16.msra.mxu0 %v11030_v33  ;;  %v11105_v33 = vld [vmem:[%s16566_s1 + $0x1848] ss:$100 sps:$4 sm:$0xff]  }
  0xbe   : > { %7824 = vmatprep.subr.bf16.mxu0 %v11038_v50  ;;  %v11113_v50 = vld [vmem:[%s16566_s1 + $0x1784] ss:$100 sps:$4 sm:$0xff]  }
  0xbf   : > { %7864 = vmatpush2.bf16.msra.mxu1 %v11033_v36  ;;  %v11108_v36 = vld [vmem:[%s16566_s1 + $0xb00] ss:$100 sps:$4 sm:$0xff]  }
  0xc0   : > { %7865 = vmatprep.subr.bf16.mxu1 %v11041_v37  ;;  %v11116_v37 = vld [vmem:[%s16566_s1 + $0xa3c] ss:$100 sps:$4 sm:$0xff]  }
  0xc1   : > { %7825 = vmatpush2.bf16.msra.mxu0 %v11036_v38  ;;  %v11111_v38 = vld [vmem:[%s16566_s1 + $0x1780] ss:$100 sps:$4 sm:$0xff]  }
  0xc2   : > { %7826 = vmatprep.subr.bf16.mxu0 %v11044_v39  ;;  %v11119_v39 = vld [vmem:[%s16566_s1 + $0x16bc] ss:$100 sps:$4 sm:$0xff]  }
  0xc3   : > { %7866 = vmatpush2.bf16.msra.mxu1 %v11039_v41  ;;  %v11114_v41 = vld [vmem:[%s16566_s1 + $0xa38] ss:$100 sps:$4 sm:$0xff]  }
  0xc4   : > { %7867 = vmatprep.subr.bf16.mxu1 %v11047_v42  ;;  %v11122_v42 = vld [vmem:[%s16566_s1 + $0x974] ss:$100 sps:$4 sm:$0xff]  }
  0xc5   : > { %7827 = vmatpush2.bf16.msra.mxu0 %v11042_v43  ;;  %v11117_v43 = vld [vmem:[%s16566_s1 + $0x16b8] ss:$100 sps:$4 sm:$0xff]  }
  0xc6   : > { %7828 = vmatprep.subr.bf16.mxu0 %v11050_v44  ;;  %v11125_v44 = vld [vmem:[%s16566_s1 + $0x15f4] ss:$100 sps:$4 sm:$0xff]  }
  0xc7   : > { %7868 = vmatpush2.bf16.msra.mxu1 %v11045_v47  ;;  %v11120_v47 = vld [vmem:[%s16566_s1 + $0x970] ss:$100 sps:$4 sm:$0xff]  }
  0xc8   : > { %7869 = vmatprep.subr.bf16.mxu1 %v11053_v48  ;;  %v11128_v48 = vld [vmem:[%s16566_s1 + $0x8ac] ss:$100 sps:$4 sm:$0xff]  }
  0xc9   : > { %7829 = vmatpush2.bf16.msra.mxu0 %v11048_v49  ;;  %v11123_v49 = vld [vmem:[%s16566_s1 + $0x15f0] ss:$100 sps:$4 sm:$0xff]  }
  0xca   : > { %7880 = vmatprep.subr.bf16.mxu0 %v11056_v51  ;;  %v11131_v51 = vld [vmem:[%s16566_s1 + $0x152c] ss:$100 sps:$4 sm:$0xff]  }
  0xcb   : > { %7870 = vmatpush2.bf16.msra.mxu1 %v11051_v52  ;;  %v11126_v52 = vld [vmem:[%s16566_s1 + $0x8a8] ss:$100 sps:$4 sm:$0xff]  }
  0xcc   : > { %7831 = vmatmul.mubr.bf16.vlgmr.msra.gmra.mxu0 %v12833_v20  ;;  %7921 = vmatprep.subr.bf16.mxu1 %v11059_v53  ;;  %v11134_v53 = vld [vmem:[%s16566_s1 + $0x7e4] ss:$100 sps:$4 sm:$0xff]  }
  0xcd   : > { %7881 = vmatpush1.bf16.msra.mxu0 %v11054_v54  ;;  %7912 = vmatprep.mubr.bf16.mxu0 %v12754_v56  ;;  %v11129_v54 = vld [vmem:[%s16566_s1 + $0x1528] ss:$100 sps:$4 sm:$0xff]  }
  0xce   : > { %7872 = vmatmul.mubr.bf16.vlgmr.msra.gmra.mxu1 %v13030_v34  ;;  %7882 = vmatprep.subr.bf16.mxu0 %v11062_v55  ;;  %v11137_v55 = vld [vmem:[%s16566_s1 + $0x1464] ss:$100 sps:$4 sm:$0xff]  }
  0xcf   : > { %7922 = vmatpush1.bf16.msra.mxu1 %v11057_v58  ;;  %7953 = vmatprep.mubr.bf16.mxu1 %v12756_v57  ;;  %v11132_v58 = vld [vmem:[%s16566_s1 + $0x7e0] ss:$100 sps:$4 sm:$0xff]  }
  0xd0   : > { %7923 = vmatprep.subr.bf16.mxu1 %v11065_v59  ;;  %v11140_v59 = vld [vmem:[%s16566_s1 + $0x71c] ss:$100 sps:$4 sm:$0xff]  }
  0xd1   : > { %7883 = vmatpush1.bf16.msra.mxu0 %v11060_v60  ;;  %v11135_v60 = vld [vmem:[%s16566_s1 + $0x1460] ss:$100 sps:$4 sm:$0xff]  }
  0xd2   : > { %7884 = vmatprep.subr.bf16.mxu0 %v11068_v61  ;;  %v11143_v61 = vld [vmem:[%s16566_s1 + $0x139c] ss:$100 sps:$4 sm:$0xff]  }
  0xd3   : > { %7924 = vmatpush1.bf16.msra.mxu1 %v11063_v62  ;;  %v11138_v62 = vld [vmem:[%s16566_s1 + $0x718] ss:$100 sps:$4 sm:$0xff]  }
  0xd4   : > { %7925 = vmatprep.subr.bf16.mxu1 %v11071_v63  ;;  %v11146_v63 = vld [vmem:[%s16566_s1 + $0x654] ss:$100 sps:$4 sm:$0xff]  }
  0xd5   : > { %7885 = vmatpush1.bf16.msra.mxu0 %v11066_v0  ;;  %v11141_v0 = vld [vmem:[%s16566_s1 + $0x1398] ss:$100 sps:$4 sm:$0xff]  }
  0xd6   : > { %7886 = vmatprep.subr.bf16.mxu0 %v11074_v1  ;;  %v11149_v1 = vld [vmem:[%s16566_s1 + $0x12d4] ss:$100 sps:$4 sm:$0xff]  }
  0xd7   : > { %7926 = vmatpush1.bf16.msra.mxu1 %v11069_v2  ;;  %v11144_v2 = vld [vmem:[%s16566_s1 + $0x650] ss:$100 sps:$4 sm:$0xff]  }
  0xd8   : > { %7927 = vmatprep.subr.bf16.mxu1 %v11077_v4  ;;  %v1453_v4 = vld [vmem:[%s16567_s2] sm:$0xff] }
  0xd9   : > { %7887 = vmatpush1.bf16.msra.mxu0 %v11072_v6  ;;  %v11152_v6 = vld [vmem:[%s16566_s1 + $0x1e8c] ss:$100 sps:$4 sm:$0xff]  }
  0xda   : > { %7888 = vmatprep.subr.bf16.mxu0 %v11080_v8  ;;  %v11147_v8 = vld [vmem:[%s16566_s1 + $0x12d0] ss:$100 sps:$4 sm:$0xff]  }
  0xdb   : > { %7928 = vmatpush1.bf16.msra.mxu1 %v11075_v9  ;;  %v11155_v9 = vld [vmem:[%s16566_s1 + $0x594] ss:$100 sps:$4 sm:$0xff]  }
  0xdc   : > { %7929 = vmatprep.subr.bf16.mxu1 %v11083_v10  ;;  %v7512_v10 = vrot.slane %v1453_v4, %v12788_v3 }
  0xdd   : > { %7889 = vmatpush1.bf16.msra.mxu0 %v11078_v11  ;;  %v11150_v11 = vld [vmem:[%s16566_s1 + $0x1e88] ss:$100 sps:$4 sm:$0xff]  }
  0xde   : > { %7890 = vmatprep.subr.bf16.mxu0 %v11086_v12  ;;  %v11158_v12 = vld [vmem:[%s16566_s1 + $0x1dc4] ss:$100 sps:$4 sm:$0xff]  }
  0xdf   : > { %7930 = vmatpush1.bf16.msra.mxu1 %v11081_v13  ;;  %v7516_v13 = vrot.slane %v1453_v4, %v12725_v45  ;;  %v11198_v4 = vld [vmem:[%s16566_s1 + $0x24c8] ss:$100 sps:$4 sm:$0xff]  }
  0xe0   : > { %7931 = vmatprep.subr.bf16.mxu1 %v11089_v14  ;;  %v11153_v14 = vld [vmem:[%s16566_s1 + $0x590] ss:$100 sps:$4 sm:$0xff]  }
  0xe1   : > { %7891 = vmatpush1.bf16.msra.mxu0 %v11084_v15 }
  0xe2   : > { %7892 = vmatprep.subr.bf16.mxu0 %v11092_v17  ;;  %v11161_v17 = vld [vmem:[%s16566_s1 + $0x4cc] ss:$100 sps:$4 sm:$0xff]  }
  0xe3   : > { %7932 = vmatpush1.bf16.msra.mxu1 %v11087_v18 }
  0xe4   : > { %7933 = vmatprep.subr.bf16.mxu1 %v11095_v21  ;;  %v11156_v21 = vld [vmem:[%s16566_s1 + $0x1dc0] ss:$100 sps:$4 sm:$0xff]  }
  0xe5   : > { %7893 = vmatpush1.bf16.msra.mxu0 %v11090_v22 }
  0xe6   : > { %7894 = vmatprep.subr.bf16.mxu0 %v11098_v23 }
  0xe7   : > { %7934 = vmatpush1.bf16.msra.mxu1 %v11093_v24  ;;  %v11164_v24 = vld [vmem:[%s16566_s1 + $0x1cfc] ss:$100 sps:$4 sm:$0xff]  }
  0xe8   : > { %7935 = vmatprep.subr.bf16.mxu1 %v11101_v26 }
  0xe9   : > { %7895 = vmatpush1.bf16.msra.mxu0 %v11096_v27 }
  0xea   : > { %7896 = vmatprep.subr.bf16.mxu0 %v11104_v28  ;;  %v11159_v28 = vld [vmem:[%s16566_s1 + $0x4c8] ss:$100 sps:$4 sm:$0xff]  }
  0xeb   : > { %7936 = vmatpush1.bf16.msra.mxu1 %v11099_v29 }
  0xec   : > { %7937 = vmatprep.subr.bf16.mxu1 %v11107_v30 }
  0xed   : > { %7897 = vmatpush2.bf16.msra.mxu0 %v11102_v31  ;;  %v11167_v31 = vld [vmem:[%s16566_s1 + $0x404] ss:$100 sps:$4 sm:$0xff]  }
  0xee   : > { %7898 = vmatprep.subr.bf16.mxu0 %v11110_v32 }
  0xef   : > { %7938 = vmatpush2.bf16.msra.mxu1 %v11105_v33  ;;  %v11162_v33 = vld [vmem:[%s16566_s1 + $0x1cf8] ss:$100 sps:$4 sm:$0xff]  }
  0xf0   : > { %7939 = vmatprep.subr.bf16.mxu1 %v11113_v50 }
  0xf1   : > { %7899 = vmatpush2.bf16.msra.mxu0 %v11108_v36  ;;  %v11170_v36 = vld [vmem:[%s16566_s1 + $0x1c34] ss:$100 sps:$4 sm:$0xff]  }
  0xf2   : > { %7900 = vmatprep.subr.bf16.mxu0 %v11116_v37 }
  0xf3   : > { %7940 = vmatpush2.bf16.msra.mxu1 %v11111_v38  ;;  %v11165_v38 = vld [vmem:[%s16566_s1 + $0x400] ss:$100 sps:$4 sm:$0xff]  }
  0xf4   : > { %7941 = vmatprep.subr.bf16.mxu1 %v11119_v39  ;;  %v11173_v39 = vld [vmem:[%s16566_s1 + $0x33c] ss:$100 sps:$4 sm:$0xff]  }
  0xf5   : > { %7901 = vmatpush2.bf16.msra.mxu0 %v11114_v41 }
  0xf6   : > { %7902 = vmatprep.subr.bf16.mxu0 %v11122_v42  ;;  %v11168_v42 = vld [vmem:[%s16566_s1 + $0x1c30] ss:$100 sps:$4 sm:$0xff]  }
  0xf7   : > { %7942 = vmatpush2.bf16.msra.mxu1 %v11117_v43  ;;  %v11176_v43 = vld [vmem:[%s16566_s1 + $0x1b6c] ss:$100 sps:$4 sm:$0xff]  }
  0xf8   : > { %7943 = vmatprep.subr.bf16.mxu1 %v11125_v44  ;;  %v11171_v44 = vld [vmem:[%s16566_s1 + $0x338] ss:$100 sps:$4 sm:$0xff]  }
  0xf9   : > { %7903 = vmatpush2.bf16.msra.mxu0 %v11120_v47  ;;  %v11179_v47 = vld [vmem:[%s16566_s1 + $0x274] ss:$100 sps:$4 sm:$0xff]  }
  0xfa   : > { %7904 = vmatprep.subr.bf16.mxu0 %v11128_v48  ;;  %v11174_v48 = vld [vmem:[%s16566_s1 + $0x1b68] ss:$100 sps:$4 sm:$0xff]  }
  0xfb   : > { %7944 = vmatpush2.bf16.msra.mxu1 %v11123_v49  ;;  %v11182_v49 = vld [vmem:[%s16566_s1 + $0x1aa4] ss:$100 sps:$4 sm:$0xff]  }
  0xfc   : > { %7945 = vmatprep.subr.bf16.mxu1 %v11131_v51  ;;  %v11177_v51 = vld [vmem:[%s16566_s1 + $0x270] ss:$100 sps:$4 sm:$0xff]  }
  0xfd   : > { %7905 = vmatpush2.bf16.msra.mxu0 %v11126_v52  ;;  %v11185_v52 = vld [vmem:[%s16566_s1 + $0x1ac] ss:$100 sps:$4 sm:$0xff]  }
  0xfe   : > { %7906 = vmatprep.subr.bf16.mxu0 %v11134_v53  ;;  %v11180_v53 = vld [vmem:[%s16566_s1 + $0x1aa0] ss:$100 sps:$4 sm:$0xff]  }
  0xff   : > { %7946 = vmatpush2.bf16.msra.mxu1 %v11129_v54  ;;  %v11188_v54 = vld [vmem:[%s16566_s1 + $0x19dc] ss:$100 sps:$4 sm:$0xff]  }
 0x100   : > { %7947 = vmatprep.subr.bf16.mxu1 %v11137_v55  ;;  %v11183_v55 = vld [vmem:[%s16566_s1 + $0x1a8] ss:$100 sps:$4 sm:$0xff]  }
 0x101   : > { %7907 = vmatpush2.bf16.msra.mxu0 %v11132_v58  ;;  %v11191_v58 = vld [vmem:[%s16566_s1 + $0xe4] ss:$100 sps:$4 sm:$0xff]  }
 0x102   : > { %7908 = vmatprep.subr.bf16.mxu0 %v11140_v59  ;;  %v11186_v59 = vld [vmem:[%s16566_s1 + $0x19d8] ss:$100 sps:$4 sm:$0xff]  }
 0x103   : > { %7948 = vmatpush2.bf16.msra.mxu1 %v11135_v60  ;;  %v11194_v60 = vld [vmem:[%s16566_s1 + $0x1914] ss:$100 sps:$4 sm:$0xff]  }
 0x104   : > { %7949 = vmatprep.subr.bf16.mxu1 %v11143_v61  ;;  %v11189_v61 = vld [vmem:[%s16566_s1 + $0xe0] ss:$100 sps:$4 sm:$0xff]  }
 0x105   : > { %7909 = vmatpush2.bf16.msra.mxu0 %v11138_v62  ;;  %v11197_v62 = vld [vmem:[%s16566_s1 + $0x1c] ss:$100 sps:$4 sm:$0xff]  }
 0x106   : > { %7910 = vmatprep.subr.bf16.mxu0 %v11146_v63  ;;  %v11192_v63 = vld [vmem:[%s16566_s1 + $0x1910] ss:$100 sps:$4 sm:$0xff]  }
 0x107   : > { %7950 = vmatpush2.bf16.msra.mxu1 %v11141_v0  ;;  %v11200_v0 = vld [vmem:[%s16566_s1 + $0x24cc] ss:$100 sps:$4 sm:$0xff]  }
 0x108   : > { %7951 = vmatprep.subr.bf16.mxu1 %v11149_v1  ;;  %v11195_v1 = vld [vmem:[%s16566_s1 + $0x18] ss:$100 sps:$4 sm:$0xff]  }
 0x109   : > { %7911 = vmatpush2.bf16.msra.mxu0 %v11144_v2  ;;  %v11203_v2 = vld [vmem:[%s16566_s1 + $0xbd4] ss:$100 sps:$4 sm:$0xff]  }
 0x10a   : > { %7962 = vmatprep.subr.bf16.mxu0 %v11152_v6  ;;  %v11206_v6 = vld [vmem:[%s16566_s1 + $0x2404] ss:$100 sps:$4 sm:$0xff]  }
 0x10b   : > { %7952 = vmatpush2.bf16.msra.mxu1 %v11147_v8  ;;  %v11201_v8 = vld [vmem:[%s16566_s1 + $0xbd0] ss:$100 sps:$4 sm:$0xff]  }
 0x10c   : > { %v7668_v15 = vpop.f32.mrf.mxu0  ;;  %7913 = vmatmul.mubr.bf16.vlgmr.msra.gmra.mxu0 %v12823_v16  ;;  %8003 = vmatprep.subr.bf16.mxu1 %v11155_v9  ;;  %v11209_v9 = vld [vmem:[%s16566_s1 + $0xb0c] ss:$100 sps:$4 sm:$0xff]  }
 0x10d   : > { %v7669_v18 = vadd.f32 %v7668_v15, %v7512_v10  ;;  %7963 = vmatpush1.bf16.msra.mxu0 %v11150_v11  ;;  %7994 = vmatprep.mubr.bf16.mxu0 %v12831_v19  ;;  %v11204_v10 = vld [vmem:[%s16566_s1 + $0x2400] ss:$100 sps:$4 sm:$0xff]   ;;  %v11218_v15 = vld [vmem:[%s16566_s1 + $0x2274] ss:$100 sps:$4 sm:$0xff]  }
 0x10e   : > { %v7670_v22 = vpop.f32.mrf.mxu0  ;;  %v7709_v23 = vpop.f32.mrf.mxu1  ;;  %7954 = vmatmul.mubr.bf16.vlgmr.msra.gmra.mxu1 %v12833_v20  ;;  %7964 = vmatprep.subr.bf16.mxu0 %v11158_v12  ;;  %v11212_v11 = vld [vmem:[%s16566_s1 + $0x233c] ss:$100 sps:$4 sm:$0xff]   ;;  %v11207_v12 = vld [vmem:[%s16566_s1 + $0xb08] ss:$100 sps:$4 sm:$0xff]  }
 0x10f   : > { %v7671_v26 = vadd.f32 %v7670_v22, %v7516_v13  ;;  %v13453_v27 = vadd.f32 %v7709_v23, %v7669_v18  ;;  %8004 = vmatpush1.bf16.msra.mxu1 %v11153_v14  ;;  %8035 = vmatprep.mubr.bf16.mxu1 %v12754_v56  ;;  %v11215_v13 = vld [vmem:[%s16566_s1 + $0xa44] ss:$100 sps:$4 sm:$0xff]   ;;  %v11210_v14 = vld [vmem:[%s16566_s1 + $0x2338] ss:$100 sps:$4 sm:$0xff]   ;;  %v11224_v22 = vld [vmem:[%s16566_s1 + $0x21ac] ss:$100 sps:$4 sm:$0xff]  }
 0x110   : > { %v7672_v29 = vpop.f32.mrf.mxu0  ;;  %v7711_v30 = vpop.f32.mrf.mxu1  ;;  %8005 = vmatprep.subr.bf16.mxu1 %v11161_v17  ;;  %v11213_v17 = vld [vmem:[%s16566_s1 + $0xa40] ss:$100 sps:$4 sm:$0xff]   ;;  %v11219_v23 = vld [vmem:[%s16566_s1 + $0x978] ss:$100 sps:$4 sm:$0xff]  }
 0x111   : > { %v13462_v32 = vadd.f32 %v7711_v30, %v7671_v26  ;;  %7965 = vmatpush1.bf16.msra.mxu0 %v11156_v21  ;;  %v11221_v18 = vld [vmem:[%s16566_s1 + $0x97c] ss:$100 sps:$4 sm:$0xff]   ;;  %v11216_v21 = vld [vmem:[%s16566_s1 + $0x2270] ss:$100 sps:$4 sm:$0xff]   ;;  %v11222_v26 = vld [vmem:[%s16566_s1 + $0x21a8] ss:$100 sps:$4 sm:$0xff]  }
 0x112   : > { %v7673_v50 = vpop.f32.mrf.mxu0  ;;  %7966 = vmatprep.subr.bf16.mxu0 %v11164_v24  ;;  %v7713_v37 = vpop.f32.mrf.mxu1  ;;  %v11227_v24 = vld [vmem:[%s16566_s1 + $0x8b4] ss:$100 sps:$4 sm:$0xff]   ;;  %v11233_v30 = vld [vmem:[%s16566_s1 + $0x7ec] ss:$100 sps:$4 sm:$0xff]  }
 0x113   : > { %8006 = vmatpush1.bf16.msra.mxu1 %v11159_v28  ;;  %v11230_v28 = vld [vmem:[%s16566_s1 + $0x20e4] ss:$100 sps:$4 sm:$0xff]   ;;  %v11225_v29 = vld [vmem:[%s16566_s1 + $0x8b0] ss:$100 sps:$4 sm:$0xff]   ;;  %v11234_v37 = vld [vmem:[%s16566_s1 + $0x2018] ss:$100 sps:$4 sm:$0xff]  }
 0x114   : > { %8007 = vmatprep.subr.bf16.mxu1 %v11167_v31  ;;  %v7714_v41 = vpop.f32.mrf.mxu1  ;;  %v11228_v31 = vld [vmem:[%s16566_s1 + $0x20e0] ss:$100 sps:$4 sm:$0xff]   ;;  %v11231_v50 = vld [vmem:[%s16566_s1 + $0x7e8] ss:$100 sps:$4 sm:$0xff]  }
 0x115   : > { %7967 = vmatpush1.bf16.msra.mxu0 %v11162_v33  ;;  %v11236_v33 = vld [vmem:[%s16566_s1 + $0x201c] ss:$100 sps:$4 sm:$0xff]  }
 0x116   : > { %7968 = vmatprep.subr.bf16.mxu0 %v11170_v36  ;;  %v11239_v36 = vld [vmem:[%s16566_s1 + $0x724] ss:$100 sps:$4 sm:$0xff]   ;;  %v11245_v41 = vld [vmem:[%s16566_s1 + $0x65c] ss:$100 sps:$4 sm:$0xff]  }
 0x117   : > { %8008 = vmatpush1.bf16.msra.mxu1 %v11165_v38  ;;  %v11242_v38 = vld [vmem:[%s16566_s1 + $0x1f54] ss:$100 sps:$4 sm:$0xff]  }
 0x118   : > { %8009 = vmatprep.subr.bf16.mxu1 %v11173_v39  ;;  %v11237_v39 = vld [vmem:[%s16566_s1 + $0x720] ss:$100 sps:$4 sm:$0xff]  }
 0x119   : > { %7969 = vmatpush1.bf16.msra.mxu0 %v11168_v42  ;;  %v11240_v42 = vld [vmem:[%s16566_s1 + $0x1f50] ss:$100 sps:$4 sm:$0xff]  }
 0x11a   : > { %7970 = vmatprep.subr.bf16.mxu0 %v11176_v43  ;;  %v11248_v43 = vld [vmem:[%s16566_s1 + $0x1214] ss:$100 sps:$4 sm:$0xff]  }
 0x11b   : > { %8010 = vmatpush1.bf16.msra.mxu1 %v11171_v44  ;;  %v11243_v44 = vld [vmem:[%s16566_s1 + $0x658] ss:$100 sps:$4 sm:$0xff]  }
 0x11c   : > { %8011 = vmatprep.subr.bf16.mxu1 %v11179_v47  ;;  %v11251_v47 = vld [vmem:[%s16566_s1 + $0x1e94] ss:$100 sps:$4 sm:$0xff]  }
 0x11d   : > { %7971 = vmatpush1.bf16.msra.mxu0 %v11174_v48  ;;  %v11246_v48 = vld [vmem:[%s16566_s1 + $0x1210] ss:$100 sps:$4 sm:$0xff]  }
 0x11e   : > { %7972 = vmatprep.subr.bf16.mxu0 %v11182_v49  ;;  %v11254_v49 = vld [vmem:[%s16566_s1 + $0x114c] ss:$100 sps:$4 sm:$0xff]  }
 0x11f   : > { %8012 = vmatpush1.bf16.msra.mxu1 %v11177_v51  ;;  %v11249_v51 = vld [vmem:[%s16566_s1 + $0x1e90] ss:$100 sps:$4 sm:$0xff]  }
 0x120   : > { %8013 = vmatprep.subr.bf16.mxu1 %v11185_v52 }
 0x121   : > { %7973 = vmatpush1.bf16.msra.mxu0 %v11180_v53  ;;  %v11257_v53 = vld [vmem:[%s16566_s1 + $0x1dcc] ss:$100 sps:$4 sm:$0xff]  }
 0x122   : > { %7974 = vmatprep.subr.bf16.mxu0 %v11188_v54 }
 0x123   : > { %8014 = vmatpush1.bf16.msra.mxu1 %v11183_v55  ;;  %v11252_v55 = vld [vmem:[%s16566_s1 + $0x1148] ss:$100 sps:$4 sm:$0xff]  }
 0x124   : > { %8015 = vmatprep.subr.bf16.mxu1 %v11191_v58 }
 0x125   : > { %7975 = vmatpush1.bf16.msra.mxu0 %v11186_v59  ;;  %v11260_v59 = vld [vmem:[%s16566_s1 + $0x1084] ss:$100 sps:$4 sm:$0xff]  }
 0x126   : > { %7976 = vmatprep.subr.bf16.mxu0 %v11194_v60 }
 0x127   : > { %8016 = vmatpush1.bf16.msra.mxu1 %v11189_v61  ;;  %v11255_v61 = vld [vmem:[%s16566_s1 + $0x1dc8] ss:$100 sps:$4 sm:$0xff]  }
 0x128   : > { %8017 = vmatprep.subr.bf16.mxu1 %v11197_v62 }
 0x129   : > { %7977 = vmatpush1.bf16.msra.mxu0 %v11192_v63  ;;  %v11263_v63 = vld [vmem:[%s16566_s1 + $0x1d04] ss:$100 sps:$4 sm:$0xff]  }
 0x12a   : > { %7978 = vmatprep.subr.bf16.mxu0 %v11200_v0 }
 0x12b   : > { %8018 = vmatpush1.bf16.msra.mxu1 %v11195_v1 }
 0x12c   : > { %8019 = vmatprep.subr.bf16.mxu1 %v11203_v2 }
 0x12d   : > { %7979 = vmatpush2.bf16.msra.mxu0 %v11198_v4  ;;  %v11266_v4 = vld [vmem:[%s16566_s1 + $0xfbc] ss:$100 sps:$4 sm:$0xff]  }
 0x12e   : > { %7980 = vmatprep.subr.bf16.mxu0 %v11206_v6 }
 0x12f   : > { %8020 = vmatpush2.bf16.msra.mxu1 %v11201_v8  ;;  %v11261_v8 = vld [vmem:[%s16566_s1 + $0x1d00] ss:$100 sps:$4 sm:$0xff]  }
 0x130   : > { %8021 = vmatprep.subr.bf16.mxu1 %v11209_v9  ;;  %v11269_v9 = vld [vmem:[%s16566_s1 + $0x1c3c] ss:$100 sps:$4 sm:$0xff]  }
 0x131   : > { %7981 = vmatpush2.bf16.msra.mxu0 %v11204_v10 }
 0x132   : > { %7982 = vmatprep.subr.bf16.mxu0 %v11212_v11  ;;  %v11264_v11 = vld [vmem:[%s16566_s1 + $0xfb8] ss:$100 sps:$4 sm:$0xff]  }
 0x133   : > { %8022 = vmatpush2.bf16.msra.mxu1 %v11207_v12  ;;  %v11272_v12 = vld [vmem:[%s16566_s1 + $0xef4] ss:$100 sps:$4 sm:$0xff]  }
 0x134   : > { %8023 = vmatprep.subr.bf16.mxu1 %v11215_v13  ;;  %v11267_v13 = vld [vmem:[%s16566_s1 + $0x1c38] ss:$100 sps:$4 sm:$0xff]  }
 0x135   : > { %7983 = vmatpush2.bf16.msra.mxu0 %v11210_v14  ;;  %v11275_v14 = vld [vmem:[%s16566_s1 + $0x1b74] ss:$100 sps:$4 sm:$0xff]  }
 0x136   : > { %7984 = vmatprep.subr.bf16.mxu0 %v11218_v15  ;;  %v11270_v15 = vld [vmem:[%s16566_s1 + $0xef0] ss:$100 sps:$4 sm:$0xff]  }
 0x137   : > { %8024 = vmatpush2.bf16.msra.mxu1 %v11213_v17  ;;  %v11278_v17 = vld [vmem:[%s16566_s1 + $0xe2c] ss:$100 sps:$4 sm:$0xff]  }
 0x138   : > { %8025 = vmatprep.subr.bf16.mxu1 %v11221_v18  ;;  %v11273_v18 = vld [vmem:[%s16566_s1 + $0x1b70] ss:$100 sps:$4 sm:$0xff]  }
 0x139   : > { %7985 = vmatpush2.bf16.msra.mxu0 %v11216_v21  ;;  %v11281_v21 = vld [vmem:[%s16566_s1 + $0x1aac] ss:$100 sps:$4 sm:$0xff]  }
 0x13a   : > { %7986 = vmatprep.subr.bf16.mxu0 %v11224_v22  ;;  %v11276_v22 = vld [vmem:[%s16566_s1 + $0xe28] ss:$100 sps:$4 sm:$0xff]  }
 0x13b   : > { %8026 = vmatpush2.bf16.msra.mxu1 %v11219_v23  ;;  %v11284_v23 = vld [vmem:[%s16566_s1 + $0xd64] ss:$100 sps:$4 sm:$0xff]  }
 0x13c   : > { %8027 = vmatprep.subr.bf16.mxu1 %v11227_v24  ;;  %v11279_v24 = vld [vmem:[%s16566_s1 + $0x1aa8] ss:$100 sps:$4 sm:$0xff]  }
 0x13d   : > { %7987 = vmatpush2.bf16.msra.mxu0 %v11222_v26  ;;  %v11287_v26 = vld [vmem:[%s16566_s1 + $0x19e4] ss:$100 sps:$4 sm:$0xff]  }
 0x13e   : > { %7988 = vmatprep.subr.bf16.mxu0 %v11230_v28  ;;  %v11282_v28 = vld [vmem:[%s16566_s1 + $0xd60] ss:$100 sps:$4 sm:$0xff]  }
 0x13f   : > { %8028 = vmatpush2.bf16.msra.mxu1 %v11225_v29  ;;  %v11290_v29 = vld [vmem:[%s16566_s1 + $0xc9c] ss:$100 sps:$4 sm:$0xff]  }
 0x140   : > { %8029 = vmatprep.subr.bf16.mxu1 %v11233_v30  ;;  %v11285_v30 = vld [vmem:[%s16566_s1 + $0x19e0] ss:$100 sps:$4 sm:$0xff]  }
 0x141   : > { %7989 = vmatpush2.bf16.msra.mxu0 %v11228_v31  ;;  %v11293_v31 = vld [vmem:[%s16566_s1 + $0x191c] ss:$100 sps:$4 sm:$0xff]  }
 0x142   : > { %7990 = vmatprep.subr.bf16.mxu0 %v11236_v33  ;;  %v11288_v33 = vld [vmem:[%s16566_s1 + $0xc98] ss:$100 sps:$4 sm:$0xff]  }
 0x143   : > { %8030 = vmatpush2.bf16.msra.mxu1 %v11231_v50  ;;  %v11296_v50 = vld [vmem:[%s16566_s1 + $0x1854] ss:$100 sps:$4 sm:$0xff]  }
 0x144   : > { %8031 = vmatprep.subr.bf16.mxu1 %v11239_v36  ;;  %v11291_v36 = vld [vmem:[%s16566_s1 + $0x1918] ss:$100 sps:$4 sm:$0xff]  }
 0x145   : > { %7991 = vmatpush2.bf16.msra.mxu0 %v11234_v37  ;;  %v11299_v37 = vld [vmem:[%s16566_s1 + $0x24d4] ss:$100 sps:$4 sm:$0xff]  }
 0x146   : > { %7992 = vmatprep.subr.bf16.mxu0 %v11242_v38  ;;  %v11294_v38 = vld [vmem:[%s16566_s1 + $0x1850] ss:$100 sps:$4 sm:$0xff]  }
 0x147   : > { %8032 = vmatpush2.bf16.msra.mxu1 %v11237_v39  ;;  %v11302_v39 = vld [vmem:[%s16566_s1 + $0x178c] ss:$100 sps:$4 sm:$0xff]  }
 0x148   : > { %8033 = vmatprep.subr.bf16.mxu1 %v11245_v41  ;;  %v11297_v41 = vld [vmem:[%s16566_s1 + $0x24d0] ss:$100 sps:$4 sm:$0xff]  }
 0x149   : > { %7993 = vmatpush2.bf16.msra.mxu0 %v11240_v42  ;;  %v11305_v42 = vld [vmem:[%s16566_s1 + $0x240c] ss:$100 sps:$4 sm:$0xff]  }
 0x14a   : > { %8044 = vmatprep.subr.bf16.mxu0 %v11248_v43  ;;  %v11300_v43 = vld [vmem:[%s16566_s1 + $0x1788] ss:$100 sps:$4 sm:$0xff]  }
 0x14b   : > { %8034 = vmatpush2.bf16.msra.mxu1 %v11243_v44  ;;  %v11308_v44 = vld [vmem:[%s16566_s1 + $0x16c4] ss:$100 sps:$4 sm:$0xff]  }
 0x14c   : > { %v7750_v52 = vpop.f32.mrf.mxu0  ;;  %7995 = vmatmul.mubr.bf16.vlgmr.msra.gmra.mxu0 %v13030_v34  ;;  %8085 = vmatprep.subr.bf16.mxu1 %v11251_v47  ;;  %v11303_v47 = vld [vmem:[%s16566_s1 + $0x2408] ss:$100 sps:$4 sm:$0xff]  }
 0x14d   : > { %v13646_v54 = vadd.f32 %v7750_v52, %v13453_v27  ;;  %8045 = vmatpush1.bf16.msra.mxu0 %v11246_v48  ;;  %8076 = vmatprep.mubr.bf16.mxu0 %v12756_v57  ;;  %v11311_v48 = vld [vmem:[%s16566_s1 + $0x2344] ss:$100 sps:$4 sm:$0xff]  }
 0x14e   : > { %v7752_v58 = vpop.f32.mrf.mxu0  ;;  %8036 = vmatmul.mubr.bf16.vlgmr.msra.gmra.mxu1 %v12823_v16  ;;  %8046 = vmatprep.subr.bf16.mxu0 %v11254_v49  ;;  %v13656_v60 = vpop.f32.mrf.mxu1  ;;  %v11306_v49 = vld [vmem:[%s16566_s1 + $0x16c0] ss:$100 sps:$4 sm:$0xff]  }
 0x14f   : > { %v13659_v27 = vadd.f32 %v7752_v58, %v13462_v32  ;;  %8086 = vmatpush1.bf16.msra.mxu1 %v11249_v51  ;;  %8117 = vmatprep.mubr.bf16.mxu1 %v12831_v19  ;;  %v11258_v32 = vld [vmem:[%s16566_s1 + $0x1080] ss:$100 sps:$4 sm:$0xff]   ;;  %v11320_v58 = vld [vmem:[%s16566_s1 + $0x1534] ss:$100 sps:$4 sm:$0xff]  }
 0x150   : > { %v7754_v62 = vpop.f32.mrf.mxu0  ;;  %8087 = vmatprep.subr.bf16.mxu1 %v11257_v53  ;;  %v13668_v0 = vpop.f32.mrf.mxu1  ;;  %v11314_v51 = vld [vmem:[%s16566_s1 + $0x15fc] ss:$100 sps:$4 sm:$0xff]  }
 0x151   : > { %v9255_v1 = vcombine.low %v13646_v54, %v13659_v27  ;;  %8047 = vmatpush1.bf16.msra.mxu0 %v11252_v55  ;;  %v11309_v52 = vld [vmem:[%s16566_s1 + $0x2340] ss:$100 sps:$4 sm:$0xff]   ;;  %v11312_v55 = vld [vmem:[%s16566_s1 + $0x15f8] ss:$100 sps:$4 sm:$0xff]   ;;  %v11318_v62 = vld [vmem:[%s16566_s1 + $0x1530] ss:$100 sps:$4 sm:$0xff]  }
 0x152   : > { %v7755_v2 = vpop.f32.mrf.mxu0  ;;  %8048 = vmatprep.subr.bf16.mxu0 %v11260_v59  ;;  %v7795_v6 = vpop.f32.mrf.mxu1  ;;  %v11317_v53 = vld [vmem:[%s16566_s1 + $0x227c] ss:$100 sps:$4 sm:$0xff]  }
 0x153   : > { %8088 = vmatpush1.bf16.msra.mxu1 %v11255_v61  ;;  %v11315_v59 = vld [vmem:[%s16566_s1 + $0x2278] ss:$100 sps:$4 sm:$0xff]   ;;  %v11329_v2 = vld [vmem:[%s16566_s1 + $0x20ec] ss:$100 sps:$4 sm:$0xff]   ;;  %v11332_v6 = vld [vmem:[%s16566_s1 + $0x13a4] ss:$100 sps:$4 sm:$0xff]  }
 0x154   : > { %8089 = vmatprep.subr.bf16.mxu1 %v11263_v63  ;;  %v7796_v10 = vpop.f32.mrf.mxu1  ;;  %v11323_v61 = vld [vmem:[%s16566_s1 + $0x21b4] ss:$100 sps:$4 sm:$0xff]   ;;  %v11326_v63 = vld [vmem:[%s16566_s1 + $0x146c] ss:$100 sps:$4 sm:$0xff]   ;;  %v11363_v54 = vld [vmem:[%s16566_s1 + $0xfc0] ss:$100 sps:$4 sm:$0xff]  }
 0x155   : > { %8049 = vmatpush1.bf16.msra.mxu0 %v11258_v32  ;;  %v11321_v32 = vld [vmem:[%s16566_s1 + $0x21b0] ss:$100 sps:$4 sm:$0xff]   ;;  %v11330_v10 = vld [vmem:[%s16566_s1 + $0x13a0] ss:$100 sps:$4 sm:$0xff]  }
 0x156   : > { %8050 = vmatprep.subr.bf16.mxu0 %v11266_v4  ;;  %v11324_v4 = vld [vmem:[%s16566_s1 + $0x1468] ss:$100 sps:$4 sm:$0xff]   ;;  %v11371_v27 = vld [vmem:[%s16566_s1 + $0xefc] ss:$100 sps:$4 sm:$0xff]  }
 0x157   : > { %8090 = vmatpush1.bf16.msra.mxu1 %v11261_v8  ;;  %v11327_v8 = vld [vmem:[%s16566_s1 + $0x20e8] ss:$100 sps:$4 sm:$0xff]  }
 0x158   : > { %8091 = vmatprep.subr.bf16.mxu1 %v11269_v9  ;;  %v11335_v9 = vld [vmem:[%s16566_s1 + $0x2024] ss:$100 sps:$4 sm:$0xff]  }
 0x159   : > { %8051 = vmatpush1.bf16.msra.mxu0 %v11264_v11  ;;  %v11338_v11 = vld [vmem:[%s16566_s1 + $0x12dc] ss:$100 sps:$4 sm:$0xff]  }
 0x15a   : > { %8052 = vmatprep.subr.bf16.mxu0 %v11272_v12  ;;  %v11333_v12 = vld [vmem:[%s16566_s1 + $0x2020] ss:$100 sps:$4 sm:$0xff]  }
 0x15b   : > { %8092 = vmatpush1.bf16.msra.mxu1 %v11267_v13  ;;  %v11341_v13 = vld [vmem:[%s16566_s1 + $0x1f5c] ss:$100 sps:$4 sm:$0xff]  }
 0x15c   : > { %8093 = vmatprep.subr.bf16.mxu1 %v11275_v14  ;;  %v11336_v14 = vld [vmem:[%s16566_s1 + $0x12d8] ss:$100 sps:$4 sm:$0xff]  }
 0x15d   : > { %8053 = vmatpush1.bf16.msra.mxu0 %v11270_v15  ;;  %v11344_v15 = vld [vmem:[%s16566_s1 + $0x59c] ss:$100 sps:$4 sm:$0xff]  }
 0x15e   : > { %8054 = vmatprep.subr.bf16.mxu0 %v11278_v17  ;;  %v13837_v17 = vld [vmem:[%s16567_s2] sm:$0xff] }
 0x15f   : > { %8094 = vmatpush1.bf16.msra.mxu1 %v11273_v18  ;;  %v7520_v18 = vrot.slane %v13837_v17, %v12800_v7 }
 0x160   : > { %8095 = vmatprep.subr.bf16.mxu1 %v11281_v21  ;;  %v11339_v21 = vld [vmem:[%s16566_s1 + $0x1f58] ss:$100 sps:$4 sm:$0xff]  }
 0x161   : > { %8055 = vmatpush1.bf16.msra.mxu0 %v11276_v22  ;;  %v11347_v22 = vld [vmem:[%s16566_s1 + $0x121c] ss:$100 sps:$4 sm:$0xff]  }
 0x162   : > { %8056 = vmatprep.subr.bf16.mxu0 %v11284_v23  ;;  %v12553_v23 = vmov 1966171168  }
 0x163   : > { %8096 = vmatpush1.bf16.msra.mxu1 %v11279_v24  ;;  %v9260_v24 = vunpack.c.l.s4 %v12553_v23  ;;  %v11381_v23 = vld [vmem:[%s16566_s1 + $0xd68] ss:$100 sps:$4 sm:$0xff]  }
 0x164   : > { %8097 = vmatprep.subr.bf16.mxu1 %v11287_v26  ;;  %v7524_v26 = vrot.slane %v13837_v17, %v12728_v46 }
 0x165   : > { %8057 = vmatpush1.bf16.msra.mxu0 %v11282_v28  ;;  %v11342_v28 = vld [vmem:[%s16566_s1 + $0x598] ss:$100 sps:$4 sm:$0xff]  }
 0x166   : > { %8058 = vmatprep.subr.bf16.mxu0 %v11290_v29  ;;  %v11350_v29 = vld [vmem:[%s16566_s1 + $0x4d4] ss:$100 sps:$4 sm:$0xff]  }
 0x167   : > { %8098 = vmatpush1.bf16.msra.mxu1 %v11285_v30  ;;  %v7792_v30 = vadd.f32 %v13656_v60, %v7520_v18  ;;  %v11348_v60 = vld [vmem:[%s16566_s1 + $0x4d0] ss:$100 sps:$4 sm:$0xff]  }
 0x168   : > { %8099 = vmatprep.subr.bf16.mxu1 %v11293_v31  ;;  %v11345_v31 = vld [vmem:[%s16566_s1 + $0x1218] ss:$100 sps:$4 sm:$0xff]   ;;  %v11383_v18 = vld [vmem:[%s16566_s1 + $0xd6c] ss:$100 sps:$4 sm:$0xff]  }
 0x169   : > { %8059 = vmatpush1.bf16.msra.mxu0 %v11288_v33 }
 0x16a   : > { %8060 = vmatprep.subr.bf16.mxu0 %v11296_v50  ;;  %v11353_v50 = vld [vmem:[%s16566_s1 + $0x1154] ss:$100 sps:$4 sm:$0xff]  }
 0x16b   : > { %8100 = vmatpush1.bf16.msra.mxu1 %v11291_v36  ;;  %v9261_v36 = vunpack.c.0.s8 %v9260_v24  ;;  %v11389_v24 = vld [vmem:[%s16566_s1 + $0xca4] ss:$100 sps:$4 sm:$0xff]  }
 0x16c   : > { %8101 = vmatprep.subr.bf16.mxu1 %v11299_v37  ;;  %v7794_v37 = vadd.f32 %v13668_v0, %v7524_v26  ;;  %v11351_v0 = vld [vmem:[%s16566_s1 + $0x1150] ss:$100 sps:$4 sm:$0xff]   ;;  %v11384_v26 = vld [vmem:[%s16566_s1 + $0x20] ss:$100 sps:$4 sm:$0xff]  }
 0x16d   : > { %8061 = vmatpush2.bf16.msra.mxu0 %v11294_v38 }
 0x16e   : > { %8062 = vmatprep.subr.bf16.mxu0 %v11302_v39 }
 0x16f   : > { %8102 = vmatpush2.bf16.msra.mxu1 %v11297_v41 }
 0x170   : > { %8103 = vmatprep.subr.bf16.mxu1 %v11305_v42  ;;  %v11356_v42 = vld [vmem:[%s16566_s1 + $0x40c] ss:$100 sps:$4 sm:$0xff]  }
 0x171   : > { %8063 = vmatpush2.bf16.msra.mxu0 %v11300_v43 }
 0x172   : > { %8064 = vmatprep.subr.bf16.mxu0 %v11308_v44 }
 0x173   : > { %8104 = vmatpush2.bf16.msra.mxu1 %v11303_v47 }
 0x174   : > { %8105 = vmatprep.subr.bf16.mxu1 %v11311_v48 }
 0x175   : > { %8065 = vmatpush2.bf16.msra.mxu0 %v11306_v49  ;;  %v11359_v49 = vld [vmem:[%s16566_s1 + $0x108c] ss:$100 sps:$4 sm:$0xff]  }
 0x176   : > { %8066 = vmatprep.subr.bf16.mxu0 %v11314_v51  ;;  %v13880_v51 = vsub.s32 %v9261_v36, %v12707_v40  ;;  %v11401_v36 = vld [vmem:[%s16566_s1 + $0x1794] ss:$100 sps:$4 sm:$0xff]  }
 0x177   : > { %8106 = vmatpush2.bf16.msra.mxu1 %v11309_v52 }
 0x178   : > { %8107 = vmatprep.subr.bf16.mxu1 %v11317_v53  ;;  %v11354_v53 = vld [vmem:[%s16566_s1 + $0x408] ss:$100 sps:$4 sm:$0xff]  }
 0x179   : > { %8067 = vmatpush2.bf16.msra.mxu0 %v11312_v55 }
 0x17a   : > { %8068 = vmatprep.subr.bf16.mxu0 %v11320_v58  ;;  %v11362_v58 = vld [vmem:[%s16566_s1 + $0x344] ss:$100 sps:$4 sm:$0xff]  }
 0x17b   : > { %8108 = vmatpush2.bf16.msra.mxu1 %v11315_v59 }
 0x17c   : > { %8109 = vmatprep.subr.bf16.mxu1 %v11323_v61 }
 0x17d   : > { %8069 = vmatpush2.bf16.msra.mxu0 %v11318_v62  ;;  %v11357_v62 = vld [vmem:[%s16566_s1 + $0x1088] ss:$100 sps:$4 sm:$0xff]  }
 0x17e   : > { %8070 = vmatprep.subr.bf16.mxu0 %v11326_v63  ;;  %v11365_v63 = vld [vmem:[%s16566_s1 + $0xfc4] ss:$100 sps:$4 sm:$0xff]  }
 0x17f   : > { %8110 = vmatpush2.bf16.msra.mxu1 %v11321_v32 }
 0x180   : > { %8111 = vmatprep.subr.bf16.mxu1 %v11329_v2  ;;  %v13898_v2 = vrot.slane %v9255_v1, %v13880_v51  ;;  %v11366_v1 = vld [vmem:[%s16566_s1 + $0x278] ss:$100 sps:$4 sm:$0xff]  }
 0x181   : > { %8071 = vmatpush2.bf16.msra.mxu0 %v11324_v4 }
 0x182   : > { %8072 = vmatprep.subr.bf16.mxu0 %v11332_v6  ;;  %v11360_v6 = vld [vmem:[%s16566_s1 + $0x340] ss:$100 sps:$4 sm:$0xff]  }
 0x183   : > { %8112 = vmatpush2.bf16.msra.mxu1 %v11327_v8  ;;  %v11368_v8 = vld [vmem:[%s16566_s1 + $0x27c] ss:$100 sps:$4 sm:$0xff]  }
 0x184   : > { %8113 = vmatprep.subr.bf16.mxu1 %v11335_v9 }
 0x185   : > { %8073 = vmatpush2.bf16.msra.mxu0 %v11330_v10  ;;  %v11374_v10 = vld [vmem:[%s16566_s1 + $0x1b4] ss:$100 sps:$4 sm:$0xff]  }
 0x186   : > { %8074 = vmatprep.subr.bf16.mxu0 %v11338_v11  ;;  %v11369_v11 = vld [vmem:[%s16566_s1 + $0xef8] ss:$100 sps:$4 sm:$0xff]  }
 0x187   : > { %8114 = vmatpush2.bf16.msra.mxu1 %v11333_v12  ;;  %v11377_v12 = vld [vmem:[%s16566_s1 + $0xe34] ss:$100 sps:$4 sm:$0xff]  }
 0x188   : > { %8115 = vmatprep.subr.bf16.mxu1 %v11341_v13  ;;  %v11372_v13 = vld [vmem:[%s16566_s1 + $0x1b0] ss:$100 sps:$4 sm:$0xff]  }
 0x189   : > { %8075 = vmatpush2.bf16.msra.mxu0 %v11336_v14  ;;  %v11380_v14 = vld [vmem:[%s16566_s1 + $0xec] ss:$100 sps:$4 sm:$0xff]  }
 0x18a   : > { %8126 = vmatprep.subr.bf16.mxu0 %v11344_v15  ;;  %v11375_v15 = vld [vmem:[%s16566_s1 + $0xe30] ss:$100 sps:$4 sm:$0xff]  }
 0x18b   : > { %8116 = vmatpush2.bf16.msra.mxu1 %v11339_v21  ;;  %v11378_v21 = vld [vmem:[%s16566_s1 + $0xe8] ss:$100 sps:$4 sm:$0xff]  }
 0x18c   : > { %v7832_v33 = vpop.f32.mrf.mxu0  ;;  %8077 = vmatmul.mubr.bf16.vlgmr.msra.gmra.mxu0 %v12833_v20  ;;  %8167 = vmatprep.subr.bf16.mxu1 %v11347_v22  ;;  %v11386_v22 = vld [vmem:[%s16566_s1 + $0x24] ss:$100 sps:$4 sm:$0xff]  }
 0x18d   : > { %v7833_v38 = vadd.f32 %v7832_v33, %v7792_v30  ;;  %8127 = vmatpush1.bf16.msra.mxu0 %v11342_v28  ;;  %8158 = vmatprep.mubr.bf16.mxu0 %v12754_v56  ;;  %v11392_v28 = vld [vmem:[%s16566_s1 + $0xbdc] ss:$100 sps:$4 sm:$0xff]   ;;  %v11398_v33 = vld [vmem:[%s16566_s1 + $0xb14] ss:$100 sps:$4 sm:$0xff]  }
 0x18e   : > { %v7834_v39 = vpop.f32.mrf.mxu0  ;;  %v7873_v41 = vpop.f32.mrf.mxu1  ;;  %8118 = vmatmul.mubr.bf16.vlgmr.msra.gmra.mxu1 %v13030_v34  ;;  %8128 = vmatprep.subr.bf16.mxu0 %v11350_v29  ;;  %v11387_v29 = vld [vmem:[%s16566_s1 + $0xca0] ss:$100 sps:$4 sm:$0xff]  }
 0x18f   : > { %v7835_v43 = vadd.f32 %v7834_v39, %v7794_v37  ;;  %v7874_v44 = vadd.f32 %v7873_v41, %v7833_v38  ;;  %8168 = vmatpush1.bf16.msra.mxu1 %v11345_v31  ;;  %8199 = vmatprep.mubr.bf16.mxu1 %v12756_v57  ;;  %v11395_v30 = vld [vmem:[%s16566_s1 + $0x185c] ss:$100 sps:$4 sm:$0xff]   ;;  %v11396_v37 = vld [vmem:[%s16566_s1 + $0xb10] ss:$100 sps:$4 sm:$0xff]   ;;  %v11402_v41 = vld [vmem:[%s16566_s1 + $0xa48] ss:$100 sps:$4 sm:$0xff]  }
 0x190   : > { %v7836_v47 = vpop.f32.mrf.mxu0  ;;  %v7875_v48 = vpop.f32.mrf.mxu1  ;;  %8169 = vmatprep.subr.bf16.mxu1 %v11353_v50  ;;  %v11390_v31 = vld [vmem:[%s16566_s1 + $0xbd8] ss:$100 sps:$4 sm:$0xff]   ;;  %v11404_v38 = vld [vmem:[%s16566_s1 + $0xa4c] ss:$100 sps:$4 sm:$0xff]  }
 0x191   : > { %v7876_v52 = vadd.f32 %v7875_v48, %v7835_v43  ;;  %8129 = vmatpush1.bf16.msra.mxu0 %v11348_v60  ;;  %v11393_v50 = vld [vmem:[%s16566_s1 + $0x1858] ss:$100 sps:$4 sm:$0xff]   ;;  %v11399_v60 = vld [vmem:[%s16566_s1 + $0x1790] ss:$100 sps:$4 sm:$0xff]   ;;  %v11405_v43 = vld [vmem:[%s16566_s1 + $0x16c8] ss:$100 sps:$4 sm:$0xff]  }
 0x192   : > { %v7837_v55 = vpop.f32.mrf.mxu0  ;;  %8130 = vmatprep.subr.bf16.mxu0 %v11356_v42  ;;  %v7877_v59 = vpop.f32.mrf.mxu1  ;;  %v11407_v39 = vld [vmem:[%s16566_s1 + $0x16cc] ss:$100 sps:$4 sm:$0xff]   ;;  %v11410_v42 = vld [vmem:[%s16566_s1 + $0x984] ss:$100 sps:$4 sm:$0xff]   ;;  %v11416_v47 = vld [vmem:[%s16566_s1 + $0x8bc] ss:$100 sps:$4 sm:$0xff]  }
 0x193   : > { %v9256_v61 = vcombine.low %v7874_v44, %v7876_v52  ;;  %8170 = vmatpush1.bf16.msra.mxu1 %v11351_v0  ;;  %v11413_v44 = vld [vmem:[%s16566_s1 + $0x1604] ss:$100 sps:$4 sm:$0xff]   ;;  %v11414_v52 = vld [vmem:[%s16566_s1 + $0x8b8] ss:$100 sps:$4 sm:$0xff]   ;;  %v11420_v59 = vld [vmem:[%s16566_s1 + $0x7f0] ss:$100 sps:$4 sm:$0xff]  }
 0x194   : > { %8171 = vmatprep.subr.bf16.mxu1 %v11359_v49  ;;  %v7878_v32 = vpop.f32.mrf.mxu1  ;;  %v11408_v0 = vld [vmem:[%s16566_s1 + $0x980] ss:$100 sps:$4 sm:$0xff]   ;;  %v11417_v55 = vld [vmem:[%s16566_s1 + $0x1538] ss:$100 sps:$4 sm:$0xff]  }
 0x195   : > { %v13901_v4 = vrot.slane %v9256_v61, %v13880_v51  ;;  %8131 = vmatpush1.bf16.msra.mxu0 %v11354_v53  ;;  %v11411_v48 = vld [vmem:[%s16566_s1 + $0x1600] ss:$100 sps:$4 sm:$0xff]   ;;  %v11422_v53 = vld [vmem:[%s16566_s1 + $0x7f4] ss:$100 sps:$4 sm:$0xff]   ;;  %v11428_v61 = vld [vmem:[%s16566_s1 + $0x72c] ss:$100 sps:$4 sm:$0xff]  }
 0x196   : > { %8132 = vmatprep.subr.bf16.mxu0 %v11362_v58  ;;  %v11419_v49 = vld [vmem:[%s16566_s1 + $0x153c] ss:$100 sps:$4 sm:$0xff]   ;;  %v11425_v58 = vld [vmem:[%s16566_s1 + $0x1474] ss:$100 sps:$4 sm:$0xff]   ;;  %v11426_v32 = vld [vmem:[%s16566_s1 + $0x728] ss:$100 sps:$4 sm:$0xff]  }
 0x197   : > { %v9287_v9 = vcombine.low %v13898_v2, %v13901_v4  ;;  %8172 = vmatpush1.bf16.msra.mxu1 %v11357_v62  ;;  %v11423_v62 = vld [vmem:[%s16566_s1 + $0x1470] ss:$100 sps:$4 sm:$0xff]   ;;  %v11660_v4 = vld [vmem:[%s16566_s1 + $0x1c0] ss:$100 sps:$4 sm:$0xff]  }
 0x198   : > { %8173 = vmatprep.subr.bf16.mxu1 %v11365_v63  ;;  %v11431_v63 = vld [vmem:[%s16566_s1 + $0x13ac] ss:$100 sps:$4 sm:$0xff]  }
 0x199   : > { %8133 = vmatpush1.bf16.msra.mxu0 %v11360_v6  ;;  %v11434_v6 = vld [vmem:[%s16566_s1 + $0x664] ss:$100 sps:$4 sm:$0xff]  }
 0x19a   : > { %8134 = vmatprep.subr.bf16.mxu0 %v11368_v8  ;;  %v11429_v8 = vld [vmem:[%s16566_s1 + $0x13a8] ss:$100 sps:$4 sm:$0xff]  }
 0x19b   : > { %8174 = vmatpush1.bf16.msra.mxu1 %v11363_v54  ;;  %v11437_v54 = vld [vmem:[%s16566_s1 + $0x12e4] ss:$100 sps:$4 sm:$0xff]  }
 0x19c   : > { %8175 = vmatprep.subr.bf16.mxu1 %v11371_v27  ;;  %v11432_v27 = vld [vmem:[%s16566_s1 + $0x660] ss:$100 sps:$4 sm:$0xff]  }
 0x19d   : > { %8135 = vmatpush1.bf16.msra.mxu0 %v11366_v1  ;;  %v11440_v1 = vld [vmem:[%s16566_s1 + $0x1e9c] ss:$100 sps:$4 sm:$0xff]  }
 0x19e   : > { %8136 = vmatprep.subr.bf16.mxu0 %v11374_v10  ;;  %v11435_v10 = vld [vmem:[%s16566_s1 + $0x12e0] ss:$100 sps:$4 sm:$0xff]  }
 0x19f   : > { %8176 = vmatpush1.bf16.msra.mxu1 %v11369_v11  ;;  %v11443_v11 = vld [vmem:[%s16566_s1 + $0x5a4] ss:$100 sps:$4 sm:$0xff]  }
 0x1a0   : > { %8177 = vmatprep.subr.bf16.mxu1 %v11377_v12  ;;  %v7528_v12 = vrot.slane %v13837_v17, %v13005_v25 }
 0x1a1   : > { %8137 = vmatpush1.bf16.msra.mxu0 %v11372_v13  ;;  %v11438_v13 = vld [vmem:[%s16566_s1 + $0x1e98] ss:$100 sps:$4 sm:$0xff]  }
 0x1a2   : > { %8138 = vmatprep.subr.bf16.mxu0 %v11380_v14  ;;  %v11446_v14 = vld [vmem:[%s16566_s1 + $0x1dd4] ss:$100 sps:$4 sm:$0xff]  }
 0x1a3   : > { %8178 = vmatpush1.bf16.msra.mxu1 %v11375_v15  ;;  %v7532_v15 = vrot.slane %v13837_v17, %v12794_v5 }
 0x1a4   : > { %8179 = vmatprep.subr.bf16.mxu1 %v11383_v18  ;;  %v11441_v18 = vld [vmem:[%s16566_s1 + $0x5a0] ss:$100 sps:$4 sm:$0xff]  }
 0x1a5   : > { %8139 = vmatpush1.bf16.msra.mxu0 %v11378_v21 }
 0x1a6   : > { %8140 = vmatprep.subr.bf16.mxu0 %v11386_v22  ;;  %v11449_v22 = vld [vmem:[%s16566_s1 + $0x4dc] ss:$100 sps:$4 sm:$0xff]  }
 0x1a7   : > { %8180 = vmatpush1.bf16.msra.mxu1 %v11381_v23 }
 0x1a8   : > { %8181 = vmatprep.subr.bf16.mxu1 %v11389_v24  ;;  %v11444_v24 = vld [vmem:[%s16566_s1 + $0x1dd0] ss:$100 sps:$4 sm:$0xff]  }
 0x1a9   : > { %8141 = vmatpush1.bf16.msra.mxu0 %v11384_v26 }
 0x1aa   : > { %8142 = vmatprep.subr.bf16.mxu0 %v11392_v28  ;;  %v11452_v28 = vld [vmem:[%s16566_s1 + $0x1d0c] ss:$100 sps:$4 sm:$0xff]  }
 0x1ab   : > { %8182 = vmatpush1.bf16.msra.mxu1 %v11387_v29 }
 0x1ac   : > { %8183 = vmatprep.subr.bf16.mxu1 %v11395_v30 }
 0x1ad   : > { %8143 = vmatpush2.bf16.msra.mxu0 %v11390_v31  ;;  %v11447_v31 = vld [vmem:[%s16566_s1 + $0x4d8] ss:$100 sps:$4 sm:$0xff]  }
 0x1ae   : > { %8144 = vmatprep.subr.bf16.mxu0 %v11398_v33 }
 0x1af   : > { %8184 = vmatpush2.bf16.msra.mxu1 %v11393_v50 }
 0x1b0   : > { %8185 = vmatprep.subr.bf16.mxu1 %v11401_v36  ;;  %v11455_v36 = vld [vmem:[%s16566_s1 + $0x414] ss:$100 sps:$4 sm:$0xff]  }
 0x1b1   : > { %8145 = vmatpush2.bf16.msra.mxu0 %v11396_v37 }
 0x1b2   : > { %8146 = vmatprep.subr.bf16.mxu0 %v11404_v38  ;;  %v11450_v38 = vld [vmem:[%s16566_s1 + $0x1d08] ss:$100 sps:$4 sm:$0xff]  }
 0x1b3   : > { %8186 = vmatpush2.bf16.msra.mxu1 %v11399_v60 }
 0x1b4   : > { %8187 = vmatprep.subr.bf16.mxu1 %v11407_v39  ;;  %v11458_v39 = vld [vmem:[%s16566_s1 + $0x1c44] ss:$100 sps:$4 sm:$0xff]  }
 0x1b5   : > { %8147 = vmatpush2.bf16.msra.mxu0 %v11402_v41 }
 0x1b6   : > { %8148 = vmatprep.subr.bf16.mxu0 %v11410_v42  ;;  %v11453_v42 = vld [vmem:[%s16566_s1 + $0x410] ss:$100 sps:$4 sm:$0xff]  }
 0x1b7   : > { %8188 = vmatpush2.bf16.msra.mxu1 %v11405_v43  ;;  %v11461_v43 = vld [vmem:[%s16566_s1 + $0x34c] ss:$100 sps:$4 sm:$0xff]  }
 0x1b8   : > { %8189 = vmatprep.subr.bf16.mxu1 %v11413_v44 }
 0x1b9   : > { %8149 = vmatpush2.bf16.msra.mxu0 %v11408_v0  ;;  %v11456_v0 = vld [vmem:[%s16566_s1 + $0x1c40] ss:$100 sps:$4 sm:$0xff]  }
 0x1ba   : > { %8150 = vmatprep.subr.bf16.mxu0 %v11416_v47  ;;  %v11464_v47 = vld [vmem:[%s16566_s1 + $0x1b7c] ss:$100 sps:$4 sm:$0xff]  }
 0x1bb   : > { %8190 = vmatpush2.bf16.msra.mxu1 %v11411_v48  ;;  %v11459_v48 = vld [vmem:[%s16566_s1 + $0x348] ss:$100 sps:$4 sm:$0xff]  }
 0x1bc   : > { %8191 = vmatprep.subr.bf16.mxu1 %v11419_v49  ;;  %v11467_v49 = vld [vmem:[%s16566_s1 + $0x284] ss:$100 sps:$4 sm:$0xff]  }
 0x1bd   : > { %8151 = vmatpush2.bf16.msra.mxu0 %v11414_v52  ;;  %v11462_v52 = vld [vmem:[%s16566_s1 + $0x1b78] ss:$100 sps:$4 sm:$0xff]  }
 0x1be   : > { %8152 = vmatprep.subr.bf16.mxu0 %v11422_v53  ;;  %v11470_v53 = vld [vmem:[%s16566_s1 + $0x1ab4] ss:$100 sps:$4 sm:$0xff]  }
 0x1bf   : > { %8192 = vmatpush2.bf16.msra.mxu1 %v11417_v55  ;;  %v11465_v55 = vld [vmem:[%s16566_s1 + $0x280] ss:$100 sps:$4 sm:$0xff]  }
 0x1c0   : > { %8193 = vmatprep.subr.bf16.mxu1 %v11425_v58  ;;  %v11473_v58 = vld [vmem:[%s16566_s1 + $0x1bc] ss:$100 sps:$4 sm:$0xff]  }
 0x1c1   : > { %8153 = vmatpush2.bf16.msra.mxu0 %v11420_v59  ;;  %v11468_v59 = vld [vmem:[%s16566_s1 + $0x1ab0] ss:$100 sps:$4 sm:$0xff]  }
 0x1c2   : > { %8154 = vmatprep.subr.bf16.mxu0 %v11428_v61  ;;  %v11476_v61 = vld [vmem:[%s16566_s1 + $0x19ec] ss:$100 sps:$4 sm:$0xff]  }
 0x1c3   : > { %8194 = vmatpush2.bf16.msra.mxu1 %v11423_v62  ;;  %v11471_v62 = vld [vmem:[%s16566_s1 + $0x1b8] ss:$100 sps:$4 sm:$0xff]  }
 0x1c4   : > { %8195 = vmatprep.subr.bf16.mxu1 %v11431_v63  ;;  %v11479_v63 = vld [vmem:[%s16566_s1 + $0xf4] ss:$100 sps:$4 sm:$0xff]  }
 0x1c5   : > { %8155 = vmatpush2.bf16.msra.mxu0 %v11426_v32  ;;  %v11474_v32 = vld [vmem:[%s16566_s1 + $0x19e8] ss:$100 sps:$4 sm:$0xff]  }
 0x1c6   : > { %8156 = vmatprep.subr.bf16.mxu0 %v11434_v6  ;;  %v11482_v6 = vld [vmem:[%s16566_s1 + $0x1924] ss:$100 sps:$4 sm:$0xff]  }
 0x1c7   : > { %8196 = vmatpush2.bf16.msra.mxu1 %v11429_v8  ;;  %v11477_v8 = vld [vmem:[%s16566_s1 + $0xf0] ss:$100 sps:$4 sm:$0xff]  }
 0x1c8   : > { %8197 = vmatprep.subr.bf16.mxu1 %v11437_v54  ;;  %v11485_v54 = vld [vmem:[%s16566_s1 + $0x2c] ss:$100 sps:$4 sm:$0xff]  }
 0x1c9   : > { %8157 = vmatpush2.bf16.msra.mxu0 %v11432_v27  ;;  %v11480_v27 = vld [vmem:[%s16566_s1 + $0x1920] ss:$100 sps:$4 sm:$0xff]  }
 0x1ca   : > { %8208 = vmatprep.subr.bf16.mxu0 %v11440_v1  ;;  %v11488_v1 = vld [vmem:[%s16566_s1 + $0x24dc] ss:$100 sps:$4 sm:$0xff]  }
 0x1cb   : > { %8198 = vmatpush2.bf16.msra.mxu1 %v11435_v10  ;;  %v11483_v10 = vld [vmem:[%s16566_s1 + $0x28] ss:$100 sps:$4 sm:$0xff]  }
 0x1cc   : > { %v7914_v21 = vpop.f32.mrf.mxu0  ;;  %8159 = vmatmul.mubr.bf16.vlgmr.msra.gmra.mxu0 %v12823_v16  ;;  %8249 = vmatprep.subr.bf16.mxu1 %v11443_v11  ;;  %v11491_v11 = vld [vmem:[%s16566_s1 + $0xbe4] ss:$100 sps:$4 sm:$0xff]  }
 0x1cd   : > { %v7915_v23 = vadd.f32 %v7914_v21, %v7528_v12  ;;  %8209 = vmatpush1.bf16.msra.mxu0 %v11438_v13  ;;  %8240 = vmatprep.mubr.bf16.mxu0 %v12831_v19  ;;  %v11486_v12 = vld [vmem:[%s16566_s1 + $0x24d8] ss:$100 sps:$4 sm:$0xff]   ;;  %v11500_v21 = vld [vmem:[%s16566_s1 + $0x234c] ss:$100 sps:$4 sm:$0xff]  }
 0x1ce   : > { %v7916_v17 = vpop.f32.mrf.mxu0  ;;  %v7955_v26 = vpop.f32.mrf.mxu1  ;;  %8200 = vmatmul.mubr.bf16.vlgmr.msra.gmra.mxu1 %v12833_v20  ;;  %8210 = vmatprep.subr.bf16.mxu0 %v11446_v14  ;;  %v11494_v13 = vld [vmem:[%s16566_s1 + $0x2414] ss:$100 sps:$4 sm:$0xff]   ;;  %v11489_v14 = vld [vmem:[%s16566_s1 + $0xbe0] ss:$100 sps:$4 sm:$0xff]  }
 0x1cf   : > { %v7917_v29 = vadd.f32 %v7916_v17, %v7532_v15  ;;  %v14086_v30 = vadd.f32 %v7955_v26, %v7915_v23  ;;  %8250 = vmatpush1.bf16.msra.mxu1 %v11441_v18  ;;  %8281 = vmatprep.mubr.bf16.mxu1 %v12754_v56  ;;  %v11497_v15 = vld [vmem:[%s16566_s1 + $0xb1c] ss:$100 sps:$4 sm:$0xff]   ;;  %v11492_v18 = vld [vmem:[%s16566_s1 + $0x2410] ss:$100 sps:$4 sm:$0xff]   ;;  %v11506_v17 = vld [vmem:[%s16566_s1 + $0x2284] ss:$100 sps:$4 sm:$0xff]  }
 0x1d0   : > { %v7918_v33 = vpop.f32.mrf.mxu0  ;;  %v7957_v50 = vpop.f32.mrf.mxu1  ;;  %8251 = vmatprep.subr.bf16.mxu1 %v11449_v22  ;;  %v11495_v22 = vld [vmem:[%s16566_s1 + $0xb18] ss:$100 sps:$4 sm:$0xff]   ;;  %v11501_v26 = vld [vmem:[%s16566_s1 + $0xa50] ss:$100 sps:$4 sm:$0xff]  }
 0x1d1   : > { %v14095_v37 = vadd.f32 %v7957_v50, %v7917_v29  ;;  %8211 = vmatpush1.bf16.msra.mxu0 %v11444_v24  ;;  %v11503_v23 = vld [vmem:[%s16566_s1 + $0xa54] ss:$100 sps:$4 sm:$0xff]   ;;  %v11498_v24 = vld [vmem:[%s16566_s1 + $0x2348] ss:$100 sps:$4 sm:$0xff]   ;;  %v11504_v29 = vld [vmem:[%s16566_s1 + $0x2280] ss:$100 sps:$4 sm:$0xff]  }
 0x1d2   : > { %v7919_v60 = vpop.f32.mrf.mxu0  ;;  %8212 = vmatprep.subr.bf16.mxu0 %v11452_v28  ;;  %v7959_v41 = vpop.f32.mrf.mxu1  ;;  %v11509_v28 = vld [vmem:[%s16566_s1 + $0x98c] ss:$100 sps:$4 sm:$0xff]   ;;  %v11515_v50 = vld [vmem:[%s16566_s1 + $0x8c4] ss:$100 sps:$4 sm:$0xff]  }
 0x1d3   : > { %8252 = vmatpush1.bf16.msra.mxu1 %v11447_v31  ;;  %v11512_v31 = vld [vmem:[%s16566_s1 + $0x21bc] ss:$100 sps:$4 sm:$0xff]   ;;  %v11507_v33 = vld [vmem:[%s16566_s1 + $0x988] ss:$100 sps:$4 sm:$0xff]   ;;  %v11516_v41 = vld [vmem:[%s16566_s1 + $0x20f0] ss:$100 sps:$4 sm:$0xff]  }
 0x1d4   : > { %8253 = vmatprep.subr.bf16.mxu1 %v11455_v36  ;;  %v7960_v44 = vpop.f32.mrf.mxu1  ;;  %v11510_v36 = vld [vmem:[%s16566_s1 + $0x21b8] ss:$100 sps:$4 sm:$0xff]   ;;  %v11513_v60 = vld [vmem:[%s16566_s1 + $0x8c0] ss:$100 sps:$4 sm:$0xff]  }
 0x1d5   : > { %8213 = vmatpush1.bf16.msra.mxu0 %v11450_v38  ;;  %v11518_v38 = vld [vmem:[%s16566_s1 + $0x20f4] ss:$100 sps:$4 sm:$0xff]  }
 0x1d6   : > { %8214 = vmatprep.subr.bf16.mxu0 %v11458_v39  ;;  %v11521_v39 = vld [vmem:[%s16566_s1 + $0x7fc] ss:$100 sps:$4 sm:$0xff]   ;;  %v11527_v44 = vld [vmem:[%s16566_s1 + $0x734] ss:$100 sps:$4 sm:$0xff]  }
 0x1d7   : > { %8254 = vmatpush1.bf16.msra.mxu1 %v11453_v42  ;;  %v11524_v42 = vld [vmem:[%s16566_s1 + $0x202c] ss:$100 sps:$4 sm:$0xff]  }
 0x1d8   : > { %8255 = vmatprep.subr.bf16.mxu1 %v11461_v43  ;;  %v11519_v43 = vld [vmem:[%s16566_s1 + $0x7f8] ss:$100 sps:$4 sm:$0xff]  }
 0x1d9   : > { %8215 = vmatpush1.bf16.msra.mxu0 %v11456_v0  ;;  %v11522_v0 = vld [vmem:[%s16566_s1 + $0x2028] ss:$100 sps:$4 sm:$0xff]  }
 0x1da   : > { %8216 = vmatprep.subr.bf16.mxu0 %v11464_v47  ;;  %v11530_v47 = vld [vmem:[%s16566_s1 + $0x1f64] ss:$100 sps:$4 sm:$0xff]  }
 0x1db   : > { %8256 = vmatpush1.bf16.msra.mxu1 %v11459_v48  ;;  %v11525_v48 = vld [vmem:[%s16566_s1 + $0x730] ss:$100 sps:$4 sm:$0xff]  }
 0x1dc   : > { %8257 = vmatprep.subr.bf16.mxu1 %v11467_v49  ;;  %v11533_v49 = vld [vmem:[%s16566_s1 + $0x66c] ss:$100 sps:$4 sm:$0xff]  }
 0x1dd   : > { %8217 = vmatpush1.bf16.msra.mxu0 %v11462_v52  ;;  %v11528_v52 = vld [vmem:[%s16566_s1 + $0x1f60] ss:$100 sps:$4 sm:$0xff]  }
 0x1de   : > { %8218 = vmatprep.subr.bf16.mxu0 %v11470_v53  ;;  %v11536_v53 = vld [vmem:[%s16566_s1 + $0x1224] ss:$100 sps:$4 sm:$0xff]  }
 0x1df   : > { %8258 = vmatpush1.bf16.msra.mxu1 %v11465_v55  ;;  %v11531_v55 = vld [vmem:[%s16566_s1 + $0x668] ss:$100 sps:$4 sm:$0xff]  }
 0x1e0   : > { %8259 = vmatprep.subr.bf16.mxu1 %v11473_v58  ;;  %v11539_v58 = vld [vmem:[%s16566_s1 + $0x1ea4] ss:$100 sps:$4 sm:$0xff]  }
 0x1e1   : > { %8219 = vmatpush1.bf16.msra.mxu0 %v11468_v59  ;;  %v11534_v59 = vld [vmem:[%s16566_s1 + $0x1220] ss:$100 sps:$4 sm:$0xff]  }
 0x1e2   : > { %8220 = vmatprep.subr.bf16.mxu0 %v11476_v61  ;;  %v11542_v61 = vld [vmem:[%s16566_s1 + $0x115c] ss:$100 sps:$4 sm:$0xff]  }
 0x1e3   : > { %8260 = vmatpush1.bf16.msra.mxu1 %v11471_v62  ;;  %v11537_v62 = vld [vmem:[%s16566_s1 + $0x1ea0] ss:$100 sps:$4 sm:$0xff]  }
 0x1e4   : > { %8261 = vmatprep.subr.bf16.mxu1 %v11479_v63  ;;  %v11540_v63 = vld [vmem:[%s16566_s1 + $0x1158] ss:$100 sps:$4 sm:$0xff]  }
 0x1e5   : > { %8221 = vmatpush1.bf16.msra.mxu0 %v11474_v32 }
 0x1e6   : > { %8222 = vmatprep.subr.bf16.mxu0 %v11482_v6  ;;  %v11545_v6 = vld [vmem:[%s16566_s1 + $0x1ddc] ss:$100 sps:$4 sm:$0xff]  }
 0x1e7   : > { %8262 = vmatpush1.bf16.msra.mxu1 %v11477_v8 }
 0x1e8   : > { %8263 = vmatprep.subr.bf16.mxu1 %v11485_v54  ;;  %v11543_v54 = vld [vmem:[%s16566_s1 + $0x1dd8] ss:$100 sps:$4 sm:$0xff]  }
 0x1e9   : > { %8223 = vmatpush1.bf16.msra.mxu0 %v11480_v27 }
 0x1ea   : > { %8224 = vmatprep.subr.bf16.mxu0 %v11488_v1  ;;  %v11548_v1 = vld [vmem:[%s16566_s1 + $0x1094] ss:$100 sps:$4 sm:$0xff]  }
 0x1eb   : > { %8264 = vmatpush1.bf16.msra.mxu1 %v11483_v10 }
 0x1ec   : > { %8265 = vmatprep.subr.bf16.mxu1 %v11491_v11  ;;  %v11546_v11 = vld [vmem:[%s16566_s1 + $0x1090] ss:$100 sps:$4 sm:$0xff]  }
 0x1ed   : > { %8225 = vmatpush2.bf16.msra.mxu0 %v11486_v12 }
 0x1ee   : > { %8226 = vmatprep.subr.bf16.mxu0 %v11494_v13  ;;  %v11551_v13 = vld [vmem:[%s16566_s1 + $0x1d14] ss:$100 sps:$4 sm:$0xff]  }
 0x1ef   : > { %8266 = vmatpush2.bf16.msra.mxu1 %v11489_v14 }
 0x1f0   : > { %8267 = vmatprep.subr.bf16.mxu1 %v11497_v15 }
 0x1f1   : > { %8227 = vmatpush2.bf16.msra.mxu0 %v11492_v18 }
 0x1f2   : > { %8228 = vmatprep.subr.bf16.mxu0 %v11500_v21  ;;  %v11554_v21 = vld [vmem:[%s16566_s1 + $0xfcc] ss:$100 sps:$4 sm:$0xff]  }
 0x1f3   : > { %8268 = vmatpush2.bf16.msra.mxu1 %v11495_v22 }
 0x1f4   : > { %8269 = vmatprep.subr.bf16.mxu1 %v11503_v23  ;;  %v11552_v23 = vld [vmem:[%s16566_s1 + $0xfc8] ss:$100 sps:$4 sm:$0xff]  }
 0x1f5   : > { %8229 = vmatpush2.bf16.msra.mxu0 %v11498_v24  ;;  %v11557_v24 = vld [vmem:[%s16566_s1 + $0x1c4c] ss:$100 sps:$4 sm:$0xff]  }
 0x1f6   : > { %8230 = vmatprep.subr.bf16.mxu0 %v11506_v17 }
 0x1f7   : > { %8270 = vmatpush2.bf16.msra.mxu1 %v11501_v26  ;;  %v11555_v26 = vld [vmem:[%s16566_s1 + $0x1c48] ss:$100 sps:$4 sm:$0xff]  }
 0x1f8   : > { %8271 = vmatprep.subr.bf16.mxu1 %v11509_v28  ;;  %v11560_v28 = vld [vmem:[%s16566_s1 + $0xf04] ss:$100 sps:$4 sm:$0xff]  }
 0x1f9   : > { %8231 = vmatpush2.bf16.msra.mxu0 %v11504_v29  ;;  %v11558_v29 = vld [vmem:[%s16566_s1 + $0xf00] ss:$100 sps:$4 sm:$0xff]  }
 0x1fa   : > { %8232 = vmatprep.subr.bf16.mxu0 %v11512_v31  ;;  %v11563_v31 = vld [vmem:[%s16566_s1 + $0x1b84] ss:$100 sps:$4 sm:$0xff]  }
 0x1fb   : > { %8272 = vmatpush2.bf16.msra.mxu1 %v11507_v33  ;;  %v11561_v33 = vld [vmem:[%s16566_s1 + $0x1b80] ss:$100 sps:$4 sm:$0xff]  }
 0x1fc   : > { %8273 = vmatprep.subr.bf16.mxu1 %v11515_v50  ;;  %v11566_v50 = vld [vmem:[%s16566_s1 + $0xe3c] ss:$100 sps:$4 sm:$0xff]  }
 0x1fd   : > { %8233 = vmatpush2.bf16.msra.mxu0 %v11510_v36  ;;  %v11564_v36 = vld [vmem:[%s16566_s1 + $0xe38] ss:$100 sps:$4 sm:$0xff]  }
 0x1fe   : > { %8234 = vmatprep.subr.bf16.mxu0 %v11518_v38  ;;  %v11569_v38 = vld [vmem:[%s16566_s1 + $0x1abc] ss:$100 sps:$4 sm:$0xff]  }
 0x1ff   : > { %8274 = vmatpush2.bf16.msra.mxu1 %v11513_v60  ;;  %v11567_v60 = vld [vmem:[%s16566_s1 + $0x1ab8] ss:$100 sps:$4 sm:$0xff]  }
 0x200   : > { %8275 = vmatprep.subr.bf16.mxu1 %v11521_v39  ;;  %v11572_v39 = vld [vmem:[%s16566_s1 + $0xd74] ss:$100 sps:$4 sm:$0xff]  }
 0x201   : > { %8235 = vmatpush2.bf16.msra.mxu0 %v11516_v41  ;;  %v11570_v41 = vld [vmem:[%s16566_s1 + $0xd70] ss:$100 sps:$4 sm:$0xff]  }
 0x202   : > { %8236 = vmatprep.subr.bf16.mxu0 %v11524_v42  ;;  %v11575_v42 = vld [vmem:[%s16566_s1 + $0x19f4] ss:$100 sps:$4 sm:$0xff]  }
 0x203   : > { %8276 = vmatpush2.bf16.msra.mxu1 %v11519_v43  ;;  %v11573_v43 = vld [vmem:[%s16566_s1 + $0x19f0] ss:$100 sps:$4 sm:$0xff]  }
 0x204   : > { %8277 = vmatprep.subr.bf16.mxu1 %v11527_v44  ;;  %v11578_v44 = vld [vmem:[%s16566_s1 + $0xcac] ss:$100 sps:$4 sm:$0xff]  }
 0x205   : > { %8237 = vmatpush2.bf16.msra.mxu0 %v11522_v0  ;;  %v11576_v0 = vld [vmem:[%s16566_s1 + $0xca8] ss:$100 sps:$4 sm:$0xff]  }
 0x206   : > { %8238 = vmatprep.subr.bf16.mxu0 %v11530_v47  ;;  %v11581_v47 = vld [vmem:[%s16566_s1 + $0x192c] ss:$100 sps:$4 sm:$0xff]  }
 0x207   : > { %8278 = vmatpush2.bf16.msra.mxu1 %v11525_v48  ;;  %v11579_v48 = vld [vmem:[%s16566_s1 + $0x1928] ss:$100 sps:$4 sm:$0xff]  }
 0x208   : > { %8279 = vmatprep.subr.bf16.mxu1 %v11533_v49  ;;  %v11584_v49 = vld [vmem:[%s16566_s1 + $0x1864] ss:$100 sps:$4 sm:$0xff]  }
 0x209   : > { %8239 = vmatpush2.bf16.msra.mxu0 %v11528_v52  ;;  %v11582_v52 = vld [vmem:[%s16566_s1 + $0x1860] ss:$100 sps:$4 sm:$0xff]  }
 0x20a   : > { %8290 = vmatprep.subr.bf16.mxu0 %v11536_v53  ;;  %v11587_v53 = vld [vmem:[%s16566_s1 + $0x24e4] ss:$100 sps:$4 sm:$0xff]  }
 0x20b   : > { %8280 = vmatpush2.bf16.msra.mxu1 %v11531_v55  ;;  %v11585_v55 = vld [vmem:[%s16566_s1 + $0x24e0] ss:$100 sps:$4 sm:$0xff]  }
 0x20c   : > { %v7996_v32 = vpop.f32.mrf.mxu0  ;;  %8241 = vmatmul.mubr.bf16.vlgmr.msra.gmra.mxu0 %v13030_v34  ;;  %8331 = vmatprep.subr.bf16.mxu1 %v11539_v58  ;;  %v11590_v58 = vld [vmem:[%s16566_s1 + $0x179c] ss:$100 sps:$4 sm:$0xff]  }
 0x20d   : > { %v14282_v8 = vadd.f32 %v7996_v32, %v14086_v30  ;;  %8291 = vmatpush1.bf16.msra.mxu0 %v11534_v59  ;;  %8322 = vmatprep.mubr.bf16.mxu0 %v12756_v57  ;;  %v11588_v59 = vld [vmem:[%s16566_s1 + $0x1798] ss:$100 sps:$4 sm:$0xff]   ;;  %v11594_v32 = vld [vmem:[%s16566_s1 + $0x16d0] ss:$100 sps:$4 sm:$0xff]  }
 0x20e   : > { %v7998_v27 = vpop.f32.mrf.mxu0  ;;  %8282 = vmatmul.mubr.bf16.vlgmr.msra.gmra.mxu1 %v12823_v16  ;;  %8292 = vmatprep.subr.bf16.mxu0 %v11542_v61  ;;  %v14292_v10 = vpop.f32.mrf.mxu1  ;;  %v11593_v61 = vld [vmem:[%s16566_s1 + $0x241c] ss:$100 sps:$4 sm:$0xff]  }
 0x20f   : > { %v14295_v30 = vadd.f32 %v7998_v27, %v14095_v37  ;;  %8332 = vmatpush1.bf16.msra.mxu1 %v11537_v62  ;;  %8363 = vmatprep.mubr.bf16.mxu1 %v12831_v19  ;;  %v11549_v37 = vld [vmem:[%s16566_s1 + $0x1d10] ss:$100 sps:$4 sm:$0xff]   ;;  %v11591_v62 = vld [vmem:[%s16566_s1 + $0x2418] ss:$100 sps:$4 sm:$0xff]  }
 0x210   : > { %v8000_v12 = vpop.f32.mrf.mxu0  ;;  %8333 = vmatprep.subr.bf16.mxu1 %v11545_v6  ;;  %v14304_v14 = vpop.f32.mrf.mxu1  ;;  %v11599_v6 = vld [vmem:[%s16566_s1 + $0x2354] ss:$100 sps:$4 sm:$0xff]   ;;  %v11602_v27 = vld [vmem:[%s16566_s1 + $0x160c] ss:$100 sps:$4 sm:$0xff]  }
 0x211   : > { %v9257_v15 = vcombine.low %v14282_v8, %v14295_v30  ;;  %8293 = vmatpush1.bf16.msra.mxu0 %v11540_v63  ;;  %v11596_v63 = vld [vmem:[%s16566_s1 + $0x16d4] ss:$100 sps:$4 sm:$0xff]   ;;  %v11603_v12 = vld [vmem:[%s16566_s1 + $0x2288] ss:$100 sps:$4 sm:$0xff]  }
 0x212   : > { %v8001_v18 = vpop.f32.mrf.mxu0  ;;  %8294 = vmatprep.subr.bf16.mxu0 %v11548_v1  ;;  %v8041_v22 = vpop.f32.mrf.mxu1  ;;  %v11600_v1 = vld [vmem:[%s16566_s1 + $0x1608] ss:$100 sps:$4 sm:$0xff]  }
 0x213   : > { %8334 = vmatpush1.bf16.msra.mxu1 %v11543_v54  ;;  %v11597_v54 = vld [vmem:[%s16566_s1 + $0x2350] ss:$100 sps:$4 sm:$0xff]   ;;  %v11611_v18 = vld [vmem:[%s16566_s1 + $0x21c4] ss:$100 sps:$4 sm:$0xff]   ;;  %v11614_v22 = vld [vmem:[%s16566_s1 + $0x147c] ss:$100 sps:$4 sm:$0xff]  }
 0x214   : > { %8335 = vmatprep.subr.bf16.mxu1 %v11551_v13  ;;  %v8042_v17 = vpop.f32.mrf.mxu1  ;;  %v11608_v13 = vld [vmem:[%s16566_s1 + $0x1544] ss:$100 sps:$4 sm:$0xff]   ;;  %v11659_v30 = vld [vmem:[%s16566_s1 + $0xf0c] ss:$100 sps:$4 sm:$0xff]  }
 0x215   : > { %8295 = vmatpush1.bf16.msra.mxu0 %v11546_v11  ;;  %v11605_v11 = vld [vmem:[%s16566_s1 + $0x228c] ss:$100 sps:$4 sm:$0xff]   ;;  %v11615_v17 = vld [vmem:[%s16566_s1 + $0x20f8] ss:$100 sps:$4 sm:$0xff]  }
 0x216   : > { %8296 = vmatprep.subr.bf16.mxu0 %v11554_v21  ;;  %v11609_v21 = vld [vmem:[%s16566_s1 + $0x21c0] ss:$100 sps:$4 sm:$0xff]   ;;  %v11654_v8 = vld [vmem:[%s16566_s1 + $0x288] ss:$100 sps:$4 sm:$0xff]  }
 0x217   : > { %8336 = vmatpush1.bf16.msra.mxu1 %v11549_v37  ;;  %v11606_v37 = vld [vmem:[%s16566_s1 + $0x1540] ss:$100 sps:$4 sm:$0xff]  }
 0x218   : > { %8337 = vmatprep.subr.bf16.mxu1 %v11557_v24  ;;  %v11617_v24 = vld [vmem:[%s16566_s1 + $0x20fc] ss:$100 sps:$4 sm:$0xff]  }
 0x219   : > { %8297 = vmatpush1.bf16.msra.mxu0 %v11552_v23  ;;  %v11612_v23 = vld [vmem:[%s16566_s1 + $0x1478] ss:$100 sps:$4 sm:$0xff]  }
 0x21a   : > { %8298 = vmatprep.subr.bf16.mxu0 %v11560_v28  ;;  %v11618_v28 = vld [vmem:[%s16566_s1 + $0x13b0] ss:$100 sps:$4 sm:$0xff]  }
 0x21b   : > { %8338 = vmatpush1.bf16.msra.mxu1 %v11555_v26  ;;  %v11620_v26 = vld [vmem:[%s16566_s1 + $0x13b4] ss:$100 sps:$4 sm:$0xff]  }
 0x21c   : > { %8339 = vmatprep.subr.bf16.mxu1 %v11563_v31  ;;  %v11621_v31 = vld [vmem:[%s16566_s1 + $0x2030] ss:$100 sps:$4 sm:$0xff]  }
 0x21d   : > { %8299 = vmatpush1.bf16.msra.mxu0 %v11558_v29  ;;  %v11623_v29 = vld [vmem:[%s16566_s1 + $0x2034] ss:$100 sps:$4 sm:$0xff]  }
 0x21e   : > { %8300 = vmatprep.subr.bf16.mxu0 %v11566_v50  ;;  %v14459_v50 = vsub.s32 6, %v12707_v40 }
 0x21f   : > { %8340 = vmatpush1.bf16.msra.mxu1 %v11561_v33  ;;  %v11626_v33 = vld [vmem:[%s16566_s1 + $0x12ec] ss:$100 sps:$4 sm:$0xff]  }
 0x220   : > { %8341 = vmatprep.subr.bf16.mxu1 %v11569_v38  ;;  %v11629_v38 = vld [vmem:[%s16566_s1 + $0x1f6c] ss:$100 sps:$4 sm:$0xff]  }
 0x221   : > { %8301 = vmatpush1.bf16.msra.mxu0 %v11564_v36  ;;  %v11624_v36 = vld [vmem:[%s16566_s1 + $0x12e8] ss:$100 sps:$4 sm:$0xff]  }
 0x222   : > { %8302 = vmatprep.subr.bf16.mxu0 %v11572_v39  ;;  %v11627_v39 = vld [vmem:[%s16566_s1 + $0x1f68] ss:$100 sps:$4 sm:$0xff]  }
 0x223   : > { %8342 = vmatpush1.bf16.msra.mxu1 %v11567_v60  ;;  %v14468_v60 = vsub.s32 7, %v12707_v40  ;;  %v11630_v40 = vld [vmem:[%s16566_s1 + $0x5a8] ss:$100 sps:$4 sm:$0xff]  }
 0x224   : > { %8343 = vmatprep.subr.bf16.mxu1 %v11575_v42  ;;  %v12543_v42 = vld [vmem:[%s16567_s2] sm:$0xff] }
 0x225   : > { %8303 = vmatpush1.bf16.msra.mxu0 %v11570_v41  ;;  %v11632_v41 = vld [vmem:[%s16566_s1 + $0x5ac] ss:$100 sps:$4 sm:$0xff]  }
 0x226   : > { %8304 = vmatprep.subr.bf16.mxu0 %v11578_v44  ;;  %v11635_v44 = vld [vmem:[%s16566_s1 + $0x122c] ss:$100 sps:$4 sm:$0xff]  }
 0x227   : > { %8344 = vmatpush1.bf16.msra.mxu1 %v11573_v43  ;;  %v7536_v43 = vrot.slane %v12543_v42, %v14459_v50 }
 0x228   : > { %8345 = vmatprep.subr.bf16.mxu1 %v11581_v47  ;;  %v11633_v47 = vld [vmem:[%s16566_s1 + $0x1228] ss:$100 sps:$4 sm:$0xff]  }
 0x229   : > { %8305 = vmatpush1.bf16.msra.mxu0 %v11576_v0  ;;  %v7540_v0 = vrot.slane %v12543_v42, %v14468_v60  ;;  %v11666_v42 = vld [vmem:[%s16566_s1 + $0xf8] ss:$100 sps:$4 sm:$0xff]  }
 0x22a   : > { %8306 = vmatprep.subr.bf16.mxu0 %v11584_v49  ;;  %v8038_v49 = vadd.f32 %v14292_v10, %v7536_v43  ;;  %v11639_v10 = vld [vmem:[%s16566_s1 + $0x1160] ss:$100 sps:$4 sm:$0xff]  }
 0x22b   : > { %8346 = vmatpush1.bf16.msra.mxu1 %v11579_v48  ;;  %v11638_v48 = vld [vmem:[%s16566_s1 + $0x4e4] ss:$100 sps:$4 sm:$0xff]   ;;  %v11671_v43 = vld [vmem:[%s16566_s1 + $0xd7c] ss:$100 sps:$4 sm:$0xff]  }
 0x22c   : > { %8347 = vmatprep.subr.bf16.mxu1 %v11587_v53 }
 0x22d   : > { %8307 = vmatpush2.bf16.msra.mxu0 %v11582_v52  ;;  %v11636_v52 = vld [vmem:[%s16566_s1 + $0x4e0] ss:$100 sps:$4 sm:$0xff]  }
 0x22e   : > { %8308 = vmatprep.subr.bf16.mxu0 %v11590_v58  ;;  %v8040_v58 = vadd.f32 %v14304_v14, %v7540_v0  ;;  %v11642_v14 = vld [vmem:[%s16566_s1 + $0x418] ss:$100 sps:$4 sm:$0xff]   ;;  %v11672_v0 = vld [vmem:[%s16566_s1 + $0x30] ss:$100 sps:$4 sm:$0xff]  }
 0x22f   : > { %8348 = vmatpush2.bf16.msra.mxu1 %v11585_v55  ;;  %v11641_v55 = vld [vmem:[%s16566_s1 + $0x1164] ss:$100 sps:$4 sm:$0xff]  }
 0x230   : > { %8349 = vmatprep.subr.bf16.mxu1 %v11593_v61 }
 0x231   : > { %8309 = vmatpush2.bf16.msra.mxu0 %v11588_v59 }
 0x232   : > { %8310 = vmatprep.subr.bf16.mxu0 %v11596_v63  ;;  %v11644_v63 = vld [vmem:[%s16566_s1 + $0x41c] ss:$100 sps:$4 sm:$0xff]  }
 0x233   : > { %8350 = vmatpush2.bf16.msra.mxu1 %v11591_v62 }
 0x234   : > { %8351 = vmatprep.subr.bf16.mxu1 %v11599_v6 }
 0x235   : > { %8311 = vmatpush2.bf16.msra.mxu0 %v11594_v32 }
 0x236   : > { %8312 = vmatprep.subr.bf16.mxu0 %v11602_v27  ;;  %v11647_v27 = vld [vmem:[%s16566_s1 + $0x109c] ss:$100 sps:$4 sm:$0xff]  }
 0x237   : > { %8352 = vmatpush2.bf16.msra.mxu1 %v11597_v54 }
 0x238   : > { %8353 = vmatprep.subr.bf16.mxu1 %v11605_v11 }
 0x239   : > { %8313 = vmatpush2.bf16.msra.mxu0 %v11600_v1 }
 0x23a   : > { %8314 = vmatprep.subr.bf16.mxu0 %v11608_v13 }
 0x23b   : > { %8354 = vmatpush2.bf16.msra.mxu1 %v11603_v12  ;;  %v11645_v12 = vld [vmem:[%s16566_s1 + $0x1098] ss:$100 sps:$4 sm:$0xff]  }
 0x23c   : > { %8355 = vmatprep.subr.bf16.mxu1 %v11611_v18 }
 0x23d   : > { %8315 = vmatpush2.bf16.msra.mxu0 %v11606_v37  ;;  %v11650_v37 = vld [vmem:[%s16566_s1 + $0x354] ss:$100 sps:$4 sm:$0xff]  }
 0x23e   : > { %8316 = vmatprep.subr.bf16.mxu0 %v11614_v22  ;;  %v11648_v22 = vld [vmem:[%s16566_s1 + $0x350] ss:$100 sps:$4 sm:$0xff]  }
 0x23f   : > { %8356 = vmatpush2.bf16.msra.mxu1 %v11609_v21 }
 0x240   : > { %8357 = vmatprep.subr.bf16.mxu1 %v11617_v24 }
 0x241   : > { %8317 = vmatpush2.bf16.msra.mxu0 %v11612_v23  ;;  %v11653_v23 = vld [vmem:[%s16566_s1 + $0xfd4] ss:$100 sps:$4 sm:$0xff]  }
 0x242   : > { %8318 = vmatprep.subr.bf16.mxu0 %v11620_v26 }
 0x243   : > { %8358 = vmatpush2.bf16.msra.mxu1 %v11615_v17  ;;  %v9279_v17 = vrot.slane %v9257_v15, %v13880_v51  ;;  %v9295_v15 = vrot.slane %v9287_v9, %v13880_v51  ;;  %v11665_v9 = vld [vmem:[%s16566_s1 + $0xe44] ss:$100 sps:$4 sm:$0xff]  }
 0x244   : > { %8359 = vmatprep.subr.bf16.mxu1 %v11623_v29  ;;  %v11656_v29 = vld [vmem:[%s16566_s1 + $0x28c] ss:$100 sps:$4 sm:$0xff]  }
 0x245   : > { %8319 = vmatpush2.bf16.msra.mxu0 %v11618_v28  ;;  %v11651_v28 = vld [vmem:[%s16566_s1 + $0xfd0] ss:$100 sps:$4 sm:$0xff]  }
 0x246   : > { %8320 = vmatprep.subr.bf16.mxu0 %v11626_v33 }
 0x247   : > { %8360 = vmatpush2.bf16.msra.mxu1 %v11621_v31 }
 0x248   : > { %8361 = vmatprep.subr.bf16.mxu1 %v11629_v38  ;;  %v11662_v38 = vld [vmem:[%s16566_s1 + $0x1c4] ss:$100 sps:$4 sm:$0xff]  }
 0x249   : > { %8321 = vmatpush2.bf16.msra.mxu0 %v11624_v36  ;;  %v11657_v36 = vld [vmem:[%s16566_s1 + $0xf08] ss:$100 sps:$4 sm:$0xff]  }
 0x24a   : > { %8372 = vmatprep.subr.bf16.mxu0 %v11632_v41  ;;  %v11668_v41 = vld [vmem:[%s16566_s1 + $0xfc] ss:$100 sps:$4 sm:$0xff]  }
 0x24b   : > { %8362 = vmatpush2.bf16.msra.mxu1 %v11627_v39  ;;  %v11663_v39 = vld [vmem:[%s16566_s1 + $0xe40] ss:$100 sps:$4 sm:$0xff]  }
 0x24c   : > { %v8078_v53 = vpop.f32.mrf.mxu0  ;;  %8323 = vmatmul.mubr.bf16.vlgmr.msra.gmra.mxu0 %v12833_v20  ;;  %8413 = vmatprep.subr.bf16.mxu1 %v11635_v44  ;;  %v11674_v44 = vld [vmem:[%s16566_s1 + $0x34] ss:$100 sps:$4 sm:$0xff]  }
 0x24d   : > { %v8079_v59 = vadd.f32 %v8078_v53, %v8038_v49  ;;  %8373 = vmatpush1.bf16.msra.mxu0 %v11630_v40  ;;  %8404 = vmatprep.mubr.bf16.mxu0 %v12754_v56  ;;  %v11669_v40 = vld [vmem:[%s16566_s1 + $0xd78] ss:$100 sps:$4 sm:$0xff]   ;;  %v11680_v49 = vld [vmem:[%s16566_s1 + $0xbec] ss:$100 sps:$4 sm:$0xff]  }
 0x24e   : > { %v8080_v61 = vpop.f32.mrf.mxu0  ;;  %v8119_v62 = vpop.f32.mrf.mxu1  ;;  %8364 = vmatmul.mubr.bf16.vlgmr.msra.gmra.mxu1 %v13030_v34  ;;  %8374 = vmatprep.subr.bf16.mxu0 %v11638_v48  ;;  %v11675_v48 = vld [vmem:[%s16566_s1 + $0xcb0] ss:$100 sps:$4 sm:$0xff]  }
 0x24f   : > { %v8081_v32 = vadd.f32 %v8080_v61, %v8040_v58  ;;  %8414 = vmatpush1.bf16.msra.mxu1 %v11633_v47  ;;  %8445 = vmatprep.mubr.bf16.mxu1 %v12756_v57  ;;  %v8120_v1 = vadd.f32 %v8119_v62, %v8079_v59  ;;  %v11677_v47 = vld [vmem:[%s16566_s1 + $0xcb4] ss:$100 sps:$4 sm:$0xff]   ;;  %v11683_v53 = vld [vmem:[%s16566_s1 + $0x186c] ss:$100 sps:$4 sm:$0xff]   ;;  %v11686_v58 = vld [vmem:[%s16566_s1 + $0xb24] ss:$100 sps:$4 sm:$0xff]  }
 0x250   : > { %v8082_v6 = vpop.f32.mrf.mxu0  ;;  %v8121_v54 = vpop.f32.mrf.mxu1  ;;  %8415 = vmatprep.subr.bf16.mxu1 %v11641_v55  ;;  %v11681_v55 = vld [vmem:[%s16566_s1 + $0x1868] ss:$100 sps:$4 sm:$0xff]   ;;  %v11684_v59 = vld [vmem:[%s16566_s1 + $0xb20] ss:$100 sps:$4 sm:$0xff]  }
 0x251   : > { %v8122_v11 = vadd.f32 %v8121_v54, %v8081_v32  ;;  %8375 = vmatpush1.bf16.msra.mxu0 %v11636_v52  ;;  %v11678_v52 = vld [vmem:[%s16566_s1 + $0xbe8] ss:$100 sps:$4 sm:$0xff]   ;;  %v11687_v61 = vld [vmem:[%s16566_s1 + $0x17a0] ss:$100 sps:$4 sm:$0xff]   ;;  %v11698_v6 = vld [vmem:[%s16566_s1 + $0x994] ss:$100 sps:$4 sm:$0xff]  }
 0x252   : > { %v8083_v13 = vpop.f32.mrf.mxu0  ;;  %8376 = vmatprep.subr.bf16.mxu0 %v11644_v63  ;;  %v8123_v18 = vpop.f32.mrf.mxu1  ;;  %v11692_v62 = vld [vmem:[%s16566_s1 + $0xa5c] ss:$100 sps:$4 sm:$0xff]   ;;  %v11696_v54 = vld [vmem:[%s16566_s1 + $0x990] ss:$100 sps:$4 sm:$0xff]  }
 0x253   : > { %v9258_v21 = vcombine.low %v8120_v1, %v8122_v11  ;;  %8416 = vmatpush1.bf16.msra.mxu1 %v11639_v10  ;;  %v11689_v10 = vld [vmem:[%s16566_s1 + $0x17a4] ss:$100 sps:$4 sm:$0xff]   ;;  %v11690_v63 = vld [vmem:[%s16566_s1 + $0xa58] ss:$100 sps:$4 sm:$0xff]   ;;  %v11699_v1 = vld [vmem:[%s16566_s1 + $0x1610] ss:$100 sps:$4 sm:$0xff]  }
 0x254   : > { %8417 = vmatprep.subr.bf16.mxu1 %v11647_v27  ;;  %v8124_v24 = vpop.f32.mrf.mxu1  ;;  %v11695_v32 = vld [vmem:[%s16566_s1 + $0x16dc] ss:$100 sps:$4 sm:$0xff]   ;;  %v11701_v27 = vld [vmem:[%s16566_s1 + $0x1614] ss:$100 sps:$4 sm:$0xff]   ;;  %v11704_v11 = vld [vmem:[%s16566_s1 + $0x8cc] ss:$100 sps:$4 sm:$0xff]  }
 0x255   : > { %v9286_v26 = vrot.slane %v9258_v21, %v13880_v51  ;;  %8377 = vmatpush1.bf16.msra.mxu0 %v11642_v14  ;;  %v11693_v14 = vld [vmem:[%s16566_s1 + $0x16d8] ss:$100 sps:$4 sm:$0xff]   ;;  %v11707_v13 = vld [vmem:[%s16566_s1 + $0x154c] ss:$100 sps:$4 sm:$0xff]   ;;  %v11710_v18 = vld [vmem:[%s16566_s1 + $0x804] ss:$100 sps:$4 sm:$0xff]  }
 0x256   : > { %8378 = vmatprep.subr.bf16.mxu0 %v11650_v37  ;;  %v11705_v37 = vld [vmem:[%s16566_s1 + $0x1548] ss:$100 sps:$4 sm:$0xff]   ;;  %v11708_v21 = vld [vmem:[%s16566_s1 + $0x800] ss:$100 sps:$4 sm:$0xff]  }
 0x257   : > { %v9288_v31 = vcombine.low %v9279_v17, %v9286_v26  ;;  %8418 = vmatpush1.bf16.msra.mxu1 %v11645_v12  ;;  %v11702_v12 = vld [vmem:[%s16566_s1 + $0x8c8] ss:$100 sps:$4 sm:$0xff]   ;;  %v11716_v24 = vld [vmem:[%s16566_s1 + $0x73c] ss:$100 sps:$4 sm:$0xff]  }
 0x258   : > { %8419 = vmatprep.subr.bf16.mxu1 %v11653_v23  ;;  %v11711_v23 = vld [vmem:[%s16566_s1 + $0x1480] ss:$100 sps:$4 sm:$0xff]   ;;  %v11714_v17 = vld [vmem:[%s16566_s1 + $0x738] ss:$100 sps:$4 sm:$0xff]  }
 0x259   : > { %v9302_v33 = vrot.slane %v9288_v31, %v13880_v51  ;;  %8379 = vmatpush1.bf16.msra.mxu0 %v11648_v22  ;;  %v11713_v22 = vld [vmem:[%s16566_s1 + $0x1484] ss:$100 sps:$4 sm:$0xff]   ;;  %v11719_v26 = vld [vmem:[%s16566_s1 + $0x13bc] ss:$100 sps:$4 sm:$0xff]   ;;  %v11720_v31 = vld [vmem:[%s16566_s1 + $0x670] ss:$100 sps:$4 sm:$0xff]  }
 0x25a   : > { %8380 = vmatprep.subr.bf16.mxu0 %v11656_v29  ;;  %v11722_v29 = vld [vmem:[%s16566_s1 + $0x674] ss:$100 sps:$4 sm:$0xff]  }
 0x25b   : > { %v9303_v2 = vcombine.low %v9295_v15, %v9302_v33  ;;  %8420 = vmatpush1.bf16.msra.mxu1 %v11651_v28  ;;  %v11717_v28 = vld [vmem:[%s16566_s1 + $0x13b8] ss:$100 sps:$4 sm:$0xff]   ;;  %v14696_v15 = vld [vmem:[%s16567_s2 + $0x8] sm:$0xff]  ;;  %v11723_v33 = vld [vmem:[%s16566_s1 + $0x12f0] ss:$100 sps:$4 sm:$0xff]  }
 0x25c   : > { %8421 = vmatprep.subr.bf16.mxu1 %v11659_v30  ;;  %v11728_v30 = vld [vmem:[%s16566_s1 + $0x1eac] ss:$100 sps:$4 sm:$0xff]  }
 0x25d   : > { %9420 = vst [vmem:[%s14558_s18] sm:$0xff] %v9303_v2  ;;  %8381 = vmatpush1.bf16.msra.mxu0 %v11654_v8  ;;  %v11725_v8 = vld [vmem:[%s16566_s1 + $0x12f4] ss:$100 sps:$4 sm:$0xff]   ;;  %v11726_v2 = vld [vmem:[%s16566_s1 + $0x1ea8] ss:$100 sps:$4 sm:$0xff]  }
 0x25e   : > { %8382 = vmatprep.subr.bf16.mxu0 %v11662_v38  ;;  %v7544_v38 = vrot.slane %v14696_v15, %v12788_v3 }
 0x25f   : > { %8422 = vmatpush1.bf16.msra.mxu1 %v11657_v36  ;;  %v11731_v36 = vld [vmem:[%s16566_s1 + $0x5b4] ss:$100 sps:$4 sm:$0xff]  }
 0x260   : > { %8423 = vmatprep.subr.bf16.mxu1 %v11665_v9  ;;  %v7548_v9 = vrot.slane %v14696_v15, %v12725_v45 }
 0x261   : > { %8383 = vmatpush1.bf16.msra.mxu0 %v11660_v4  ;;  %v11734_v4 = vld [vmem:[%s16566_s1 + $0x1de4] ss:$100 sps:$4 sm:$0xff]  }
 0x262   : > { %8384 = vmatprep.subr.bf16.mxu0 %v11668_v41 }
 0x263   : > { %8424 = vmatpush1.bf16.msra.mxu1 %v11663_v39  ;;  %v11729_v39 = vld [vmem:[%s16566_s1 + $0x5b0] ss:$100 sps:$4 sm:$0xff]  }
 0x264   : > { %8425 = vmatprep.subr.bf16.mxu1 %v11671_v43 }
 0x265   : > { %8385 = vmatpush1.bf16.msra.mxu0 %v11666_v42  ;;  %v11737_v42 = vld [vmem:[%s16566_s1 + $0x4ec] ss:$100 sps:$4 sm:$0xff]  }
 0x266   : > { %8386 = vmatprep.subr.bf16.mxu0 %v11674_v44 }
 0x267   : > { %8426 = vmatpush1.bf16.msra.mxu1 %v11669_v40  ;;  %v11732_v40 = vld [vmem:[%s16566_s1 + $0x1de0] ss:$100 sps:$4 sm:$0xff]  }
 0x268   : > { %8427 = vmatprep.subr.bf16.mxu1 %v11677_v47  ;;  %v11740_v47 = vld [vmem:[%s16566_s1 + $0x1d1c] ss:$100 sps:$4 sm:$0xff]  }
 0x269   : > { %8387 = vmatpush1.bf16.msra.mxu0 %v11672_v0 }
 0x26a   : > { %8388 = vmatprep.subr.bf16.mxu0 %v11680_v49 }
 0x26b   : > { %8428 = vmatpush1.bf16.msra.mxu1 %v11675_v48 }
 0x26c   : > { %8429 = vmatprep.subr.bf16.mxu1 %v11683_v53 }
 0x26d   : > { %8389 = vmatpush2.bf16.msra.mxu0 %v11678_v52  ;;  %v11735_v52 = vld [vmem:[%s16566_s1 + $0x4e8] ss:$100 sps:$4 sm:$0xff]  }
 0x26e   : > { %8390 = vmatprep.subr.bf16.mxu0 %v11686_v58  ;;  %v11743_v58 = vld [vmem:[%s16566_s1 + $0x424] ss:$100 sps:$4 sm:$0xff]  }
 0x26f   : > { %8430 = vmatpush2.bf16.msra.mxu1 %v11681_v55 }
 0x270   : > { %8431 = vmatprep.subr.bf16.mxu1 %v11689_v10  ;;  %v11738_v10 = vld [vmem:[%s16566_s1 + $0x1d18] ss:$100 sps:$4 sm:$0xff]  }
 0x271   : > { %8391 = vmatpush2.bf16.msra.mxu0 %v11684_v59 }
 0x272   : > { %8392 = vmatprep.subr.bf16.mxu0 %v11692_v62  ;;  %v11746_v62 = vld [vmem:[%s16566_s1 + $0x1c54] ss:$100 sps:$4 sm:$0xff]  }
 0x273   : > { %8432 = vmatpush2.bf16.msra.mxu1 %v11687_v61 }
 0x274   : > { %8433 = vmatprep.subr.bf16.mxu1 %v11695_v32  ;;  %v11741_v32 = vld [vmem:[%s16566_s1 + $0x420] ss:$100 sps:$4 sm:$0xff]  }
 0x275   : > { %8393 = vmatpush2.bf16.msra.mxu0 %v11690_v63 }
 0x276   : > { %8394 = vmatprep.subr.bf16.mxu0 %v11698_v6 }
 0x277   : > { %8434 = vmatpush2.bf16.msra.mxu1 %v11693_v14  ;;  %v11749_v14 = vld [vmem:[%s16566_s1 + $0x35c] ss:$100 sps:$4 sm:$0xff]  }
 0x278   : > { %8435 = vmatprep.subr.bf16.mxu1 %v11701_v27  ;;  %v11752_v27 = vld [vmem:[%s16566_s1 + $0x1b8c] ss:$100 sps:$4 sm:$0xff]  }
 0x279   : > { %8395 = vmatpush2.bf16.msra.mxu0 %v11696_v54  ;;  %v11744_v54 = vld [vmem:[%s16566_s1 + $0x1c50] ss:$100 sps:$4 sm:$0xff]  }
 0x27a   : > { %8396 = vmatprep.subr.bf16.mxu0 %v11704_v11  ;;  %v11755_v11 = vld [vmem:[%s16566_s1 + $0x294] ss:$100 sps:$4 sm:$0xff]  }
 0x27b   : > { %8436 = vmatpush2.bf16.msra.mxu1 %v11699_v1  ;;  %v11747_v1 = vld [vmem:[%s16566_s1 + $0x358] ss:$100 sps:$4 sm:$0xff]  }
 0x27c   : > { %8437 = vmatprep.subr.bf16.mxu1 %v11707_v13  ;;  %v11758_v13 = vld [vmem:[%s16566_s1 + $0x1ac4] ss:$100 sps:$4 sm:$0xff]  }
 0x27d   : > { %8397 = vmatpush2.bf16.msra.mxu0 %v11702_v12  ;;  %v11750_v12 = vld [vmem:[%s16566_s1 + $0x1b88] ss:$100 sps:$4 sm:$0xff]  }
 0x27e   : > { %8398 = vmatprep.subr.bf16.mxu0 %v11710_v18  ;;  %v11761_v18 = vld [vmem:[%s16566_s1 + $0x1cc] ss:$100 sps:$4 sm:$0xff]  }
 0x27f   : > { %8438 = vmatpush2.bf16.msra.mxu1 %v11705_v37  ;;  %v11753_v37 = vld [vmem:[%s16566_s1 + $0x290] ss:$100 sps:$4 sm:$0xff]  }
 0x280   : > { %8439 = vmatprep.subr.bf16.mxu1 %v11713_v22  ;;  %v11764_v22 = vld [vmem:[%s16566_s1 + $0x19fc] ss:$100 sps:$4 sm:$0xff]  }
 0x281   : > { %8399 = vmatpush2.bf16.msra.mxu0 %v11708_v21  ;;  %v11756_v21 = vld [vmem:[%s16566_s1 + $0x1ac0] ss:$100 sps:$4 sm:$0xff]  }
 0x282   : > { %8400 = vmatprep.subr.bf16.mxu0 %v11716_v24  ;;  %v11767_v24 = vld [vmem:[%s16566_s1 + $0x104] ss:$100 sps:$4 sm:$0xff]  }
 0x283   : > { %8440 = vmatpush2.bf16.msra.mxu1 %v11711_v23  ;;  %v11759_v23 = vld [vmem:[%s16566_s1 + $0x1c8] ss:$100 sps:$4 sm:$0xff]  }
 0x284   : > { %8441 = vmatprep.subr.bf16.mxu1 %v11719_v26  ;;  %v11770_v26 = vld [vmem:[%s16566_s1 + $0x1934] ss:$100 sps:$4 sm:$0xff]  }
 0x285   : > { %8401 = vmatpush2.bf16.msra.mxu0 %v11714_v17  ;;  %v11762_v17 = vld [vmem:[%s16566_s1 + $0x19f8] ss:$100 sps:$4 sm:$0xff]  }
 0x286   : > { %8402 = vmatprep.subr.bf16.mxu0 %v11722_v29  ;;  %v11773_v29 = vld [vmem:[%s16566_s1 + $0x3c] ss:$100 sps:$4 sm:$0xff]  }
 0x287   : > { %8442 = vmatpush2.bf16.msra.mxu1 %v11717_v28  ;;  %v11765_v28 = vld [vmem:[%s16566_s1 + $0x100] ss:$100 sps:$4 sm:$0xff]  }
 0x288   : > { %8443 = vmatprep.subr.bf16.mxu1 %v11725_v8  ;;  %v11776_v8 = vld [vmem:[%s16566_s1 + $0x24ec] ss:$100 sps:$4 sm:$0xff]  }
 0x289   : > { %8403 = vmatpush2.bf16.msra.mxu0 %v11720_v31  ;;  %v11768_v31 = vld [vmem:[%s16566_s1 + $0x1930] ss:$100 sps:$4 sm:$0xff]  }
 0x28a   : > { %8454 = vmatprep.subr.bf16.mxu0 %v11728_v30  ;;  %v11771_v30 = vld [vmem:[%s16566_s1 + $0x38] ss:$100 sps:$4 sm:$0xff]  }
 0x28b   : > { %8444 = vmatpush2.bf16.msra.mxu1 %v11723_v33  ;;  %v11779_v33 = vld [vmem:[%s16566_s1 + $0xbf4] ss:$100 sps:$4 sm:$0xff]  }
 0x28c   : > { %v8160_v41 = vpop.f32.mrf.mxu0  ;;  %8405 = vmatmul.mubr.bf16.vlgmr.msra.gmra.mxu0 %v12823_v16  ;;  %8495 = vmatprep.subr.bf16.mxu1 %v11731_v36  ;;  %v11774_v36 = vld [vmem:[%s16566_s1 + $0x24e8] ss:$100 sps:$4 sm:$0xff]  }
 0x28d   : > { %v8161_v43 = vadd.f32 %v8160_v41, %v7544_v38  ;;  %8455 = vmatpush1.bf16.msra.mxu0 %v11726_v2  ;;  %8486 = vmatprep.mubr.bf16.mxu0 %v12831_v19  ;;  %v11782_v38 = vld [vmem:[%s16566_s1 + $0x2424] ss:$100 sps:$4 sm:$0xff]   ;;  %v11777_v2 = vld [vmem:[%s16566_s1 + $0xbf0] ss:$100 sps:$4 sm:$0xff]  }
 0x28e   : > { %v8162_v44 = vpop.f32.mrf.mxu0  ;;  %v8201_v0 = vpop.f32.mrf.mxu1  ;;  %8446 = vmatmul.mubr.bf16.vlgmr.msra.gmra.mxu1 %v12833_v20  ;;  %8456 = vmatprep.subr.bf16.mxu0 %v11734_v4  ;;  %v11785_v4 = vld [vmem:[%s16566_s1 + $0xb2c] ss:$100 sps:$4 sm:$0xff]  }
 0x28f   : > { %v8163_v48 = vadd.f32 %v8162_v44, %v7548_v9  ;;  %v14729_v49 = vadd.f32 %v8201_v0, %v8161_v43  ;;  %8496 = vmatpush1.bf16.msra.mxu1 %v11729_v39  ;;  %8527 = vmatprep.mubr.bf16.mxu1 %v12754_v56  ;;  %v11780_v9 = vld [vmem:[%s16566_s1 + $0x2420] ss:$100 sps:$4 sm:$0xff]   ;;  %v11783_v41 = vld [vmem:[%s16566_s1 + $0xb28] ss:$100 sps:$4 sm:$0xff]   ;;  %v11786_v43 = vld [vmem:[%s16566_s1 + $0x2358] ss:$100 sps:$4 sm:$0xff]  }
 0x290   : > { %v8164_v53 = vpop.f32.mrf.mxu0  ;;  %v8203_v55 = vpop.f32.mrf.mxu1  ;;  %8497 = vmatprep.subr.bf16.mxu1 %v11737_v42  ;;  %v11788_v39 = vld [vmem:[%s16566_s1 + $0x235c] ss:$100 sps:$4 sm:$0xff]   ;;  %v11791_v42 = vld [vmem:[%s16566_s1 + $0xa64] ss:$100 sps:$4 sm:$0xff]  }
 0x291   : > { %v14738_v59 = vadd.f32 %v8203_v55, %v8163_v48  ;;  %8457 = vmatpush1.bf16.msra.mxu0 %v11732_v40  ;;  %v11794_v40 = vld [vmem:[%s16566_s1 + $0x2294] ss:$100 sps:$4 sm:$0xff]   ;;  %v11789_v44 = vld [vmem:[%s16566_s1 + $0xa60] ss:$100 sps:$4 sm:$0xff]   ;;  %v11800_v48 = vld [vmem:[%s16566_s1 + $0x21cc] ss:$100 sps:$4 sm:$0xff]  }
 0x292   : > { %v8165_v61 = vpop.f32.mrf.mxu0  ;;  %8458 = vmatprep.subr.bf16.mxu0 %v11740_v47  ;;  %v8205_v63 = vpop.f32.mrf.mxu1  ;;  %v11797_v0 = vld [vmem:[%s16566_s1 + $0x99c] ss:$100 sps:$4 sm:$0xff]   ;;  %v11792_v47 = vld [vmem:[%s16566_s1 + $0x2290] ss:$100 sps:$4 sm:$0xff]   ;;  %v11798_v55 = vld [vmem:[%s16566_s1 + $0x21c8] ss:$100 sps:$4 sm:$0xff]  }
 0x293   : > { %8498 = vmatpush1.bf16.msra.mxu1 %v11735_v52  ;;  %v11795_v52 = vld [vmem:[%s16566_s1 + $0x998] ss:$100 sps:$4 sm:$0xff]   ;;  %v11809_v61 = vld [vmem:[%s16566_s1 + $0x80c] ss:$100 sps:$4 sm:$0xff]  }
 0x294   : > { %8499 = vmatprep.subr.bf16.mxu1 %v11743_v58  ;;  %v8206_v6 = vpop.f32.mrf.mxu1  ;;  %v11803_v53 = vld [vmem:[%s16566_s1 + $0x8d4] ss:$100 sps:$4 sm:$0xff]   ;;  %v11806_v58 = vld [vmem:[%s16566_s1 + $0x2104] ss:$100 sps:$4 sm:$0xff]   ;;  %v11812_v63 = vld [vmem:[%s16566_s1 + $0x203c] ss:$100 sps:$4 sm:$0xff]  }
 0x295   : > { %8459 = vmatpush1.bf16.msra.mxu0 %v11738_v10  ;;  %v11801_v10 = vld [vmem:[%s16566_s1 + $0x8d0] ss:$100 sps:$4 sm:$0xff]   ;;  %v11810_v6 = vld [vmem:[%s16566_s1 + $0x2038] ss:$100 sps:$4 sm:$0xff]  }
 0x296   : > { %8460 = vmatprep.subr.bf16.mxu0 %v11746_v62  ;;  %v11804_v62 = vld [vmem:[%s16566_s1 + $0x2100] ss:$100 sps:$4 sm:$0xff]  }
 0x297   : > { %8500 = vmatpush1.bf16.msra.mxu1 %v11741_v32  ;;  %v11807_v32 = vld [vmem:[%s16566_s1 + $0x808] ss:$100 sps:$4 sm:$0xff]  }
 0x298   : > { %8501 = vmatprep.subr.bf16.mxu1 %v11749_v14  ;;  %v11815_v14 = vld [vmem:[%s16566_s1 + $0x744] ss:$100 sps:$4 sm:$0xff]  }
 0x299   : > { %8461 = vmatpush1.bf16.msra.mxu0 %v11744_v54  ;;  %v11818_v54 = vld [vmem:[%s16566_s1 + $0x1f74] ss:$100 sps:$4 sm:$0xff]  }
 0x29a   : > { %8462 = vmatprep.subr.bf16.mxu0 %v11752_v27  ;;  %v11813_v27 = vld [vmem:[%s16566_s1 + $0x740] ss:$100 sps:$4 sm:$0xff]  }
 0x29b   : > { %8502 = vmatpush1.bf16.msra.mxu1 %v11747_v1  ;;  %v11821_v1 = vld [vmem:[%s16566_s1 + $0x67c] ss:$100 sps:$4 sm:$0xff]  }
 0x29c   : > { %8503 = vmatprep.subr.bf16.mxu1 %v11755_v11  ;;  %v11816_v11 = vld [vmem:[%s16566_s1 + $0x1f70] ss:$100 sps:$4 sm:$0xff]  }
 0x29d   : > { %8463 = vmatpush1.bf16.msra.mxu0 %v11750_v12  ;;  %v11824_v12 = vld [vmem:[%s16566_s1 + $0x1234] ss:$100 sps:$4 sm:$0xff]  }
 0x29e   : > { %8464 = vmatprep.subr.bf16.mxu0 %v11758_v13  ;;  %v11819_v13 = vld [vmem:[%s16566_s1 + $0x678] ss:$100 sps:$4 sm:$0xff]  }
 0x29f   : > { %8504 = vmatpush1.bf16.msra.mxu1 %v11753_v37  ;;  %v11827_v37 = vld [vmem:[%s16566_s1 + $0x1eb4] ss:$100 sps:$4 sm:$0xff]  }
 0x2a0   : > { %8505 = vmatprep.subr.bf16.mxu1 %v11761_v18  ;;  %v11822_v18 = vld [vmem:[%s16566_s1 + $0x1230] ss:$100 sps:$4 sm:$0xff]  }
 0x2a1   : > { %8465 = vmatpush1.bf16.msra.mxu0 %v11756_v21  ;;  %v11830_v21 = vld [vmem:[%s16566_s1 + $0x116c] ss:$100 sps:$4 sm:$0xff]  }
 0x2a2   : > { %8466 = vmatprep.subr.bf16.mxu0 %v11764_v22  ;;  %v11825_v22 = vld [vmem:[%s16566_s1 + $0x1eb0] ss:$100 sps:$4 sm:$0xff]  }
 0x2a3   : > { %8506 = vmatpush1.bf16.msra.mxu1 %v11759_v23 }
 0x2a4   : > { %8507 = vmatprep.subr.bf16.mxu1 %v11767_v24  ;;  %v11833_v24 = vld [vmem:[%s16566_s1 + $0x1dec] ss:$100 sps:$4 sm:$0xff]  }
 0x2a5   : > { %8467 = vmatpush1.bf16.msra.mxu0 %v11762_v17 }
 0x2a6   : > { %8468 = vmatprep.subr.bf16.mxu0 %v11770_v26  ;;  %v11828_v26 = vld [vmem:[%s16566_s1 + $0x1168] ss:$100 sps:$4 sm:$0xff]  }
 0x2a7   : > { %8508 = vmatpush1.bf16.msra.mxu1 %v11765_v28 }
 0x2a8   : > { %8509 = vmatprep.subr.bf16.mxu1 %v11773_v29  ;;  %v11836_v29 = vld [vmem:[%s16566_s1 + $0x10a4] ss:$100 sps:$4 sm:$0xff]  }
 0x2a9   : > { %8469 = vmatpush1.bf16.msra.mxu0 %v11768_v31 }
 0x2aa   : > { %8470 = vmatprep.subr.bf16.mxu0 %v11776_v8  ;;  %v11831_v8 = vld [vmem:[%s16566_s1 + $0x1de8] ss:$100 sps:$4 sm:$0xff]  }
 0x2ab   : > { %8510 = vmatpush1.bf16.msra.mxu1 %v11771_v30 }
 0x2ac   : > { %8511 = vmatprep.subr.bf16.mxu1 %v11779_v33  ;;  %v11839_v33 = vld [vmem:[%s16566_s1 + $0x1d24] ss:$100 sps:$4 sm:$0xff]  }
 0x2ad   : > { %8471 = vmatpush2.bf16.msra.mxu0 %v11774_v36 }
 0x2ae   : > { %8472 = vmatprep.subr.bf16.mxu0 %v11782_v38 }
 0x2af   : > { %8512 = vmatpush2.bf16.msra.mxu1 %v11777_v2 }
 0x2b0   : > { %8513 = vmatprep.subr.bf16.mxu1 %v11785_v4  ;;  %v11842_v4 = vld [vmem:[%s16566_s1 + $0xfdc] ss:$100 sps:$4 sm:$0xff]  }
 0x2b1   : > { %8473 = vmatpush2.bf16.msra.mxu0 %v11780_v9 }
 0x2b2   : > { %8474 = vmatprep.subr.bf16.mxu0 %v11788_v39  ;;  %v11837_v39 = vld [vmem:[%s16566_s1 + $0x1d20] ss:$100 sps:$4 sm:$0xff]  }
 0x2b3   : > { %8514 = vmatpush2.bf16.msra.mxu1 %v11783_v41  ;;  %v11845_v41 = vld [vmem:[%s16566_s1 + $0x1c5c] ss:$100 sps:$4 sm:$0xff]  }
 0x2b4   : > { %8515 = vmatprep.subr.bf16.mxu1 %v11791_v42 }
 0x2b5   : > { %8475 = vmatpush2.bf16.msra.mxu0 %v11786_v43  ;;  %v11840_v43 = vld [vmem:[%s16566_s1 + $0xfd8] ss:$100 sps:$4 sm:$0xff]  }
 0x2b6   : > { %8476 = vmatprep.subr.bf16.mxu0 %v11794_v40  ;;  %v11848_v40 = vld [vmem:[%s16566_s1 + $0xf14] ss:$100 sps:$4 sm:$0xff]  }
 0x2b7   : > { %8516 = vmatpush2.bf16.msra.mxu1 %v11789_v44  ;;  %v11843_v44 = vld [vmem:[%s16566_s1 + $0x1c58] ss:$100 sps:$4 sm:$0xff]  }
 0x2b8   : > { %8517 = vmatprep.subr.bf16.mxu1 %v11797_v0  ;;  %v11851_v0 = vld [vmem:[%s16566_s1 + $0x1b94] ss:$100 sps:$4 sm:$0xff]  }
 0x2b9   : > { %8477 = vmatpush2.bf16.msra.mxu0 %v11792_v47  ;;  %v11846_v47 = vld [vmem:[%s16566_s1 + $0xf10] ss:$100 sps:$4 sm:$0xff]  }
 0x2ba   : > { %8478 = vmatprep.subr.bf16.mxu0 %v11800_v48  ;;  %v11854_v48 = vld [vmem:[%s16566_s1 + $0xe4c] ss:$100 sps:$4 sm:$0xff]  }
 0x2bb   : > { %8518 = vmatpush2.bf16.msra.mxu1 %v11795_v52  ;;  %v11849_v52 = vld [vmem:[%s16566_s1 + $0x1b90] ss:$100 sps:$4 sm:$0xff]  }
 0x2bc   : > { %8519 = vmatprep.subr.bf16.mxu1 %v11803_v53  ;;  %v11857_v53 = vld [vmem:[%s16566_s1 + $0x1acc] ss:$100 sps:$4 sm:$0xff]  }
 0x2bd   : > { %8479 = vmatpush2.bf16.msra.mxu0 %v11798_v55  ;;  %v11852_v55 = vld [vmem:[%s16566_s1 + $0xe48] ss:$100 sps:$4 sm:$0xff]  }
 0x2be   : > { %8480 = vmatprep.subr.bf16.mxu0 %v11806_v58  ;;  %v11860_v58 = vld [vmem:[%s16566_s1 + $0xd84] ss:$100 sps:$4 sm:$0xff]  }
 0x2bf   : > { %8520 = vmatpush2.bf16.msra.mxu1 %v11801_v10  ;;  %v11855_v10 = vld [vmem:[%s16566_s1 + $0x1ac8] ss:$100 sps:$4 sm:$0xff]  }
 0x2c0   : > { %8521 = vmatprep.subr.bf16.mxu1 %v11809_v61  ;;  %v11863_v61 = vld [vmem:[%s16566_s1 + $0x1a04] ss:$100 sps:$4 sm:$0xff]  }
 0x2c1   : > { %8481 = vmatpush2.bf16.msra.mxu0 %v11804_v62  ;;  %v11858_v62 = vld [vmem:[%s16566_s1 + $0xd80] ss:$100 sps:$4 sm:$0xff]  }
 0x2c2   : > { %8482 = vmatprep.subr.bf16.mxu0 %v11812_v63  ;;  %v11866_v63 = vld [vmem:[%s16566_s1 + $0xcbc] ss:$100 sps:$4 sm:$0xff]  }
 0x2c3   : > { %8522 = vmatpush2.bf16.msra.mxu1 %v11807_v32  ;;  %v11861_v32 = vld [vmem:[%s16566_s1 + $0x1a00] ss:$100 sps:$4 sm:$0xff]  }
 0x2c4   : > { %8523 = vmatprep.subr.bf16.mxu1 %v11815_v14  ;;  %v11869_v14 = vld [vmem:[%s16566_s1 + $0x193c] ss:$100 sps:$4 sm:$0xff]  }
 0x2c5   : > { %8483 = vmatpush2.bf16.msra.mxu0 %v11810_v6  ;;  %v11864_v6 = vld [vmem:[%s16566_s1 + $0xcb8] ss:$100 sps:$4 sm:$0xff]  }
 0x2c6   : > { %8484 = vmatprep.subr.bf16.mxu0 %v11818_v54  ;;  %v11872_v54 = vld [vmem:[%s16566_s1 + $0x1874] ss:$100 sps:$4 sm:$0xff]  }
 0x2c7   : > { %8524 = vmatpush2.bf16.msra.mxu1 %v11813_v27  ;;  %v11867_v27 = vld [vmem:[%s16566_s1 + $0x1938] ss:$100 sps:$4 sm:$0xff]  }
 0x2c8   : > { %8525 = vmatprep.subr.bf16.mxu1 %v11821_v1  ;;  %v11875_v1 = vld [vmem:[%s16566_s1 + $0x24f4] ss:$100 sps:$4 sm:$0xff]  }
 0x2c9   : > { %8485 = vmatpush2.bf16.msra.mxu0 %v11816_v11  ;;  %v11870_v11 = vld [vmem:[%s16566_s1 + $0x1870] ss:$100 sps:$4 sm:$0xff]  }
 0x2ca   : > { %8536 = vmatprep.subr.bf16.mxu0 %v11824_v12  ;;  %v11878_v12 = vld [vmem:[%s16566_s1 + $0x17ac] ss:$100 sps:$4 sm:$0xff]  }
 0x2cb   : > { %8526 = vmatpush2.bf16.msra.mxu1 %v11819_v13  ;;  %v11873_v13 = vld [vmem:[%s16566_s1 + $0x24f0] ss:$100 sps:$4 sm:$0xff]  }
 0x2cc   : > { %v8242_v23 = vpop.f32.mrf.mxu0  ;;  %8487 = vmatmul.mubr.bf16.vlgmr.msra.gmra.mxu0 %v13030_v34  ;;  %8577 = vmatprep.subr.bf16.mxu1 %v11827_v37  ;;  %v11881_v37 = vld [vmem:[%s16566_s1 + $0x242c] ss:$100 sps:$4 sm:$0xff]  }
 0x2cd   : > { %v14922_v17 = vadd.f32 %v8242_v23, %v14729_v49  ;;  %8537 = vmatpush1.bf16.msra.mxu0 %v11822_v18  ;;  %8568 = vmatprep.mubr.bf16.mxu0 %v12756_v57  ;;  %v11876_v18 = vld [vmem:[%s16566_s1 + $0x17a8] ss:$100 sps:$4 sm:$0xff]  }
 0x2ce   : > { %v8244_v28 = vpop.f32.mrf.mxu0  ;;  %8528 = vmatmul.mubr.bf16.vlgmr.msra.gmra.mxu1 %v12823_v16  ;;  %8538 = vmatprep.subr.bf16.mxu0 %v11830_v21  ;;  %v14932_v31 = vpop.f32.mrf.mxu1  ;;  %v11884_v21 = vld [vmem:[%s16566_s1 + $0x16e4] ss:$100 sps:$4 sm:$0xff]  }
 0x2cf   : > { %v14935_v49 = vadd.f32 %v8244_v28, %v14738_v59  ;;  %8578 = vmatpush1.bf16.msra.mxu1 %v11825_v22  ;;  %8609 = vmatprep.mubr.bf16.mxu1 %v12831_v19  ;;  %v11834_v59 = vld [vmem:[%s16566_s1 + $0x10a0] ss:$100 sps:$4 sm:$0xff]   ;;  %v11879_v22 = vld [vmem:[%s16566_s1 + $0x2428] ss:$100 sps:$4 sm:$0xff]  }
 0x2d0   : > { %v8246_v30 = vpop.f32.mrf.mxu0  ;;  %8579 = vmatprep.subr.bf16.mxu1 %v11833_v24  ;;  %v14944_v36 = vpop.f32.mrf.mxu1  ;;  %v11887_v23 = vld [vmem:[%s16566_s1 + $0x2364] ss:$100 sps:$4 sm:$0xff]  }
 0x2d1   : > { %v9304_v38 = vcombine.low %v14922_v17, %v14935_v49  ;;  %8539 = vmatpush1.bf16.msra.mxu0 %v11828_v26  ;;  %v11882_v24 = vld [vmem:[%s16566_s1 + $0x16e0] ss:$100 sps:$4 sm:$0xff]   ;;  %v11896_v30 = vld [vmem:[%s16566_s1 + $0x1554] ss:$100 sps:$4 sm:$0xff]  }
 0x2d2   : > { %v8247_v2 = vpop.f32.mrf.mxu0  ;;  %8540 = vmatprep.subr.bf16.mxu0 %v11836_v29  ;;  %v8287_v9 = vpop.f32.mrf.mxu1  ;;  %v11890_v26 = vld [vmem:[%s16566_s1 + $0x161c] ss:$100 sps:$4 sm:$0xff]  }
 0x2d3   : > { %8580 = vmatpush1.bf16.msra.mxu1 %v11831_v8  ;;  %v11885_v28 = vld [vmem:[%s16566_s1 + $0x2360] ss:$100 sps:$4 sm:$0xff]   ;;  %v11888_v8 = vld [vmem:[%s16566_s1 + $0x1618] ss:$100 sps:$4 sm:$0xff]   ;;  %v11894_v2 = vld [vmem:[%s16566_s1 + $0x1550] ss:$100 sps:$4 sm:$0xff]  }
 0x2d4   : > { %8581 = vmatprep.subr.bf16.mxu1 %v11839_v33  ;;  %v8288_v42 = vpop.f32.mrf.mxu1  ;;  %v11893_v29 = vld [vmem:[%s16566_s1 + $0x229c] ss:$100 sps:$4 sm:$0xff]   ;;  %v11897_v9 = vld [vmem:[%s16566_s1 + $0x21d0] ss:$100 sps:$4 sm:$0xff]  }
 0x2d5   : > { %8541 = vmatpush1.bf16.msra.mxu0 %v11834_v59  ;;  %v11891_v33 = vld [vmem:[%s16566_s1 + $0x2298] ss:$100 sps:$4 sm:$0xff]   ;;  %v11908_v42 = vld [vmem:[%s16566_s1 + $0x13c4] ss:$100 sps:$4 sm:$0xff]  }
 0x2d6   : > { %8542 = vmatprep.subr.bf16.mxu0 %v11842_v4  ;;  %v11899_v59 = vld [vmem:[%s16566_s1 + $0x21d4] ss:$100 sps:$4 sm:$0xff]   ;;  %v11902_v4 = vld [vmem:[%s16566_s1 + $0x148c] ss:$100 sps:$4 sm:$0xff]   ;;  %v11939_v17 = vld [vmem:[%s16566_s1 + $0xfe0] ss:$100 sps:$4 sm:$0xff]  }
 0x2d7   : > { %8582 = vmatpush1.bf16.msra.mxu1 %v11837_v39  ;;  %v11905_v39 = vld [vmem:[%s16566_s1 + $0x210c] ss:$100 sps:$4 sm:$0xff]   ;;  %v11947_v49 = vld [vmem:[%s16566_s1 + $0xf1c] ss:$100 sps:$4 sm:$0xff]  }
 0x2d8   : > { %8583 = vmatprep.subr.bf16.mxu1 %v11845_v41  ;;  %v11900_v41 = vld [vmem:[%s16566_s1 + $0x1488] ss:$100 sps:$4 sm:$0xff]  }
 0x2d9   : > { %8543 = vmatpush1.bf16.msra.mxu0 %v11840_v43  ;;  %v11903_v43 = vld [vmem:[%s16566_s1 + $0x2108] ss:$100 sps:$4 sm:$0xff]  }
 0x2da   : > { %8544 = vmatprep.subr.bf16.mxu0 %v11848_v40  ;;  %v11911_v40 = vld [vmem:[%s16566_s1 + $0x2044] ss:$100 sps:$4 sm:$0xff]  }
 0x2db   : > { %8584 = vmatpush1.bf16.msra.mxu1 %v11843_v44  ;;  %v11906_v44 = vld [vmem:[%s16566_s1 + $0x13c0] ss:$100 sps:$4 sm:$0xff]  }
 0x2dc   : > { %8585 = vmatprep.subr.bf16.mxu1 %v11851_v0  ;;  %v11914_v0 = vld [vmem:[%s16566_s1 + $0x12fc] ss:$100 sps:$4 sm:$0xff]  }
 0x2dd   : > { %8545 = vmatpush1.bf16.msra.mxu0 %v11846_v47  ;;  %v11909_v47 = vld [vmem:[%s16566_s1 + $0x2040] ss:$100 sps:$4 sm:$0xff]  }
 0x2de   : > { %8546 = vmatprep.subr.bf16.mxu0 %v11854_v48  ;;  %v11917_v48 = vld [vmem:[%s16566_s1 + $0x1f7c] ss:$100 sps:$4 sm:$0xff]  }
 0x2df   : > { %8586 = vmatpush1.bf16.msra.mxu1 %v11849_v52  ;;  %v11912_v52 = vld [vmem:[%s16566_s1 + $0x12f8] ss:$100 sps:$4 sm:$0xff]  }
 0x2e0   : > { %8587 = vmatprep.subr.bf16.mxu1 %v11857_v53  ;;  %v11920_v53 = vld [vmem:[%s16566_s1 + $0x5bc] ss:$100 sps:$4 sm:$0xff]  }
 0x2e1   : > { %8547 = vmatpush1.bf16.msra.mxu0 %v11852_v55  ;;  %v7552_v55 = vrot.slane %v14696_v15, %v12800_v7 }
 0x2e2   : > { %8548 = vmatprep.subr.bf16.mxu0 %v11860_v58  ;;  %v11915_v58 = vld [vmem:[%s16566_s1 + $0x1f78] ss:$100 sps:$4 sm:$0xff]  }
 0x2e3   : > { %8588 = vmatpush1.bf16.msra.mxu1 %v11855_v10  ;;  %v11923_v10 = vld [vmem:[%s16566_s1 + $0x123c] ss:$100 sps:$4 sm:$0xff]  }
 0x2e4   : > { %8589 = vmatprep.subr.bf16.mxu1 %v11863_v61  ;;  %v7556_v61 = vrot.slane %v14696_v15, %v12728_v46  ;;  %v11929_v15 = vld [vmem:[%s16566_s1 + $0x1174] ss:$100 sps:$4 sm:$0xff]  }
 0x2e5   : > { %8549 = vmatpush1.bf16.msra.mxu0 %v11858_v62  ;;  %v11918_v62 = vld [vmem:[%s16566_s1 + $0x5b8] ss:$100 sps:$4 sm:$0xff]  }
 0x2e6   : > { %8550 = vmatprep.subr.bf16.mxu0 %v11866_v63  ;;  %v11926_v63 = vld [vmem:[%s16566_s1 + $0x4f4] ss:$100 sps:$4 sm:$0xff]  }
 0x2e7   : > { %8590 = vmatpush1.bf16.msra.mxu1 %v11861_v32  ;;  %v8284_v32 = vadd.f32 %v14932_v31, %v7552_v55  ;;  %v11924_v31 = vld [vmem:[%s16566_s1 + $0x4f0] ss:$100 sps:$4 sm:$0xff]   ;;  %v11957_v55 = vld [vmem:[%s16566_s1 + $0xd88] ss:$100 sps:$4 sm:$0xff]  }
 0x2e8   : > { %8591 = vmatprep.subr.bf16.mxu1 %v11869_v14  ;;  %v11921_v14 = vld [vmem:[%s16566_s1 + $0x1238] ss:$100 sps:$4 sm:$0xff]  }
 0x2e9   : > { %8551 = vmatpush1.bf16.msra.mxu0 %v11864_v6 }
 0x2ea   : > { %8552 = vmatprep.subr.bf16.mxu0 %v11872_v54  ;;  %v8286_v54 = vadd.f32 %v14944_v36, %v7556_v61  ;;  %v11927_v36 = vld [vmem:[%s16566_s1 + $0x1170] ss:$100 sps:$4 sm:$0xff]   ;;  %v11968_v61 = vld [vmem:[%s16566_s1 + $0xbfc] ss:$100 sps:$4 sm:$0xff]  }
 0x2eb   : > { %8592 = vmatpush1.bf16.msra.mxu1 %v11867_v27 }
 0x2ec   : > { %8593 = vmatprep.subr.bf16.mxu1 %v11875_v1 }
 0x2ed   : > { %8553 = vmatpush2.bf16.msra.mxu0 %v11870_v11 }
 0x2ee   : > { %8554 = vmatprep.subr.bf16.mxu0 %v11878_v12  ;;  %v11932_v12 = vld [vmem:[%s16566_s1 + $0x42c] ss:$100 sps:$4 sm:$0xff]  }
 0x2ef   : > { %8594 = vmatpush2.bf16.msra.mxu1 %v11873_v13 }
 0x2f0   : > { %8595 = vmatprep.subr.bf16.mxu1 %v11881_v37 }
 0x2f1   : > { %8555 = vmatpush2.bf16.msra.mxu0 %v11876_v18 }
 0x2f2   : > { %8556 = vmatprep.subr.bf16.mxu0 %v11884_v21 }
 0x2f3   : > { %8596 = vmatpush2.bf16.msra.mxu1 %v11879_v22  ;;  %v11935_v22 = vld [vmem:[%s16566_s1 + $0x10ac] ss:$100 sps:$4 sm:$0xff]  }
 0x2f4   : > { %8597 = vmatprep.subr.bf16.mxu1 %v11887_v23 }
 0x2f5   : > { %8557 = vmatpush2.bf16.msra.mxu0 %v11882_v24  ;;  %v11930_v24 = vld [vmem:[%s16566_s1 + $0x428] ss:$100 sps:$4 sm:$0xff]  }
 0x2f6   : > { %8558 = vmatprep.subr.bf16.mxu0 %v11890_v26 }
 0x2f7   : > { %8598 = vmatpush2.bf16.msra.mxu1 %v11885_v28  ;;  %v11938_v28 = vld [vmem:[%s16566_s1 + $0x364] ss:$100 sps:$4 sm:$0xff]  }
 0x2f8   : > { %8599 = vmatprep.subr.bf16.mxu1 %v11893_v29 }
 0x2f9   : > { %8559 = vmatpush2.bf16.msra.mxu0 %v11888_v8 }
 0x2fa   : > { %8560 = vmatprep.subr.bf16.mxu0 %v11896_v30  ;;  %v11933_v30 = vld [vmem:[%s16566_s1 + $0x10a8] ss:$100 sps:$4 sm:$0xff]  }
 0x2fb   : > { %8600 = vmatpush2.bf16.msra.mxu1 %v11891_v33  ;;  %v11941_v33 = vld [vmem:[%s16566_s1 + $0xfe4] ss:$100 sps:$4 sm:$0xff]  }
 0x2fc   : > { %8601 = vmatprep.subr.bf16.mxu1 %v11899_v59 }
 0x2fd   : > { %8561 = vmatpush2.bf16.msra.mxu0 %v11894_v2  ;;  %v15166_v2 = vrot.slane %v9304_v38, %v13880_v51  ;;  %v11942_v38 = vld [vmem:[%s16566_s1 + $0x298] ss:$100 sps:$4 sm:$0xff]  }
 0x2fe   : > { %8562 = vmatprep.subr.bf16.mxu0 %v11902_v4 }
 0x2ff   : > { %8602 = vmatpush2.bf16.msra.mxu1 %v11897_v9  ;;  %v11936_v9 = vld [vmem:[%s16566_s1 + $0x360] ss:$100 sps:$4 sm:$0xff]  }
 0x300   : > { %8603 = vmatprep.subr.bf16.mxu1 %v11905_v39  ;;  %v11944_v39 = vld [vmem:[%s16566_s1 + $0x29c] ss:$100 sps:$4 sm:$0xff]  }
 0x301   : > { %8563 = vmatpush2.bf16.msra.mxu0 %v11900_v41 }
 0x302   : > { %8564 = vmatprep.subr.bf16.mxu0 %v11908_v42  ;;  %v11950_v42 = vld [vmem:[%s16566_s1 + $0x1d4] ss:$100 sps:$4 sm:$0xff]  }
 0x303   : > { %8604 = vmatpush2.bf16.msra.mxu1 %v11903_v43  ;;  %v11945_v43 = vld [vmem:[%s16566_s1 + $0xf18] ss:$100 sps:$4 sm:$0xff]  }
 0x304   : > { %8605 = vmatprep.subr.bf16.mxu1 %v11911_v40  ;;  %v11953_v40 = vld [vmem:[%s16566_s1 + $0xe54] ss:$100 sps:$4 sm:$0xff]  }
 0x305   : > { %8565 = vmatpush2.bf16.msra.mxu0 %v11906_v44  ;;  %v11948_v44 = vld [vmem:[%s16566_s1 + $0x1d0] ss:$100 sps:$4 sm:$0xff]  }
 0x306   : > { %8566 = vmatprep.subr.bf16.mxu0 %v11914_v0  ;;  %v11956_v0 = vld [vmem:[%s16566_s1 + $0x10c] ss:$100 sps:$4 sm:$0xff]  }
 0x307   : > { %8606 = vmatpush2.bf16.msra.mxu1 %v11909_v47  ;;  %v11951_v47 = vld [vmem:[%s16566_s1 + $0xe50] ss:$100 sps:$4 sm:$0xff]  }
 0x308   : > { %8607 = vmatprep.subr.bf16.mxu1 %v11917_v48  ;;  %v11959_v48 = vld [vmem:[%s16566_s1 + $0xd8c] ss:$100 sps:$4 sm:$0xff]  }
 0x309   : > { %8567 = vmatpush2.bf16.msra.mxu0 %v11912_v52  ;;  %v11954_v52 = vld [vmem:[%s16566_s1 + $0x108] ss:$100 sps:$4 sm:$0xff]  }
 0x30a   : > { %8618 = vmatprep.subr.bf16.mxu0 %v11920_v53  ;;  %v11962_v53 = vld [vmem:[%s16566_s1 + $0x44] ss:$100 sps:$4 sm:$0xff]  }
 0x30b   : > { %8608 = vmatpush2.bf16.msra.mxu1 %v11915_v58  ;;  %v11965_v58 = vld [vmem:[%s16566_s1 + $0xcc4] ss:$100 sps:$4 sm:$0xff]  }
 0x30c   : > { %v8324_v6 = vpop.f32.mrf.mxu0  ;;  %8569 = vmatmul.mubr.bf16.vlgmr.msra.gmra.mxu0 %v12833_v20  ;;  %8659 = vmatprep.subr.bf16.mxu1 %v11923_v10  ;;  %v11960_v10 = vld [vmem:[%s16566_s1 + $0x40] ss:$100 sps:$4 sm:$0xff]  }
 0x30d   : > { %v8325_v27 = vadd.f32 %v8324_v6, %v8284_v32  ;;  %8619 = vmatpush1.bf16.msra.mxu0 %v11918_v62  ;;  %8650 = vmatprep.mubr.bf16.mxu0 %v12754_v56  ;;  %v11963_v62 = vld [vmem:[%s16566_s1 + $0xcc0] ss:$100 sps:$4 sm:$0xff]   ;;  %v11966_v32 = vld [vmem:[%s16566_s1 + $0xbf8] ss:$100 sps:$4 sm:$0xff]  }
 0x30e   : > { %v8326_v1 = vpop.f32.mrf.mxu0  ;;  %v8365_v11 = vpop.f32.mrf.mxu1  ;;  %8610 = vmatmul.mubr.bf16.vlgmr.msra.gmra.mxu1 %v13030_v34  ;;  %8620 = vmatprep.subr.bf16.mxu0 %v11926_v63  ;;  %v11971_v63 = vld [vmem:[%s16566_s1 + $0x187c] ss:$100 sps:$4 sm:$0xff]  }
 0x30f   : > { %v8327_v13 = vadd.f32 %v8326_v1, %v8286_v54  ;;  %v8366_v37 = vadd.f32 %v8365_v11, %v8325_v27  ;;  %8660 = vmatpush1.bf16.msra.mxu1 %v11921_v14  ;;  %8691 = vmatprep.mubr.bf16.mxu1 %v12756_v57  ;;  %v11974_v14 = vld [vmem:[%s16566_s1 + $0xb34] ss:$100 sps:$4 sm:$0xff]   ;;  %v11980_v27 = vld [vmem:[%s16566_s1 + $0xa6c] ss:$100 sps:$4 sm:$0xff]  }
 0x310   : > { %v8328_v18 = vpop.f32.mrf.mxu0  ;;  %v8367_v21 = vpop.f32.mrf.mxu1  ;;  %8661 = vmatprep.subr.bf16.mxu1 %v11929_v15  ;;  %v11969_v6 = vld [vmem:[%s16566_s1 + $0x1878] ss:$100 sps:$4 sm:$0xff]   ;;  %v11972_v54 = vld [vmem:[%s16566_s1 + $0xb30] ss:$100 sps:$4 sm:$0xff]   ;;  %v11978_v11 = vld [vmem:[%s16566_s1 + $0xa68] ss:$100 sps:$4 sm:$0xff]  }
 0x311   : > { %v8368_v23 = vadd.f32 %v8367_v21, %v8327_v13  ;;  %8621 = vmatpush1.bf16.msra.mxu0 %v11924_v31  ;;  %v11977_v15 = vld [vmem:[%s16566_s1 + $0x17b4] ss:$100 sps:$4 sm:$0xff]   ;;  %v11983_v1 = vld [vmem:[%s16566_s1 + $0x16ec] ss:$100 sps:$4 sm:$0xff]   ;;  %v11992_v18 = vld [vmem:[%s16566_s1 + $0x8dc] ss:$100 sps:$4 sm:$0xff]  }
 0x312   : > { %v8329_v26 = vpop.f32.mrf.mxu0  ;;  %8622 = vmatprep.subr.bf16.mxu0 %v11932_v12  ;;  %v8369_v29 = vpop.f32.mrf.mxu1  ;;  %v11975_v31 = vld [vmem:[%s16566_s1 + $0x17b0] ss:$100 sps:$4 sm:$0xff]   ;;  %v11986_v12 = vld [vmem:[%s16566_s1 + $0x9a4] ss:$100 sps:$4 sm:$0xff]  }
 0x313   : > { %v9305_v8 = vcombine.low %v8366_v37, %v8368_v23  ;;  %8662 = vmatpush1.bf16.msra.mxu1 %v11927_v36  ;;  %v11981_v13 = vld [vmem:[%s16566_s1 + $0x16e8] ss:$100 sps:$4 sm:$0xff]   ;;  %v11984_v36 = vld [vmem:[%s16566_s1 + $0x9a0] ss:$100 sps:$4 sm:$0xff]   ;;  %v11990_v23 = vld [vmem:[%s16566_s1 + $0x8d8] ss:$100 sps:$4 sm:$0xff]  }
 0x314   : > { %8663 = vmatprep.subr.bf16.mxu1 %v11935_v22  ;;  %v8370_v59 = vpop.f32.mrf.mxu1  ;;  %v11989_v37 = vld [vmem:[%s16566_s1 + $0x1624] ss:$100 sps:$4 sm:$0xff]   ;;  %v11995_v22 = vld [vmem:[%s16566_s1 + $0x155c] ss:$100 sps:$4 sm:$0xff]   ;;  %v11996_v29 = vld [vmem:[%s16566_s1 + $0x810] ss:$100 sps:$4 sm:$0xff]  }
 0x315   : > { %v15169_v4 = vrot.slane %v9305_v8, %v13880_v51  ;;  %8623 = vmatpush1.bf16.msra.mxu0 %v11930_v24  ;;  %v11987_v21 = vld [vmem:[%s16566_s1 + $0x1620] ss:$100 sps:$4 sm:$0xff]   ;;  %v11998_v24 = vld [vmem:[%s16566_s1 + $0x814] ss:$100 sps:$4 sm:$0xff]   ;;  %v12004_v8 = vld [vmem:[%s16566_s1 + $0x74c] ss:$100 sps:$4 sm:$0xff]  }
 0x316   : > { %8624 = vmatprep.subr.bf16.mxu0 %v11938_v28  ;;  %v11993_v26 = vld [vmem:[%s16566_s1 + $0x1558] ss:$100 sps:$4 sm:$0xff]   ;;  %v12002_v59 = vld [vmem:[%s16566_s1 + $0x748] ss:$100 sps:$4 sm:$0xff]  }
 0x317   : > { %v9336_v41 = vcombine.low %v15166_v2, %v15169_v4  ;;  %8664 = vmatpush1.bf16.msra.mxu1 %v11933_v30  ;;  %v12001_v28 = vld [vmem:[%s16566_s1 + $0x1494] ss:$100 sps:$4 sm:$0xff]   ;;  %v12241_v2 = vld [vmem:[%s16566_s1 + $0xe64] ss:$100 sps:$4 sm:$0xff]  }
 0x318   : > { %8665 = vmatprep.subr.bf16.mxu1 %v11941_v33  ;;  %v11999_v30 = vld [vmem:[%s16566_s1 + $0x1490] ss:$100 sps:$4 sm:$0xff]   ;;  %v12236_v4 = vld [vmem:[%s16566_s1 + $0x1e0] ss:$100 sps:$4 sm:$0xff]  }
 0x319   : > { %8625 = vmatpush1.bf16.msra.mxu0 %v11936_v9  ;;  %v12007_v33 = vld [vmem:[%s16566_s1 + $0x13cc] ss:$100 sps:$4 sm:$0xff]   ;;  %v12010_v9 = vld [vmem:[%s16566_s1 + $0x684] ss:$100 sps:$4 sm:$0xff]  }
 0x31a   : > { %8626 = vmatprep.subr.bf16.mxu0 %v11944_v39  ;;  %v12005_v39 = vld [vmem:[%s16566_s1 + $0x13c8] ss:$100 sps:$4 sm:$0xff]  }
 0x31b   : > { %8666 = vmatpush1.bf16.msra.mxu1 %v11939_v17  ;;  %v12013_v17 = vld [vmem:[%s16566_s1 + $0x1304] ss:$100 sps:$4 sm:$0xff]  }
 0x31c   : > { %8667 = vmatprep.subr.bf16.mxu1 %v11947_v49  ;;  %v12008_v49 = vld [vmem:[%s16566_s1 + $0x680] ss:$100 sps:$4 sm:$0xff]  }
 0x31d   : > { %8627 = vmatpush1.bf16.msra.mxu0 %v11942_v38  ;;  %v12016_v38 = vld [vmem:[%s16566_s1 + $0x1ebc] ss:$100 sps:$4 sm:$0xff]  }
 0x31e   : > { %8628 = vmatprep.subr.bf16.mxu0 %v11950_v42  ;;  %v12011_v42 = vld [vmem:[%s16566_s1 + $0x1300] ss:$100 sps:$4 sm:$0xff]  }
 0x31f   : > { %8668 = vmatpush1.bf16.msra.mxu1 %v11945_v43  ;;  %v12019_v43 = vld [vmem:[%s16566_s1 + $0x5c4] ss:$100 sps:$4 sm:$0xff]  }
 0x320   : > { %8669 = vmatprep.subr.bf16.mxu1 %v11953_v40  ;;  %v15332_v40 = vld [vmem:[%s16567_s2 + $0x8] sm:$0xff] }
 0x321   : > { %8629 = vmatpush1.bf16.msra.mxu0 %v11948_v44  ;;  %v7560_v44 = vrot.slane %v15332_v40, %v13005_v25 }
 0x322   : > { %8630 = vmatprep.subr.bf16.mxu0 %v11956_v0  ;;  %v12014_v0 = vld [vmem:[%s16566_s1 + $0x1eb8] ss:$100 sps:$4 sm:$0xff]  }
 0x323   : > { %8670 = vmatpush1.bf16.msra.mxu1 %v11951_v47  ;;  %v12022_v47 = vld [vmem:[%s16566_s1 + $0x1df4] ss:$100 sps:$4 sm:$0xff]  }
 0x324   : > { %8671 = vmatprep.subr.bf16.mxu1 %v11959_v48  ;;  %v7564_v48 = vrot.slane %v15332_v40, %v12794_v5 }
 0x325   : > { %8631 = vmatpush1.bf16.msra.mxu0 %v11954_v52  ;;  %v12017_v52 = vld [vmem:[%s16566_s1 + $0x5c0] ss:$100 sps:$4 sm:$0xff]  }
 0x326   : > { %8632 = vmatprep.subr.bf16.mxu0 %v11962_v53 }
 0x327   : > { %8672 = vmatpush1.bf16.msra.mxu1 %v11957_v55  ;;  %v12025_v55 = vld [vmem:[%s16566_s1 + $0x4fc] ss:$100 sps:$4 sm:$0xff]  }
 0x328   : > { %8673 = vmatprep.subr.bf16.mxu1 %v11965_v58 }
 0x329   : > { %8633 = vmatpush1.bf16.msra.mxu0 %v11960_v10  ;;  %v12020_v10 = vld [vmem:[%s16566_s1 + $0x1df0] ss:$100 sps:$4 sm:$0xff]  }
 0x32a   : > { %8634 = vmatprep.subr.bf16.mxu0 %v11968_v61 }
 0x32b   : > { %8674 = vmatpush1.bf16.msra.mxu1 %v11963_v62 }
 0x32c   : > { %8675 = vmatprep.subr.bf16.mxu1 %v11971_v63  ;;  %v12028_v63 = vld [vmem:[%s16566_s1 + $0x1d2c] ss:$100 sps:$4 sm:$0xff]  }
 0x32d   : > { %8635 = vmatpush2.bf16.msra.mxu0 %v11966_v32 }
 0x32e   : > { %8636 = vmatprep.subr.bf16.mxu0 %v11974_v14 }
 0x32f   : > { %8676 = vmatpush2.bf16.msra.mxu1 %v11969_v6  ;;  %v12023_v6 = vld [vmem:[%s16566_s1 + $0x4f8] ss:$100 sps:$4 sm:$0xff]  }
 0x330   : > { %8677 = vmatprep.subr.bf16.mxu1 %v11977_v15 }
 0x331   : > { %8637 = vmatpush2.bf16.msra.mxu0 %v11972_v54 }
 0x332   : > { %8638 = vmatprep.subr.bf16.mxu0 %v11980_v27  ;;  %v12031_v27 = vld [vmem:[%s16566_s1 + $0x434] ss:$100 sps:$4 sm:$0xff]  }
 0x333   : > { %8678 = vmatpush2.bf16.msra.mxu1 %v11975_v31 }
 0x334   : > { %8679 = vmatprep.subr.bf16.mxu1 %v11983_v1  ;;  %v12026_v1 = vld [vmem:[%s16566_s1 + $0x1d28] ss:$100 sps:$4 sm:$0xff]  }
 0x335   : > { %8639 = vmatpush2.bf16.msra.mxu0 %v11978_v11 }
 0x336   : > { %8640 = vmatprep.subr.bf16.mxu0 %v11986_v12  ;;  %v12034_v12 = vld [vmem:[%s16566_s1 + $0x1c64] ss:$100 sps:$4 sm:$0xff]  }
 0x337   : > { %8680 = vmatpush2.bf16.msra.mxu1 %v11981_v13 }
 0x338   : > { %8681 = vmatprep.subr.bf16.mxu1 %v11989_v37  ;;  %v12029_v37 = vld [vmem:[%s16566_s1 + $0x430] ss:$100 sps:$4 sm:$0xff]  }
 0x339   : > { %8641 = vmatpush2.bf16.msra.mxu0 %v11984_v36  ;;  %v12037_v36 = vld [vmem:[%s16566_s1 + $0x36c] ss:$100 sps:$4 sm:$0xff]  }
 0x33a   : > { %8642 = vmatprep.subr.bf16.mxu0 %v11992_v18 }
 0x33b   : > { %8682 = vmatpush2.bf16.msra.mxu1 %v11987_v21  ;;  %v12032_v21 = vld [vmem:[%s16566_s1 + $0x1c60] ss:$100 sps:$4 sm:$0xff]  }
 0x33c   : > { %8683 = vmatprep.subr.bf16.mxu1 %v11995_v22  ;;  %v12040_v22 = vld [vmem:[%s16566_s1 + $0x1b9c] ss:$100 sps:$4 sm:$0xff]  }
 0x33d   : > { %8643 = vmatpush2.bf16.msra.mxu0 %v11990_v23  ;;  %v12035_v23 = vld [vmem:[%s16566_s1 + $0x368] ss:$100 sps:$4 sm:$0xff]  }
 0x33e   : > { %8644 = vmatprep.subr.bf16.mxu0 %v11998_v24  ;;  %v12043_v24 = vld [vmem:[%s16566_s1 + $0x2a4] ss:$100 sps:$4 sm:$0xff]  }
 0x33f   : > { %8684 = vmatpush2.bf16.msra.mxu1 %v11993_v26  ;;  %v12038_v26 = vld [vmem:[%s16566_s1 + $0x1b98] ss:$100 sps:$4 sm:$0xff]  }
 0x340   : > { %8685 = vmatprep.subr.bf16.mxu1 %v12001_v28  ;;  %v12046_v28 = vld [vmem:[%s16566_s1 + $0x1ad4] ss:$100 sps:$4 sm:$0xff]  }
 0x341   : > { %8645 = vmatpush2.bf16.msra.mxu0 %v11996_v29  ;;  %v12041_v29 = vld [vmem:[%s16566_s1 + $0x2a0] ss:$100 sps:$4 sm:$0xff]  }
 0x342   : > { %8646 = vmatprep.subr.bf16.mxu0 %v12004_v8  ;;  %v12049_v8 = vld [vmem:[%s16566_s1 + $0x1dc] ss:$100 sps:$4 sm:$0xff]  }
 0x343   : > { %8686 = vmatpush2.bf16.msra.mxu1 %v11999_v30  ;;  %v12044_v30 = vld [vmem:[%s16566_s1 + $0x1ad0] ss:$100 sps:$4 sm:$0xff]  }
 0x344   : > { %8687 = vmatprep.subr.bf16.mxu1 %v12007_v33  ;;  %v12052_v33 = vld [vmem:[%s16566_s1 + $0x1a0c] ss:$100 sps:$4 sm:$0xff]  }
 0x345   : > { %8647 = vmatpush2.bf16.msra.mxu0 %v12002_v59  ;;  %v12047_v59 = vld [vmem:[%s16566_s1 + $0x1d8] ss:$100 sps:$4 sm:$0xff]  }
 0x346   : > { %8648 = vmatprep.subr.bf16.mxu0 %v12010_v9  ;;  %v12055_v9 = vld [vmem:[%s16566_s1 + $0x114] ss:$100 sps:$4 sm:$0xff]  }
 0x347   : > { %8688 = vmatpush2.bf16.msra.mxu1 %v12005_v39  ;;  %v12050_v39 = vld [vmem:[%s16566_s1 + $0x1a08] ss:$100 sps:$4 sm:$0xff]  }
 0x348   : > { %8689 = vmatprep.subr.bf16.mxu1 %v12013_v17  ;;  %v12058_v17 = vld [vmem:[%s16566_s1 + $0x1944] ss:$100 sps:$4 sm:$0xff]  }
 0x349   : > { %8649 = vmatpush2.bf16.msra.mxu0 %v12008_v49  ;;  %v12053_v49 = vld [vmem:[%s16566_s1 + $0x110] ss:$100 sps:$4 sm:$0xff]  }
 0x34a   : > { %8700 = vmatprep.subr.bf16.mxu0 %v12016_v38  ;;  %v12061_v38 = vld [vmem:[%s16566_s1 + $0x4c] ss:$100 sps:$4 sm:$0xff]  }
 0x34b   : > { %8690 = vmatpush2.bf16.msra.mxu1 %v12011_v42  ;;  %v12056_v42 = vld [vmem:[%s16566_s1 + $0x1940] ss:$100 sps:$4 sm:$0xff]  }
 0x34c   : > { %v8406_v53 = vpop.f32.mrf.mxu0  ;;  %8651 = vmatmul.mubr.bf16.vlgmr.msra.gmra.mxu0 %v12823_v16  ;;  %8741 = vmatprep.subr.bf16.mxu1 %v12019_v43  ;;  %v12064_v43 = vld [vmem:[%s16566_s1 + $0x24fc] ss:$100 sps:$4 sm:$0xff]  }
 0x34d   : > { %v8407_v58 = vadd.f32 %v8406_v53, %v7560_v44  ;;  %8701 = vmatpush1.bf16.msra.mxu0 %v12014_v0  ;;  %8732 = vmatprep.mubr.bf16.mxu0 %v12831_v19  ;;  %v12059_v44 = vld [vmem:[%s16566_s1 + $0x48] ss:$100 sps:$4 sm:$0xff]   ;;  %v12073_v53 = vld [vmem:[%s16566_s1 + $0xb3c] ss:$100 sps:$4 sm:$0xff]  }
 0x34e   : > { %v8408_v61 = vpop.f32.mrf.mxu0  ;;  %v8447_v62 = vpop.f32.mrf.mxu1  ;;  %8692 = vmatmul.mubr.bf16.vlgmr.msra.gmra.mxu1 %v12833_v20  ;;  %8702 = vmatprep.subr.bf16.mxu0 %v12022_v47  ;;  %v12067_v0 = vld [vmem:[%s16566_s1 + $0xc04] ss:$100 sps:$4 sm:$0xff]   ;;  %v12062_v47 = vld [vmem:[%s16566_s1 + $0x24f8] ss:$100 sps:$4 sm:$0xff]  }
 0x34f   : > { %v8409_v32 = vadd.f32 %v8408_v61, %v7564_v48  ;;  %v15359_v14 = vadd.f32 %v8447_v62, %v8407_v58  ;;  %8742 = vmatpush1.bf16.msra.mxu1 %v12017_v52  ;;  %8773 = vmatprep.mubr.bf16.mxu1 %v12754_v56  ;;  %v12070_v48 = vld [vmem:[%s16566_s1 + $0x2434] ss:$100 sps:$4 sm:$0xff]   ;;  %v12065_v52 = vld [vmem:[%s16566_s1 + $0xc00] ss:$100 sps:$4 sm:$0xff]   ;;  %v12076_v58 = vld [vmem:[%s16566_s1 + $0x236c] ss:$100 sps:$4 sm:$0xff]  }
 0x350   : > { %v8410_v15 = vpop.f32.mrf.mxu0  ;;  %v8449_v54 = vpop.f32.mrf.mxu1  ;;  %8743 = vmatprep.subr.bf16.mxu1 %v12025_v55  ;;  %v12068_v55 = vld [vmem:[%s16566_s1 + $0x2430] ss:$100 sps:$4 sm:$0xff]   ;;  %v12074_v62 = vld [vmem:[%s16566_s1 + $0x2368] ss:$100 sps:$4 sm:$0xff]  }
 0x351   : > { %v15368_v31 = vadd.f32 %v8449_v54, %v8409_v32  ;;  %8703 = vmatpush1.bf16.msra.mxu0 %v12020_v10  ;;  %v12071_v10 = vld [vmem:[%s16566_s1 + $0xb38] ss:$100 sps:$4 sm:$0xff]   ;;  %v12077_v32 = vld [vmem:[%s16566_s1 + $0xa70] ss:$100 sps:$4 sm:$0xff]   ;;  %v12080_v15 = vld [vmem:[%s16566_s1 + $0x22a0] ss:$100 sps:$4 sm:$0xff]  }
 0x352   : > { %v8411_v11 = vpop.f32.mrf.mxu0  ;;  %8704 = vmatprep.subr.bf16.mxu0 %v12028_v63  ;;  %v8451_v13 = vpop.f32.mrf.mxu1  ;;  %v12079_v61 = vld [vmem:[%s16566_s1 + $0xa74] ss:$100 sps:$4 sm:$0xff]   ;;  %v12082_v63 = vld [vmem:[%s16566_s1 + $0x22a4] ss:$100 sps:$4 sm:$0xff]   ;;  %v12088_v54 = vld [vmem:[%s16566_s1 + $0x21dc] ss:$100 sps:$4 sm:$0xff]  }
 0x353   : > { %8744 = vmatpush1.bf16.msra.mxu1 %v12023_v6  ;;  %v12085_v6 = vld [vmem:[%s16566_s1 + $0x9ac] ss:$100 sps:$4 sm:$0xff]   ;;  %v12086_v11 = vld [vmem:[%s16566_s1 + $0x21d8] ss:$100 sps:$4 sm:$0xff]   ;;  %v12089_v13 = vld [vmem:[%s16566_s1 + $0x8e0] ss:$100 sps:$4 sm:$0xff]  }
 0x354   : > { %8745 = vmatprep.subr.bf16.mxu1 %v12031_v27  ;;  %v8452_v18 = vpop.f32.mrf.mxu1  ;;  %v12083_v27 = vld [vmem:[%s16566_s1 + $0x9a8] ss:$100 sps:$4 sm:$0xff]  }
 0x355   : > { %8705 = vmatpush1.bf16.msra.mxu0 %v12026_v1  ;;  %v12091_v1 = vld [vmem:[%s16566_s1 + $0x8e4] ss:$100 sps:$4 sm:$0xff]   ;;  %v12100_v18 = vld [vmem:[%s16566_s1 + $0x204c] ss:$100 sps:$4 sm:$0xff]  }
 0x356   : > { %8706 = vmatprep.subr.bf16.mxu0 %v12034_v12  ;;  %v12094_v12 = vld [vmem:[%s16566_s1 + $0x2114] ss:$100 sps:$4 sm:$0xff]  }
 0x357   : > { %8746 = vmatpush1.bf16.msra.mxu1 %v12029_v37  ;;  %v12097_v37 = vld [vmem:[%s16566_s1 + $0x81c] ss:$100 sps:$4 sm:$0xff]  }
 0x358   : > { %8747 = vmatprep.subr.bf16.mxu1 %v12037_v36  ;;  %v12092_v36 = vld [vmem:[%s16566_s1 + $0x2110] ss:$100 sps:$4 sm:$0xff]  }
 0x359   : > { %8707 = vmatpush1.bf16.msra.mxu0 %v12032_v21  ;;  %v12095_v21 = vld [vmem:[%s16566_s1 + $0x818] ss:$100 sps:$4 sm:$0xff]  }
 0x35a   : > { %8708 = vmatprep.subr.bf16.mxu0 %v12040_v22  ;;  %v12103_v22 = vld [vmem:[%s16566_s1 + $0x754] ss:$100 sps:$4 sm:$0xff]  }
 0x35b   : > { %8748 = vmatpush1.bf16.msra.mxu1 %v12035_v23  ;;  %v12098_v23 = vld [vmem:[%s16566_s1 + $0x2048] ss:$100 sps:$4 sm:$0xff]  }
 0x35c   : > { %8749 = vmatprep.subr.bf16.mxu1 %v12043_v24  ;;  %v12106_v24 = vld [vmem:[%s16566_s1 + $0x1f84] ss:$100 sps:$4 sm:$0xff]  }
 0x35d   : > { %8709 = vmatpush1.bf16.msra.mxu0 %v12038_v26  ;;  %v12101_v26 = vld [vmem:[%s16566_s1 + $0x750] ss:$100 sps:$4 sm:$0xff]  }
 0x35e   : > { %8710 = vmatprep.subr.bf16.mxu0 %v12046_v28  ;;  %v12109_v28 = vld [vmem:[%s16566_s1 + $0x68c] ss:$100 sps:$4 sm:$0xff]  }
 0x35f   : > { %8750 = vmatpush1.bf16.msra.mxu1 %v12041_v29  ;;  %v12104_v29 = vld [vmem:[%s16566_s1 + $0x1f80] ss:$100 sps:$4 sm:$0xff]  }
 0x360   : > { %8751 = vmatprep.subr.bf16.mxu1 %v12049_v8  ;;  %v12112_v8 = vld [vmem:[%s16566_s1 + $0x1244] ss:$100 sps:$4 sm:$0xff]  }
 0x361   : > { %8711 = vmatpush1.bf16.msra.mxu0 %v12044_v30  ;;  %v12107_v30 = vld [vmem:[%s16566_s1 + $0x688] ss:$100 sps:$4 sm:$0xff]  }
 0x362   : > { %8712 = vmatprep.subr.bf16.mxu0 %v12052_v33  ;;  %v12115_v33 = vld [vmem:[%s16566_s1 + $0x1ec4] ss:$100 sps:$4 sm:$0xff]  }
 0x363   : > { %8752 = vmatpush1.bf16.msra.mxu1 %v12047_v59  ;;  %v12110_v59 = vld [vmem:[%s16566_s1 + $0x1240] ss:$100 sps:$4 sm:$0xff]  }
 0x364   : > { %8753 = vmatprep.subr.bf16.mxu1 %v12055_v9  ;;  %v12118_v9 = vld [vmem:[%s16566_s1 + $0x117c] ss:$100 sps:$4 sm:$0xff]  }
 0x365   : > { %8713 = vmatpush1.bf16.msra.mxu0 %v12050_v39  ;;  %v12113_v39 = vld [vmem:[%s16566_s1 + $0x1ec0] ss:$100 sps:$4 sm:$0xff]  }
 0x366   : > { %8714 = vmatprep.subr.bf16.mxu0 %v12058_v17 }
 0x367   : > { %8754 = vmatpush1.bf16.msra.mxu1 %v12053_v49  ;;  %v12121_v49 = vld [vmem:[%s16566_s1 + $0x1dfc] ss:$100 sps:$4 sm:$0xff]  }
 0x368   : > { %8755 = vmatprep.subr.bf16.mxu1 %v12061_v38 }
 0x369   : > { %8715 = vmatpush1.bf16.msra.mxu0 %v12056_v42  ;;  %v12116_v42 = vld [vmem:[%s16566_s1 + $0x1178] ss:$100 sps:$4 sm:$0xff]  }
 0x36a   : > { %8716 = vmatprep.subr.bf16.mxu0 %v12064_v43 }
 0x36b   : > { %8756 = vmatpush1.bf16.msra.mxu1 %v12059_v44  ;;  %v12124_v44 = vld [vmem:[%s16566_s1 + $0x10b4] ss:$100 sps:$4 sm:$0xff]  }
 0x36c   : > { %8757 = vmatprep.subr.bf16.mxu1 %v12067_v0 }
 0x36d   : > { %8717 = vmatpush2.bf16.msra.mxu0 %v12062_v47  ;;  %v12119_v47 = vld [vmem:[%s16566_s1 + $0x1df8] ss:$100 sps:$4 sm:$0xff]  }
 0x36e   : > { %8718 = vmatprep.subr.bf16.mxu0 %v12070_v48 }
 0x36f   : > { %8758 = vmatpush2.bf16.msra.mxu1 %v12065_v52  ;;  %v12127_v52 = vld [vmem:[%s16566_s1 + $0x1d34] ss:$100 sps:$4 sm:$0xff]  }
 0x370   : > { %8759 = vmatprep.subr.bf16.mxu1 %v12073_v53 }
 0x371   : > { %8719 = vmatpush2.bf16.msra.mxu0 %v12068_v55 }
 0x372   : > { %8720 = vmatprep.subr.bf16.mxu0 %v12076_v58 }
 0x373   : > { %8760 = vmatpush2.bf16.msra.mxu1 %v12071_v10  ;;  %v12130_v10 = vld [vmem:[%s16566_s1 + $0xfec] ss:$100 sps:$4 sm:$0xff]  }
 0x374   : > { %8761 = vmatprep.subr.bf16.mxu1 %v12079_v61 }
 0x375   : > { %8721 = vmatpush2.bf16.msra.mxu0 %v12074_v62  ;;  %v12125_v62 = vld [vmem:[%s16566_s1 + $0x1d30] ss:$100 sps:$4 sm:$0xff]  }
 0x376   : > { %8722 = vmatprep.subr.bf16.mxu0 %v12082_v63  ;;  %v12133_v63 = vld [vmem:[%s16566_s1 + $0x1c6c] ss:$100 sps:$4 sm:$0xff]  }
 0x377   : > { %8762 = vmatpush2.bf16.msra.mxu1 %v12077_v32 }
 0x378   : > { %8763 = vmatprep.subr.bf16.mxu1 %v12085_v6  ;;  %v12128_v6 = vld [vmem:[%s16566_s1 + $0xfe8] ss:$100 sps:$4 sm:$0xff]  }
 0x379   : > { %8723 = vmatpush2.bf16.msra.mxu0 %v12080_v15  ;;  %v12136_v15 = vld [vmem:[%s16566_s1 + $0xf24] ss:$100 sps:$4 sm:$0xff]  }
 0x37a   : > { %8724 = vmatprep.subr.bf16.mxu0 %v12088_v54  ;;  %v12131_v54 = vld [vmem:[%s16566_s1 + $0x1c68] ss:$100 sps:$4 sm:$0xff]  }
 0x37b   : > { %8764 = vmatpush2.bf16.msra.mxu1 %v12083_v27  ;;  %v12139_v27 = vld [vmem:[%s16566_s1 + $0x1ba4] ss:$100 sps:$4 sm:$0xff]  }
 0x37c   : > { %8765 = vmatprep.subr.bf16.mxu1 %v12091_v1  ;;  %v12134_v1 = vld [vmem:[%s16566_s1 + $0xf20] ss:$100 sps:$4 sm:$0xff]  }
 0x37d   : > { %8725 = vmatpush2.bf16.msra.mxu0 %v12086_v11  ;;  %v12142_v11 = vld [vmem:[%s16566_s1 + $0xe5c] ss:$100 sps:$4 sm:$0xff]  }
 0x37e   : > { %8726 = vmatprep.subr.bf16.mxu0 %v12094_v12  ;;  %v12137_v12 = vld [vmem:[%s16566_s1 + $0x1ba0] ss:$100 sps:$4 sm:$0xff]  }
 0x37f   : > { %8766 = vmatpush2.bf16.msra.mxu1 %v12089_v13  ;;  %v12145_v13 = vld [vmem:[%s16566_s1 + $0x1adc] ss:$100 sps:$4 sm:$0xff]  }
 0x380   : > { %8767 = vmatprep.subr.bf16.mxu1 %v12097_v37  ;;  %v12140_v37 = vld [vmem:[%s16566_s1 + $0xe58] ss:$100 sps:$4 sm:$0xff]  }
 0x381   : > { %8727 = vmatpush2.bf16.msra.mxu0 %v12092_v36  ;;  %v12148_v36 = vld [vmem:[%s16566_s1 + $0xd94] ss:$100 sps:$4 sm:$0xff]  }
 0x382   : > { %8728 = vmatprep.subr.bf16.mxu0 %v12100_v18  ;;  %v12143_v18 = vld [vmem:[%s16566_s1 + $0x1ad8] ss:$100 sps:$4 sm:$0xff]  }
 0x383   : > { %8768 = vmatpush2.bf16.msra.mxu1 %v12095_v21  ;;  %v12151_v21 = vld [vmem:[%s16566_s1 + $0x1a14] ss:$100 sps:$4 sm:$0xff]  }
 0x384   : > { %8769 = vmatprep.subr.bf16.mxu1 %v12103_v22  ;;  %v12146_v22 = vld [vmem:[%s16566_s1 + $0xd90] ss:$100 sps:$4 sm:$0xff]  }
 0x385   : > { %8729 = vmatpush2.bf16.msra.mxu0 %v12098_v23  ;;  %v12154_v23 = vld [vmem:[%s16566_s1 + $0xccc] ss:$100 sps:$4 sm:$0xff]  }
 0x386   : > { %8730 = vmatprep.subr.bf16.mxu0 %v12106_v24  ;;  %v12149_v24 = vld [vmem:[%s16566_s1 + $0x1a10] ss:$100 sps:$4 sm:$0xff]  }
 0x387   : > { %8770 = vmatpush2.bf16.msra.mxu1 %v12101_v26  ;;  %v12157_v26 = vld [vmem:[%s16566_s1 + $0x194c] ss:$100 sps:$4 sm:$0xff]  }
 0x388   : > { %8771 = vmatprep.subr.bf16.mxu1 %v12109_v28  ;;  %v12152_v28 = vld [vmem:[%s16566_s1 + $0xcc8] ss:$100 sps:$4 sm:$0xff]  }
 0x389   : > { %8731 = vmatpush2.bf16.msra.mxu0 %v12104_v29  ;;  %v12160_v29 = vld [vmem:[%s16566_s1 + $0x1884] ss:$100 sps:$4 sm:$0xff]  }
 0x38a   : > { %8782 = vmatprep.subr.bf16.mxu0 %v12112_v8  ;;  %v12155_v8 = vld [vmem:[%s16566_s1 + $0x1948] ss:$100 sps:$4 sm:$0xff]  }
 0x38b   : > { %8772 = vmatpush2.bf16.msra.mxu1 %v12107_v30  ;;  %v12163_v30 = vld [vmem:[%s16566_s1 + $0x2504] ss:$100 sps:$4 sm:$0xff]  }
 0x38c   : > { %v8488_v17 = vpop.f32.mrf.mxu0  ;;  %8733 = vmatmul.mubr.bf16.vlgmr.msra.gmra.mxu0 %v13030_v34  ;;  %8823 = vmatprep.subr.bf16.mxu1 %v12115_v33  ;;  %v12158_v33 = vld [vmem:[%s16566_s1 + $0x1880] ss:$100 sps:$4 sm:$0xff]  }
 0x38d   : > { %v15552_v38 = vadd.f32 %v8488_v17, %v15359_v14  ;;  %8783 = vmatpush1.bf16.msra.mxu0 %v12110_v59  ;;  %8814 = vmatprep.mubr.bf16.mxu0 %v12756_v57  ;;  %v12166_v59 = vld [vmem:[%s16566_s1 + $0x17bc] ss:$100 sps:$4 sm:$0xff]  }
 0x38e   : > { %v8490_v43 = vpop.f32.mrf.mxu0  ;;  %8774 = vmatmul.mubr.bf16.vlgmr.msra.gmra.mxu1 %v12823_v16  ;;  %8784 = vmatprep.subr.bf16.mxu0 %v12118_v9  ;;  %v15562_v0 = vpop.f32.mrf.mxu1  ;;  %v12161_v9 = vld [vmem:[%s16566_s1 + $0x2500] ss:$100 sps:$4 sm:$0xff]   ;;  %v12164_v17 = vld [vmem:[%s16566_s1 + $0x17b8] ss:$100 sps:$4 sm:$0xff]  }
 0x38f   : > { %v15565_v14 = vadd.f32 %v8490_v43, %v15368_v31  ;;  %8824 = vmatpush1.bf16.msra.mxu1 %v12113_v39  ;;  %8855 = vmatprep.mubr.bf16.mxu1 %v12831_v19  ;;  %v12122_v31 = vld [vmem:[%s16566_s1 + $0x10b0] ss:$100 sps:$4 sm:$0xff]   ;;  %v12169_v39 = vld [vmem:[%s16566_s1 + $0x243c] ss:$100 sps:$4 sm:$0xff]  }
 0x390   : > { %v8492_v48 = vpop.f32.mrf.mxu0  ;;  %8825 = vmatprep.subr.bf16.mxu1 %v12121_v49  ;;  %v15574_v53 = vpop.f32.mrf.mxu1  ;;  %v12172_v49 = vld [vmem:[%s16566_s1 + $0x16f4] ss:$100 sps:$4 sm:$0xff]  }
 0x391   : > { %v9306_v55 = vcombine.low %v15552_v38, %v15565_v14  ;;  %8785 = vmatpush1.bf16.msra.mxu0 %v12116_v42  ;;  %v12167_v42 = vld [vmem:[%s16566_s1 + $0x2438] ss:$100 sps:$4 sm:$0xff]   ;;  %v12173_v48 = vld [vmem:[%s16566_s1 + $0x2370] ss:$100 sps:$4 sm:$0xff]  }
 0x392   : > { %v8493_v58 = vpop.f32.mrf.mxu0  ;;  %8786 = vmatprep.subr.bf16.mxu0 %v12124_v44  ;;  %v8533_v61 = vpop.f32.mrf.mxu1  ;;  %v12175_v43 = vld [vmem:[%s16566_s1 + $0x2374] ss:$100 sps:$4 sm:$0xff]   ;;  %v12235_v14 = vld [vmem:[%s16566_s1 + $0xf2c] ss:$100 sps:$4 sm:$0xff]  }
 0x393   : > { %8826 = vmatpush1.bf16.msra.mxu1 %v12119_v47  ;;  %v12170_v44 = vld [vmem:[%s16566_s1 + $0x16f0] ss:$100 sps:$4 sm:$0xff]   ;;  %v12184_v58 = vld [vmem:[%s16566_s1 + $0x1564] ss:$100 sps:$4 sm:$0xff]  }
 0x394   : > { %8827 = vmatprep.subr.bf16.mxu1 %v12127_v52  ;;  %v8534_v32 = vpop.f32.mrf.mxu1  ;;  %v12178_v47 = vld [vmem:[%s16566_s1 + $0x162c] ss:$100 sps:$4 sm:$0xff]   ;;  %v12187_v61 = vld [vmem:[%s16566_s1 + $0x21e4] ss:$100 sps:$4 sm:$0xff]  }
 0x395   : > { %8787 = vmatpush1.bf16.msra.mxu0 %v12122_v31  ;;  %v12181_v52 = vld [vmem:[%s16566_s1 + $0x22ac] ss:$100 sps:$4 sm:$0xff]   ;;  %v12185_v32 = vld [vmem:[%s16566_s1 + $0x21e0] ss:$100 sps:$4 sm:$0xff]  }
 0x396   : > { %8788 = vmatprep.subr.bf16.mxu0 %v12130_v10  ;;  %v12176_v31 = vld [vmem:[%s16566_s1 + $0x1628] ss:$100 sps:$4 sm:$0xff]   ;;  %v12227_v38 = vld [vmem:[%s16566_s1 + $0xff0] ss:$100 sps:$4 sm:$0xff]  }
 0x397   : > { %8828 = vmatpush1.bf16.msra.mxu1 %v12125_v62  ;;  %v12179_v10 = vld [vmem:[%s16566_s1 + $0x22a8] ss:$100 sps:$4 sm:$0xff]   ;;  %v12182_v62 = vld [vmem:[%s16566_s1 + $0x1560] ss:$100 sps:$4 sm:$0xff]  }
 0x398   : > { %8829 = vmatprep.subr.bf16.mxu1 %v12133_v63  ;;  %v12190_v63 = vld [vmem:[%s16566_s1 + $0x149c] ss:$100 sps:$4 sm:$0xff]  }
 0x399   : > { %8789 = vmatpush1.bf16.msra.mxu0 %v12128_v6  ;;  %v12193_v6 = vld [vmem:[%s16566_s1 + $0x211c] ss:$100 sps:$4 sm:$0xff]  }
 0x39a   : > { %8790 = vmatprep.subr.bf16.mxu0 %v12136_v15  ;;  %v12188_v15 = vld [vmem:[%s16566_s1 + $0x1498] ss:$100 sps:$4 sm:$0xff]  }
 0x39b   : > { %8830 = vmatpush1.bf16.msra.mxu1 %v12131_v54  ;;  %v12196_v54 = vld [vmem:[%s16566_s1 + $0x13d4] ss:$100 sps:$4 sm:$0xff]  }
 0x39c   : > { %8831 = vmatprep.subr.bf16.mxu1 %v12139_v27  ;;  %v12191_v27 = vld [vmem:[%s16566_s1 + $0x2118] ss:$100 sps:$4 sm:$0xff]  }
 0x39d   : > { %8791 = vmatpush1.bf16.msra.mxu0 %v12134_v1  ;;  %v12199_v1 = vld [vmem:[%s16566_s1 + $0x2054] ss:$100 sps:$4 sm:$0xff]  }
 0x39e   : > { %8792 = vmatprep.subr.bf16.mxu0 %v12142_v11  ;;  %v12194_v11 = vld [vmem:[%s16566_s1 + $0x13d0] ss:$100 sps:$4 sm:$0xff]  }
 0x39f   : > { %8832 = vmatpush1.bf16.msra.mxu1 %v12137_v12  ;;  %v12202_v12 = vld [vmem:[%s16566_s1 + $0x130c] ss:$100 sps:$4 sm:$0xff]  }
 0x3a0   : > { %8833 = vmatprep.subr.bf16.mxu1 %v12145_v13  ;;  %v12197_v13 = vld [vmem:[%s16566_s1 + $0x2050] ss:$100 sps:$4 sm:$0xff]  }
 0x3a1   : > { %8793 = vmatpush1.bf16.msra.mxu0 %v12140_v37  ;;  %v12205_v37 = vld [vmem:[%s16566_s1 + $0x1f8c] ss:$100 sps:$4 sm:$0xff]  }
 0x3a2   : > { %8794 = vmatprep.subr.bf16.mxu0 %v12148_v36  ;;  %v12200_v36 = vld [vmem:[%s16566_s1 + $0x1308] ss:$100 sps:$4 sm:$0xff]  }
 0x3a3   : > { %8834 = vmatpush1.bf16.msra.mxu1 %v12143_v18  ;;  %v12208_v18 = vld [vmem:[%s16566_s1 + $0x5cc] ss:$100 sps:$4 sm:$0xff]  }
 0x3a4   : > { %8835 = vmatprep.subr.bf16.mxu1 %v12151_v21  ;;  %v7568_v21 = vrot.slane %v15332_v40, %v14459_v50 }
 0x3a5   : > { %8795 = vmatpush1.bf16.msra.mxu0 %v12146_v22  ;;  %v12203_v22 = vld [vmem:[%s16566_s1 + $0x1f88] ss:$100 sps:$4 sm:$0xff]  }
 0x3a6   : > { %8796 = vmatprep.subr.bf16.mxu0 %v12154_v23  ;;  %v12211_v23 = vld [vmem:[%s16566_s1 + $0x124c] ss:$100 sps:$4 sm:$0xff]  }
 0x3a7   : > { %8836 = vmatpush1.bf16.msra.mxu1 %v12149_v24  ;;  %v7572_v24 = vrot.slane %v15332_v40, %v14468_v60  ;;  %v12217_v40 = vld [vmem:[%s16566_s1 + $0x1184] ss:$100 sps:$4 sm:$0xff]  }
 0x3a8   : > { %8837 = vmatprep.subr.bf16.mxu1 %v12157_v26  ;;  %v12206_v26 = vld [vmem:[%s16566_s1 + $0x5c8] ss:$100 sps:$4 sm:$0xff]  }
 0x3a9   : > { %8797 = vmatpush1.bf16.msra.mxu0 %v12152_v28  ;;  %v12214_v28 = vld [vmem:[%s16566_s1 + $0x504] ss:$100 sps:$4 sm:$0xff]  }
 0x3aa   : > { %8798 = vmatprep.subr.bf16.mxu0 %v12160_v29  ;;  %v8530_v29 = vadd.f32 %v15562_v0, %v7568_v21  ;;  %v12212_v0 = vld [vmem:[%s16566_s1 + $0x500] ss:$100 sps:$4 sm:$0xff]  }
 0x3ab   : > { %8838 = vmatpush1.bf16.msra.mxu1 %v12155_v8  ;;  %v12209_v8 = vld [vmem:[%s16566_s1 + $0x1248] ss:$100 sps:$4 sm:$0xff]   ;;  %v12247_v21 = vld [vmem:[%s16566_s1 + $0xd9c] ss:$100 sps:$4 sm:$0xff]  }
 0x3ac   : > { %8839 = vmatprep.subr.bf16.mxu1 %v12163_v30 }
 0x3ad   : > { %8799 = vmatpush2.bf16.msra.mxu0 %v12158_v33  ;;  %v8532_v33 = vadd.f32 %v15574_v53, %v7572_v24  ;;  %v12215_v53 = vld [vmem:[%s16566_s1 + $0x1180] ss:$100 sps:$4 sm:$0xff]   ;;  %v12245_v24 = vld [vmem:[%s16566_s1 + $0xd98] ss:$100 sps:$4 sm:$0xff]  }
 0x3ae   : > { %8800 = vmatprep.subr.bf16.mxu0 %v12166_v59 }
 0x3af   : > { %8840 = vmatpush2.bf16.msra.mxu1 %v12161_v9 }
 0x3b0   : > { %8841 = vmatprep.subr.bf16.mxu1 %v12169_v39 }
 0x3b1   : > { %8801 = vmatpush2.bf16.msra.mxu0 %v12164_v17  ;;  %v12220_v17 = vld [vmem:[%s16566_s1 + $0x43c] ss:$100 sps:$4 sm:$0xff]  }
 0x3b2   : > { %8802 = vmatprep.subr.bf16.mxu0 %v12172_v49 }
 0x3b3   : > { %8842 = vmatpush2.bf16.msra.mxu1 %v12167_v42 }
 0x3b4   : > { %8843 = vmatprep.subr.bf16.mxu1 %v12175_v43 }
 0x3b5   : > { %8803 = vmatpush2.bf16.msra.mxu0 %v12170_v44  ;;  %v12223_v44 = vld [vmem:[%s16566_s1 + $0x10bc] ss:$100 sps:$4 sm:$0xff]  }
 0x3b6   : > { %8804 = vmatprep.subr.bf16.mxu0 %v12178_v47 }
 0x3b7   : > { %8844 = vmatpush2.bf16.msra.mxu1 %v12173_v48 }
 0x3b8   : > { %8845 = vmatprep.subr.bf16.mxu1 %v12181_v52  ;;  %v12218_v52 = vld [vmem:[%s16566_s1 + $0x438] ss:$100 sps:$4 sm:$0xff]  }
 0x3b9   : > { %8805 = vmatpush2.bf16.msra.mxu0 %v12176_v31 }
 0x3ba   : > { %8806 = vmatprep.subr.bf16.mxu0 %v12184_v58  ;;  %v12226_v58 = vld [vmem:[%s16566_s1 + $0x374] ss:$100 sps:$4 sm:$0xff]  }
 0x3bb   : > { %8846 = vmatpush2.bf16.msra.mxu1 %v12179_v10 }
 0x3bc   : > { %8847 = vmatprep.subr.bf16.mxu1 %v12187_v61 }
 0x3bd   : > { %8807 = vmatpush2.bf16.msra.mxu0 %v12182_v62  ;;  %v12221_v62 = vld [vmem:[%s16566_s1 + $0x10b8] ss:$100 sps:$4 sm:$0xff]  }
 0x3be   : > { %8808 = vmatprep.subr.bf16.mxu0 %v12190_v63  ;;  %v12229_v63 = vld [vmem:[%s16566_s1 + $0xff4] ss:$100 sps:$4 sm:$0xff]  }
 0x3bf   : > { %8848 = vmatpush2.bf16.msra.mxu1 %v12185_v32 }
 0x3c0   : > { %8849 = vmatprep.subr.bf16.mxu1 %v12193_v6  ;;  %v9328_v6 = vrot.slane %v9306_v55, %v13880_v51  ;;  %v9344_v55 = vrot.slane %v9336_v41, %v13880_v51  ;;  %v12244_v41 = vld [vmem:[%s16566_s1 + $0x11c] ss:$100 sps:$4 sm:$0xff]  }
 0x3c1   : > { %8809 = vmatpush2.bf16.msra.mxu0 %v12188_v15 }
 0x3c2   : > { %8810 = vmatprep.subr.bf16.mxu0 %v12196_v54  ;;  %v12224_v54 = vld [vmem:[%s16566_s1 + $0x370] ss:$100 sps:$4 sm:$0xff]  }
 0x3c3   : > { %8850 = vmatpush2.bf16.msra.mxu1 %v12191_v27  ;;  %v12232_v27 = vld [vmem:[%s16566_s1 + $0x2ac] ss:$100 sps:$4 sm:$0xff]  }
 0x3c4   : > { %8851 = vmatprep.subr.bf16.mxu1 %v12199_v1 }
 0x3c5   : > { %8811 = vmatpush2.bf16.msra.mxu0 %v12194_v11 }
 0x3c6   : > { %8812 = vmatprep.subr.bf16.mxu0 %v12202_v12  ;;  %v12230_v12 = vld [vmem:[%s16566_s1 + $0x2a8] ss:$100 sps:$4 sm:$0xff]  }
 0x3c7   : > { %8852 = vmatpush2.bf16.msra.mxu1 %v12197_v13  ;;  %v12238_v13 = vld [vmem:[%s16566_s1 + $0x1e4] ss:$100 sps:$4 sm:$0xff]  }
 0x3c8   : > { %8853 = vmatprep.subr.bf16.mxu1 %v12205_v37 }
 0x3c9   : > { %8813 = vmatpush2.bf16.msra.mxu0 %v12200_v36  ;;  %v12233_v36 = vld [vmem:[%s16566_s1 + $0xf28] ss:$100 sps:$4 sm:$0xff]  }
 0x3ca   : > { %8864 = vmatprep.subr.bf16.mxu0 %v12208_v18  ;;  %v12239_v18 = vld [vmem:[%s16566_s1 + $0xe60] ss:$100 sps:$4 sm:$0xff]  }
 0x3cb   : > { %8854 = vmatpush2.bf16.msra.mxu1 %v12203_v22  ;;  %v12242_v22 = vld [vmem:[%s16566_s1 + $0x118] ss:$100 sps:$4 sm:$0xff]  }
 0x3cc   : > { %v8570_v30 = vpop.f32.mrf.mxu0  ;;  %8815 = vmatmul.mubr.bf16.vlgmr.msra.gmra.mxu0 %v12833_v20  ;;  %8905 = vmatprep.subr.bf16.mxu1 %v12211_v23  ;;  %v12250_v23 = vld [vmem:[%s16566_s1 + $0x54] ss:$100 sps:$4 sm:$0xff]  }
 0x3cd   : > { %v8571_v59 = vadd.f32 %v8570_v30, %v8530_v29  ;;  %8865 = vmatpush1.bf16.msra.mxu0 %v12206_v26  ;;  %8896 = vmatprep.mubr.bf16.mxu0 %v12754_v56  ;;  %v12253_v26 = vld [vmem:[%s16566_s1 + $0xcd4] ss:$100 sps:$4 sm:$0xff]   ;;  %v12256_v29 = vld [vmem:[%s16566_s1 + $0xc0c] ss:$100 sps:$4 sm:$0xff]  }
 0x3ce   : > { %v8572_v9 = vpop.f32.mrf.mxu0  ;;  %v8611_v39 = vpop.f32.mrf.mxu1  ;;  %8856 = vmatmul.mubr.bf16.vlgmr.msra.gmra.mxu1 %v13030_v34  ;;  %8866 = vmatprep.subr.bf16.mxu0 %v12214_v28  ;;  %v12248_v28 = vld [vmem:[%s16566_s1 + $0x50] ss:$100 sps:$4 sm:$0xff]  }
 0x3cf   : > { %v8573_v49 = vadd.f32 %v8572_v9, %v8532_v33  ;;  %8906 = vmatpush1.bf16.msra.mxu1 %v12209_v8  ;;  %8937 = vmatprep.mubr.bf16.mxu1 %v12756_v57  ;;  %v8612_v47 = vadd.f32 %v8611_v39, %v8571_v59  ;;  %v12251_v8 = vld [vmem:[%s16566_s1 + $0xcd0] ss:$100 sps:$4 sm:$0xff]   ;;  %v12262_v33 = vld [vmem:[%s16566_s1 + $0xb44] ss:$100 sps:$4 sm:$0xff]   ;;  %v12268_v39 = vld [vmem:[%s16566_s1 + $0xa7c] ss:$100 sps:$4 sm:$0xff]  }
 0x3d0   : > { %v8574_v42 = vpop.f32.mrf.mxu0  ;;  %v8613_v43 = vpop.f32.mrf.mxu1  ;;  %8907 = vmatprep.subr.bf16.mxu1 %v12217_v40  ;;  %v12259_v30 = vld [vmem:[%s16566_s1 + $0x188c] ss:$100 sps:$4 sm:$0xff]   ;;  %v12260_v9 = vld [vmem:[%s16566_s1 + $0xb40] ss:$100 sps:$4 sm:$0xff]  }
 0x3d1   : > { %v8614_v48 = vadd.f32 %v8613_v43, %v8573_v49  ;;  %8867 = vmatpush1.bf16.msra.mxu0 %v12212_v0  ;;  %v12254_v40 = vld [vmem:[%s16566_s1 + $0xc08] ss:$100 sps:$4 sm:$0xff]   ;;  %v12271_v49 = vld [vmem:[%s16566_s1 + $0x16fc] ss:$100 sps:$4 sm:$0xff]   ;;  %v12274_v42 = vld [vmem:[%s16566_s1 + $0x9b4] ss:$100 sps:$4 sm:$0xff]  }
 0x3d2   : > { %v8575_v31 = vpop.f32.mrf.mxu0  ;;  %8868 = vmatprep.subr.bf16.mxu0 %v12220_v17  ;;  %v8615_v10 = vpop.f32.mrf.mxu1  ;;  %v12257_v59 = vld [vmem:[%s16566_s1 + $0x1888] ss:$100 sps:$4 sm:$0xff]   ;;  %v12263_v17 = vld [vmem:[%s16566_s1 + $0x17c0] ss:$100 sps:$4 sm:$0xff]   ;;  %v12269_v43 = vld [vmem:[%s16566_s1 + $0x16f8] ss:$100 sps:$4 sm:$0xff]  }
 0x3d3   : > { %v9307_v61 = vcombine.low %v8612_v47, %v8614_v48  ;;  %8908 = vmatpush1.bf16.msra.mxu1 %v12215_v53  ;;  %v12265_v0 = vld [vmem:[%s16566_s1 + $0x17c4] ss:$100 sps:$4 sm:$0xff]   ;;  %v12266_v53 = vld [vmem:[%s16566_s1 + $0xa78] ss:$100 sps:$4 sm:$0xff]   ;;  %v12272_v47 = vld [vmem:[%s16566_s1 + $0x9b0] ss:$100 sps:$4 sm:$0xff]  }
 0x3d4   : > { %8909 = vmatprep.subr.bf16.mxu1 %v12223_v44  ;;  %v8616_v32 = vpop.f32.mrf.mxu1  ;;  %v12277_v44 = vld [vmem:[%s16566_s1 + $0x1634] ss:$100 sps:$4 sm:$0xff]   ;;  %v12280_v48 = vld [vmem:[%s16566_s1 + $0x8ec] ss:$100 sps:$4 sm:$0xff]   ;;  %v12286_v10 = vld [vmem:[%s16566_s1 + $0x824] ss:$100 sps:$4 sm:$0xff]  }
 0x3d5   : > { %v9335_v15 = vrot.slane %v9307_v61, %v13880_v51  ;;  %8869 = vmatpush1.bf16.msra.mxu0 %v12218_v52  ;;  %v12275_v52 = vld [vmem:[%s16566_s1 + $0x1630] ss:$100 sps:$4 sm:$0xff]   ;;  %v12281_v61 = vld [vmem:[%s16566_s1 + $0x1568] ss:$100 sps:$4 sm:$0xff]   ;;  %v12292_v32 = vld [vmem:[%s16566_s1 + $0x75c] ss:$100 sps:$4 sm:$0xff]  }
 0x3d6   : > { %8870 = vmatprep.subr.bf16.mxu0 %v12226_v58  ;;  %v12283_v31 = vld [vmem:[%s16566_s1 + $0x156c] ss:$100 sps:$4 sm:$0xff]  }
 0x3d7   : > { %v9337_v1 = vcombine.low %v9328_v6, %v9335_v15  ;;  %8910 = vmatpush1.bf16.msra.mxu1 %v12221_v62  ;;  %v12278_v58 = vld [vmem:[%s16566_s1 + $0x8e8] ss:$100 sps:$4 sm:$0xff]   ;;  %v12287_v6 = vld [vmem:[%s16566_s1 + $0x14a0] ss:$100 sps:$4 sm:$0xff]  }
 0x3d8   : > { %8911 = vmatprep.subr.bf16.mxu1 %v12229_v63  ;;  %v12289_v62 = vld [vmem:[%s16566_s1 + $0x14a4] ss:$100 sps:$4 sm:$0xff]   ;;  %v12295_v15 = vld [vmem:[%s16566_s1 + $0x13dc] ss:$100 sps:$4 sm:$0xff]  }
 0x3d9   : > { %v9351_v11 = vrot.slane %v9337_v1, %v13880_v51  ;;  %8871 = vmatpush1.bf16.msra.mxu0 %v12224_v54  ;;  %v12284_v63 = vld [vmem:[%s16566_s1 + $0x820] ss:$100 sps:$4 sm:$0xff]   ;;  %v12290_v54 = vld [vmem:[%s16566_s1 + $0x758] ss:$100 sps:$4 sm:$0xff]  }
 0x3da   : > { %8872 = vmatprep.subr.bf16.mxu0 %v12232_v27  ;;  %v12298_v27 = vld [vmem:[%s16566_s1 + $0x694] ss:$100 sps:$4 sm:$0xff]  }
 0x3db   : > { %v9352_v37 = vcombine.low %v9344_v55, %v9351_v11  ;;  %8912 = vmatpush1.bf16.msra.mxu1 %v12227_v38  ;;  %v12293_v1 = vld [vmem:[%s16566_s1 + $0x13d8] ss:$100 sps:$4 sm:$0xff]   ;;  %v15953_v55 = vld [vmem:[%s16567_s2 + $0x10] sm:$0xff] }
 0x3dc   : > { %8913 = vmatprep.subr.bf16.mxu1 %v12235_v14  ;;  %v12301_v38 = vld [vmem:[%s16566_s1 + $0x1314] ss:$100 sps:$4 sm:$0xff]   ;;  %v12304_v11 = vld [vmem:[%s16566_s1 + $0x1ecc] ss:$100 sps:$4 sm:$0xff]  }
 0x3dd   : > { %9421 = vst [vmem:[%s14558_s18 + $0x8] sm:$0xff] %v9352_v37  ;;  %8873 = vmatpush1.bf16.msra.mxu0 %v12230_v12  ;;  %v12296_v14 = vld [vmem:[%s16566_s1 + $0x690] ss:$100 sps:$4 sm:$0xff]   ;;  %v7576_v37 = vrot.slane %v15953_v55, %v12788_v3 }
 0x3de   : > { %8874 = vmatprep.subr.bf16.mxu0 %v12238_v13  ;;  %v12299_v12 = vld [vmem:[%s16566_s1 + $0x1310] ss:$100 sps:$4 sm:$0xff]  }
 0x3df   : > { %8914 = vmatpush1.bf16.msra.mxu1 %v12233_v36  ;;  %v12307_v13 = vld [vmem:[%s16566_s1 + $0x5d4] ss:$100 sps:$4 sm:$0xff]   ;;  %v12302_v36 = vld [vmem:[%s16566_s1 + $0x1ec8] ss:$100 sps:$4 sm:$0xff]  }
 0x3e0   : > { %8915 = vmatprep.subr.bf16.mxu1 %v12241_v2  ;;  %v12310_v2 = vld [vmem:[%s16566_s1 + $0x1e04] ss:$100 sps:$4 sm:$0xff]   ;;  %v12313_v3 = vld [vmem:[%s16566_s1 + $0x50c] ss:$100 sps:$4 sm:$0xff]  }
 0x3e1   : > { %8875 = vmatpush1.bf16.msra.mxu0 %v12236_v4  ;;  %v7580_v4 = vrot.slane %v15953_v55, %v12725_v45 }
 0x3e2   : > { %8876 = vmatprep.subr.bf16.mxu0 %v12244_v41  ;;  %v12305_v41 = vld [vmem:[%s16566_s1 + $0x5d0] ss:$100 sps:$4 sm:$0xff]  }
 0x3e3   : > { %8916 = vmatpush1.bf16.msra.mxu1 %v12239_v18 }
 0x3e4   : > { %8917 = vmatprep.subr.bf16.mxu1 %v12247_v21 }
 0x3e5   : > { %8877 = vmatpush1.bf16.msra.mxu0 %v12242_v22  ;;  %v12308_v22 = vld [vmem:[%s16566_s1 + $0x1e00] ss:$100 sps:$4 sm:$0xff]  }
 0x3e6   : > { %8878 = vmatprep.subr.bf16.mxu0 %v12250_v23 }
 0x3e7   : > { %8918 = vmatpush1.bf16.msra.mxu1 %v12245_v24  ;;  %v12316_v24 = vld [vmem:[%s16566_s1 + $0x1d3c] ss:$100 sps:$4 sm:$0xff]  }
 0x3e8   : > { %8919 = vmatprep.subr.bf16.mxu1 %v12253_v26 }
 0x3e9   : > { %8879 = vmatpush1.bf16.msra.mxu0 %v12248_v28 }
 0x3ea   : > { %8880 = vmatprep.subr.bf16.mxu0 %v12256_v29  ;;  %v12311_v29 = vld [vmem:[%s16566_s1 + $0x508] ss:$100 sps:$4 sm:$0xff]  }
 0x3eb   : > { %8920 = vmatpush1.bf16.msra.mxu1 %v12251_v8 }
 0x3ec   : > { %8921 = vmatprep.subr.bf16.mxu1 %v12259_v30 }
 0x3ed   : > { %8881 = vmatpush2.bf16.msra.mxu0 %v12254_v40  ;;  %v12319_v40 = vld [vmem:[%s16566_s1 + $0x444] ss:$100 sps:$4 sm:$0xff]  }
 0x3ee   : > { %8882 = vmatprep.subr.bf16.mxu0 %v12262_v33 }
 0x3ef   : > { %8922 = vmatpush2.bf16.msra.mxu1 %v12257_v59  ;;  %v12314_v59 = vld [vmem:[%s16566_s1 + $0x1d38] ss:$100 sps:$4 sm:$0xff]  }
 0x3f0   : > { %8923 = vmatprep.subr.bf16.mxu1 %v12265_v0 }
 0x3f1   : > { %8883 = vmatpush2.bf16.msra.mxu0 %v12260_v9  ;;  %v12322_v9 = vld [vmem:[%s16566_s1 + $0x1c74] ss:$100 sps:$4 sm:$0xff]  }
 0x3f2   : > { %8884 = vmatprep.subr.bf16.mxu0 %v12268_v39 }
 0x3f3   : > { %8924 = vmatpush2.bf16.msra.mxu1 %v12263_v17  ;;  %v12317_v17 = vld [vmem:[%s16566_s1 + $0x440] ss:$100 sps:$4 sm:$0xff]  }
 0x3f4   : > { %8925 = vmatprep.subr.bf16.mxu1 %v12271_v49  ;;  %v12325_v49 = vld [vmem:[%s16566_s1 + $0x37c] ss:$100 sps:$4 sm:$0xff]  }
 0x3f5   : > { %8885 = vmatpush2.bf16.msra.mxu0 %v12266_v53 }
 0x3f6   : > { %8886 = vmatprep.subr.bf16.mxu0 %v12274_v42  ;;  %v12320_v42 = vld [vmem:[%s16566_s1 + $0x1c70] ss:$100 sps:$4 sm:$0xff]  }
 0x3f7   : > { %8926 = vmatpush2.bf16.msra.mxu1 %v12269_v43  ;;  %v12328_v43 = vld [vmem:[%s16566_s1 + $0x1bac] ss:$100 sps:$4 sm:$0xff]  }
 0x3f8   : > { %8927 = vmatprep.subr.bf16.mxu1 %v12277_v44  ;;  %v12323_v44 = vld [vmem:[%s16566_s1 + $0x378] ss:$100 sps:$4 sm:$0xff]  }
 0x3f9   : > { %8887 = vmatpush2.bf16.msra.mxu0 %v12272_v47  ;;  %v12331_v47 = vld [vmem:[%s16566_s1 + $0x2b4] ss:$100 sps:$4 sm:$0xff]  }
 0x3fa   : > { %8888 = vmatprep.subr.bf16.mxu0 %v12280_v48  ;;  %v12326_v48 = vld [vmem:[%s16566_s1 + $0x1ba8] ss:$100 sps:$4 sm:$0xff]  }
 0x3fb   : > { %8928 = vmatpush2.bf16.msra.mxu1 %v12275_v52  ;;  %v12334_v52 = vld [vmem:[%s16566_s1 + $0x1ae4] ss:$100 sps:$4 sm:$0xff]  }
 0x3fc   : > { %8929 = vmatprep.subr.bf16.mxu1 %v12283_v31  ;;  %v12329_v31 = vld [vmem:[%s16566_s1 + $0x2b0] ss:$100 sps:$4 sm:$0xff]  }
 0x3fd   : > { %8889 = vmatpush2.bf16.msra.mxu0 %v12278_v58  ;;  %v12337_v58 = vld [vmem:[%s16566_s1 + $0x1ec] ss:$100 sps:$4 sm:$0xff]  }
 0x3fe   : > { %8890 = vmatprep.subr.bf16.mxu0 %v12286_v10  ;;  %v12332_v10 = vld [vmem:[%s16566_s1 + $0x1ae0] ss:$100 sps:$4 sm:$0xff]  }
 0x3ff   : > { %8930 = vmatpush2.bf16.msra.mxu1 %v12281_v61  ;;  %v12340_v61 = vld [vmem:[%s16566_s1 + $0x1a1c] ss:$100 sps:$4 sm:$0xff]  }
 0x400   : > { %8931 = vmatprep.subr.bf16.mxu1 %v12289_v62  ;;  %v12335_v62 = vld [vmem:[%s16566_s1 + $0x1e8] ss:$100 sps:$4 sm:$0xff]  }
 0x401   : > { %8891 = vmatpush2.bf16.msra.mxu0 %v12284_v63  ;;  %v12343_v63 = vld [vmem:[%s16566_s1 + $0x124] ss:$100 sps:$4 sm:$0xff]  }
 0x402   : > { %8892 = vmatprep.subr.bf16.mxu0 %v12292_v32  ;;  %v12338_v32 = vld [vmem:[%s16566_s1 + $0x1a18] ss:$100 sps:$4 sm:$0xff]  }
 0x403   : > { %8932 = vmatpush2.bf16.msra.mxu1 %v12287_v6  ;;  %v12346_v6 = vld [vmem:[%s16566_s1 + $0x1954] ss:$100 sps:$4 sm:$0xff]  }
 0x404   : > { %8933 = vmatprep.subr.bf16.mxu1 %v12295_v15  ;;  %v12341_v15 = vld [vmem:[%s16566_s1 + $0x120] ss:$100 sps:$4 sm:$0xff]  }
 0x405   : > { %8893 = vmatpush2.bf16.msra.mxu0 %v12290_v54  ;;  %v12349_v54 = vld [vmem:[%s16566_s1 + $0x5c] ss:$100 sps:$4 sm:$0xff]  }
 0x406   : > { %8894 = vmatprep.subr.bf16.mxu0 %v12298_v27  ;;  %v12344_v27 = vld [vmem:[%s16566_s1 + $0x1950] ss:$100 sps:$4 sm:$0xff]  }
 0x407   : > { %8934 = vmatpush2.bf16.msra.mxu1 %v12293_v1  ;;  %v12352_v1 = vld [vmem:[%s16566_s1 + $0x250c] ss:$100 sps:$4 sm:$0xff]  }
 0x408   : > { %8935 = vmatprep.subr.bf16.mxu1 %v12301_v38  ;;  %v12347_v38 = vld [vmem:[%s16566_s1 + $0x58] ss:$100 sps:$4 sm:$0xff]  }
 0x409   : > { %8895 = vmatpush2.bf16.msra.mxu0 %v12296_v14  ;;  %v12355_v14 = vld [vmem:[%s16566_s1 + $0xc14] ss:$100 sps:$4 sm:$0xff]  }
 0x40a   : > { %8946 = vmatprep.subr.bf16.mxu0 %v12304_v11  ;;  %v12350_v11 = vld [vmem:[%s16566_s1 + $0x2508] ss:$100 sps:$4 sm:$0xff]  }
 0x40b   : > { %8936 = vmatpush2.bf16.msra.mxu1 %v12299_v12  ;;  %v12358_v12 = vld [vmem:[%s16566_s1 + $0x2444] ss:$100 sps:$4 sm:$0xff]  }
 0x40c   : > { %v8652_v18 = vpop.f32.mrf.mxu0  ;;  %8897 = vmatmul.mubr.bf16.vlgmr.msra.gmra.mxu0 %v12823_v16  ;;  %8987 = vmatprep.subr.bf16.mxu1 %v12307_v13  ;;  %v12353_v13 = vld [vmem:[%s16566_s1 + $0xc10] ss:$100 sps:$4 sm:$0xff]  }
 0x40d   : > { %v8653_v21 = vadd.f32 %v8652_v18, %v7576_v37  ;;  %8947 = vmatpush1.bf16.msra.mxu0 %v12302_v36  ;;  %8978 = vmatprep.mubr.bf16.mxu0 %v12831_v19  ;;  %v12361_v37 = vld [vmem:[%s16566_s1 + $0xb4c] ss:$100 sps:$4 sm:$0xff]   ;;  %v12356_v36 = vld [vmem:[%s16566_s1 + $0x2440] ss:$100 sps:$4 sm:$0xff]   ;;  %v12362_v18 = vld [vmem:[%s16566_s1 + $0x2378] ss:$100 sps:$4 sm:$0xff]  }
 0x40e   : > { %v8654_v45 = vpop.f32.mrf.mxu0  ;;  %v8693_v23 = vpop.f32.mrf.mxu1  ;;  %8938 = vmatmul.mubr.bf16.vlgmr.msra.gmra.mxu1 %v12833_v20  ;;  %8948 = vmatprep.subr.bf16.mxu0 %v12310_v2  ;;  %v12364_v2 = vld [vmem:[%s16566_s1 + $0x237c] ss:$100 sps:$4 sm:$0xff]  }
 0x40f   : > { %v8655_v26 = vadd.f32 %v8654_v45, %v7580_v4  ;;  %v15989_v28 = vadd.f32 %v8693_v23, %v8653_v21  ;;  %8988 = vmatpush1.bf16.msra.mxu1 %v12305_v41  ;;  %9019 = vmatprep.mubr.bf16.mxu1 %v12754_v56  ;;  %v12359_v4 = vld [vmem:[%s16566_s1 + $0xb48] ss:$100 sps:$4 sm:$0xff]   ;;  %v12365_v21 = vld [vmem:[%s16566_s1 + $0xa80] ss:$100 sps:$4 sm:$0xff]   ;;  %v12368_v45 = vld [vmem:[%s16566_s1 + $0x22b0] ss:$100 sps:$4 sm:$0xff]  }
 0x410   : > { %v8656_v8 = vpop.f32.mrf.mxu0  ;;  %v8695_v30 = vpop.f32.mrf.mxu1  ;;  %8989 = vmatprep.subr.bf16.mxu1 %v12313_v3  ;;  %v12367_v41 = vld [vmem:[%s16566_s1 + $0xa84] ss:$100 sps:$4 sm:$0xff]   ;;  %v12370_v3 = vld [vmem:[%s16566_s1 + $0x22b4] ss:$100 sps:$4 sm:$0xff]   ;;  %v12376_v23 = vld [vmem:[%s16566_s1 + $0x21ec] ss:$100 sps:$4 sm:$0xff]  }
 0x411   : > { %v15998_v33 = vadd.f32 %v8695_v30, %v8655_v26  ;;  %8949 = vmatpush1.bf16.msra.mxu0 %v12308_v22  ;;  %v12373_v22 = vld [vmem:[%s16566_s1 + $0x9bc] ss:$100 sps:$4 sm:$0xff]   ;;  %v12379_v26 = vld [vmem:[%s16566_s1 + $0x8f4] ss:$100 sps:$4 sm:$0xff]   ;;  %v12382_v8 = vld [vmem:[%s16566_s1 + $0x2124] ss:$100 sps:$4 sm:$0xff]  }
 0x412   : > { %v8657_v0 = vpop.f32.mrf.mxu0  ;;  %8950 = vmatprep.subr.bf16.mxu0 %v12316_v24  ;;  %v8697_v39 = vpop.f32.mrf.mxu1  ;;  %v12371_v24 = vld [vmem:[%s16566_s1 + $0x9b8] ss:$100 sps:$4 sm:$0xff]   ;;  %v12377_v30 = vld [vmem:[%s16566_s1 + $0x8f0] ss:$100 sps:$4 sm:$0xff]  }
 0x413   : > { %8990 = vmatpush1.bf16.msra.mxu1 %v12311_v29  ;;  %v12374_v29 = vld [vmem:[%s16566_s1 + $0x21e8] ss:$100 sps:$4 sm:$0xff]   ;;  %v12388_v0 = vld [vmem:[%s16566_s1 + $0x205c] ss:$100 sps:$4 sm:$0xff]  }
 0x414   : > { %8991 = vmatprep.subr.bf16.mxu1 %v12319_v40  ;;  %v8698_v53 = vpop.f32.mrf.mxu1  ;;  %v12385_v40 = vld [vmem:[%s16566_s1 + $0x82c] ss:$100 sps:$4 sm:$0xff]   ;;  %v12391_v39 = vld [vmem:[%s16566_s1 + $0x764] ss:$100 sps:$4 sm:$0xff]  }
 0x415   : > { %8951 = vmatpush1.bf16.msra.mxu0 %v12314_v59  ;;  %v12380_v59 = vld [vmem:[%s16566_s1 + $0x2120] ss:$100 sps:$4 sm:$0xff]  }
 0x416   : > { %8952 = vmatprep.subr.bf16.mxu0 %v12322_v9  ;;  %v12383_v9 = vld [vmem:[%s16566_s1 + $0x828] ss:$100 sps:$4 sm:$0xff]   ;;  %v12389_v53 = vld [vmem:[%s16566_s1 + $0x760] ss:$100 sps:$4 sm:$0xff]  }
 0x417   : > { %8992 = vmatpush1.bf16.msra.mxu1 %v12317_v17  ;;  %v12386_v17 = vld [vmem:[%s16566_s1 + $0x2058] ss:$100 sps:$4 sm:$0xff]  }
 0x418   : > { %8993 = vmatprep.subr.bf16.mxu1 %v12325_v49  ;;  %v12394_v49 = vld [vmem:[%s16566_s1 + $0x1f94] ss:$100 sps:$4 sm:$0xff]  }
 0x419   : > { %8953 = vmatpush1.bf16.msra.mxu0 %v12320_v42  ;;  %v12397_v42 = vld [vmem:[%s16566_s1 + $0x69c] ss:$100 sps:$4 sm:$0xff]  }
 0x41a   : > { %8954 = vmatprep.subr.bf16.mxu0 %v12328_v43  ;;  %v12392_v43 = vld [vmem:[%s16566_s1 + $0x1f90] ss:$100 sps:$4 sm:$0xff]  }
 0x41b   : > { %8994 = vmatpush1.bf16.msra.mxu1 %v12323_v44  ;;  %v12400_v44 = vld [vmem:[%s16566_s1 + $0x1254] ss:$100 sps:$4 sm:$0xff]  }
 0x41c   : > { %8995 = vmatprep.subr.bf16.mxu1 %v12331_v47  ;;  %v12395_v47 = vld [vmem:[%s16566_s1 + $0x698] ss:$100 sps:$4 sm:$0xff]  }
 0x41d   : > { %8955 = vmatpush1.bf16.msra.mxu0 %v12326_v48  ;;  %v12403_v48 = vld [vmem:[%s16566_s1 + $0x1ed4] ss:$100 sps:$4 sm:$0xff]  }
 0x41e   : > { %8956 = vmatprep.subr.bf16.mxu0 %v12334_v52  ;;  %v12398_v52 = vld [vmem:[%s16566_s1 + $0x1250] ss:$100 sps:$4 sm:$0xff]  }
 0x41f   : > { %8996 = vmatpush1.bf16.msra.mxu1 %v12329_v31  ;;  %v12406_v31 = vld [vmem:[%s16566_s1 + $0x118c] ss:$100 sps:$4 sm:$0xff]  }
 0x420   : > { %8997 = vmatprep.subr.bf16.mxu1 %v12337_v58  ;;  %v12401_v58 = vld [vmem:[%s16566_s1 + $0x1ed0] ss:$100 sps:$4 sm:$0xff]  }
 0x421   : > { %8957 = vmatpush1.bf16.msra.mxu0 %v12332_v10 }
 0x422   : > { %8958 = vmatprep.subr.bf16.mxu0 %v12340_v61  ;;  %v12409_v61 = vld [vmem:[%s16566_s1 + $0x1e0c] ss:$100 sps:$4 sm:$0xff]  }
 0x423   : > { %8998 = vmatpush1.bf16.msra.mxu1 %v12335_v62 }
 0x424   : > { %8999 = vmatprep.subr.bf16.mxu1 %v12343_v63  ;;  %v12404_v63 = vld [vmem:[%s16566_s1 + $0x1188] ss:$100 sps:$4 sm:$0xff]  }
 0x425   : > { %8959 = vmatpush1.bf16.msra.mxu0 %v12338_v32 }
 0x426   : > { %8960 = vmatprep.subr.bf16.mxu0 %v12346_v6  ;;  %v12412_v6 = vld [vmem:[%s16566_s1 + $0x10c4] ss:$100 sps:$4 sm:$0xff]  }
 0x427   : > { %9000 = vmatpush1.bf16.msra.mxu1 %v12341_v15 }
 0x428   : > { %9001 = vmatprep.subr.bf16.mxu1 %v12349_v54  ;;  %v12407_v54 = vld [vmem:[%s16566_s1 + $0x1e08] ss:$100 sps:$4 sm:$0xff]  }
 0x429   : > { %8961 = vmatpush1.bf16.msra.mxu0 %v12344_v27 }
 0x42a   : > { %8962 = vmatprep.subr.bf16.mxu0 %v12352_v1  ;;  %v12415_v1 = vld [vmem:[%s16566_s1 + $0x1d44] ss:$100 sps:$4 sm:$0xff]  }
 0x42b   : > { %9002 = vmatpush1.bf16.msra.mxu1 %v12347_v38 }
 0x42c   : > { %9003 = vmatprep.subr.bf16.mxu1 %v12355_v14 }
 0x42d   : > { %8963 = vmatpush2.bf16.msra.mxu0 %v12350_v11 }
 0x42e   : > { %8964 = vmatprep.subr.bf16.mxu0 %v12358_v12  ;;  %v12418_v12 = vld [vmem:[%s16566_s1 + $0xffc] ss:$100 sps:$4 sm:$0xff]  }
 0x42f   : > { %9004 = vmatpush2.bf16.msra.mxu1 %v12353_v13 }
 0x430   : > { %9005 = vmatprep.subr.bf16.mxu1 %v12361_v37  ;;  %v12413_v37 = vld [vmem:[%s16566_s1 + $0x1d40] ss:$100 sps:$4 sm:$0xff]  }
 0x431   : > { %8965 = vmatpush2.bf16.msra.mxu0 %v12356_v36  ;;  %v12421_v36 = vld [vmem:[%s16566_s1 + $0x1c7c] ss:$100 sps:$4 sm:$0xff]  }
 0x432   : > { %8966 = vmatprep.subr.bf16.mxu0 %v12364_v2 }
 0x433   : > { %9006 = vmatpush2.bf16.msra.mxu1 %v12359_v4  ;;  %v12416_v4 = vld [vmem:[%s16566_s1 + $0xff8] ss:$100 sps:$4 sm:$0xff]  }
 0x434   : > { %9007 = vmatprep.subr.bf16.mxu1 %v12367_v41  ;;  %v12424_v41 = vld [vmem:[%s16566_s1 + $0xf34] ss:$100 sps:$4 sm:$0xff]  }
 0x435   : > { %8967 = vmatpush2.bf16.msra.mxu0 %v12362_v18  ;;  %v12419_v18 = vld [vmem:[%s16566_s1 + $0x1c78] ss:$100 sps:$4 sm:$0xff]  }
 0x436   : > { %8968 = vmatprep.subr.bf16.mxu0 %v12370_v3  ;;  %v12427_v3 = vld [vmem:[%s16566_s1 + $0x1bb4] ss:$100 sps:$4 sm:$0xff]  }
 0x437   : > { %9008 = vmatpush2.bf16.msra.mxu1 %v12365_v21  ;;  %v12422_v21 = vld [vmem:[%s16566_s1 + $0xf30] ss:$100 sps:$4 sm:$0xff]  }
 0x438   : > { %9009 = vmatprep.subr.bf16.mxu1 %v12373_v22  ;;  %v12430_v22 = vld [vmem:[%s16566_s1 + $0xe6c] ss:$100 sps:$4 sm:$0xff]  }
 0x439   : > { %8969 = vmatpush2.bf16.msra.mxu0 %v12368_v45  ;;  %v12425_v45 = vld [vmem:[%s16566_s1 + $0x1bb0] ss:$100 sps:$4 sm:$0xff]  }
 0x43a   : > { %8970 = vmatprep.subr.bf16.mxu0 %v12376_v23  ;;  %v12433_v23 = vld [vmem:[%s16566_s1 + $0x1aec] ss:$100 sps:$4 sm:$0xff]  }
 0x43b   : > { %9010 = vmatpush2.bf16.msra.mxu1 %v12371_v24  ;;  %v12428_v24 = vld [vmem:[%s16566_s1 + $0xe68] ss:$100 sps:$4 sm:$0xff]  }
 0x43c   : > { %9011 = vmatprep.subr.bf16.mxu1 %v12379_v26  ;;  %v12436_v26 = vld [vmem:[%s16566_s1 + $0xda4] ss:$100 sps:$4 sm:$0xff]  }
 0x43d   : > { %8971 = vmatpush2.bf16.msra.mxu0 %v12374_v29  ;;  %v12431_v29 = vld [vmem:[%s16566_s1 + $0x1ae8] ss:$100 sps:$4 sm:$0xff]  }
 0x43e   : > { %8972 = vmatprep.subr.bf16.mxu0 %v12382_v8  ;;  %v12439_v8 = vld [vmem:[%s16566_s1 + $0x1a24] ss:$100 sps:$4 sm:$0xff]  }
 0x43f   : > { %9012 = vmatpush2.bf16.msra.mxu1 %v12377_v30  ;;  %v12434_v30 = vld [vmem:[%s16566_s1 + $0xda0] ss:$100 sps:$4 sm:$0xff]  }
 0x440   : > { %9013 = vmatprep.subr.bf16.mxu1 %v12385_v40  ;;  %v12442_v40 = vld [vmem:[%s16566_s1 + $0xcdc] ss:$100 sps:$4 sm:$0xff]  }
 0x441   : > { %8973 = vmatpush2.bf16.msra.mxu0 %v12380_v59  ;;  %v12437_v59 = vld [vmem:[%s16566_s1 + $0x1a20] ss:$100 sps:$4 sm:$0xff]  }
 0x442   : > { %8974 = vmatprep.subr.bf16.mxu0 %v12388_v0  ;;  %v12445_v0 = vld [vmem:[%s16566_s1 + $0x195c] ss:$100 sps:$4 sm:$0xff]  }
 0x443   : > { %9014 = vmatpush2.bf16.msra.mxu1 %v12383_v9  ;;  %v12440_v9 = vld [vmem:[%s16566_s1 + $0xcd8] ss:$100 sps:$4 sm:$0xff]  }
 0x444   : > { %9015 = vmatprep.subr.bf16.mxu1 %v12391_v39  ;;  %v12448_v39 = vld [vmem:[%s16566_s1 + $0x1894] ss:$100 sps:$4 sm:$0xff]  }
 0x445   : > { %8975 = vmatpush2.bf16.msra.mxu0 %v12386_v17  ;;  %v12443_v17 = vld [vmem:[%s16566_s1 + $0x1958] ss:$100 sps:$4 sm:$0xff]  }
 0x446   : > { %8976 = vmatprep.subr.bf16.mxu0 %v12394_v49  ;;  %v12451_v49 = vld [vmem:[%s16566_s1 + $0x2514] ss:$100 sps:$4 sm:$0xff]  }
 0x447   : > { %9016 = vmatpush2.bf16.msra.mxu1 %v12389_v53  ;;  %v12446_v53 = vld [vmem:[%s16566_s1 + $0x1890] ss:$100 sps:$4 sm:$0xff]  }
 0x448   : > { %9017 = vmatprep.subr.bf16.mxu1 %v12397_v42  ;;  %v12454_v42 = vld [vmem:[%s16566_s1 + $0x17cc] ss:$100 sps:$4 sm:$0xff]  }
 0x449   : > { %8977 = vmatpush2.bf16.msra.mxu0 %v12392_v43  ;;  %v12449_v43 = vld [vmem:[%s16566_s1 + $0x2510] ss:$100 sps:$4 sm:$0xff]  }
 0x44a   : > { %9028 = vmatprep.subr.bf16.mxu0 %v12400_v44  ;;  %v12457_v44 = vld [vmem:[%s16566_s1 + $0x244c] ss:$100 sps:$4 sm:$0xff]  }
 0x44b   : > { %9018 = vmatpush2.bf16.msra.mxu1 %v12395_v47  ;;  %v12452_v47 = vld [vmem:[%s16566_s1 + $0x17c8] ss:$100 sps:$4 sm:$0xff]  }
 0x44c   : > { %v8734_v10 = vpop.f32.mrf.mxu0  ;;  %8979 = vmatmul.mubr.bf16.vlgmr.msra.gmra.mxu0 %v13030_v34  ;;  %9069 = vmatprep.subr.bf16.mxu1 %v12403_v48  ;;  %v12460_v48 = vld [vmem:[%s16566_s1 + $0x1704] ss:$100 sps:$4 sm:$0xff]  }
 0x44d   : > { %v16182_v62 = vadd.f32 %v8734_v10, %v15989_v28  ;;  %9029 = vmatpush1.bf16.msra.mxu0 %v12398_v52  ;;  %9060 = vmatprep.mubr.bf16.mxu0 %v12756_v57  ;;  %v12455_v52 = vld [vmem:[%s16566_s1 + $0x2448] ss:$100 sps:$4 sm:$0xff]   ;;  %v12466_v10 = vld [vmem:[%s16566_s1 + $0x163c] ss:$100 sps:$4 sm:$0xff]  }
 0x44e   : > { %v8736_v32 = vpop.f32.mrf.mxu0  ;;  %9020 = vmatmul.mubr.bf16.vlgmr.msra.gmra.mxu1 %v12823_v16  ;;  %9030 = vmatprep.subr.bf16.mxu0 %v12406_v31  ;;  %v16192_v15 = vpop.f32.mrf.mxu1  ;;  %v12463_v31 = vld [vmem:[%s16566_s1 + $0x2384] ss:$100 sps:$4 sm:$0xff]  }
 0x44f   : > { %v16195_v28 = vadd.f32 %v8736_v32, %v15998_v33  ;;  %9070 = vmatpush1.bf16.msra.mxu1 %v12401_v58  ;;  %9101 = vmatprep.mubr.bf16.mxu1 %v12831_v19  ;;  %v12410_v33 = vld [vmem:[%s16566_s1 + $0x10c0] ss:$100 sps:$4 sm:$0xff]   ;;  %v12464_v32 = vld [vmem:[%s16566_s1 + $0x1638] ss:$100 sps:$4 sm:$0xff]  }
 0x450   : > { %v8738_v27 = vpop.f32.mrf.mxu0  ;;  %9071 = vmatprep.subr.bf16.mxu1 %v12409_v61  ;;  %v16204_v38 = vpop.f32.mrf.mxu1  ;;  %v12458_v58 = vld [vmem:[%s16566_s1 + $0x1700] ss:$100 sps:$4 sm:$0xff]  }
 0x451   : > { %v9353_v14 = vcombine.low %v16182_v62, %v16195_v28  ;;  %9031 = vmatpush1.bf16.msra.mxu0 %v12404_v63  ;;  %v12461_v61 = vld [vmem:[%s16566_s1 + $0x2380] ss:$100 sps:$4 sm:$0xff]   ;;  %v12475_v27 = vld [vmem:[%s16566_s1 + $0x21f4] ss:$100 sps:$4 sm:$0xff]  }
 0x452   : > { %v8739_v11 = vpop.f32.mrf.mxu0  ;;  %9032 = vmatprep.subr.bf16.mxu0 %v12412_v6  ;;  %v8779_v13 = vpop.f32.mrf.mxu1  ;;  %v12469_v63 = vld [vmem:[%s16566_s1 + $0x22bc] ss:$100 sps:$4 sm:$0xff]   ;;  %v12472_v6 = vld [vmem:[%s16566_s1 + $0x1574] ss:$100 sps:$4 sm:$0xff]  }
 0x453   : > { %9072 = vmatpush1.bf16.msra.mxu1 %v12407_v54  ;;  %v12467_v54 = vld [vmem:[%s16566_s1 + $0x22b8] ss:$100 sps:$4 sm:$0xff]   ;;  %v12473_v11 = vld [vmem:[%s16566_s1 + $0x21f0] ss:$100 sps:$4 sm:$0xff]   ;;  %v12476_v13 = vld [vmem:[%s16566_s1 + $0x14a8] ss:$100 sps:$4 sm:$0xff]  }
 0x454   : > { %9073 = vmatprep.subr.bf16.mxu1 %v12415_v1  ;;  %v8780_v2 = vpop.f32.mrf.mxu1  ;;  %v12470_v1 = vld [vmem:[%s16566_s1 + $0x1570] ss:$100 sps:$4 sm:$0xff]   ;;  %v12509_v62 = vld [vmem:[%s16566_s1 + $0x1000] ss:$100 sps:$4 sm:$0xff]   ;;  %v12512_v28 = vld [vmem:[%s16566_s1 + $0x1578] ss:$100 sps:$4 sm:$0xff]  }
 0x455   : > { %9033 = vmatpush1.bf16.msra.mxu0 %v12410_v33  ;;  %v12478_v33 = vld [vmem:[%s16566_s1 + $0x14ac] ss:$100 sps:$4 sm:$0xff]   ;;  %v12487_v2 = vld [vmem:[%s16566_s1 + $0x2064] ss:$100 sps:$4 sm:$0xff]  }
 0x456   : > { %9034 = vmatprep.subr.bf16.mxu0 %v12418_v12  ;;  %v12481_v12 = vld [vmem:[%s16566_s1 + $0x212c] ss:$100 sps:$4 sm:$0xff]  }
 0x457   : > { %9074 = vmatpush1.bf16.msra.mxu1 %v12413_v37  ;;  %v12484_v37 = vld [vmem:[%s16566_s1 + $0x13e4] ss:$100 sps:$4 sm:$0xff]  }
 0x458   : > { %9075 = vmatprep.subr.bf16.mxu1 %v12421_v36  ;;  %v12479_v36 = vld [vmem:[%s16566_s1 + $0x2128] ss:$100 sps:$4 sm:$0xff]  }
 0x459   : > { %9035 = vmatpush1.bf16.msra.mxu0 %v12416_v4  ;;  %v12482_v4 = vld [vmem:[%s16566_s1 + $0x13e0] ss:$100 sps:$4 sm:$0xff]  }
 0x45a   : > { %9036 = vmatprep.subr.bf16.mxu0 %v12424_v41  ;;  %v12490_v41 = vld [vmem:[%s16566_s1 + $0x131c] ss:$100 sps:$4 sm:$0xff]  }
 0x45b   : > { %9076 = vmatpush1.bf16.msra.mxu1 %v12419_v18  ;;  %v12485_v18 = vld [vmem:[%s16566_s1 + $0x2060] ss:$100 sps:$4 sm:$0xff]  }
 0x45c   : > { %9077 = vmatprep.subr.bf16.mxu1 %v12427_v3  ;;  %v12493_v3 = vld [vmem:[%s16566_s1 + $0x1f9c] ss:$100 sps:$4 sm:$0xff]  }
 0x45d   : > { %9037 = vmatpush1.bf16.msra.mxu0 %v12422_v21  ;;  %v12488_v21 = vld [vmem:[%s16566_s1 + $0x1318] ss:$100 sps:$4 sm:$0xff]  }
 0x45e   : > { %9038 = vmatprep.subr.bf16.mxu0 %v12430_v22  ;;  %v12494_v22 = vld [vmem:[%s16566_s1 + $0xc18] ss:$100 sps:$4 sm:$0xff]  }
 0x45f   : > { %9078 = vmatpush1.bf16.msra.mxu1 %v12425_v45  ;;  %v7584_v45 = vrot.slane %v15953_v55, %v12800_v7  ;;  %v12498_v7 = vld [vmem:[%s16566_s1 + $0xb50] ss:$100 sps:$4 sm:$0xff]  }
 0x460   : > { %9079 = vmatprep.subr.bf16.mxu1 %v12433_v23  ;;  %v12491_v23 = vld [vmem:[%s16566_s1 + $0x1f98] ss:$100 sps:$4 sm:$0xff]  }
 0x461   : > { %9039 = vmatpush1.bf16.msra.mxu0 %v12428_v24  ;;  %v12496_v24 = vld [vmem:[%s16566_s1 + $0x1898] ss:$100 sps:$4 sm:$0xff]  }
 0x462   : > { %9040 = vmatprep.subr.bf16.mxu0 %v12436_v26  ;;  %v7588_v26 = vrot.slane %v15953_v55, %v12728_v46  ;;  %v12500_v46 = vld [vmem:[%s16566_s1 + $0x17d0] ss:$100 sps:$4 sm:$0xff]  }
 0x463   : > { %9080 = vmatpush1.bf16.msra.mxu1 %v12431_v29  ;;  %v12495_v29 = vld [vmem:[%s16566_s1 + $0x5d8] ss:$100 sps:$4 sm:$0xff]  }
 0x464   : > { %9081 = vmatprep.subr.bf16.mxu1 %v12439_v8  ;;  %v8776_v8 = vadd.f32 %v16192_v15, %v7584_v45  ;;  %v12499_v15 = vld [vmem:[%s16566_s1 + $0x510] ss:$100 sps:$4 sm:$0xff]   ;;  %v12527_v45 = vld [vmem:[%s16566_s1 + $0x1ed8] ss:$100 sps:$4 sm:$0xff]  }
 0x465   : > { %9041 = vmatpush1.bf16.msra.mxu0 %v12434_v30  ;;  %v12497_v30 = vld [vmem:[%s16566_s1 + $0x1258] ss:$100 sps:$4 sm:$0xff]  }
 0x466   : > { %9042 = vmatprep.subr.bf16.mxu0 %v12442_v40 }
 0x467   : > { %9082 = vmatpush1.bf16.msra.mxu1 %v12437_v59  ;;  %v8778_v59 = vadd.f32 %v16204_v38, %v7588_v26  ;;  %v12501_v38 = vld [vmem:[%s16566_s1 + $0x1190] ss:$100 sps:$4 sm:$0xff]   ;;  %v12530_v26 = vld [vmem:[%s16566_s1 + $0x2388] ss:$100 sps:$4 sm:$0xff]  }
 0x468   : > { %9083 = vmatprep.subr.bf16.mxu1 %v12445_v0 }
 0x469   : > { %9043 = vmatpush1.bf16.msra.mxu0 %v12440_v9 }
 0x46a   : > { %9044 = vmatprep.subr.bf16.mxu0 %v12448_v39 }
 0x46b   : > { %9084 = vmatpush1.bf16.msra.mxu1 %v12443_v17  ;;  %v12502_v17 = vld [vmem:[%s16566_s1 + $0xa88] ss:$100 sps:$4 sm:$0xff]  }
 0x46c   : > { %9085 = vmatprep.subr.bf16.mxu1 %v12451_v49 }
 0x46d   : > { %9045 = vmatpush2.bf16.msra.mxu0 %v12446_v53 }
 0x46e   : > { %9046 = vmatprep.subr.bf16.mxu0 %v12454_v42 }
 0x46f   : > { %9086 = vmatpush2.bf16.msra.mxu1 %v12449_v43  ;;  %v12504_v43 = vld [vmem:[%s16566_s1 + $0x1708] ss:$100 sps:$4 sm:$0xff]  }
 0x470   : > { %9087 = vmatprep.subr.bf16.mxu1 %v12457_v44 }
 0x471   : > { %9047 = vmatpush2.bf16.msra.mxu0 %v12452_v47  ;;  %v12503_v47 = vld [vmem:[%s16566_s1 + $0x448] ss:$100 sps:$4 sm:$0xff]  }
 0x472   : > { %9048 = vmatprep.subr.bf16.mxu0 %v12460_v48 }
 0x473   : > { %9088 = vmatpush2.bf16.msra.mxu1 %v12455_v52  ;;  %v12506_v52 = vld [vmem:[%s16566_s1 + $0x9c0] ss:$100 sps:$4 sm:$0xff]  }
 0x474   : > { %9089 = vmatprep.subr.bf16.mxu1 %v12463_v31 }
 0x475   : > { %9049 = vmatpush2.bf16.msra.mxu0 %v12458_v58  ;;  %v12505_v58 = vld [vmem:[%s16566_s1 + $0x10c8] ss:$100 sps:$4 sm:$0xff]  }
 0x476   : > { %9050 = vmatprep.subr.bf16.mxu0 %v12466_v10  ;;  %v12508_v10 = vld [vmem:[%s16566_s1 + $0x1640] ss:$100 sps:$4 sm:$0xff]  }
 0x477   : > { %9090 = vmatpush2.bf16.msra.mxu1 %v12461_v61 }
 0x478   : > { %9091 = vmatprep.subr.bf16.mxu1 %v12469_v63  ;;  %v16426_v63 = vrot.slane %v9353_v14, %v13880_v51  ;;  %v12511_v14 = vld [vmem:[%s16566_s1 + $0x2b8] ss:$100 sps:$4 sm:$0xff]  }
 0x479   : > { %9051 = vmatpush2.bf16.msra.mxu0 %v12464_v32 }
 0x47a   : > { %9052 = vmatprep.subr.bf16.mxu0 %v12472_v6  ;;  %v12507_v6 = vld [vmem:[%s16566_s1 + $0x380] ss:$100 sps:$4 sm:$0xff]  }
 0x47b   : > { %9092 = vmatpush2.bf16.msra.mxu1 %v12467_v54  ;;  %v12510_v54 = vld [vmem:[%s16566_s1 + $0x8f8] ss:$100 sps:$4 sm:$0xff]  }
 0x47c   : > { %9093 = vmatprep.subr.bf16.mxu1 %v12475_v27 }
 0x47d   : > { %9053 = vmatpush2.bf16.msra.mxu0 %v12470_v1  ;;  %v12514_v1 = vld [vmem:[%s16566_s1 + $0x830] ss:$100 sps:$4 sm:$0xff]  }
 0x47e   : > { %9054 = vmatprep.subr.bf16.mxu0 %v12478_v33  ;;  %v12513_v33 = vld [vmem:[%s16566_s1 + $0xf38] ss:$100 sps:$4 sm:$0xff]  }
 0x47f   : > { %9094 = vmatpush2.bf16.msra.mxu1 %v12473_v11  ;;  %v12516_v11 = vld [vmem:[%s16566_s1 + $0x14b0] ss:$100 sps:$4 sm:$0xff]  }
 0x480   : > { %9095 = vmatprep.subr.bf16.mxu1 %v12481_v12  ;;  %v12515_v12 = vld [vmem:[%s16566_s1 + $0x1f0] ss:$100 sps:$4 sm:$0xff]  }
 0x481   : > { %9055 = vmatpush2.bf16.msra.mxu0 %v12476_v13  ;;  %v12518_v13 = vld [vmem:[%s16566_s1 + $0x768] ss:$100 sps:$4 sm:$0xff]  }
 0x482   : > { %9056 = vmatprep.subr.bf16.mxu0 %v12484_v37  ;;  %v12517_v37 = vld [vmem:[%s16566_s1 + $0xe70] ss:$100 sps:$4 sm:$0xff]  }
 0x483   : > { %9096 = vmatpush2.bf16.msra.mxu1 %v12479_v36  ;;  %v12520_v36 = vld [vmem:[%s16566_s1 + $0x13e8] ss:$100 sps:$4 sm:$0xff]  }
 0x484   : > { %9097 = vmatprep.subr.bf16.mxu1 %v12487_v2  ;;  %v12519_v2 = vld [vmem:[%s16566_s1 + $0x128] ss:$100 sps:$4 sm:$0xff]  }
 0x485   : > { %9057 = vmatpush2.bf16.msra.mxu0 %v12482_v4  ;;  %v12522_v4 = vld [vmem:[%s16566_s1 + $0x6a0] ss:$100 sps:$4 sm:$0xff]  }
 0x486   : > { %9058 = vmatprep.subr.bf16.mxu0 %v12490_v41  ;;  %v12521_v41 = vld [vmem:[%s16566_s1 + $0xda8] ss:$100 sps:$4 sm:$0xff]  }
 0x487   : > { %9098 = vmatpush2.bf16.msra.mxu1 %v12485_v18  ;;  %v12524_v18 = vld [vmem:[%s16566_s1 + $0x1320] ss:$100 sps:$4 sm:$0xff]  }
 0x488   : > { %9099 = vmatprep.subr.bf16.mxu1 %v12493_v3  ;;  %v12523_v3 = vld [vmem:[%s16566_s1 + $0x60] ss:$100 sps:$4 sm:$0xff]  }
 0x489   : > { %9059 = vmatpush2.bf16.msra.mxu0 %v12488_v21  ;;  %v12526_v21 = vld [vmem:[%s16566_s1 + $0x2518] ss:$100 sps:$4 sm:$0xff]  }
 0x48a   : > { %10689 = vmatprep.subr.bf16.mxu0 %v12494_v22  ;;  %v12525_v22 = vld [vmem:[%s16566_s1 + $0xce0] ss:$100 sps:$4 sm:$0xff]  }
 0x48b   : > { %9100 = vmatpush2.bf16.msra.mxu1 %v12491_v23  ;;  %v12528_v23 = vld [vmem:[%s16566_s1 + $0x2450] ss:$100 sps:$4 sm:$0xff]  }
 0x48c   : > { %v8816_v40 = vpop.f32.mrf.mxu0  ;;  %9061 = vmatmul.mubr.bf16.vlgmr.msra.gmra.mxu0 %v12833_v20  ;;  %10711 = vmatprep.subr.bf16.mxu1 %v12496_v24  ;;  %v12529_v24 = vld [vmem:[%s16566_s1 + $0x1e10] ss:$100 sps:$4 sm:$0xff]  }
 0x48d   : > { %v8817_v0 = vadd.f32 %v8816_v40, %v8776_v8  ;;  %10690 = vmatpush3.bf16.msra.mxu0 %v12495_v29  ;;  %9142 = vmatprep.mubr.bf16.mxu0 %v12754_v56  ;;  %v12531_v29 = vld [vmem:[%s16566_s1 + $0x1d48] ss:$100 sps:$4 sm:$0xff]   ;;  %v12536_v8 = vld [vmem:[%s16566_s1 + $0x2130] ss:$100 sps:$4 sm:$0xff]  }
 0x48e   : > { %v8818_v9 = vpop.f32.mrf.mxu0  ;;  %v8857_v39 = vpop.f32.mrf.mxu1  ;;  %9102 = vmatmul.mubr.bf16.vlgmr.msra.gmra.mxu1 %v13030_v34  ;;  %10691 = vmatprep.subr.bf16.mxu0 %v12498_v7  ;;  %v12535_v7 = vld [vmem:[%s16566_s1 + $0x1bb8] ss:$100 sps:$4 sm:$0xff]   ;;  %v12538_v40 = vld [vmem:[%s16566_s1 + $0x2068] ss:$100 sps:$4 sm:$0xff]  }
 0x48f   : > { %v8819_v49 = vadd.f32 %v8818_v9, %v8778_v59  ;;  %v8858_v53 = vadd.f32 %v8857_v39, %v8817_v0  ;;  %10712 = vmatpush3.bf16.msra.mxu1 %v12497_v30  ;;  %9182 = vmatprep.mubr.bf16.mxu1 %v12756_v57  ;;  %v12537_v30 = vld [vmem:[%s16566_s1 + $0x1af0] ss:$100 sps:$4 sm:$0xff]   ;;  %v12540_v59 = vld [vmem:[%s16566_s1 + $0x1fa0] ss:$100 sps:$4 sm:$0xff]   ;;  %v7596_v9 = vrot.slane %v15953_v55, %v12794_v5 }
 0x490   : > { %v8820_v42 = vpop.f32.mrf.mxu0  ;;  %v8859_v56 = vpop.f32.mrf.mxu1  ;;  %10713 = vmatprep.subr.bf16.mxu1 %v12500_v46  ;;  %v12539_v46 = vld [vmem:[%s16566_s1 + $0x1a28] ss:$100 sps:$4 sm:$0xff]   ;;  %v12541_v0 = vld [vmem:[%s16566_s1 + $0x1960] ss:$100 sps:$4 sm:$0xff]  }
 0x491   : > { %v8860_v44 = vadd.f32 %v8859_v56, %v8819_v49  ;;  %10692 = vmatpush3.bf16.msra.mxu0 %v12499_v15  ;;  %v7592_v15 = vrot.slane %v15953_v55, %v13005_v25 }
 0x492   : > { %v8821_v48 = vpop.f32.mrf.mxu0  ;;  %10693 = vmatprep.subr.bf16.mxu0 %v12502_v17  ;;  %v8861_v57 = vpop.f32.mrf.mxu1 }
 0x493   : > { %v9354_v31 = vcombine.low %v8858_v53, %v8860_v44  ;;  %10714 = vmatpush3.bf16.msra.mxu1 %v12501_v38 }
 0x494   : > { %10715 = vmatprep.subr.bf16.mxu1 %v12504_v43  ;;  %v8862_v61 = vpop.f32.mrf.mxu1 }
 0x495   : > { %v16429_v32 = vrot.slane %v9354_v31, %v13880_v51  ;;  %10694 = vmatpush3.bf16.msra.mxu0 %v12503_v47 }
 0x496   : > { %10695 = vmatprep.subr.bf16.mxu0 %v12506_v52 }
 0x497   : > { %v9385_v27 = vcombine.low %v16426_v63, %v16429_v32  ;;  %10716 = vmatpush3.bf16.msra.mxu1 %v12505_v58 }
 0x498   : > { %10717 = vmatprep.subr.bf16.mxu1 %v12508_v10 }
 0x499   : > { %10696 = vmatpush3.bf16.msra.mxu0 %v12507_v6 }
 0x49a   : > { %10697 = vmatprep.subr.bf16.mxu0 %v12510_v54 }
 0x49b   : > { %10718 = vmatpush3.bf16.msra.mxu1 %v12509_v62 }
 0x49c   : > { %10719 = vmatprep.subr.bf16.mxu1 %v12512_v28  ;;  %v7600_v28 = vrot.slane %v15953_v55, %v14459_v50 }
 0x49d   : > { %10698 = vmatpush3.bf16.msra.mxu0 %v12511_v14  ;;  %v7604_v14 = vrot.slane %v15953_v55, %v14468_v60 }
 0x49e   : > { %10699 = vmatprep.subr.bf16.mxu0 %v12514_v1 }
 0x49f   : > { %10720 = vmatpush3.bf16.msra.mxu1 %v12513_v33 }
 0x4a0   : > { %10721 = vmatprep.subr.bf16.mxu1 %v12516_v11 }
 0x4a1   : > { %10700 = vmatpush3.bf16.msra.mxu0 %v12515_v12 }
 0x4a2   : > { %10701 = vmatprep.subr.bf16.mxu0 %v12518_v13 }
 0x4a3   : > { %10722 = vmatpush3.bf16.msra.mxu1 %v12517_v37 }
 0x4a4   : > { %10723 = vmatprep.subr.bf16.mxu1 %v12520_v36 }
 0x4a5   : > { %10702 = vmatpush3.bf16.msra.mxu0 %v12519_v2 }
 0x4a6   : > { %10703 = vmatprep.subr.bf16.mxu0 %v12522_v4 }
 0x4a7   : > { %10724 = vmatpush3.bf16.msra.mxu1 %v12521_v41 }
 0x4a8   : > { %10725 = vmatprep.subr.bf16.mxu1 %v12524_v18 }
 0x4a9   : > { %10704 = vmatpush3.bf16.msra.mxu0 %v12523_v3 }
 0x4aa   : > { %10733 = vmatprep.subr.bf16.mxu0 %v12526_v21 }
 0x4ab   : > { %10726 = vmatpush3.bf16.msra.mxu1 %v12525_v22 }
 0x4ac   : > { %9143 = vmatmul.mubr.bf16.vlgmr.msra.gmra.mxu0 %v12823_v16  ;;  %v12532_v16 = vld [vmem:[%s16566_s1 + $0x22c0] ss:$100 sps:$4 sm:$0xff]  }
 0x4ad   : > { %10734 = vmatpush3.bf16.msra.mxu0 %v12527_v45  ;;  %9222 = vmatprep.mubr.bf16.mxu0 %v12831_v19  ;;  %v12533_v19 = vld [vmem:[%s16566_s1 + $0x1c80] ss:$100 sps:$4 sm:$0xff]  }
 0x4ae   : > { %9183 = vmatmul.mubr.bf16.vlgmr.msra.gmra.mxu1 %v12833_v20  ;;  %10735 = vmatprep.subr.bf16.mxu0 %v12528_v23  ;;  %v12534_v20 = vld [vmem:[%s16566_s1 + $0x21f8] ss:$100 sps:$4 sm:$0xff]   ;;  %v9393_v23 = vrot.slane %v9385_v27, %v13880_v51 }
 0x4b1   : > { %10736 = vmatpush3.bf16.msra.mxu0 %v12529_v24 }
 0x4b2   : > { %10737 = vmatprep.subr.bf16.mxu0 %v12530_v26 }
 0x4b5   : > { %10738 = vmatpush3.bf16.msra.mxu0 %v12531_v29 }
 0x4b6   : > { %10739 = vmatprep.subr.bf16.mxu0 %v12532_v16 }
 0x4b9   : > { %10740 = vmatpush3.bf16.msra.mxu0 %v12533_v19 }
 0x4ba   : > { %10741 = vmatprep.subr.bf16.mxu0 %v12534_v20 }
 0x4bd   : > { %10742 = vmatpush3.bf16.msra.mxu0 %v12535_v7 }
 0x4be   : > { %10743 = vmatprep.subr.bf16.mxu0 %v12536_v8 }
 0x4c1   : > { %10744 = vmatpush3.bf16.msra.mxu0 %v12537_v30 }
 0x4c2   : > { %10745 = vmatprep.subr.bf16.mxu0 %v12538_v40 }
 0x4c5   : > { %10746 = vmatpush3.bf16.msra.mxu0 %v12539_v46 }
 0x4c6   : > { %10747 = vmatprep.subr.bf16.mxu0 %v12540_v59  ;;  %v10686_v59 = vld [vmem:[%s16567_s2 + $0x18] ss:$0 sm:$0xff] }
 0x4c9   : > { %10748 = vmatpush3.bf16.msra.mxu0 %v12541_v0 }
 0x4cc   : > { %v8898_v39 = vpop.f32.mrf.mxu0  ;;  %9223 = vmatmul.mubr.bf16.vlgmr.msra.gmra.mxu0 %v13030_v34 }
 0x4cd   : > { %v8899_v17 = vadd.f32 %v8898_v39, %v7592_v15 }
 0x4ce   : > { %v8900_v49 = vpop.f32.mrf.mxu0  ;;  %v8939_v53 = vpop.f32.mrf.mxu1 }
 0x4cf   : > { %v8901_v38 = vadd.f32 %v8900_v49, %v7596_v9  ;;  %v8940_v42 = vadd.f32 %v8939_v53, %v8899_v17 }
 0x4d0   : > { %v8902_v56 = vpop.f32.mrf.mxu0  ;;  %v8941_v43 = vpop.f32.mrf.mxu1 }
 0x4d1   : > { %v8942_v44 = vadd.f32 %v8941_v43, %v8901_v38 }
 0x4d2   : > { %v8903_v47 = vpop.f32.mrf.mxu0  ;;  %v8943_v48 = vpop.f32.mrf.mxu1 }
 0x4d4   : > { %v8944_v52 = vpop.f32.mrf.mxu1 }
 0x50c   : > { %v8980_v57 = vpop.f32.mrf.mxu0 }
 0x50d   : > { %v8981_v31 = vadd.f32 %v8980_v57, %v8940_v42 }
 0x50e   : > { %v8982_v25 = vpop.f32.mrf.mxu0  ;;  %v9021_v58 = vpop.f32.mrf.mxu1 }
 0x50f   : > { %v8983_v10 = vadd.f32 %v8982_v25, %v8942_v44  ;;  %v9022_v1 = vadd.f32 %v9021_v58, %v7600_v28 }
 0x510   : > { %v8984_v5 = vpop.f32.mrf.mxu0  ;;  %v9023_v61 = vpop.f32.mrf.mxu1 }
 0x511   : > { %v9355_v6 = vcombine.low %v8981_v31, %v8983_v10  ;;  %v9024_v11 = vadd.f32 %v9023_v61, %v7604_v14 }
 0x512   : > { %v8985_v34 = vpop.f32.mrf.mxu0  ;;  %v9025_v54 = vpop.f32.mrf.mxu1 }
 0x513   : > { %v9377_v50 = vrot.slane %v9355_v6, %v13880_v51 }
 0x514   : > { %v9026_v62 = vpop.f32.mrf.mxu1 }
 0x54c   : > { %v9062_v33 = vpop.f32.mrf.mxu0 }
 0x54d   : > { %v9063_v12 = vadd.f32 %v9062_v33, %v9022_v1 }
 0x54e   : > { %v9064_v13 = vpop.f32.mrf.mxu0  ;;  %v9103_v37 = vpop.f32.mrf.mxu1 }
 0x54f   : > { %v9065_v36 = vadd.f32 %v9064_v13, %v9024_v11  ;;  %v9104_v41 = vadd.f32 %v9103_v37, %v9063_v12 }
 0x550   : > { %v9066_v2 = vpop.f32.mrf.mxu0  ;;  %v9105_v4 = vpop.f32.mrf.mxu1 }
 0x551   : > { %v9106_v18 = vadd.f32 %v9105_v4, %v9065_v36 }
 0x552   : > { %v9067_v3 = vpop.f32.mrf.mxu0  ;;  %v9107_v21 = vpop.f32.mrf.mxu1 }
 0x553   : > { %v9356_v22 = vcombine.low %v9104_v41, %v9106_v18 }
 0x554   : > { %v9108_v45 = vpop.f32.mrf.mxu1 }
 0x555   : > { %v9384_v60 = vrot.slane %v9356_v22, %v13880_v51 }
 0x557   : > { %v9386_v55 = vcombine.low %v9377_v50, %v9384_v60 }
 0x559   : > { %v9400_v24 = vrot.slane %v9386_v55, %v13880_v51 }
 0x55b   : > { %v9401_v26 = vcombine.low %v9393_v23, %v9400_v24 }
 0x55d   : > { %9422 = vst [vmem:[%s14558_s18 + $0x10] sm:$0xff] %v9401_v26 }
 0x56c   : > { %v10705_v29 = vpop.f32.mrf.mxu0 }
 0x56e   : > { %v10706_v16 = vpop.f32.mrf.mxu0  ;;  %v10727_v19 = vpop.f32.mrf.mxu1 }
 0x56f   : > { %v10707_v46 = vadd.f32 %v10706_v16, %v10705_v29 }
 0x570   : > { %v10708_v20 = vpop.f32.mrf.mxu0  ;;  %v10728_v7 = vpop.f32.mrf.mxu1 }
 0x571   : > { %v9145_v63 = vadd.f32 %v10707_v46, %v10686_v59  ;;  %v10729_v32 = vadd.f32 %v10728_v7, %v10727_v19 }
 0x572   : > { %v10709_v8 = vpop.f32.mrf.mxu0  ;;  %v10730_v30 = vpop.f32.mrf.mxu1 }
 0x573   : > { %v9185_v15 = vadd.f32 %v10729_v32, %v9145_v63 }
 0x574   : > { %v10731_v40 = vpop.f32.mrf.mxu1 }
 0x58c   : > { %v10749_v27 = vpop.f32.mrf.mxu0 }
 0x58e   : > { %v10750_v0 = vpop.f32.mrf.mxu0 }
 0x58f   : > { %v10751_v9 = vadd.f32 %v10750_v0, %v10749_v27 }
 0x590   : > { %v10752_v39 = vpop.f32.mrf.mxu0 }
 0x591   : > { %v9225_v17 = vadd.f32 %v10751_v9, %v9185_v15 }
 0x592   : > { %v10753_v49 = vpop.f32.mrf.mxu0 }
 0x593   : > { %v9408_v53 = vrot.slane %v9225_v17, %v13880_v51 }
 0x595   : > { %v9415_v38 = vrot.slane %v9408_v53, %v13880_v51 }
 0x597   : > { %9427 = vst.msk [vmem:[%s14558_s18 + $0x18] sm:$0x1] %vm9425_vm0, %v9415_v38 }
 0x598 PF: > { %s13_s12 = sadd.s32 1, %s12551_s12  }
 0x599   : > { %p10_p4 = scmp.ge.s32.totalorder %s13_s12, 4  }
 0x59b   :  { %12 = sbr.rel (!%p10_p4) target bundleno = 1 (0x1), region = 62 }

</bundles_post_ra>
